<compile_context>
chip_gen: v5e
topology: v5e:2x2
jax: 0.10.0
libtpu: 0.0.40
codegen_flags: <defaults>
</compile_context>

<pallas_src>
import functools

import jax
import jax.numpy as jnp
from jax.experimental import pallas as pl
from jax.experimental.pallas import tpu as pltpu

HID = 64     # real hidden / conv-channel width
HP = 128     # lane-padded width (one vreg of lanes)


# ------------------------------ fused kernel ------------------------------- #

def _lpn_kernel(lm_ref,                                   # SMEM (N*L,) int32
                patches_ref, conv_w_ref, conv_b_ref,
                fc_w_ref, fc_b_ref,
                wih0_ref, whh0_ref, bih0_ref, bhh0_ref,
                wih1_ref, whh1_ref, bih1_ref, bhh1_ref,
                pw_ref, pb_ref,
                avg_ref, last_ref,                        # outputs (B, C)
                feat_ref, pooled_ref,                     # VMEM scratch
                *, B, S, L):
    N = B * S

    # ---- Conv2d(3,64,k7,s2,p3) as one im2col matmul + bias + LeakyReLU(0.01).
    #      Output channels are zero-padded to 128 lanes; the feature map stays
    #      resident in VMEM (never written back to HBM).
    acc = jnp.dot(patches_ref[...], conv_w_ref[...],
                  preferred_element_type=jnp.float32) + conv_b_ref[...]
    feat_ref[...] = jnp.where(acc >= 0.0, acc, 0.01 * acc)

    # ---- Landmark gather: flat row ids live in SMEM (scalar prefetch); each
    #      landmark is one aligned (1,128) dynamic-row read from the feature
    #      map scratch into the pooled-feature scratch.
    for n in range(N):
        for l in range(L):
            row = lm_ref[n * L + l]
            pooled_ref[pl.ds(n, 1), pl.ds(l * HP, HP)] = feat_ref[pl.ds(row, 1), :]

    # ---- fc layer: (N, L*128) @ (L*128, 128)  (zero rows/cols in the padding)
    fea = jnp.dot(pooled_ref[...], fc_w_ref[...],
                  preferred_element_type=jnp.float32) + fc_b_ref[...]

    # ---- GRU layer-0 input projections hoisted out of the recurrence:
    #      one (N,128)@(128,384) matmul instead of B small ones on the
    #      serial critical path.
    gi0_all = jnp.dot(fea, wih0_ref[...],
                      preferred_element_type=jnp.float32) + bih0_ref[...]

    def gru_gates(gi, gh, h):
        # fused gates, PyTorch order r|z|n; each gate block is 128-lane aligned
        r = jax.nn.sigmoid(gi[:, 0 * HP:1 * HP] + gh[:, 0 * HP:1 * HP])
        z = jax.nn.sigmoid(gi[:, 1 * HP:2 * HP] + gh[:, 1 * HP:2 * HP])
        cand = jnp.tanh(gi[:, 2 * HP:3 * HP] + r * gh[:, 2 * HP:3 * HP])
        return (1.0 - z) * cand + z * h

    h0 = jnp.zeros((S, HP), jnp.float32)
    h1 = jnp.zeros((S, HP), jnp.float32)
    h1_steps = []
    # TODO(synk): inter-layer GRU dropout is train-only in PyTorch; the
    # inference path implemented here omits it.
    for t in range(B):        # recurrence axis = B (seq-first GRU), batch = S
        gh0 = jnp.dot(h0, whh0_ref[...],
                      preferred_element_type=jnp.float32) + bhh0_ref[...]
        h0 = gru_gates(gi0_all[t * S:(t + 1) * S, :], gh0, h0)
        gi1 = jnp.dot(h0, wih1_ref[...],
                      preferred_element_type=jnp.float32) + bih1_ref[...]
        gh1 = jnp.dot(h1, whh1_ref[...],
                      preferred_element_type=jnp.float32) + bhh1_ref[...]
        h1 = gru_gates(gi1, gh1, h1)
        h1_steps.append(h1)

    # ---- Batched projection over all (t, s) rows, then mean / last over S
    #      with a single full-(B,C) store per output.
    h1_all = jnp.concatenate(h1_steps, axis=0)                         # (B*S, 128)
    logits = jnp.dot(h1_all, pw_ref[...],
                     preferred_element_type=jnp.float32) + pb_ref[...]  # (B*S, C)
    inv_s = 1.0 / S
    avg_rows, last_rows = [], []
    for t in range(B):
        lt = logits[t * S:(t + 1) * S, :]
        avg_rows.append(jnp.sum(lt, axis=0, keepdims=True) * inv_s)
        last_rows.append(lt[S - 1:S, :])
    avg_ref[...] = jnp.concatenate(avg_rows, axis=0).astype(avg_ref.dtype)
    last_ref[...] = jnp.concatenate(last_rows, axis=0).astype(last_ref.dtype)


def lpn_fused(patches, lm_flat, params, *, B, S, L):
    N = B * S
    M = patches.shape[0]                     # N * Ho * Wo
    C = params["proj_w"].shape[1]

    weights = (params["conv_w"], params["conv_b"],
               params["fc_w"], params["fc_b"],
               params["gru0_wih"], params["gru0_whh"],
               params["gru0_bih"], params["gru0_bhh"],
               params["gru1_wih"], params["gru1_whh"],
               params["gru1_bih"], params["gru1_bhh"],
               params["proj_w"], params["proj_b"])
    args = (patches,) + weights

    # Single grid step, everything VMEM-resident (<4 MiB total); index maps
    # receive the scalar-prefetch ref as an extra trailing argument.
    in_specs = [pl.BlockSpec(a.shape, lambda i, lm, nd=a.ndim: (0,) * nd)
                for a in args]
    out_spec = pl.BlockSpec((B, C), lambda i, lm: (0, 0))

    return pl.pallas_call(
        functools.partial(_lpn_kernel, B=B, S=S, L=L),
        out_shape=(jax.ShapeDtypeStruct((B, C), jnp.float32),
                   jax.ShapeDtypeStruct((B, C), jnp.float32)),
        grid_spec=pltpu.PrefetchScalarGridSpec(
            num_scalar_prefetch=1,
            grid=(1,),
            in_specs=in_specs,
            out_specs=[out_spec, out_spec],
            scratch_shapes=[pltpu.VMEM((M, HP), jnp.float32),        # feature map
                            pltpu.VMEM((N, L * HP), jnp.float32)]),  # pooled feats
        compiler_params=pltpu.CompilerParams(
            dimension_semantics=("arbitrary",)),
    )(lm_flat, *args)


# ------------------------------ model wrapper ------------------------------ #

def init_params(key, num_class):
    L = 20
    ks = jax.random.split(key, 8)

    def u(k, shape, fan_in):
        s = 1.0 / (fan_in ** 0.5)
        return jax.random.uniform(k, shape, jnp.float32, -s, s)

    def pad_cols(w, width):
        return jnp.pad(w, ((0, 0), (0, width - w.shape[1])))

    def pad_rows(w, rows):
        return jnp.pad(w, ((0, rows - w.shape[0]), (0, 0)))

    def gru_layer(k):
        k1, k2, k3, k4 = jax.random.split(k, 4)

        def expand_w(w):               # (HID, 3*HID) -> (HP, 3*HP), r|z|n blocks
            w3 = w.reshape(HID, 3, HID)
            w3 = jnp.pad(w3, ((0, HP - HID), (0, 0), (0, HP - HID)))
            return w3.reshape(HP, 3 * HP)

        def expand_b(b):               # (1, 3*HID) -> (1, 3*HP)
            b3 = b.reshape(1, 3, HID)
            b3 = jnp.pad(b3, ((0, 0), (0, 0), (0, HP - HID)))
            return b3.reshape(1, 3 * HP)

        return (expand_w(u(k1, (HID, 3 * HID), HID)),
                expand_w(u(k2, (HID, 3 * HID), HID)),
                expand_b(u(k3, (1, 3 * HID), HID)),
                expand_b(u(k4, (1, 3 * HID), HID)))

    g0 = gru_layer(ks[4])
    g1 = gru_layer(ks[5])

    # fc: real (L*64, 64) with rows ordered (landmark, channel); each landmark's
    # 64 channel rows and the 64 output columns are zero-padded to 128.
    fc_w = u(ks[2], (L * HID, HID), L * HID).reshape(L, HID, HID)
    fc_w = jnp.pad(fc_w, ((0, 0), (0, HP - HID), (0, HP - HID))).reshape(L * HP, HP)

    return {
        # Conv2d(3,64,k7) as im2col weight (147, 64), zero-padded to 128 out-chs
        "conv_w": pad_cols(u(ks[0], (3 * 7 * 7, HID), 3 * 7 * 7), HP),
        "conv_b": pad_cols(u(ks[1], (1, HID), 3 * 7 * 7), HP),
        "fc_w": fc_w,
        "fc_b": pad_cols(u(ks[3], (1, HID), L * HID), HP),
        # GRU layers: gate-fused weights, gate order r|z|n, 128-lane gate blocks
        "gru0_wih": g0[0], "gru0_whh": g0[1], "gru0_bih": g0[2], "gru0_bhh": g0[3],
        "gru1_wih": g1[0], "gru1_whh": g1[1], "gru1_bih": g1[2], "gru1_bhh": g1[3],
        # Linear(64, num_class): input rows zero-padded to the 128-wide hidden
        "proj_w": pad_rows(u(ks[6], (HID, num_class), HID), HP),
        "proj_b": u(ks[7], (1, num_class), HID),
    }


def lpn_forward(params, input_img, input_landmark):
    B, S, C_in, H, W = input_img.shape
    N = B * S
    Ho, Wo = H // 2, W // 2
    L = input_landmark.shape[2]

    # im2col patch construction (feature index = c*49 + kh*7 + kw, matching a
    # flattened PyTorch [64,3,7,7] conv weight).
    # TODO(synk): building the patches inside the kernel from the (N,22,22,3)
    # NHWC tensor was evaluated but its 3-wide minor dim lowers to heavily
    # padded VMEM tiles / relayout-heavy strided slices in Mosaic, so the patch
    # construction stays in XLA (it fuses into one copy); everything downstream
    # of it is a single fused Pallas kernel.
    x = input_img.reshape(N, C_in, H, W)
    x_nhwc = jnp.transpose(x, (0, 2, 3, 1))
    x_pad = jnp.pad(x_nhwc, ((0, 0), (3, 3), (3, 3), (0, 0)))
    cols = []
    for kh in range(7):
        for kw in range(7):
            cols.append(x_pad[:, kh:kh + 2 * Ho:2, kw:kw + 2 * Wo:2, :])
    patches = jnp.stack(cols, axis=-1)                      # (N, Ho, Wo, 3, 49)
    patches = patches.reshape(N * Ho * Wo, C_in * 7 * 7)    # (N*Ho*Wo, 147)

    # Flatten landmark (row, col) pairs into feature-map row ids; they go to
    # SMEM via scalar prefetch and drive the in-kernel gather.
    lm = input_landmark.reshape(N, L, 2).astype(jnp.int32)
    base = (jnp.arange(N, dtype=jnp.int32) * (Ho * Wo))[:, None]
    lm_flat = (base + lm[:, :, 0] * Wo + lm[:, :, 1]).reshape(N * L)

    return lpn_fused(patches, lm_flat, params, B=B, S=S, L=L)


# ---------------------------------- main ----------------------------------- #

if __name__ == "__main__":
    key = jax.random.PRNGKey(0)
    kp, ki, kl = jax.random.split(key, 3)

    num_class = 5
    B, S, H, W = 2, 4, 16, 16
    num_landmark = 20   # fc_layer is Linear(20*64, 64) => 20 landmarks

    params = init_params(kp, num_class)
    input_img = jax.random.normal(ki, (B, S, 3, H, W), jnp.float32)
    input_landmark = jax.random.randint(
        kl, (B, S, num_landmark, 2), 0, H // 2, jnp.int32)

    fwd = jax.jit(functools.partial(lpn_forward, params))
    avg_logits, last_logits = fwd(input_img, input_landmark)
    jax.block_until_ready((avg_logits, last_logits))

    assert avg_logits.shape == (B, num_class)
    assert last_logits.shape == (B, num_class)
    print("KERNEL_OK")
</pallas_src>

<mosaic_0001>
module attributes {stable_mosaic.version = 11 : i64} {
  func.func @_lpn_kernel(%arg0: i32, %arg1: memref<160xi32, #tpu.memory_space<smem>>, %arg2: memref<512x147xf32, #tpu.memory_space<vmem>>, %arg3: memref<147x128xf32, #tpu.memory_space<vmem>>, %arg4: memref<1x128xf32, #tpu.memory_space<vmem>>, %arg5: memref<2560x128xf32, #tpu.memory_space<vmem>>, %arg6: memref<1x128xf32, #tpu.memory_space<vmem>>, %arg7: memref<128x384xf32, #tpu.memory_space<vmem>>, %arg8: memref<128x384xf32, #tpu.memory_space<vmem>>, %arg9: memref<1x384xf32, #tpu.memory_space<vmem>>, %arg10: memref<1x384xf32, #tpu.memory_space<vmem>>, %arg11: memref<128x384xf32, #tpu.memory_space<vmem>>, %arg12: memref<128x384xf32, #tpu.memory_space<vmem>>, %arg13: memref<1x384xf32, #tpu.memory_space<vmem>>, %arg14: memref<1x384xf32, #tpu.memory_space<vmem>>, %arg15: memref<128x5xf32, #tpu.memory_space<vmem>>, %arg16: memref<1x5xf32, #tpu.memory_space<vmem>>, %arg17: memref<2x5xf32, #tpu.memory_space<vmem>>, %arg18: memref<2x5xf32, #tpu.memory_space<vmem>>, %arg19: memref<512x128xf32, #tpu.memory_space<vmem>>, %arg20: memref<8x2560xf32, #tpu.memory_space<vmem>>) attributes {dimension_semantics = [#tpu.dimension_semantics<arbitrary>], iteration_bounds = array<i64: 1>, scalar_prefetch = 1 : i64, scratch_operands = 2 : i64, tpu.core_type = #tpu.core_type<tc>, window_params = [{pipeline_mode = #tpu.pipeline_mode<synchronous>, transform_indices = @transform_0, window_bounds = array<i64: 512, 147>}, {pipeline_mode = #tpu.pipeline_mode<synchronous>, transform_indices = @transform_1, window_bounds = array<i64: 147, 128>}, {pipeline_mode = #tpu.pipeline_mode<synchronous>, transform_indices = @transform_2, window_bounds = array<i64: 1, 128>}, {pipeline_mode = #tpu.pipeline_mode<synchronous>, transform_indices = @transform_3, window_bounds = array<i64: 2560, 128>}, {pipeline_mode = #tpu.pipeline_mode<synchronous>, transform_indices = @transform_4, window_bounds = array<i64: 1, 128>}, {pipeline_mode = #tpu.pipeline_mode<synchronous>, transform_indices = @transform_5, window_bounds = array<i64: 128, 384>}, {pipeline_mode = #tpu.pipeline_mode<synchronous>, transform_indices = @transform_6, window_bounds = array<i64: 128, 384>}, {pipeline_mode = #tpu.pipeline_mode<synchronous>, transform_indices = @transform_7, window_bounds = array<i64: 1, 384>}, {pipeline_mode = #tpu.pipeline_mode<synchronous>, transform_indices = @transform_8, window_bounds = array<i64: 1, 384>}, {pipeline_mode = #tpu.pipeline_mode<synchronous>, transform_indices = @transform_9, window_bounds = array<i64: 128, 384>}, {pipeline_mode = #tpu.pipeline_mode<synchronous>, transform_indices = @transform_10, window_bounds = array<i64: 128, 384>}, {pipeline_mode = #tpu.pipeline_mode<synchronous>, transform_indices = @transform_11, window_bounds = array<i64: 1, 384>}, {pipeline_mode = #tpu.pipeline_mode<synchronous>, transform_indices = @transform_12, window_bounds = array<i64: 1, 384>}, {pipeline_mode = #tpu.pipeline_mode<synchronous>, transform_indices = @transform_13, window_bounds = array<i64: 128, 5>}, {pipeline_mode = #tpu.pipeline_mode<synchronous>, transform_indices = @transform_14, window_bounds = array<i64: 1, 5>}, {pipeline_mode = #tpu.pipeline_mode<synchronous>, transform_indices = @transform_15, window_bounds = array<i64: 2, 5>}, {pipeline_mode = #tpu.pipeline_mode<synchronous>, transform_indices = @transform_16, window_bounds = array<i64: 2, 5>}]} {
    %c0 = arith.constant 0 : index
    %c0_0 = arith.constant 0 : index
    %0 = vector.load %arg2[%c0, %c0_0] : memref<512x147xf32, #tpu.memory_space<vmem>>, vector<512x147xf32>
    %c0_1 = arith.constant 0 : index
    %c0_2 = arith.constant 0 : index
    %1 = vector.load %arg3[%c0_1, %c0_2] : memref<147x128xf32, #tpu.memory_space<vmem>>, vector<147x128xf32>
    %cst = arith.constant dense<0.000000e+00> : vector<512x128xf32>
    %2 = tpu.matmul %0, %1, %cst {dimension_numbers = #tpu.dot_dimension_numbers<[1], [0], [0], [1], [0, 0, 1, 1], [], []>} : vector<512x147xf32>, vector<147x128xf32>, vector<512x128xf32> -> vector<512x128xf32>
    %c0_3 = arith.constant 0 : index
    %c0_4 = arith.constant 0 : index
    %3 = vector.load %arg4[%c0_3, %c0_4] : memref<1x128xf32, #tpu.memory_space<vmem>>, vector<1x128xf32>
    %4 = vector.broadcast %3 : vector<1x128xf32> to vector<512x128xf32>
    %5 = arith.addf %2, %4 : vector<512x128xf32>
    %cst_5 = arith.constant 0.000000e+00 : f32
    %6 = vector.broadcast %cst_5 : f32 to vector<512x128xf32>
    %7 = arith.cmpf oge, %5, %6 : vector<512x128xf32>
    %cst_6 = arith.constant 0.00999999977 : f32
    %8 = vector.broadcast %cst_6 : f32 to vector<512x128xf32>
    %9 = arith.mulf %8, %5 : vector<512x128xf32>
    %10 = arith.select %7, %5, %9 : vector<512x128xi1>, vector<512x128xf32>
    %c0_7 = arith.constant 0 : index
    %c0_8 = arith.constant 0 : index
    %11 = vector.load %arg19[%c0_7, %c0_8] : memref<512x128xf32, #tpu.memory_space<vmem>>, vector<512x128xf32>
    tpu.vector_store %arg19[%c0_7, %c0_8], %10 {strides = array<i32>} : memref<512x128xf32, #tpu.memory_space<vmem>>, vector<512x128xf32>,
    %c0_9 = arith.constant 0 : index
    %12 = memref.load %arg1[%c0_9] : memref<160xi32, #tpu.memory_space<smem>>
    %13 = arith.index_cast %12 : i32 to index
    %c0_10 = arith.constant 0 : index
    %14 = vector.load %arg19[%13, %c0_10] : memref<512x128xf32, #tpu.memory_space<vmem>>, vector<1x128xf32>
    %c0_11 = arith.constant 0 : index
    %c0_12 = arith.constant 0 : index
    %15 = vector.load %arg20[%c0_11, %c0_12] : memref<8x2560xf32, #tpu.memory_space<vmem>>, vector<1x128xf32>
    tpu.vector_store %arg20[%c0_11, %c0_12], %14 {strides = array<i32>} : memref<8x2560xf32, #tpu.memory_space<vmem>>, vector<1x128xf32>,
    %c1 = arith.constant 1 : index
    %16 = memref.load %arg1[%c1] : memref<160xi32, #tpu.memory_space<smem>>
    %17 = arith.index_cast %16 : i32 to index
    %c0_13 = arith.constant 0 : index
    %18 = vector.load %arg19[%17, %c0_13] : memref<512x128xf32, #tpu.memory_space<vmem>>, vector<1x128xf32>
    %c0_14 = arith.constant 0 : index
    %c128 = arith.constant 128 : index
    %19 = vector.load %arg20[%c0_14, %c128] : memref<8x2560xf32, #tpu.memory_space<vmem>>, vector<1x128xf32>
    tpu.vector_store %arg20[%c0_14, %c128], %18 {strides = array<i32>} : memref<8x2560xf32, #tpu.memory_space<vmem>>, vector<1x128xf32>,
    %c2 = arith.constant 2 : index
    %20 = memref.load %arg1[%c2] : memref<160xi32, #tpu.memory_space<smem>>
    %21 = arith.index_cast %20 : i32 to index
    %c0_15 = arith.constant 0 : index
    %22 = vector.load %arg19[%21, %c0_15] : memref<512x128xf32, #tpu.memory_space<vmem>>, vector<1x128xf32>
    %c0_16 = arith.constant 0 : index
    %c256 = arith.constant 256 : index
    %23 = vector.load %arg20[%c0_16, %c256] : memref<8x2560xf32, #tpu.memory_space<vmem>>, vector<1x128xf32>
    tpu.vector_store %arg20[%c0_16, %c256], %22 {strides = array<i32>} : memref<8x2560xf32, #tpu.memory_space<vmem>>, vector<1x128xf32>,
    %c3 = arith.constant 3 : index
    %24 = memref.load %arg1[%c3] : memref<160xi32, #tpu.memory_space<smem>>
    %25 = arith.index_cast %24 : i32 to index
    %c0_17 = arith.constant 0 : index
    %26 = vector.load %arg19[%25, %c0_17] : memref<512x128xf32, #tpu.memory_space<vmem>>, vector<1x128xf32>
    %c0_18 = arith.constant 0 : index
    %c384 = arith.constant 384 : index
    %27 = vector.load %arg20[%c0_18, %c384] : memref<8x2560xf32, #tpu.memory_space<vmem>>, vector<1x128xf32>
    tpu.vector_store %arg20[%c0_18, %c384], %26 {strides = array<i32>} : memref<8x2560xf32, #tpu.memory_space<vmem>>, vector<1x128xf32>,
    %c4 = arith.constant 4 : index
    %28 = memref.load %arg1[%c4] : memref<160xi32, #tpu.memory_space<smem>>
    %29 = arith.index_cast %28 : i32 to index
    %c0_19 = arith.constant 0 : index
    %30 = vector.load %arg19[%29, %c0_19] : memref<512x128xf32, #tpu.memory_space<vmem>>, vector<1x128xf32>
    %c0_20 = arith.constant 0 : index
    %c512 = arith.constant 512 : index
    %31 = vector.load %arg20[%c0_20, %c512] : memref<8x2560xf32, #tpu.memory_space<vmem>>, vector<1x128xf32>
    tpu.vector_store %arg20[%c0_20, %c512], %30 {strides = array<i32>} : memref<8x2560xf32, #tpu.memory_space<vmem>>, vector<1x128xf32>,
    %c5 = arith.constant 5 : index
    %32 = memref.load %arg1[%c5] : memref<160xi32, #tpu.memory_space<smem>>
    %33 = arith.index_cast %32 : i32 to index
    %c0_21 = arith.constant 0 : index
    %34 = vector.load %arg19[%33, %c0_21] : memref<512x128xf32, #tpu.memory_space<vmem>>, vector<1x128xf32>
    %c0_22 = arith.constant 0 : index
    %c640 = arith.constant 640 : index
    %35 = vector.load %arg20[%c0_22, %c640] : memref<8x2560xf32, #tpu.memory_space<vmem>>, vector<1x128xf32>
    tpu.vector_store %arg20[%c0_22, %c640], %34 {strides = array<i32>} : memref<8x2560xf32, #tpu.memory_space<vmem>>, vector<1x128xf32>,
    %c6 = arith.constant 6 : index
    %36 = memref.load %arg1[%c6] : memref<160xi32, #tpu.memory_space<smem>>
    %37 = arith.index_cast %36 : i32 to index
    %c0_23 = arith.constant 0 : index
    %38 = vector.load %arg19[%37, %c0_23] : memref<512x128xf32, #tpu.memory_space<vmem>>, vector<1x128xf32>
    %c0_24 = arith.constant 0 : index
    %c768 = arith.constant 768 : index
    %39 = vector.load %arg20[%c0_24, %c768] : memref<8x2560xf32, #tpu.memory_space<vmem>>, vector<1x128xf32>
    tpu.vector_store %arg20[%c0_24, %c768], %38 {strides = array<i32>} : memref<8x2560xf32, #tpu.memory_space<vmem>>, vector<1x128xf32>,
    %c7 = arith.constant 7 : index
    %40 = memref.load %arg1[%c7] : memref<160xi32, #tpu.memory_space<smem>>
    %41 = arith.index_cast %40 : i32 to index
    %c0_25 = arith.constant 0 : index
    %42 = vector.load %arg19[%41, %c0_25] : memref<512x128xf32, #tpu.memory_space<vmem>>, vector<1x128xf32>
    %c0_26 = arith.constant 0 : index
    %c896 = arith.constant 896 : index
    %43 = vector.load %arg20[%c0_26, %c896] : memref<8x2560xf32, #tpu.memory_space<vmem>>, vector<1x128xf32>
    tpu.vector_store %arg20[%c0_26, %c896], %42 {strides = array<i32>} : memref<8x2560xf32, #tpu.memory_space<vmem>>, vector<1x128xf32>,
    %c8 = arith.constant 8 : index
    %44 = memref.load %arg1[%c8] : memref<160xi32, #tpu.memory_space<smem>>
    %45 = arith.index_cast %44 : i32 to index
    %c0_27 = arith.constant 0 : index
    %46 = vector.load %arg19[%45, %c0_27] : memref<512x128xf32, #tpu.memory_space<vmem>>, vector<1x128xf32>
    %c0_28 = arith.constant 0 : index
    %c1024 = arith.constant 1024 : index
    %47 = vector.load %arg20[%c0_28, %c1024] : memref<8x2560xf32, #tpu.memory_space<vmem>>, vector<1x128xf32>
    tpu.vector_store %arg20[%c0_28, %c1024], %46 {strides = array<i32>} : memref<8x2560xf32, #tpu.memory_space<vmem>>, vector<1x128xf32>,
    %c9 = arith.constant 9 : index
    %48 = memref.load %arg1[%c9] : memref<160xi32, #tpu.memory_space<smem>>
    %49 = arith.index_cast %48 : i32 to index
    %c0_29 = arith.constant 0 : index
    %50 = vector.load %arg19[%49, %c0_29] : memref<512x128xf32, #tpu.memory_space<vmem>>, vector<1x128xf32>
    %c0_30 = arith.constant 0 : index
    %c1152 = arith.constant 1152 : index
    %51 = vector.load %arg20[%c0_30, %c1152] : memref<8x2560xf32, #tpu.memory_space<vmem>>, vector<1x128xf32>
    tpu.vector_store %arg20[%c0_30, %c1152], %50 {strides = array<i32>} : memref<8x2560xf32, #tpu.memory_space<vmem>>, vector<1x128xf32>,
    %c10 = arith.constant 10 : index
    %52 = memref.load %arg1[%c10] : memref<160xi32, #tpu.memory_space<smem>>
    %53 = arith.index_cast %52 : i32 to index
    %c0_31 = arith.constant 0 : index
    %54 = vector.load %arg19[%53, %c0_31] : memref<512x128xf32, #tpu.memory_space<vmem>>, vector<1x128xf32>
    %c0_32 = arith.constant 0 : index
    %c1280 = arith.constant 1280 : index
    %55 = vector.load %arg20[%c0_32, %c1280] : memref<8x2560xf32, #tpu.memory_space<vmem>>, vector<1x128xf32>
    tpu.vector_store %arg20[%c0_32, %c1280], %54 {strides = array<i32>} : memref<8x2560xf32, #tpu.memory_space<vmem>>, vector<1x128xf32>,
    %c11 = arith.constant 11 : index
    %56 = memref.load %arg1[%c11] : memref<160xi32, #tpu.memory_space<smem>>
    %57 = arith.index_cast %56 : i32 to index
    %c0_33 = arith.constant 0 : index
    %58 = vector.load %arg19[%57, %c0_33] : memref<512x128xf32, #tpu.memory_space<vmem>>, vector<1x128xf32>
    %c0_34 = arith.constant 0 : index
    %c1408 = arith.constant 1408 : index
    %59 = vector.load %arg20[%c0_34, %c1408] : memref<8x2560xf32, #tpu.memory_space<vmem>>, vector<1x128xf32>
    tpu.vector_store %arg20[%c0_34, %c1408], %58 {strides = array<i32>} : memref<8x2560xf32, #tpu.memory_space<vmem>>, vector<1x128xf32>,
    %c12 = arith.constant 12 : index
    %60 = memref.load %arg1[%c12] : memref<160xi32, #tpu.memory_space<smem>>
    %61 = arith.index_cast %60 : i32 to index
    %c0_35 = arith.constant 0 : index
    %62 = vector.load %arg19[%61, %c0_35] : memref<512x128xf32, #tpu.memory_space<vmem>>, vector<1x128xf32>
    %c0_36 = arith.constant 0 : index
    %c1536 = arith.constant 1536 : index
    %63 = vector.load %arg20[%c0_36, %c1536] : memref<8x2560xf32, #tpu.memory_space<vmem>>, vector<1x128xf32>
    tpu.vector_store %arg20[%c0_36, %c1536], %62 {strides = array<i32>} : memref<8x2560xf32, #tpu.memory_space<vmem>>, vector<1x128xf32>,
    %c13 = arith.constant 13 : index
    %64 = memref.load %arg1[%c13] : memref<160xi32, #tpu.memory_space<smem>>
    %65 = arith.index_cast %64 : i32 to index
    %c0_37 = arith.constant 0 : index
    %66 = vector.load %arg19[%65, %c0_37] : memref<512x128xf32, #tpu.memory_space<vmem>>, vector<1x128xf32>
    %c0_38 = arith.constant 0 : index
    %c1664 = arith.constant 1664 : index
    %67 = vector.load %arg20[%c0_38, %c1664] : memref<8x2560xf32, #tpu.memory_space<vmem>>, vector<1x128xf32>
    tpu.vector_store %arg20[%c0_38, %c1664], %66 {strides = array<i32>} : memref<8x2560xf32, #tpu.memory_space<vmem>>, vector<1x128xf32>,
    %c14 = arith.constant 14 : index
    %68 = memref.load %arg1[%c14] : memref<160xi32, #tpu.memory_space<smem>>
    %69 = arith.index_cast %68 : i32 to index
    %c0_39 = arith.constant 0 : index
    %70 = vector.load %arg19[%69, %c0_39] : memref<512x128xf32, #tpu.memory_space<vmem>>, vector<1x128xf32>
    %c0_40 = arith.constant 0 : index
    %c1792 = arith.constant 1792 : index
    %71 = vector.load %arg20[%c0_40, %c1792] : memref<8x2560xf32, #tpu.memory_space<vmem>>, vector<1x128xf32>
    tpu.vector_store %arg20[%c0_40, %c1792], %70 {strides = array<i32>} : memref<8x2560xf32, #tpu.memory_space<vmem>>, vector<1x128xf32>,
    %c15 = arith.constant 15 : index
    %72 = memref.load %arg1[%c15] : memref<160xi32, #tpu.memory_space<smem>>
    %73 = arith.index_cast %72 : i32 to index
    %c0_41 = arith.constant 0 : index
    %74 = vector.load %arg19[%73, %c0_41] : memref<512x128xf32, #tpu.memory_space<vmem>>, vector<1x128xf32>
    %c0_42 = arith.constant 0 : index
    %c1920 = arith.constant 1920 : index
    %75 = vector.load %arg20[%c0_42, %c1920] : memref<8x2560xf32, #tpu.memory_space<vmem>>, vector<1x128xf32>
    tpu.vector_store %arg20[%c0_42, %c1920], %74 {strides = array<i32>} : memref<8x2560xf32, #tpu.memory_space<vmem>>, vector<1x128xf32>,
    %c16 = arith.constant 16 : index
    %76 = memref.load %arg1[%c16] : memref<160xi32, #tpu.memory_space<smem>>
    %77 = arith.index_cast %76 : i32 to index
    %c0_43 = arith.constant 0 : index
    %78 = vector.load %arg19[%77, %c0_43] : memref<512x128xf32, #tpu.memory_space<vmem>>, vector<1x128xf32>
    %c0_44 = arith.constant 0 : index
    %c2048 = arith.constant 2048 : index
    %79 = vector.load %arg20[%c0_44, %c2048] : memref<8x2560xf32, #tpu.memory_space<vmem>>, vector<1x128xf32>
    tpu.vector_store %arg20[%c0_44, %c2048], %78 {strides = array<i32>} : memref<8x2560xf32, #tpu.memory_space<vmem>>, vector<1x128xf32>,
    %c17 = arith.constant 17 : index
    %80 = memref.load %arg1[%c17] : memref<160xi32, #tpu.memory_space<smem>>
    %81 = arith.index_cast %80 : i32 to index
    %c0_45 = arith.constant 0 : index
    %82 = vector.load %arg19[%81, %c0_45] : memref<512x128xf32, #tpu.memory_space<vmem>>, vector<1x128xf32>
    %c0_46 = arith.constant 0 : index
    %c2176 = arith.constant 2176 : index
    %83 = vector.load %arg20[%c0_46, %c2176] : memref<8x2560xf32, #tpu.memory_space<vmem>>, vector<1x128xf32>
    tpu.vector_store %arg20[%c0_46, %c2176], %82 {strides = array<i32>} : memref<8x2560xf32, #tpu.memory_space<vmem>>, vector<1x128xf32>,
    %c18 = arith.constant 18 : index
    %84 = memref.load %arg1[%c18] : memref<160xi32, #tpu.memory_space<smem>>
    %85 = arith.index_cast %84 : i32 to index
    %c0_47 = arith.constant 0 : index
    %86 = vector.load %arg19[%85, %c0_47] : memref<512x128xf32, #tpu.memory_space<vmem>>, vector<1x128xf32>
    %c0_48 = arith.constant 0 : index
    %c2304 = arith.constant 2304 : index
    %87 = vector.load %arg20[%c0_48, %c2304] : memref<8x2560xf32, #tpu.memory_space<vmem>>, vector<1x128xf32>
    tpu.vector_store %arg20[%c0_48, %c2304], %86 {strides = array<i32>} : memref<8x2560xf32, #tpu.memory_space<vmem>>, vector<1x128xf32>,
    %c19 = arith.constant 19 : index
    %88 = memref.load %arg1[%c19] : memref<160xi32, #tpu.memory_space<smem>>
    %89 = arith.index_cast %88 : i32 to index
    %c0_49 = arith.constant 0 : index
    %90 = vector.load %arg19[%89, %c0_49] : memref<512x128xf32, #tpu.memory_space<vmem>>, vector<1x128xf32>
    %c0_50 = arith.constant 0 : index
    %c2432 = arith.constant 2432 : index
    %91 = vector.load %arg20[%c0_50, %c2432] : memref<8x2560xf32, #tpu.memory_space<vmem>>, vector<1x128xf32>
    tpu.vector_store %arg20[%c0_50, %c2432], %90 {strides = array<i32>} : memref<8x2560xf32, #tpu.memory_space<vmem>>, vector<1x128xf32>,
    %c20 = arith.constant 20 : index
    %92 = memref.load %arg1[%c20] : memref<160xi32, #tpu.memory_space<smem>>
    %93 = arith.index_cast %92 : i32 to index
    %c0_51 = arith.constant 0 : index
    %94 = vector.load %arg19[%93, %c0_51] : memref<512x128xf32, #tpu.memory_space<vmem>>, vector<1x128xf32>
    %c1_52 = arith.constant 1 : index
    %c0_53 = arith.constant 0 : index
    %95 = vector.load %arg20[%c1_52, %c0_53] : memref<8x2560xf32, #tpu.memory_space<vmem>>, vector<1x128xf32>
    tpu.vector_store %arg20[%c1_52, %c0_53], %94 {strides = array<i32>} : memref<8x2560xf32, #tpu.memory_space<vmem>>, vector<1x128xf32>,
    %c21 = arith.constant 21 : index
    %96 = memref.load %arg1[%c21] : memref<160xi32, #tpu.memory_space<smem>>
    %97 = arith.index_cast %96 : i32 to index
    %c0_54 = arith.constant 0 : index
    %98 = vector.load %arg19[%97, %c0_54] : memref<512x128xf32, #tpu.memory_space<vmem>>, vector<1x128xf32>
    %c1_55 = arith.constant 1 : index
    %c128_56 = arith.constant 128 : index
    %99 = vector.load %arg20[%c1_55, %c128_56] : memref<8x2560xf32, #tpu.memory_space<vmem>>, vector<1x128xf32>
    tpu.vector_store %arg20[%c1_55, %c128_56], %98 {strides = array<i32>} : memref<8x2560xf32, #tpu.memory_space<vmem>>, vector<1x128xf32>,
    %c22 = arith.constant 22 : index
    %100 = memref.load %arg1[%c22] : memref<160xi32, #tpu.memory_space<smem>>
    %101 = arith.index_cast %100 : i32 to index
    %c0_57 = arith.constant 0 : index
    %102 = vector.load %arg19[%101, %c0_57] : memref<512x128xf32, #tpu.memory_space<vmem>>, vector<1x128xf32>
    %c1_58 = arith.constant 1 : index
    %c256_59 = arith.constant 256 : index
    %103 = vector.load %arg20[%c1_58, %c256_59] : memref<8x2560xf32, #tpu.memory_space<vmem>>, vector<1x128xf32>
    tpu.vector_store %arg20[%c1_58, %c256_59], %102 {strides = array<i32>} : memref<8x2560xf32, #tpu.memory_space<vmem>>, vector<1x128xf32>,
    %c23 = arith.constant 23 : index
    %104 = memref.load %arg1[%c23] : memref<160xi32, #tpu.memory_space<smem>>
    %105 = arith.index_cast %104 : i32 to index
    %c0_60 = arith.constant 0 : index
    %106 = vector.load %arg19[%105, %c0_60] : memref<512x128xf32, #tpu.memory_space<vmem>>, vector<1x128xf32>
    %c1_61 = arith.constant 1 : index
    %c384_62 = arith.constant 384 : index
    %107 = vector.load %arg20[%c1_61, %c384_62] : memref<8x2560xf32, #tpu.memory_space<vmem>>, vector<1x128xf32>
    tpu.vector_store %arg20[%c1_61, %c384_62], %106 {strides = array<i32>} : memref<8x2560xf32, #tpu.memory_space<vmem>>, vector<1x128xf32>,
    %c24 = arith.constant 24 : index
    %108 = memref.load %arg1[%c24] : memref<160xi32, #tpu.memory_space<smem>>
    %109 = arith.index_cast %108 : i32 to index
    %c0_63 = arith.constant 0 : index
    %110 = vector.load %arg19[%109, %c0_63] : memref<512x128xf32, #tpu.memory_space<vmem>>, vector<1x128xf32>
    %c1_64 = arith.constant 1 : index
    %c512_65 = arith.constant 512 : index
    %111 = vector.load %arg20[%c1_64, %c512_65] : memref<8x2560xf32, #tpu.memory_space<vmem>>, vector<1x128xf32>
    tpu.vector_store %arg20[%c1_64, %c512_65], %110 {strides = array<i32>} : memref<8x2560xf32, #tpu.memory_space<vmem>>, vector<1x128xf32>,
    %c25 = arith.constant 25 : index
    %112 = memref.load %arg1[%c25] : memref<160xi32, #tpu.memory_space<smem>>
    %113 = arith.index_cast %112 : i32 to index
    %c0_66 = arith.constant 0 : index
    %114 = vector.load %arg19[%113, %c0_66] : memref<512x128xf32, #tpu.memory_space<vmem>>, vector<1x128xf32>
    %c1_67 = arith.constant 1 : index
    %c640_68 = arith.constant 640 : index
    %115 = vector.load %arg20[%c1_67, %c640_68] : memref<8x2560xf32, #tpu.memory_space<vmem>>, vector<1x128xf32>
    tpu.vector_store %arg20[%c1_67, %c640_68], %114 {strides = array<i32>} : memref<8x2560xf32, #tpu.memory_space<vmem>>, vector<1x128xf32>,
    %c26 = arith.constant 26 : index
    %116 = memref.load %arg1[%c26] : memref<160xi32, #tpu.memory_space<smem>>
    %117 = arith.index_cast %116 : i32 to index
    %c0_69 = arith.constant 0 : index
    %118 = vector.load %arg19[%117, %c0_69] : memref<512x128xf32, #tpu.memory_space<vmem>>, vector<1x128xf32>
    %c1_70 = arith.constant 1 : index
    %c768_71 = arith.constant 768 : index
    %119 = vector.load %arg20[%c1_70, %c768_71] : memref<8x2560xf32, #tpu.memory_space<vmem>>, vector<1x128xf32>
    tpu.vector_store %arg20[%c1_70, %c768_71], %118 {strides = array<i32>} : memref<8x2560xf32, #tpu.memory_space<vmem>>, vector<1x128xf32>,
    %c27 = arith.constant 27 : index
    %120 = memref.load %arg1[%c27] : memref<160xi32, #tpu.memory_space<smem>>
    %121 = arith.index_cast %120 : i32 to index
    %c0_72 = arith.constant 0 : index
    %122 = vector.load %arg19[%121, %c0_72] : memref<512x128xf32, #tpu.memory_space<vmem>>, vector<1x128xf32>
    %c1_73 = arith.constant 1 : index
    %c896_74 = arith.constant 896 : index
    %123 = vector.load %arg20[%c1_73, %c896_74] : memref<8x2560xf32, #tpu.memory_space<vmem>>, vector<1x128xf32>
    tpu.vector_store %arg20[%c1_73, %c896_74], %122 {strides = array<i32>} : memref<8x2560xf32, #tpu.memory_space<vmem>>, vector<1x128xf32>,
    %c28 = arith.constant 28 : index
    %124 = memref.load %arg1[%c28] : memref<160xi32, #tpu.memory_space<smem>>
    %125 = arith.index_cast %124 : i32 to index
    %c0_75 = arith.constant 0 : index
    %126 = vector.load %arg19[%125, %c0_75] : memref<512x128xf32, #tpu.memory_space<vmem>>, vector<1x128xf32>
    %c1_76 = arith.constant 1 : index
    %c1024_77 = arith.constant 1024 : index
    %127 = vector.load %arg20[%c1_76, %c1024_77] : memref<8x2560xf32, #tpu.memory_space<vmem>>, vector<1x128xf32>
    tpu.vector_store %arg20[%c1_76, %c1024_77], %126 {strides = array<i32>} : memref<8x2560xf32, #tpu.memory_space<vmem>>, vector<1x128xf32>,
    %c29 = arith.constant 29 : index
    %128 = memref.load %arg1[%c29] : memref<160xi32, #tpu.memory_space<smem>>
    %129 = arith.index_cast %128 : i32 to index
    %c0_78 = arith.constant 0 : index
    %130 = vector.load %arg19[%129, %c0_78] : memref<512x128xf32, #tpu.memory_space<vmem>>, vector<1x128xf32>
    %c1_79 = arith.constant 1 : index
    %c1152_80 = arith.constant 1152 : index
    %131 = vector.load %arg20[%c1_79, %c1152_80] : memref<8x2560xf32, #tpu.memory_space<vmem>>, vector<1x128xf32>
    tpu.vector_store %arg20[%c1_79, %c1152_80], %130 {strides = array<i32>} : memref<8x2560xf32, #tpu.memory_space<vmem>>, vector<1x128xf32>,
    %c30 = arith.constant 30 : index
    %132 = memref.load %arg1[%c30] : memref<160xi32, #tpu.memory_space<smem>>
    %133 = arith.index_cast %132 : i32 to index
    %c0_81 = arith.constant 0 : index
    %134 = vector.load %arg19[%133, %c0_81] : memref<512x128xf32, #tpu.memory_space<vmem>>, vector<1x128xf32>
    %c1_82 = arith.constant 1 : index
    %c1280_83 = arith.constant 1280 : index
    %135 = vector.load %arg20[%c1_82, %c1280_83] : memref<8x2560xf32, #tpu.memory_space<vmem>>, vector<1x128xf32>
    tpu.vector_store %arg20[%c1_82, %c1280_83], %134 {strides = array<i32>} : memref<8x2560xf32, #tpu.memory_space<vmem>>, vector<1x128xf32>,
    %c31 = arith.constant 31 : index
    %136 = memref.load %arg1[%c31] : memref<160xi32, #tpu.memory_space<smem>>
    %137 = arith.index_cast %136 : i32 to index
    %c0_84 = arith.constant 0 : index
    %138 = vector.load %arg19[%137, %c0_84] : memref<512x128xf32, #tpu.memory_space<vmem>>, vector<1x128xf32>
    %c1_85 = arith.constant 1 : index
    %c1408_86 = arith.constant 1408 : index
    %139 = vector.load %arg20[%c1_85, %c1408_86] : memref<8x2560xf32, #tpu.memory_space<vmem>>, vector<1x128xf32>
    tpu.vector_store %arg20[%c1_85, %c1408_86], %138 {strides = array<i32>} : memref<8x2560xf32, #tpu.memory_space<vmem>>, vector<1x128xf32>,
    %c32 = arith.constant 32 : index
    %140 = memref.load %arg1[%c32] : memref<160xi32, #tpu.memory_space<smem>>
    %141 = arith.index_cast %140 : i32 to index
    %c0_87 = arith.constant 0 : index
    %142 = vector.load %arg19[%141, %c0_87] : memref<512x128xf32, #tpu.memory_space<vmem>>, vector<1x128xf32>
    %c1_88 = arith.constant 1 : index
    %c1536_89 = arith.constant 1536 : index
    %143 = vector.load %arg20[%c1_88, %c1536_89] : memref<8x2560xf32, #tpu.memory_space<vmem>>, vector<1x128xf32>
    tpu.vector_store %arg20[%c1_88, %c1536_89], %142 {strides = array<i32>} : memref<8x2560xf32, #tpu.memory_space<vmem>>, vector<1x128xf32>,
    %c33 = arith.constant 33 : index
    %144 = memref.load %arg1[%c33] : memref<160xi32, #tpu.memory_space<smem>>
    %145 = arith.index_cast %144 : i32 to index
    %c0_90 = arith.constant 0 : index
    %146 = vector.load %arg19[%145, %c0_90] : memref<512x128xf32, #tpu.memory_space<vmem>>, vector<1x128xf32>
    %c1_91 = arith.constant 1 : index
    %c1664_92 = arith.constant 1664 : index
    %147 = vector.load %arg20[%c1_91, %c1664_92] : memref<8x2560xf32, #tpu.memory_space<vmem>>, vector<1x128xf32>
    tpu.vector_store %arg20[%c1_91, %c1664_92], %146 {strides = array<i32>} : memref<8x2560xf32, #tpu.memory_space<vmem>>, vector<1x128xf32>,
    %c34 = arith.constant 34 : index
    %148 = memref.load %arg1[%c34] : memref<160xi32, #tpu.memory_space<smem>>
    %149 = arith.index_cast %148 : i32 to index
    %c0_93 = arith.constant 0 : index
    %150 = vector.load %arg19[%149, %c0_93] : memref<512x128xf32, #tpu.memory_space<vmem>>, vector<1x128xf32>
    %c1_94 = arith.constant 1 : index
    %c1792_95 = arith.constant 1792 : index
    %151 = vector.load %arg20[%c1_94, %c1792_95] : memref<8x2560xf32, #tpu.memory_space<vmem>>, vector<1x128xf32>
    tpu.vector_store %arg20[%c1_94, %c1792_95], %150 {strides = array<i32>} : memref<8x2560xf32, #tpu.memory_space<vmem>>, vector<1x128xf32>,
    %c35 = arith.constant 35 : index
    %152 = memref.load %arg1[%c35] : memref<160xi32, #tpu.memory_space<smem>>
    %153 = arith.index_cast %152 : i32 to index
    %c0_96 = arith.constant 0 : index
    %154 = vector.load %arg19[%153, %c0_96] : memref<512x128xf32, #tpu.memory_space<vmem>>, vector<1x128xf32>
    %c1_97 = arith.constant 1 : index
    %c1920_98 = arith.constant 1920 : index
    %155 = vector.load %arg20[%c1_97, %c1920_98] : memref<8x2560xf32, #tpu.memory_space<vmem>>, vector<1x128xf32>
    tpu.vector_store %arg20[%c1_97, %c1920_98], %154 {strides = array<i32>} : memref<8x2560xf32, #tpu.memory_space<vmem>>, vector<1x128xf32>,
    %c36 = arith.constant 36 : index
    %156 = memref.load %arg1[%c36] : memref<160xi32, #tpu.memory_space<smem>>
    %157 = arith.index_cast %156 : i32 to index
    %c0_99 = arith.constant 0 : index
    %158 = vector.load %arg19[%157, %c0_99] : memref<512x128xf32, #tpu.memory_space<vmem>>, vector<1x128xf32>
    %c1_100 = arith.constant 1 : index
    %c2048_101 = arith.constant 2048 : index
    %159 = vector.load %arg20[%c1_100, %c2048_101] : memref<8x2560xf32, #tpu.memory_space<vmem>>, vector<1x128xf32>
    tpu.vector_store %arg20[%c1_100, %c2048_101], %158 {strides = array<i32>} : memref<8x2560xf32, #tpu.memory_space<vmem>>, vector<1x128xf32>,
    %c37 = arith.constant 37 : index
    %160 = memref.load %arg1[%c37] : memref<160xi32, #tpu.memory_space<smem>>
    %161 = arith.index_cast %160 : i32 to index
    %c0_102 = arith.constant 0 : index
    %162 = vector.load %arg19[%161, %c0_102] : memref<512x128xf32, #tpu.memory_space<vmem>>, vector<1x128xf32>
    %c1_103 = arith.constant 1 : index
    %c2176_104 = arith.constant 2176 : index
    %163 = vector.load %arg20[%c1_103, %c2176_104] : memref<8x2560xf32, #tpu.memory_space<vmem>>, vector<1x128xf32>
    tpu.vector_store %arg20[%c1_103, %c2176_104], %162 {strides = array<i32>} : memref<8x2560xf32, #tpu.memory_space<vmem>>, vector<1x128xf32>,
    %c38 = arith.constant 38 : index
    %164 = memref.load %arg1[%c38] : memref<160xi32, #tpu.memory_space<smem>>
    %165 = arith.index_cast %164 : i32 to index
    %c0_105 = arith.constant 0 : index
    %166 = vector.load %arg19[%165, %c0_105] : memref<512x128xf32, #tpu.memory_space<vmem>>, vector<1x128xf32>
    %c1_106 = arith.constant 1 : index
    %c2304_107 = arith.constant 2304 : index
    %167 = vector.load %arg20[%c1_106, %c2304_107] : memref<8x2560xf32, #tpu.memory_space<vmem>>, vector<1x128xf32>
    tpu.vector_store %arg20[%c1_106, %c2304_107], %166 {strides = array<i32>} : memref<8x2560xf32, #tpu.memory_space<vmem>>, vector<1x128xf32>,
    %c39 = arith.constant 39 : index
    %168 = memref.load %arg1[%c39] : memref<160xi32, #tpu.memory_space<smem>>
    %169 = arith.index_cast %168 : i32 to index
    %c0_108 = arith.constant 0 : index
    %170 = vector.load %arg19[%169, %c0_108] : memref<512x128xf32, #tpu.memory_space<vmem>>, vector<1x128xf32>
    %c1_109 = arith.constant 1 : index
    %c2432_110 = arith.constant 2432 : index
    %171 = vector.load %arg20[%c1_109, %c2432_110] : memref<8x2560xf32, #tpu.memory_space<vmem>>, vector<1x128xf32>
    tpu.vector_store %arg20[%c1_109, %c2432_110], %170 {strides = array<i32>} : memref<8x2560xf32, #tpu.memory_space<vmem>>, vector<1x128xf32>,
    %c40 = arith.constant 40 : index
    %172 = memref.load %arg1[%c40] : memref<160xi32, #tpu.memory_space<smem>>
    %173 = arith.index_cast %172 : i32 to index
    %c0_111 = arith.constant 0 : index
    %174 = vector.load %arg19[%173, %c0_111] : memref<512x128xf32, #tpu.memory_space<vmem>>, vector<1x128xf32>
    %c2_112 = arith.constant 2 : index
    %c0_113 = arith.constant 0 : index
    %175 = vector.load %arg20[%c2_112, %c0_113] : memref<8x2560xf32, #tpu.memory_space<vmem>>, vector<1x128xf32>
    tpu.vector_store %arg20[%c2_112, %c0_113], %174 {strides = array<i32>} : memref<8x2560xf32, #tpu.memory_space<vmem>>, vector<1x128xf32>,
    %c41 = arith.constant 41 : index
    %176 = memref.load %arg1[%c41] : memref<160xi32, #tpu.memory_space<smem>>
    %177 = arith.index_cast %176 : i32 to index
    %c0_114 = arith.constant 0 : index
    %178 = vector.load %arg19[%177, %c0_114] : memref<512x128xf32, #tpu.memory_space<vmem>>, vector<1x128xf32>
    %c2_115 = arith.constant 2 : index
    %c128_116 = arith.constant 128 : index
    %179 = vector.load %arg20[%c2_115, %c128_116] : memref<8x2560xf32, #tpu.memory_space<vmem>>, vector<1x128xf32>
    tpu.vector_store %arg20[%c2_115, %c128_116], %178 {strides = array<i32>} : memref<8x2560xf32, #tpu.memory_space<vmem>>, vector<1x128xf32>,
    %c42 = arith.constant 42 : index
    %180 = memref.load %arg1[%c42] : memref<160xi32, #tpu.memory_space<smem>>
    %181 = arith.index_cast %180 : i32 to index
    %c0_117 = arith.constant 0 : index
    %182 = vector.load %arg19[%181, %c0_117] : memref<512x128xf32, #tpu.memory_space<vmem>>, vector<1x128xf32>
    %c2_118 = arith.constant 2 : index
    %c256_119 = arith.constant 256 : index
    %183 = vector.load %arg20[%c2_118, %c256_119] : memref<8x2560xf32, #tpu.memory_space<vmem>>, vector<1x128xf32>
    tpu.vector_store %arg20[%c2_118, %c256_119], %182 {strides = array<i32>} : memref<8x2560xf32, #tpu.memory_space<vmem>>, vector<1x128xf32>,
    %c43 = arith.constant 43 : index
    %184 = memref.load %arg1[%c43] : memref<160xi32, #tpu.memory_space<smem>>
    %185 = arith.index_cast %184 : i32 to index
    %c0_120 = arith.constant 0 : index
    %186 = vector.load %arg19[%185, %c0_120] : memref<512x128xf32, #tpu.memory_space<vmem>>, vector<1x128xf32>
    %c2_121 = arith.constant 2 : index
    %c384_122 = arith.constant 384 : index
    %187 = vector.load %arg20[%c2_121, %c384_122] : memref<8x2560xf32, #tpu.memory_space<vmem>>, vector<1x128xf32>
    tpu.vector_store %arg20[%c2_121, %c384_122], %186 {strides = array<i32>} : memref<8x2560xf32, #tpu.memory_space<vmem>>, vector<1x128xf32>,
    %c44 = arith.constant 44 : index
    %188 = memref.load %arg1[%c44] : memref<160xi32, #tpu.memory_space<smem>>
    %189 = arith.index_cast %188 : i32 to index
    %c0_123 = arith.constant 0 : index
    %190 = vector.load %arg19[%189, %c0_123] : memref<512x128xf32, #tpu.memory_space<vmem>>, vector<1x128xf32>
    %c2_124 = arith.constant 2 : index
    %c512_125 = arith.constant 512 : index
    %191 = vector.load %arg20[%c2_124, %c512_125] : memref<8x2560xf32, #tpu.memory_space<vmem>>, vector<1x128xf32>
    tpu.vector_store %arg20[%c2_124, %c512_125], %190 {strides = array<i32>} : memref<8x2560xf32, #tpu.memory_space<vmem>>, vector<1x128xf32>,
    %c45 = arith.constant 45 : index
    %192 = memref.load %arg1[%c45] : memref<160xi32, #tpu.memory_space<smem>>
    %193 = arith.index_cast %192 : i32 to index
    %c0_126 = arith.constant 0 : index
    %194 = vector.load %arg19[%193, %c0_126] : memref<512x128xf32, #tpu.memory_space<vmem>>, vector<1x128xf32>
    %c2_127 = arith.constant 2 : index
    %c640_128 = arith.constant 640 : index
    %195 = vector.load %arg20[%c2_127, %c640_128] : memref<8x2560xf32, #tpu.memory_space<vmem>>, vector<1x128xf32>
    tpu.vector_store %arg20[%c2_127, %c640_128], %194 {strides = array<i32>} : memref<8x2560xf32, #tpu.memory_space<vmem>>, vector<1x128xf32>,
    %c46 = arith.constant 46 : index
    %196 = memref.load %arg1[%c46] : memref<160xi32, #tpu.memory_space<smem>>
    %197 = arith.index_cast %196 : i32 to index
    %c0_129 = arith.constant 0 : index
    %198 = vector.load %arg19[%197, %c0_129] : memref<512x128xf32, #tpu.memory_space<vmem>>, vector<1x128xf32>
    %c2_130 = arith.constant 2 : index
    %c768_131 = arith.constant 768 : index
    %199 = vector.load %arg20[%c2_130, %c768_131] : memref<8x2560xf32, #tpu.memory_space<vmem>>, vector<1x128xf32>
    tpu.vector_store %arg20[%c2_130, %c768_131], %198 {strides = array<i32>} : memref<8x2560xf32, #tpu.memory_space<vmem>>, vector<1x128xf32>,
    %c47 = arith.constant 47 : index
    %200 = memref.load %arg1[%c47] : memref<160xi32, #tpu.memory_space<smem>>
    %201 = arith.index_cast %200 : i32 to index
    %c0_132 = arith.constant 0 : index
    %202 = vector.load %arg19[%201, %c0_132] : memref<512x128xf32, #tpu.memory_space<vmem>>, vector<1x128xf32>
    %c2_133 = arith.constant 2 : index
    %c896_134 = arith.constant 896 : index
    %203 = vector.load %arg20[%c2_133, %c896_134] : memref<8x2560xf32, #tpu.memory_space<vmem>>, vector<1x128xf32>
    tpu.vector_store %arg20[%c2_133, %c896_134], %202 {strides = array<i32>} : memref<8x2560xf32, #tpu.memory_space<vmem>>, vector<1x128xf32>,
    %c48 = arith.constant 48 : index
    %204 = memref.load %arg1[%c48] : memref<160xi32, #tpu.memory_space<smem>>
    %205 = arith.index_cast %204 : i32 to index
    %c0_135 = arith.constant 0 : index
    %206 = vector.load %arg19[%205, %c0_135] : memref<512x128xf32, #tpu.memory_space<vmem>>, vector<1x128xf32>
    %c2_136 = arith.constant 2 : index
    %c1024_137 = arith.constant 1024 : index
    %207 = vector.load %arg20[%c2_136, %c1024_137] : memref<8x2560xf32, #tpu.memory_space<vmem>>, vector<1x128xf32>
    tpu.vector_store %arg20[%c2_136, %c1024_137], %206 {strides = array<i32>} : memref<8x2560xf32, #tpu.memory_space<vmem>>, vector<1x128xf32>,
    %c49 = arith.constant 49 : index
    %208 = memref.load %arg1[%c49] : memref<160xi32, #tpu.memory_space<smem>>
    %209 = arith.index_cast %208 : i32 to index
    %c0_138 = arith.constant 0 : index
    %210 = vector.load %arg19[%209, %c0_138] : memref<512x128xf32, #tpu.memory_space<vmem>>, vector<1x128xf32>
    %c2_139 = arith.constant 2 : index
    %c1152_140 = arith.constant 1152 : index
    %211 = vector.load %arg20[%c2_139, %c1152_140] : memref<8x2560xf32, #tpu.memory_space<vmem>>, vector<1x128xf32>
    tpu.vector_store %arg20[%c2_139, %c1152_140], %210 {strides = array<i32>} : memref<8x2560xf32, #tpu.memory_space<vmem>>, vector<1x128xf32>,
    %c50 = arith.constant 50 : index
    %212 = memref.load %arg1[%c50] : memref<160xi32, #tpu.memory_space<smem>>
    %213 = arith.index_cast %212 : i32 to index
    %c0_141 = arith.constant 0 : index
    %214 = vector.load %arg19[%213, %c0_141] : memref<512x128xf32, #tpu.memory_space<vmem>>, vector<1x128xf32>
    %c2_142 = arith.constant 2 : index
    %c1280_143 = arith.constant 1280 : index
    %215 = vector.load %arg20[%c2_142, %c1280_143] : memref<8x2560xf32, #tpu.memory_space<vmem>>, vector<1x128xf32>
    tpu.vector_store %arg20[%c2_142, %c1280_143], %214 {strides = array<i32>} : memref<8x2560xf32, #tpu.memory_space<vmem>>, vector<1x128xf32>,
    %c51 = arith.constant 51 : index
    %216 = memref.load %arg1[%c51] : memref<160xi32, #tpu.memory_space<smem>>
    %217 = arith.index_cast %216 : i32 to index
    %c0_144 = arith.constant 0 : index
    %218 = vector.load %arg19[%217, %c0_144] : memref<512x128xf32, #tpu.memory_space<vmem>>, vector<1x128xf32>
    %c2_145 = arith.constant 2 : index
    %c1408_146 = arith.constant 1408 : index
    %219 = vector.load %arg20[%c2_145, %c1408_146] : memref<8x2560xf32, #tpu.memory_space<vmem>>, vector<1x128xf32>
    tpu.vector_store %arg20[%c2_145, %c1408_146], %218 {strides = array<i32>} : memref<8x2560xf32, #tpu.memory_space<vmem>>, vector<1x128xf32>,
    %c52 = arith.constant 52 : index
    %220 = memref.load %arg1[%c52] : memref<160xi32, #tpu.memory_space<smem>>
    %221 = arith.index_cast %220 : i32 to index
    %c0_147 = arith.constant 0 : index
    %222 = vector.load %arg19[%221, %c0_147] : memref<512x128xf32, #tpu.memory_space<vmem>>, vector<1x128xf32>
    %c2_148 = arith.constant 2 : index
    %c1536_149 = arith.constant 1536 : index
    %223 = vector.load %arg20[%c2_148, %c1536_149] : memref<8x2560xf32, #tpu.memory_space<vmem>>, vector<1x128xf32>
    tpu.vector_store %arg20[%c2_148, %c1536_149], %222 {strides = array<i32>} : memref<8x2560xf32, #tpu.memory_space<vmem>>, vector<1x128xf32>,
    %c53 = arith.constant 53 : index
    %224 = memref.load %arg1[%c53] : memref<160xi32, #tpu.memory_space<smem>>
    %225 = arith.index_cast %224 : i32 to index
    %c0_150 = arith.constant 0 : index
    %226 = vector.load %arg19[%225, %c0_150] : memref<512x128xf32, #tpu.memory_space<vmem>>, vector<1x128xf32>
    %c2_151 = arith.constant 2 : index
    %c1664_152 = arith.constant 1664 : index
    %227 = vector.load %arg20[%c2_151, %c1664_152] : memref<8x2560xf32, #tpu.memory_space<vmem>>, vector<1x128xf32>
    tpu.vector_store %arg20[%c2_151, %c1664_152], %226 {strides = array<i32>} : memref<8x2560xf32, #tpu.memory_space<vmem>>, vector<1x128xf32>,
    %c54 = arith.constant 54 : index
    %228 = memref.load %arg1[%c54] : memref<160xi32, #tpu.memory_space<smem>>
    %229 = arith.index_cast %228 : i32 to index
    %c0_153 = arith.constant 0 : index
    %230 = vector.load %arg19[%229, %c0_153] : memref<512x128xf32, #tpu.memory_space<vmem>>, vector<1x128xf32>
    %c2_154 = arith.constant 2 : index
    %c1792_155 = arith.constant 1792 : index
    %231 = vector.load %arg20[%c2_154, %c1792_155] : memref<8x2560xf32, #tpu.memory_space<vmem>>, vector<1x128xf32>
    tpu.vector_store %arg20[%c2_154, %c1792_155], %230 {strides = array<i32>} : memref<8x2560xf32, #tpu.memory_space<vmem>>, vector<1x128xf32>,
    %c55 = arith.constant 55 : index
    %232 = memref.load %arg1[%c55] : memref<160xi32, #tpu.memory_space<smem>>
    %233 = arith.index_cast %232 : i32 to index
    %c0_156 = arith.constant 0 : index
    %234 = vector.load %arg19[%233, %c0_156] : memref<512x128xf32, #tpu.memory_space<vmem>>, vector<1x128xf32>
    %c2_157 = arith.constant 2 : index
    %c1920_158 = arith.constant 1920 : index
    %235 = vector.load %arg20[%c2_157, %c1920_158] : memref<8x2560xf32, #tpu.memory_space<vmem>>, vector<1x128xf32>
    tpu.vector_store %arg20[%c2_157, %c1920_158], %234 {strides = array<i32>} : memref<8x2560xf32, #tpu.memory_space<vmem>>, vector<1x128xf32>,
    %c56 = arith.constant 56 : index
    %236 = memref.load %arg1[%c56] : memref<160xi32, #tpu.memory_space<smem>>
    %237 = arith.index_cast %236 : i32 to index
    %c0_159 = arith.constant 0 : index
    %238 = vector.load %arg19[%237, %c0_159] : memref<512x128xf32, #tpu.memory_space<vmem>>, vector<1x128xf32>
    %c2_160 = arith.constant 2 : index
    %c2048_161 = arith.constant 2048 : index
    %239 = vector.load %arg20[%c2_160, %c2048_161] : memref<8x2560xf32, #tpu.memory_space<vmem>>, vector<1x128xf32>
    tpu.vector_store %arg20[%c2_160, %c2048_161], %238 {strides = array<i32>} : memref<8x2560xf32, #tpu.memory_space<vmem>>, vector<1x128xf32>,
    %c57 = arith.constant 57 : index
    %240 = memref.load %arg1[%c57] : memref<160xi32, #tpu.memory_space<smem>>
    %241 = arith.index_cast %240 : i32 to index
    %c0_162 = arith.constant 0 : index
    %242 = vector.load %arg19[%241, %c0_162] : memref<512x128xf32, #tpu.memory_space<vmem>>, vector<1x128xf32>
    %c2_163 = arith.constant 2 : index
    %c2176_164 = arith.constant 2176 : index
    %243 = vector.load %arg20[%c2_163, %c2176_164] : memref<8x2560xf32, #tpu.memory_space<vmem>>, vector<1x128xf32>
    tpu.vector_store %arg20[%c2_163, %c2176_164], %242 {strides = array<i32>} : memref<8x2560xf32, #tpu.memory_space<vmem>>, vector<1x128xf32>,
    %c58 = arith.constant 58 : index
    %244 = memref.load %arg1[%c58] : memref<160xi32, #tpu.memory_space<smem>>
    %245 = arith.index_cast %244 : i32 to index
    %c0_165 = arith.constant 0 : index
    %246 = vector.load %arg19[%245, %c0_165] : memref<512x128xf32, #tpu.memory_space<vmem>>, vector<1x128xf32>
    %c2_166 = arith.constant 2 : index
    %c2304_167 = arith.constant 2304 : index
    %247 = vector.load %arg20[%c2_166, %c2304_167] : memref<8x2560xf32, #tpu.memory_space<vmem>>, vector<1x128xf32>
    tpu.vector_store %arg20[%c2_166, %c2304_167], %246 {strides = array<i32>} : memref<8x2560xf32, #tpu.memory_space<vmem>>, vector<1x128xf32>,
    %c59 = arith.constant 59 : index
    %248 = memref.load %arg1[%c59] : memref<160xi32, #tpu.memory_space<smem>>
    %249 = arith.index_cast %248 : i32 to index
    %c0_168 = arith.constant 0 : index
    %250 = vector.load %arg19[%249, %c0_168] : memref<512x128xf32, #tpu.memory_space<vmem>>, vector<1x128xf32>
    %c2_169 = arith.constant 2 : index
    %c2432_170 = arith.constant 2432 : index
    %251 = vector.load %arg20[%c2_169, %c2432_170] : memref<8x2560xf32, #tpu.memory_space<vmem>>, vector<1x128xf32>
    tpu.vector_store %arg20[%c2_169, %c2432_170], %250 {strides = array<i32>} : memref<8x2560xf32, #tpu.memory_space<vmem>>, vector<1x128xf32>,
    %c60 = arith.constant 60 : index
    %252 = memref.load %arg1[%c60] : memref<160xi32, #tpu.memory_space<smem>>
    %253 = arith.index_cast %252 : i32 to index
    %c0_171 = arith.constant 0 : index
    %254 = vector.load %arg19[%253, %c0_171] : memref<512x128xf32, #tpu.memory_space<vmem>>, vector<1x128xf32>
    %c3_172 = arith.constant 3 : index
    %c0_173 = arith.constant 0 : index
    %255 = vector.load %arg20[%c3_172, %c0_173] : memref<8x2560xf32, #tpu.memory_space<vmem>>, vector<1x128xf32>
    tpu.vector_store %arg20[%c3_172, %c0_173], %254 {strides = array<i32>} : memref<8x2560xf32, #tpu.memory_space<vmem>>, vector<1x128xf32>,
    %c61 = arith.constant 61 : index
    %256 = memref.load %arg1[%c61] : memref<160xi32, #tpu.memory_space<smem>>
    %257 = arith.index_cast %256 : i32 to index
    %c0_174 = arith.constant 0 : index
    %258 = vector.load %arg19[%257, %c0_174] : memref<512x128xf32, #tpu.memory_space<vmem>>, vector<1x128xf32>
    %c3_175 = arith.constant 3 : index
    %c128_176 = arith.constant 128 : index
    %259 = vector.load %arg20[%c3_175, %c128_176] : memref<8x2560xf32, #tpu.memory_space<vmem>>, vector<1x128xf32>
    tpu.vector_store %arg20[%c3_175, %c128_176], %258 {strides = array<i32>} : memref<8x2560xf32, #tpu.memory_space<vmem>>, vector<1x128xf32>,
    %c62 = arith.constant 62 : index
    %260 = memref.load %arg1[%c62] : memref<160xi32, #tpu.memory_space<smem>>
    %261 = arith.index_cast %260 : i32 to index
    %c0_177 = arith.constant 0 : index
    %262 = vector.load %arg19[%261, %c0_177] : memref<512x128xf32, #tpu.memory_space<vmem>>, vector<1x128xf32>
    %c3_178 = arith.constant 3 : index
    %c256_179 = arith.constant 256 : index
    %263 = vector.load %arg20[%c3_178, %c256_179] : memref<8x2560xf32, #tpu.memory_space<vmem>>, vector<1x128xf32>
    tpu.vector_store %arg20[%c3_178, %c256_179], %262 {strides = array<i32>} : memref<8x2560xf32, #tpu.memory_space<vmem>>, vector<1x128xf32>,
    %c63 = arith.constant 63 : index
    %264 = memref.load %arg1[%c63] : memref<160xi32, #tpu.memory_space<smem>>
    %265 = arith.index_cast %264 : i32 to index
    %c0_180 = arith.constant 0 : index
    %266 = vector.load %arg19[%265, %c0_180] : memref<512x128xf32, #tpu.memory_space<vmem>>, vector<1x128xf32>
    %c3_181 = arith.constant 3 : index
    %c384_182 = arith.constant 384 : index
    %267 = vector.load %arg20[%c3_181, %c384_182] : memref<8x2560xf32, #tpu.memory_space<vmem>>, vector<1x128xf32>
    tpu.vector_store %arg20[%c3_181, %c384_182], %266 {strides = array<i32>} : memref<8x2560xf32, #tpu.memory_space<vmem>>, vector<1x128xf32>,
    %c64 = arith.constant 64 : index
    %268 = memref.load %arg1[%c64] : memref<160xi32, #tpu.memory_space<smem>>
    %269 = arith.index_cast %268 : i32 to index
    %c0_183 = arith.constant 0 : index
    %270 = vector.load %arg19[%269, %c0_183] : memref<512x128xf32, #tpu.memory_space<vmem>>, vector<1x128xf32>
    %c3_184 = arith.constant 3 : index
    %c512_185 = arith.constant 512 : index
    %271 = vector.load %arg20[%c3_184, %c512_185] : memref<8x2560xf32, #tpu.memory_space<vmem>>, vector<1x128xf32>
    tpu.vector_store %arg20[%c3_184, %c512_185], %270 {strides = array<i32>} : memref<8x2560xf32, #tpu.memory_space<vmem>>, vector<1x128xf32>,
    %c65 = arith.constant 65 : index
    %272 = memref.load %arg1[%c65] : memref<160xi32, #tpu.memory_space<smem>>
    %273 = arith.index_cast %272 : i32 to index
    %c0_186 = arith.constant 0 : index
    %274 = vector.load %arg19[%273, %c0_186] : memref<512x128xf32, #tpu.memory_space<vmem>>, vector<1x128xf32>
    %c3_187 = arith.constant 3 : index
    %c640_188 = arith.constant 640 : index
    %275 = vector.load %arg20[%c3_187, %c640_188] : memref<8x2560xf32, #tpu.memory_space<vmem>>, vector<1x128xf32>
    tpu.vector_store %arg20[%c3_187, %c640_188], %274 {strides = array<i32>} : memref<8x2560xf32, #tpu.memory_space<vmem>>, vector<1x128xf32>,
    %c66 = arith.constant 66 : index
    %276 = memref.load %arg1[%c66] : memref<160xi32, #tpu.memory_space<smem>>
    %277 = arith.index_cast %276 : i32 to index
    %c0_189 = arith.constant 0 : index
    %278 = vector.load %arg19[%277, %c0_189] : memref<512x128xf32, #tpu.memory_space<vmem>>, vector<1x128xf32>
    %c3_190 = arith.constant 3 : index
    %c768_191 = arith.constant 768 : index
    %279 = vector.load %arg20[%c3_190, %c768_191] : memref<8x2560xf32, #tpu.memory_space<vmem>>, vector<1x128xf32>
    tpu.vector_store %arg20[%c3_190, %c768_191], %278 {strides = array<i32>} : memref<8x2560xf32, #tpu.memory_space<vmem>>, vector<1x128xf32>,
    %c67 = arith.constant 67 : index
    %280 = memref.load %arg1[%c67] : memref<160xi32, #tpu.memory_space<smem>>
    %281 = arith.index_cast %280 : i32 to index
    %c0_192 = arith.constant 0 : index
    %282 = vector.load %arg19[%281, %c0_192] : memref<512x128xf32, #tpu.memory_space<vmem>>, vector<1x128xf32>
    %c3_193 = arith.constant 3 : index
    %c896_194 = arith.constant 896 : index
    %283 = vector.load %arg20[%c3_193, %c896_194] : memref<8x2560xf32, #tpu.memory_space<vmem>>, vector<1x128xf32>
    tpu.vector_store %arg20[%c3_193, %c896_194], %282 {strides = array<i32>} : memref<8x2560xf32, #tpu.memory_space<vmem>>, vector<1x128xf32>,
    %c68 = arith.constant 68 : index
    %284 = memref.load %arg1[%c68] : memref<160xi32, #tpu.memory_space<smem>>
    %285 = arith.index_cast %284 : i32 to index
    %c0_195 = arith.constant 0 : index
    %286 = vector.load %arg19[%285, %c0_195] : memref<512x128xf32, #tpu.memory_space<vmem>>, vector<1x128xf32>
    %c3_196 = arith.constant 3 : index
    %c1024_197 = arith.constant 1024 : index
    %287 = vector.load %arg20[%c3_196, %c1024_197] : memref<8x2560xf32, #tpu.memory_space<vmem>>, vector<1x128xf32>
    tpu.vector_store %arg20[%c3_196, %c1024_197], %286 {strides = array<i32>} : memref<8x2560xf32, #tpu.memory_space<vmem>>, vector<1x128xf32>,
    %c69 = arith.constant 69 : index
    %288 = memref.load %arg1[%c69] : memref<160xi32, #tpu.memory_space<smem>>
    %289 = arith.index_cast %288 : i32 to index
    %c0_198 = arith.constant 0 : index
    %290 = vector.load %arg19[%289, %c0_198] : memref<512x128xf32, #tpu.memory_space<vmem>>, vector<1x128xf32>
    %c3_199 = arith.constant 3 : index
    %c1152_200 = arith.constant 1152 : index
    %291 = vector.load %arg20[%c3_199, %c1152_200] : memref<8x2560xf32, #tpu.memory_space<vmem>>, vector<1x128xf32>
    tpu.vector_store %arg20[%c3_199, %c1152_200], %290 {strides = array<i32>} : memref<8x2560xf32, #tpu.memory_space<vmem>>, vector<1x128xf32>,
    %c70 = arith.constant 70 : index
    %292 = memref.load %arg1[%c70] : memref<160xi32, #tpu.memory_space<smem>>
    %293 = arith.index_cast %292 : i32 to index
    %c0_201 = arith.constant 0 : index
    %294 = vector.load %arg19[%293, %c0_201] : memref<512x128xf32, #tpu.memory_space<vmem>>, vector<1x128xf32>
    %c3_202 = arith.constant 3 : index
    %c1280_203 = arith.constant 1280 : index
    %295 = vector.load %arg20[%c3_202, %c1280_203] : memref<8x2560xf32, #tpu.memory_space<vmem>>, vector<1x128xf32>
    tpu.vector_store %arg20[%c3_202, %c1280_203], %294 {strides = array<i32>} : memref<8x2560xf32, #tpu.memory_space<vmem>>, vector<1x128xf32>,
    %c71 = arith.constant 71 : index
    %296 = memref.load %arg1[%c71] : memref<160xi32, #tpu.memory_space<smem>>
    %297 = arith.index_cast %296 : i32 to index
    %c0_204 = arith.constant 0 : index
    %298 = vector.load %arg19[%297, %c0_204] : memref<512x128xf32, #tpu.memory_space<vmem>>, vector<1x128xf32>
    %c3_205 = arith.constant 3 : index
    %c1408_206 = arith.constant 1408 : index
    %299 = vector.load %arg20[%c3_205, %c1408_206] : memref<8x2560xf32, #tpu.memory_space<vmem>>, vector<1x128xf32>
    tpu.vector_store %arg20[%c3_205, %c1408_206], %298 {strides = array<i32>} : memref<8x2560xf32, #tpu.memory_space<vmem>>, vector<1x128xf32>,
    %c72 = arith.constant 72 : index
    %300 = memref.load %arg1[%c72] : memref<160xi32, #tpu.memory_space<smem>>
    %301 = arith.index_cast %300 : i32 to index
    %c0_207 = arith.constant 0 : index
    %302 = vector.load %arg19[%301, %c0_207] : memref<512x128xf32, #tpu.memory_space<vmem>>, vector<1x128xf32>
    %c3_208 = arith.constant 3 : index
    %c1536_209 = arith.constant 1536 : index
    %303 = vector.load %arg20[%c3_208, %c1536_209] : memref<8x2560xf32, #tpu.memory_space<vmem>>, vector<1x128xf32>
    tpu.vector_store %arg20[%c3_208, %c1536_209], %302 {strides = array<i32>} : memref<8x2560xf32, #tpu.memory_space<vmem>>, vector<1x128xf32>,
    %c73 = arith.constant 73 : index
    %304 = memref.load %arg1[%c73] : memref<160xi32, #tpu.memory_space<smem>>
    %305 = arith.index_cast %304 : i32 to index
    %c0_210 = arith.constant 0 : index
    %306 = vector.load %arg19[%305, %c0_210] : memref<512x128xf32, #tpu.memory_space<vmem>>, vector<1x128xf32>
    %c3_211 = arith.constant 3 : index
    %c1664_212 = arith.constant 1664 : index
    %307 = vector.load %arg20[%c3_211, %c1664_212] : memref<8x2560xf32, #tpu.memory_space<vmem>>, vector<1x128xf32>
    tpu.vector_store %arg20[%c3_211, %c1664_212], %306 {strides = array<i32>} : memref<8x2560xf32, #tpu.memory_space<vmem>>, vector<1x128xf32>,
    %c74 = arith.constant 74 : index
    %308 = memref.load %arg1[%c74] : memref<160xi32, #tpu.memory_space<smem>>
    %309 = arith.index_cast %308 : i32 to index
    %c0_213 = arith.constant 0 : index
    %310 = vector.load %arg19[%309, %c0_213] : memref<512x128xf32, #tpu.memory_space<vmem>>, vector<1x128xf32>
    %c3_214 = arith.constant 3 : index
    %c1792_215 = arith.constant 1792 : index
    %311 = vector.load %arg20[%c3_214, %c1792_215] : memref<8x2560xf32, #tpu.memory_space<vmem>>, vector<1x128xf32>
    tpu.vector_store %arg20[%c3_214, %c1792_215], %310 {strides = array<i32>} : memref<8x2560xf32, #tpu.memory_space<vmem>>, vector<1x128xf32>,
    %c75 = arith.constant 75 : index
    %312 = memref.load %arg1[%c75] : memref<160xi32, #tpu.memory_space<smem>>
    %313 = arith.index_cast %312 : i32 to index
    %c0_216 = arith.constant 0 : index
    %314 = vector.load %arg19[%313, %c0_216] : memref<512x128xf32, #tpu.memory_space<vmem>>, vector<1x128xf32>
    %c3_217 = arith.constant 3 : index
    %c1920_218 = arith.constant 1920 : index
    %315 = vector.load %arg20[%c3_217, %c1920_218] : memref<8x2560xf32, #tpu.memory_space<vmem>>, vector<1x128xf32>
    tpu.vector_store %arg20[%c3_217, %c1920_218], %314 {strides = array<i32>} : memref<8x2560xf32, #tpu.memory_space<vmem>>, vector<1x128xf32>,
    %c76 = arith.constant 76 : index
    %316 = memref.load %arg1[%c76] : memref<160xi32, #tpu.memory_space<smem>>
    %317 = arith.index_cast %316 : i32 to index
    %c0_219 = arith.constant 0 : index
    %318 = vector.load %arg19[%317, %c0_219] : memref<512x128xf32, #tpu.memory_space<vmem>>, vector<1x128xf32>
    %c3_220 = arith.constant 3 : index
    %c2048_221 = arith.constant 2048 : index
    %319 = vector.load %arg20[%c3_220, %c2048_221] : memref<8x2560xf32, #tpu.memory_space<vmem>>, vector<1x128xf32>
    tpu.vector_store %arg20[%c3_220, %c2048_221], %318 {strides = array<i32>} : memref<8x2560xf32, #tpu.memory_space<vmem>>, vector<1x128xf32>,
    %c77 = arith.constant 77 : index
    %320 = memref.load %arg1[%c77] : memref<160xi32, #tpu.memory_space<smem>>
    %321 = arith.index_cast %320 : i32 to index
    %c0_222 = arith.constant 0 : index
    %322 = vector.load %arg19[%321, %c0_222] : memref<512x128xf32, #tpu.memory_space<vmem>>, vector<1x128xf32>
    %c3_223 = arith.constant 3 : index
    %c2176_224 = arith.constant 2176 : index
    %323 = vector.load %arg20[%c3_223, %c2176_224] : memref<8x2560xf32, #tpu.memory_space<vmem>>, vector<1x128xf32>
    tpu.vector_store %arg20[%c3_223, %c2176_224], %322 {strides = array<i32>} : memref<8x2560xf32, #tpu.memory_space<vmem>>, vector<1x128xf32>,
    %c78 = arith.constant 78 : index
    %324 = memref.load %arg1[%c78] : memref<160xi32, #tpu.memory_space<smem>>
    %325 = arith.index_cast %324 : i32 to index
    %c0_225 = arith.constant 0 : index
    %326 = vector.load %arg19[%325, %c0_225] : memref<512x128xf32, #tpu.memory_space<vmem>>, vector<1x128xf32>
    %c3_226 = arith.constant 3 : index
    %c2304_227 = arith.constant 2304 : index
    %327 = vector.load %arg20[%c3_226, %c2304_227] : memref<8x2560xf32, #tpu.memory_space<vmem>>, vector<1x128xf32>
    tpu.vector_store %arg20[%c3_226, %c2304_227], %326 {strides = array<i32>} : memref<8x2560xf32, #tpu.memory_space<vmem>>, vector<1x128xf32>,
    %c79 = arith.constant 79 : index
    %328 = memref.load %arg1[%c79] : memref<160xi32, #tpu.memory_space<smem>>
    %329 = arith.index_cast %328 : i32 to index
    %c0_228 = arith.constant 0 : index
    %330 = vector.load %arg19[%329, %c0_228] : memref<512x128xf32, #tpu.memory_space<vmem>>, vector<1x128xf32>
    %c3_229 = arith.constant 3 : index
    %c2432_230 = arith.constant 2432 : index
    %331 = vector.load %arg20[%c3_229, %c2432_230] : memref<8x2560xf32, #tpu.memory_space<vmem>>, vector<1x128xf32>
    tpu.vector_store %arg20[%c3_229, %c2432_230], %330 {strides = array<i32>} : memref<8x2560xf32, #tpu.memory_space<vmem>>, vector<1x128xf32>,
    %c80 = arith.constant 80 : index
    %332 = memref.load %arg1[%c80] : memref<160xi32, #tpu.memory_space<smem>>
    %333 = arith.index_cast %332 : i32 to index
    %c0_231 = arith.constant 0 : index
    %334 = vector.load %arg19[%333, %c0_231] : memref<512x128xf32, #tpu.memory_space<vmem>>, vector<1x128xf32>
    %c4_232 = arith.constant 4 : index
    %c0_233 = arith.constant 0 : index
    %335 = vector.load %arg20[%c4_232, %c0_233] : memref<8x2560xf32, #tpu.memory_space<vmem>>, vector<1x128xf32>
    tpu.vector_store %arg20[%c4_232, %c0_233], %334 {strides = array<i32>} : memref<8x2560xf32, #tpu.memory_space<vmem>>, vector<1x128xf32>,
    %c81 = arith.constant 81 : index
    %336 = memref.load %arg1[%c81] : memref<160xi32, #tpu.memory_space<smem>>
    %337 = arith.index_cast %336 : i32 to index
    %c0_234 = arith.constant 0 : index
    %338 = vector.load %arg19[%337, %c0_234] : memref<512x128xf32, #tpu.memory_space<vmem>>, vector<1x128xf32>
    %c4_235 = arith.constant 4 : index
    %c128_236 = arith.constant 128 : index
    %339 = vector.load %arg20[%c4_235, %c128_236] : memref<8x2560xf32, #tpu.memory_space<vmem>>, vector<1x128xf32>
    tpu.vector_store %arg20[%c4_235, %c128_236], %338 {strides = array<i32>} : memref<8x2560xf32, #tpu.memory_space<vmem>>, vector<1x128xf32>,
    %c82 = arith.constant 82 : index
    %340 = memref.load %arg1[%c82] : memref<160xi32, #tpu.memory_space<smem>>
    %341 = arith.index_cast %340 : i32 to index
    %c0_237 = arith.constant 0 : index
    %342 = vector.load %arg19[%341, %c0_237] : memref<512x128xf32, #tpu.memory_space<vmem>>, vector<1x128xf32>
    %c4_238 = arith.constant 4 : index
    %c256_239 = arith.constant 256 : index
    %343 = vector.load %arg20[%c4_238, %c256_239] : memref<8x2560xf32, #tpu.memory_space<vmem>>, vector<1x128xf32>
    tpu.vector_store %arg20[%c4_238, %c256_239], %342 {strides = array<i32>} : memref<8x2560xf32, #tpu.memory_space<vmem>>, vector<1x128xf32>,
    %c83 = arith.constant 83 : index
    %344 = memref.load %arg1[%c83] : memref<160xi32, #tpu.memory_space<smem>>
    %345 = arith.index_cast %344 : i32 to index
    %c0_240 = arith.constant 0 : index
    %346 = vector.load %arg19[%345, %c0_240] : memref<512x128xf32, #tpu.memory_space<vmem>>, vector<1x128xf32>
    %c4_241 = arith.constant 4 : index
    %c384_242 = arith.constant 384 : index
    %347 = vector.load %arg20[%c4_241, %c384_242] : memref<8x2560xf32, #tpu.memory_space<vmem>>, vector<1x128xf32>
    tpu.vector_store %arg20[%c4_241, %c384_242], %346 {strides = array<i32>} : memref<8x2560xf32, #tpu.memory_space<vmem>>, vector<1x128xf32>,
    %c84 = arith.constant 84 : index
    %348 = memref.load %arg1[%c84] : memref<160xi32, #tpu.memory_space<smem>>
    %349 = arith.index_cast %348 : i32 to index
    %c0_243 = arith.constant 0 : index
    %350 = vector.load %arg19[%349, %c0_243] : memref<512x128xf32, #tpu.memory_space<vmem>>, vector<1x128xf32>
    %c4_244 = arith.constant 4 : index
    %c512_245 = arith.constant 512 : index
    %351 = vector.load %arg20[%c4_244, %c512_245] : memref<8x2560xf32, #tpu.memory_space<vmem>>, vector<1x128xf32>
    tpu.vector_store %arg20[%c4_244, %c512_245], %350 {strides = array<i32>} : memref<8x2560xf32, #tpu.memory_space<vmem>>, vector<1x128xf32>,
    %c85 = arith.constant 85 : index
    %352 = memref.load %arg1[%c85] : memref<160xi32, #tpu.memory_space<smem>>
    %353 = arith.index_cast %352 : i32 to index
    %c0_246 = arith.constant 0 : index
    %354 = vector.load %arg19[%353, %c0_246] : memref<512x128xf32, #tpu.memory_space<vmem>>, vector<1x128xf32>
    %c4_247 = arith.constant 4 : index
    %c640_248 = arith.constant 640 : index
    %355 = vector.load %arg20[%c4_247, %c640_248] : memref<8x2560xf32, #tpu.memory_space<vmem>>, vector<1x128xf32>
    tpu.vector_store %arg20[%c4_247, %c640_248], %354 {strides = array<i32>} : memref<8x2560xf32, #tpu.memory_space<vmem>>, vector<1x128xf32>,
    %c86 = arith.constant 86 : index
    %356 = memref.load %arg1[%c86] : memref<160xi32, #tpu.memory_space<smem>>
    %357 = arith.index_cast %356 : i32 to index
    %c0_249 = arith.constant 0 : index
    %358 = vector.load %arg19[%357, %c0_249] : memref<512x128xf32, #tpu.memory_space<vmem>>, vector<1x128xf32>
    %c4_250 = arith.constant 4 : index
    %c768_251 = arith.constant 768 : index
    %359 = vector.load %arg20[%c4_250, %c768_251] : memref<8x2560xf32, #tpu.memory_space<vmem>>, vector<1x128xf32>
    tpu.vector_store %arg20[%c4_250, %c768_251], %358 {strides = array<i32>} : memref<8x2560xf32, #tpu.memory_space<vmem>>, vector<1x128xf32>,
    %c87 = arith.constant 87 : index
    %360 = memref.load %arg1[%c87] : memref<160xi32, #tpu.memory_space<smem>>
    %361 = arith.index_cast %360 : i32 to index
    %c0_252 = arith.constant 0 : index
    %362 = vector.load %arg19[%361, %c0_252] : memref<512x128xf32, #tpu.memory_space<vmem>>, vector<1x128xf32>
    %c4_253 = arith.constant 4 : index
    %c896_254 = arith.constant 896 : index
    %363 = vector.load %arg20[%c4_253, %c896_254] : memref<8x2560xf32, #tpu.memory_space<vmem>>, vector<1x128xf32>
    tpu.vector_store %arg20[%c4_253, %c896_254], %362 {strides = array<i32>} : memref<8x2560xf32, #tpu.memory_space<vmem>>, vector<1x128xf32>,
    %c88 = arith.constant 88 : index
    %364 = memref.load %arg1[%c88] : memref<160xi32, #tpu.memory_space<smem>>
    %365 = arith.index_cast %364 : i32 to index
    %c0_255 = arith.constant 0 : index
    %366 = vector.load %arg19[%365, %c0_255] : memref<512x128xf32, #tpu.memory_space<vmem>>, vector<1x128xf32>
    %c4_256 = arith.constant 4 : index
    %c1024_257 = arith.constant 1024 : index
    %367 = vector.load %arg20[%c4_256, %c1024_257] : memref<8x2560xf32, #tpu.memory_space<vmem>>, vector<1x128xf32>
    tpu.vector_store %arg20[%c4_256, %c1024_257], %366 {strides = array<i32>} : memref<8x2560xf32, #tpu.memory_space<vmem>>, vector<1x128xf32>,
    %c89 = arith.constant 89 : index
    %368 = memref.load %arg1[%c89] : memref<160xi32, #tpu.memory_space<smem>>
    %369 = arith.index_cast %368 : i32 to index
    %c0_258 = arith.constant 0 : index
    %370 = vector.load %arg19[%369, %c0_258] : memref<512x128xf32, #tpu.memory_space<vmem>>, vector<1x128xf32>
    %c4_259 = arith.constant 4 : index
    %c1152_260 = arith.constant 1152 : index
    %371 = vector.load %arg20[%c4_259, %c1152_260] : memref<8x2560xf32, #tpu.memory_space<vmem>>, vector<1x128xf32>
    tpu.vector_store %arg20[%c4_259, %c1152_260], %370 {strides = array<i32>} : memref<8x2560xf32, #tpu.memory_space<vmem>>, vector<1x128xf32>,
    %c90 = arith.constant 90 : index
    %372 = memref.load %arg1[%c90] : memref<160xi32, #tpu.memory_space<smem>>
    %373 = arith.index_cast %372 : i32 to index
    %c0_261 = arith.constant 0 : index
    %374 = vector.load %arg19[%373, %c0_261] : memref<512x128xf32, #tpu.memory_space<vmem>>, vector<1x128xf32>
    %c4_262 = arith.constant 4 : index
    %c1280_263 = arith.constant 1280 : index
    %375 = vector.load %arg20[%c4_262, %c1280_263] : memref<8x2560xf32, #tpu.memory_space<vmem>>, vector<1x128xf32>
    tpu.vector_store %arg20[%c4_262, %c1280_263], %374 {strides = array<i32>} : memref<8x2560xf32, #tpu.memory_space<vmem>>, vector<1x128xf32>,
    %c91 = arith.constant 91 : index
    %376 = memref.load %arg1[%c91] : memref<160xi32, #tpu.memory_space<smem>>
    %377 = arith.index_cast %376 : i32 to index
    %c0_264 = arith.constant 0 : index
    %378 = vector.load %arg19[%377, %c0_264] : memref<512x128xf32, #tpu.memory_space<vmem>>, vector<1x128xf32>
    %c4_265 = arith.constant 4 : index
    %c1408_266 = arith.constant 1408 : index
    %379 = vector.load %arg20[%c4_265, %c1408_266] : memref<8x2560xf32, #tpu.memory_space<vmem>>, vector<1x128xf32>
    tpu.vector_store %arg20[%c4_265, %c1408_266], %378 {strides = array<i32>} : memref<8x2560xf32, #tpu.memory_space<vmem>>, vector<1x128xf32>,
    %c92 = arith.constant 92 : index
    %380 = memref.load %arg1[%c92] : memref<160xi32, #tpu.memory_space<smem>>
    %381 = arith.index_cast %380 : i32 to index
    %c0_267 = arith.constant 0 : index
    %382 = vector.load %arg19[%381, %c0_267] : memref<512x128xf32, #tpu.memory_space<vmem>>, vector<1x128xf32>
    %c4_268 = arith.constant 4 : index
    %c1536_269 = arith.constant 1536 : index
    %383 = vector.load %arg20[%c4_268, %c1536_269] : memref<8x2560xf32, #tpu.memory_space<vmem>>, vector<1x128xf32>
    tpu.vector_store %arg20[%c4_268, %c1536_269], %382 {strides = array<i32>} : memref<8x2560xf32, #tpu.memory_space<vmem>>, vector<1x128xf32>,
    %c93 = arith.constant 93 : index
    %384 = memref.load %arg1[%c93] : memref<160xi32, #tpu.memory_space<smem>>
    %385 = arith.index_cast %384 : i32 to index
    %c0_270 = arith.constant 0 : index
    %386 = vector.load %arg19[%385, %c0_270] : memref<512x128xf32, #tpu.memory_space<vmem>>, vector<1x128xf32>
    %c4_271 = arith.constant 4 : index
    %c1664_272 = arith.constant 1664 : index
    %387 = vector.load %arg20[%c4_271, %c1664_272] : memref<8x2560xf32, #tpu.memory_space<vmem>>, vector<1x128xf32>
    tpu.vector_store %arg20[%c4_271, %c1664_272], %386 {strides = array<i32>} : memref<8x2560xf32, #tpu.memory_space<vmem>>, vector<1x128xf32>,
    %c94 = arith.constant 94 : index
    %388 = memref.load %arg1[%c94] : memref<160xi32, #tpu.memory_space<smem>>
    %389 = arith.index_cast %388 : i32 to index
    %c0_273 = arith.constant 0 : index
    %390 = vector.load %arg19[%389, %c0_273] : memref<512x128xf32, #tpu.memory_space<vmem>>, vector<1x128xf32>
    %c4_274 = arith.constant 4 : index
    %c1792_275 = arith.constant 1792 : index
    %391 = vector.load %arg20[%c4_274, %c1792_275] : memref<8x2560xf32, #tpu.memory_space<vmem>>, vector<1x128xf32>
    tpu.vector_store %arg20[%c4_274, %c1792_275], %390 {strides = array<i32>} : memref<8x2560xf32, #tpu.memory_space<vmem>>, vector<1x128xf32>,
    %c95 = arith.constant 95 : index
    %392 = memref.load %arg1[%c95] : memref<160xi32, #tpu.memory_space<smem>>
    %393 = arith.index_cast %392 : i32 to index
    %c0_276 = arith.constant 0 : index
    %394 = vector.load %arg19[%393, %c0_276] : memref<512x128xf32, #tpu.memory_space<vmem>>, vector<1x128xf32>
    %c4_277 = arith.constant 4 : index
    %c1920_278 = arith.constant 1920 : index
    %395 = vector.load %arg20[%c4_277, %c1920_278] : memref<8x2560xf32, #tpu.memory_space<vmem>>, vector<1x128xf32>
    tpu.vector_store %arg20[%c4_277, %c1920_278], %394 {strides = array<i32>} : memref<8x2560xf32, #tpu.memory_space<vmem>>, vector<1x128xf32>,
    %c96 = arith.constant 96 : index
    %396 = memref.load %arg1[%c96] : memref<160xi32, #tpu.memory_space<smem>>
    %397 = arith.index_cast %396 : i32 to index
    %c0_279 = arith.constant 0 : index
    %398 = vector.load %arg19[%397, %c0_279] : memref<512x128xf32, #tpu.memory_space<vmem>>, vector<1x128xf32>
    %c4_280 = arith.constant 4 : index
    %c2048_281 = arith.constant 2048 : index
    %399 = vector.load %arg20[%c4_280, %c2048_281] : memref<8x2560xf32, #tpu.memory_space<vmem>>, vector<1x128xf32>
    tpu.vector_store %arg20[%c4_280, %c2048_281], %398 {strides = array<i32>} : memref<8x2560xf32, #tpu.memory_space<vmem>>, vector<1x128xf32>,
    %c97 = arith.constant 97 : index
    %400 = memref.load %arg1[%c97] : memref<160xi32, #tpu.memory_space<smem>>
    %401 = arith.index_cast %400 : i32 to index
    %c0_282 = arith.constant 0 : index
    %402 = vector.load %arg19[%401, %c0_282] : memref<512x128xf32, #tpu.memory_space<vmem>>, vector<1x128xf32>
    %c4_283 = arith.constant 4 : index
    %c2176_284 = arith.constant 2176 : index
    %403 = vector.load %arg20[%c4_283, %c2176_284] : memref<8x2560xf32, #tpu.memory_space<vmem>>, vector<1x128xf32>
    tpu.vector_store %arg20[%c4_283, %c2176_284], %402 {strides = array<i32>} : memref<8x2560xf32, #tpu.memory_space<vmem>>, vector<1x128xf32>,
    %c98 = arith.constant 98 : index
    %404 = memref.load %arg1[%c98] : memref<160xi32, #tpu.memory_space<smem>>
    %405 = arith.index_cast %404 : i32 to index
    %c0_285 = arith.constant 0 : index
    %406 = vector.load %arg19[%405, %c0_285] : memref<512x128xf32, #tpu.memory_space<vmem>>, vector<1x128xf32>
    %c4_286 = arith.constant 4 : index
    %c2304_287 = arith.constant 2304 : index
    %407 = vector.load %arg20[%c4_286, %c2304_287] : memref<8x2560xf32, #tpu.memory_space<vmem>>, vector<1x128xf32>
    tpu.vector_store %arg20[%c4_286, %c2304_287], %406 {strides = array<i32>} : memref<8x2560xf32, #tpu.memory_space<vmem>>, vector<1x128xf32>,
    %c99 = arith.constant 99 : index
    %408 = memref.load %arg1[%c99] : memref<160xi32, #tpu.memory_space<smem>>
    %409 = arith.index_cast %408 : i32 to index
    %c0_288 = arith.constant 0 : index
    %410 = vector.load %arg19[%409, %c0_288] : memref<512x128xf32, #tpu.memory_space<vmem>>, vector<1x128xf32>
    %c4_289 = arith.constant 4 : index
    %c2432_290 = arith.constant 2432 : index
    %411 = vector.load %arg20[%c4_289, %c2432_290] : memref<8x2560xf32, #tpu.memory_space<vmem>>, vector<1x128xf32>
    tpu.vector_store %arg20[%c4_289, %c2432_290], %410 {strides = array<i32>} : memref<8x2560xf32, #tpu.memory_space<vmem>>, vector<1x128xf32>,
    %c100 = arith.constant 100 : index
    %412 = memref.load %arg1[%c100] : memref<160xi32, #tpu.memory_space<smem>>
    %413 = arith.index_cast %412 : i32 to index
    %c0_291 = arith.constant 0 : index
    %414 = vector.load %arg19[%413, %c0_291] : memref<512x128xf32, #tpu.memory_space<vmem>>, vector<1x128xf32>
    %c5_292 = arith.constant 5 : index
    %c0_293 = arith.constant 0 : index
    %415 = vector.load %arg20[%c5_292, %c0_293] : memref<8x2560xf32, #tpu.memory_space<vmem>>, vector<1x128xf32>
    tpu.vector_store %arg20[%c5_292, %c0_293], %414 {strides = array<i32>} : memref<8x2560xf32, #tpu.memory_space<vmem>>, vector<1x128xf32>,
    %c101 = arith.constant 101 : index
    %416 = memref.load %arg1[%c101] : memref<160xi32, #tpu.memory_space<smem>>
    %417 = arith.index_cast %416 : i32 to index
    %c0_294 = arith.constant 0 : index
    %418 = vector.load %arg19[%417, %c0_294] : memref<512x128xf32, #tpu.memory_space<vmem>>, vector<1x128xf32>
    %c5_295 = arith.constant 5 : index
    %c128_296 = arith.constant 128 : index
    %419 = vector.load %arg20[%c5_295, %c128_296] : memref<8x2560xf32, #tpu.memory_space<vmem>>, vector<1x128xf32>
    tpu.vector_store %arg20[%c5_295, %c128_296], %418 {strides = array<i32>} : memref<8x2560xf32, #tpu.memory_space<vmem>>, vector<1x128xf32>,
    %c102 = arith.constant 102 : index
    %420 = memref.load %arg1[%c102] : memref<160xi32, #tpu.memory_space<smem>>
    %421 = arith.index_cast %420 : i32 to index
    %c0_297 = arith.constant 0 : index
    %422 = vector.load %arg19[%421, %c0_297] : memref<512x128xf32, #tpu.memory_space<vmem>>, vector<1x128xf32>
    %c5_298 = arith.constant 5 : index
    %c256_299 = arith.constant 256 : index
    %423 = vector.load %arg20[%c5_298, %c256_299] : memref<8x2560xf32, #tpu.memory_space<vmem>>, vector<1x128xf32>
    tpu.vector_store %arg20[%c5_298, %c256_299], %422 {strides = array<i32>} : memref<8x2560xf32, #tpu.memory_space<vmem>>, vector<1x128xf32>,
    %c103 = arith.constant 103 : index
    %424 = memref.load %arg1[%c103] : memref<160xi32, #tpu.memory_space<smem>>
    %425 = arith.index_cast %424 : i32 to index
    %c0_300 = arith.constant 0 : index
    %426 = vector.load %arg19[%425, %c0_300] : memref<512x128xf32, #tpu.memory_space<vmem>>, vector<1x128xf32>
    %c5_301 = arith.constant 5 : index
    %c384_302 = arith.constant 384 : index
    %427 = vector.load %arg20[%c5_301, %c384_302] : memref<8x2560xf32, #tpu.memory_space<vmem>>, vector<1x128xf32>
    tpu.vector_store %arg20[%c5_301, %c384_302], %426 {strides = array<i32>} : memref<8x2560xf32, #tpu.memory_space<vmem>>, vector<1x128xf32>,
    %c104 = arith.constant 104 : index
    %428 = memref.load %arg1[%c104] : memref<160xi32, #tpu.memory_space<smem>>
    %429 = arith.index_cast %428 : i32 to index
    %c0_303 = arith.constant 0 : index
    %430 = vector.load %arg19[%429, %c0_303] : memref<512x128xf32, #tpu.memory_space<vmem>>, vector<1x128xf32>
    %c5_304 = arith.constant 5 : index
    %c512_305 = arith.constant 512 : index
    %431 = vector.load %arg20[%c5_304, %c512_305] : memref<8x2560xf32, #tpu.memory_space<vmem>>, vector<1x128xf32>
    tpu.vector_store %arg20[%c5_304, %c512_305], %430 {strides = array<i32>} : memref<8x2560xf32, #tpu.memory_space<vmem>>, vector<1x128xf32>,
    %c105 = arith.constant 105 : index
    %432 = memref.load %arg1[%c105] : memref<160xi32, #tpu.memory_space<smem>>
    %433 = arith.index_cast %432 : i32 to index
    %c0_306 = arith.constant 0 : index
    %434 = vector.load %arg19[%433, %c0_306] : memref<512x128xf32, #tpu.memory_space<vmem>>, vector<1x128xf32>
    %c5_307 = arith.constant 5 : index
    %c640_308 = arith.constant 640 : index
    %435 = vector.load %arg20[%c5_307, %c640_308] : memref<8x2560xf32, #tpu.memory_space<vmem>>, vector<1x128xf32>
    tpu.vector_store %arg20[%c5_307, %c640_308], %434 {strides = array<i32>} : memref<8x2560xf32, #tpu.memory_space<vmem>>, vector<1x128xf32>,
    %c106 = arith.constant 106 : index
    %436 = memref.load %arg1[%c106] : memref<160xi32, #tpu.memory_space<smem>>
    %437 = arith.index_cast %436 : i32 to index
    %c0_309 = arith.constant 0 : index
    %438 = vector.load %arg19[%437, %c0_309] : memref<512x128xf32, #tpu.memory_space<vmem>>, vector<1x128xf32>
    %c5_310 = arith.constant 5 : index
    %c768_311 = arith.constant 768 : index
    %439 = vector.load %arg20[%c5_310, %c768_311] : memref<8x2560xf32, #tpu.memory_space<vmem>>, vector<1x128xf32>
    tpu.vector_store %arg20[%c5_310, %c768_311], %438 {strides = array<i32>} : memref<8x2560xf32, #tpu.memory_space<vmem>>, vector<1x128xf32>,
    %c107 = arith.constant 107 : index
    %440 = memref.load %arg1[%c107] : memref<160xi32, #tpu.memory_space<smem>>
    %441 = arith.index_cast %440 : i32 to index
    %c0_312 = arith.constant 0 : index
    %442 = vector.load %arg19[%441, %c0_312] : memref<512x128xf32, #tpu.memory_space<vmem>>, vector<1x128xf32>
    %c5_313 = arith.constant 5 : index
    %c896_314 = arith.constant 896 : index
    %443 = vector.load %arg20[%c5_313, %c896_314] : memref<8x2560xf32, #tpu.memory_space<vmem>>, vector<1x128xf32>
    tpu.vector_store %arg20[%c5_313, %c896_314], %442 {strides = array<i32>} : memref<8x2560xf32, #tpu.memory_space<vmem>>, vector<1x128xf32>,
    %c108 = arith.constant 108 : index
    %444 = memref.load %arg1[%c108] : memref<160xi32, #tpu.memory_space<smem>>
    %445 = arith.index_cast %444 : i32 to index
    %c0_315 = arith.constant 0 : index
    %446 = vector.load %arg19[%445, %c0_315] : memref<512x128xf32, #tpu.memory_space<vmem>>, vector<1x128xf32>
    %c5_316 = arith.constant 5 : index
    %c1024_317 = arith.constant 1024 : index
    %447 = vector.load %arg20[%c5_316, %c1024_317] : memref<8x2560xf32, #tpu.memory_space<vmem>>, vector<1x128xf32>
    tpu.vector_store %arg20[%c5_316, %c1024_317], %446 {strides = array<i32>} : memref<8x2560xf32, #tpu.memory_space<vmem>>, vector<1x128xf32>,
    %c109 = arith.constant 109 : index
    %448 = memref.load %arg1[%c109] : memref<160xi32, #tpu.memory_space<smem>>
    %449 = arith.index_cast %448 : i32 to index
    %c0_318 = arith.constant 0 : index
    %450 = vector.load %arg19[%449, %c0_318] : memref<512x128xf32, #tpu.memory_space<vmem>>, vector<1x128xf32>
    %c5_319 = arith.constant 5 : index
    %c1152_320 = arith.constant 1152 : index
    %451 = vector.load %arg20[%c5_319, %c1152_320] : memref<8x2560xf32, #tpu.memory_space<vmem>>, vector<1x128xf32>
    tpu.vector_store %arg20[%c5_319, %c1152_320], %450 {strides = array<i32>} : memref<8x2560xf32, #tpu.memory_space<vmem>>, vector<1x128xf32>,
    %c110 = arith.constant 110 : index
    %452 = memref.load %arg1[%c110] : memref<160xi32, #tpu.memory_space<smem>>
    %453 = arith.index_cast %452 : i32 to index
    %c0_321 = arith.constant 0 : index
    %454 = vector.load %arg19[%453, %c0_321] : memref<512x128xf32, #tpu.memory_space<vmem>>, vector<1x128xf32>
    %c5_322 = arith.constant 5 : index
    %c1280_323 = arith.constant 1280 : index
    %455 = vector.load %arg20[%c5_322, %c1280_323] : memref<8x2560xf32, #tpu.memory_space<vmem>>, vector<1x128xf32>
    tpu.vector_store %arg20[%c5_322, %c1280_323], %454 {strides = array<i32>} : memref<8x2560xf32, #tpu.memory_space<vmem>>, vector<1x128xf32>,
    %c111 = arith.constant 111 : index
    %456 = memref.load %arg1[%c111] : memref<160xi32, #tpu.memory_space<smem>>
    %457 = arith.index_cast %456 : i32 to index
    %c0_324 = arith.constant 0 : index
    %458 = vector.load %arg19[%457, %c0_324] : memref<512x128xf32, #tpu.memory_space<vmem>>, vector<1x128xf32>
    %c5_325 = arith.constant 5 : index
    %c1408_326 = arith.constant 1408 : index
    %459 = vector.load %arg20[%c5_325, %c1408_326] : memref<8x2560xf32, #tpu.memory_space<vmem>>, vector<1x128xf32>
    tpu.vector_store %arg20[%c5_325, %c1408_326], %458 {strides = array<i32>} : memref<8x2560xf32, #tpu.memory_space<vmem>>, vector<1x128xf32>,
    %c112 = arith.constant 112 : index
    %460 = memref.load %arg1[%c112] : memref<160xi32, #tpu.memory_space<smem>>
    %461 = arith.index_cast %460 : i32 to index
    %c0_327 = arith.constant 0 : index
    %462 = vector.load %arg19[%461, %c0_327] : memref<512x128xf32, #tpu.memory_space<vmem>>, vector<1x128xf32>
    %c5_328 = arith.constant 5 : index
    %c1536_329 = arith.constant 1536 : index
    %463 = vector.load %arg20[%c5_328, %c1536_329] : memref<8x2560xf32, #tpu.memory_space<vmem>>, vector<1x128xf32>
    tpu.vector_store %arg20[%c5_328, %c1536_329], %462 {strides = array<i32>} : memref<8x2560xf32, #tpu.memory_space<vmem>>, vector<1x128xf32>,
    %c113 = arith.constant 113 : index
    %464 = memref.load %arg1[%c113] : memref<160xi32, #tpu.memory_space<smem>>
    %465 = arith.index_cast %464 : i32 to index
    %c0_330 = arith.constant 0 : index
    %466 = vector.load %arg19[%465, %c0_330] : memref<512x128xf32, #tpu.memory_space<vmem>>, vector<1x128xf32>
    %c5_331 = arith.constant 5 : index
    %c1664_332 = arith.constant 1664 : index
    %467 = vector.load %arg20[%c5_331, %c1664_332] : memref<8x2560xf32, #tpu.memory_space<vmem>>, vector<1x128xf32>
    tpu.vector_store %arg20[%c5_331, %c1664_332], %466 {strides = array<i32>} : memref<8x2560xf32, #tpu.memory_space<vmem>>, vector<1x128xf32>,
    %c114 = arith.constant 114 : index
    %468 = memref.load %arg1[%c114] : memref<160xi32, #tpu.memory_space<smem>>
    %469 = arith.index_cast %468 : i32 to index
    %c0_333 = arith.constant 0 : index
    %470 = vector.load %arg19[%469, %c0_333] : memref<512x128xf32, #tpu.memory_space<vmem>>, vector<1x128xf32>
    %c5_334 = arith.constant 5 : index
    %c1792_335 = arith.constant 1792 : index
    %471 = vector.load %arg20[%c5_334, %c1792_335] : memref<8x2560xf32, #tpu.memory_space<vmem>>, vector<1x128xf32>
    tpu.vector_store %arg20[%c5_334, %c1792_335], %470 {strides = array<i32>} : memref<8x2560xf32, #tpu.memory_space<vmem>>, vector<1x128xf32>,
    %c115 = arith.constant 115 : index
    %472 = memref.load %arg1[%c115] : memref<160xi32, #tpu.memory_space<smem>>
    %473 = arith.index_cast %472 : i32 to index
    %c0_336 = arith.constant 0 : index
    %474 = vector.load %arg19[%473, %c0_336] : memref<512x128xf32, #tpu.memory_space<vmem>>, vector<1x128xf32>
    %c5_337 = arith.constant 5 : index
    %c1920_338 = arith.constant 1920 : index
    %475 = vector.load %arg20[%c5_337, %c1920_338] : memref<8x2560xf32, #tpu.memory_space<vmem>>, vector<1x128xf32>
    tpu.vector_store %arg20[%c5_337, %c1920_338], %474 {strides = array<i32>} : memref<8x2560xf32, #tpu.memory_space<vmem>>, vector<1x128xf32>,
    %c116 = arith.constant 116 : index
    %476 = memref.load %arg1[%c116] : memref<160xi32, #tpu.memory_space<smem>>
    %477 = arith.index_cast %476 : i32 to index
    %c0_339 = arith.constant 0 : index
    %478 = vector.load %arg19[%477, %c0_339] : memref<512x128xf32, #tpu.memory_space<vmem>>, vector<1x128xf32>
    %c5_340 = arith.constant 5 : index
    %c2048_341 = arith.constant 2048 : index
    %479 = vector.load %arg20[%c5_340, %c2048_341] : memref<8x2560xf32, #tpu.memory_space<vmem>>, vector<1x128xf32>
    tpu.vector_store %arg20[%c5_340, %c2048_341], %478 {strides = array<i32>} : memref<8x2560xf32, #tpu.memory_space<vmem>>, vector<1x128xf32>,
    %c117 = arith.constant 117 : index
    %480 = memref.load %arg1[%c117] : memref<160xi32, #tpu.memory_space<smem>>
    %481 = arith.index_cast %480 : i32 to index
    %c0_342 = arith.constant 0 : index
    %482 = vector.load %arg19[%481, %c0_342] : memref<512x128xf32, #tpu.memory_space<vmem>>, vector<1x128xf32>
    %c5_343 = arith.constant 5 : index
    %c2176_344 = arith.constant 2176 : index
    %483 = vector.load %arg20[%c5_343, %c2176_344] : memref<8x2560xf32, #tpu.memory_space<vmem>>, vector<1x128xf32>
    tpu.vector_store %arg20[%c5_343, %c2176_344], %482 {strides = array<i32>} : memref<8x2560xf32, #tpu.memory_space<vmem>>, vector<1x128xf32>,
    %c118 = arith.constant 118 : index
    %484 = memref.load %arg1[%c118] : memref<160xi32, #tpu.memory_space<smem>>
    %485 = arith.index_cast %484 : i32 to index
    %c0_345 = arith.constant 0 : index
    %486 = vector.load %arg19[%485, %c0_345] : memref<512x128xf32, #tpu.memory_space<vmem>>, vector<1x128xf32>
    %c5_346 = arith.constant 5 : index
    %c2304_347 = arith.constant 2304 : index
    %487 = vector.load %arg20[%c5_346, %c2304_347] : memref<8x2560xf32, #tpu.memory_space<vmem>>, vector<1x128xf32>
    tpu.vector_store %arg20[%c5_346, %c2304_347], %486 {strides = array<i32>} : memref<8x2560xf32, #tpu.memory_space<vmem>>, vector<1x128xf32>,
    %c119 = arith.constant 119 : index
    %488 = memref.load %arg1[%c119] : memref<160xi32, #tpu.memory_space<smem>>
    %489 = arith.index_cast %488 : i32 to index
    %c0_348 = arith.constant 0 : index
    %490 = vector.load %arg19[%489, %c0_348] : memref<512x128xf32, #tpu.memory_space<vmem>>, vector<1x128xf32>
    %c5_349 = arith.constant 5 : index
    %c2432_350 = arith.constant 2432 : index
    %491 = vector.load %arg20[%c5_349, %c2432_350] : memref<8x2560xf32, #tpu.memory_space<vmem>>, vector<1x128xf32>
    tpu.vector_store %arg20[%c5_349, %c2432_350], %490 {strides = array<i32>} : memref<8x2560xf32, #tpu.memory_space<vmem>>, vector<1x128xf32>,
    %c120 = arith.constant 120 : index
    %492 = memref.load %arg1[%c120] : memref<160xi32, #tpu.memory_space<smem>>
    %493 = arith.index_cast %492 : i32 to index
    %c0_351 = arith.constant 0 : index
    %494 = vector.load %arg19[%493, %c0_351] : memref<512x128xf32, #tpu.memory_space<vmem>>, vector<1x128xf32>
    %c6_352 = arith.constant 6 : index
    %c0_353 = arith.constant 0 : index
    %495 = vector.load %arg20[%c6_352, %c0_353] : memref<8x2560xf32, #tpu.memory_space<vmem>>, vector<1x128xf32>
    tpu.vector_store %arg20[%c6_352, %c0_353], %494 {strides = array<i32>} : memref<8x2560xf32, #tpu.memory_space<vmem>>, vector<1x128xf32>,
    %c121 = arith.constant 121 : index
    %496 = memref.load %arg1[%c121] : memref<160xi32, #tpu.memory_space<smem>>
    %497 = arith.index_cast %496 : i32 to index
    %c0_354 = arith.constant 0 : index
    %498 = vector.load %arg19[%497, %c0_354] : memref<512x128xf32, #tpu.memory_space<vmem>>, vector<1x128xf32>
    %c6_355 = arith.constant 6 : index
    %c128_356 = arith.constant 128 : index
    %499 = vector.load %arg20[%c6_355, %c128_356] : memref<8x2560xf32, #tpu.memory_space<vmem>>, vector<1x128xf32>
    tpu.vector_store %arg20[%c6_355, %c128_356], %498 {strides = array<i32>} : memref<8x2560xf32, #tpu.memory_space<vmem>>, vector<1x128xf32>,
    %c122 = arith.constant 122 : index
    %500 = memref.load %arg1[%c122] : memref<160xi32, #tpu.memory_space<smem>>
    %501 = arith.index_cast %500 : i32 to index
    %c0_357 = arith.constant 0 : index
    %502 = vector.load %arg19[%501, %c0_357] : memref<512x128xf32, #tpu.memory_space<vmem>>, vector<1x128xf32>
    %c6_358 = arith.constant 6 : index
    %c256_359 = arith.constant 256 : index
    %503 = vector.load %arg20[%c6_358, %c256_359] : memref<8x2560xf32, #tpu.memory_space<vmem>>, vector<1x128xf32>
    tpu.vector_store %arg20[%c6_358, %c256_359], %502 {strides = array<i32>} : memref<8x2560xf32, #tpu.memory_space<vmem>>, vector<1x128xf32>,
    %c123 = arith.constant 123 : index
    %504 = memref.load %arg1[%c123] : memref<160xi32, #tpu.memory_space<smem>>
    %505 = arith.index_cast %504 : i32 to index
    %c0_360 = arith.constant 0 : index
    %506 = vector.load %arg19[%505, %c0_360] : memref<512x128xf32, #tpu.memory_space<vmem>>, vector<1x128xf32>
    %c6_361 = arith.constant 6 : index
    %c384_362 = arith.constant 384 : index
    %507 = vector.load %arg20[%c6_361, %c384_362] : memref<8x2560xf32, #tpu.memory_space<vmem>>, vector<1x128xf32>
    tpu.vector_store %arg20[%c6_361, %c384_362], %506 {strides = array<i32>} : memref<8x2560xf32, #tpu.memory_space<vmem>>, vector<1x128xf32>,
    %c124 = arith.constant 124 : index
    %508 = memref.load %arg1[%c124] : memref<160xi32, #tpu.memory_space<smem>>
    %509 = arith.index_cast %508 : i32 to index
    %c0_363 = arith.constant 0 : index
    %510 = vector.load %arg19[%509, %c0_363] : memref<512x128xf32, #tpu.memory_space<vmem>>, vector<1x128xf32>
    %c6_364 = arith.constant 6 : index
    %c512_365 = arith.constant 512 : index
    %511 = vector.load %arg20[%c6_364, %c512_365] : memref<8x2560xf32, #tpu.memory_space<vmem>>, vector<1x128xf32>
    tpu.vector_store %arg20[%c6_364, %c512_365], %510 {strides = array<i32>} : memref<8x2560xf32, #tpu.memory_space<vmem>>, vector<1x128xf32>,
    %c125 = arith.constant 125 : index
    %512 = memref.load %arg1[%c125] : memref<160xi32, #tpu.memory_space<smem>>
    %513 = arith.index_cast %512 : i32 to index
    %c0_366 = arith.constant 0 : index
    %514 = vector.load %arg19[%513, %c0_366] : memref<512x128xf32, #tpu.memory_space<vmem>>, vector<1x128xf32>
    %c6_367 = arith.constant 6 : index
    %c640_368 = arith.constant 640 : index
    %515 = vector.load %arg20[%c6_367, %c640_368] : memref<8x2560xf32, #tpu.memory_space<vmem>>, vector<1x128xf32>
    tpu.vector_store %arg20[%c6_367, %c640_368], %514 {strides = array<i32>} : memref<8x2560xf32, #tpu.memory_space<vmem>>, vector<1x128xf32>,
    %c126 = arith.constant 126 : index
    %516 = memref.load %arg1[%c126] : memref<160xi32, #tpu.memory_space<smem>>
    %517 = arith.index_cast %516 : i32 to index
    %c0_369 = arith.constant 0 : index
    %518 = vector.load %arg19[%517, %c0_369] : memref<512x128xf32, #tpu.memory_space<vmem>>, vector<1x128xf32>
    %c6_370 = arith.constant 6 : index
    %c768_371 = arith.constant 768 : index
    %519 = vector.load %arg20[%c6_370, %c768_371] : memref<8x2560xf32, #tpu.memory_space<vmem>>, vector<1x128xf32>
    tpu.vector_store %arg20[%c6_370, %c768_371], %518 {strides = array<i32>} : memref<8x2560xf32, #tpu.memory_space<vmem>>, vector<1x128xf32>,
    %c127 = arith.constant 127 : index
    %520 = memref.load %arg1[%c127] : memref<160xi32, #tpu.memory_space<smem>>
    %521 = arith.index_cast %520 : i32 to index
    %c0_372 = arith.constant 0 : index
    %522 = vector.load %arg19[%521, %c0_372] : memref<512x128xf32, #tpu.memory_space<vmem>>, vector<1x128xf32>
    %c6_373 = arith.constant 6 : index
    %c896_374 = arith.constant 896 : index
    %523 = vector.load %arg20[%c6_373, %c896_374] : memref<8x2560xf32, #tpu.memory_space<vmem>>, vector<1x128xf32>
    tpu.vector_store %arg20[%c6_373, %c896_374], %522 {strides = array<i32>} : memref<8x2560xf32, #tpu.memory_space<vmem>>, vector<1x128xf32>,
    %c128_375 = arith.constant 128 : index
    %524 = memref.load %arg1[%c128_375] : memref<160xi32, #tpu.memory_space<smem>>
    %525 = arith.index_cast %524 : i32 to index
    %c0_376 = arith.constant 0 : index
    %526 = vector.load %arg19[%525, %c0_376] : memref<512x128xf32, #tpu.memory_space<vmem>>, vector<1x128xf32>
    %c6_377 = arith.constant 6 : index
    %c1024_378 = arith.constant 1024 : index
    %527 = vector.load %arg20[%c6_377, %c1024_378] : memref<8x2560xf32, #tpu.memory_space<vmem>>, vector<1x128xf32>
    tpu.vector_store %arg20[%c6_377, %c1024_378], %526 {strides = array<i32>} : memref<8x2560xf32, #tpu.memory_space<vmem>>, vector<1x128xf32>,
    %c129 = arith.constant 129 : index
    %528 = memref.load %arg1[%c129] : memref<160xi32, #tpu.memory_space<smem>>
    %529 = arith.index_cast %528 : i32 to index
    %c0_379 = arith.constant 0 : index
    %530 = vector.load %arg19[%529, %c0_379] : memref<512x128xf32, #tpu.memory_space<vmem>>, vector<1x128xf32>
    %c6_380 = arith.constant 6 : index
    %c1152_381 = arith.constant 1152 : index
    %531 = vector.load %arg20[%c6_380, %c1152_381] : memref<8x2560xf32, #tpu.memory_space<vmem>>, vector<1x128xf32>
    tpu.vector_store %arg20[%c6_380, %c1152_381], %530 {strides = array<i32>} : memref<8x2560xf32, #tpu.memory_space<vmem>>, vector<1x128xf32>,
    %c130 = arith.constant 130 : index
    %532 = memref.load %arg1[%c130] : memref<160xi32, #tpu.memory_space<smem>>
    %533 = arith.index_cast %532 : i32 to index
    %c0_382 = arith.constant 0 : index
    %534 = vector.load %arg19[%533, %c0_382] : memref<512x128xf32, #tpu.memory_space<vmem>>, vector<1x128xf32>
    %c6_383 = arith.constant 6 : index
    %c1280_384 = arith.constant 1280 : index
    %535 = vector.load %arg20[%c6_383, %c1280_384] : memref<8x2560xf32, #tpu.memory_space<vmem>>, vector<1x128xf32>
    tpu.vector_store %arg20[%c6_383, %c1280_384], %534 {strides = array<i32>} : memref<8x2560xf32, #tpu.memory_space<vmem>>, vector<1x128xf32>,
    %c131 = arith.constant 131 : index
    %536 = memref.load %arg1[%c131] : memref<160xi32, #tpu.memory_space<smem>>
    %537 = arith.index_cast %536 : i32 to index
    %c0_385 = arith.constant 0 : index
    %538 = vector.load %arg19[%537, %c0_385] : memref<512x128xf32, #tpu.memory_space<vmem>>, vector<1x128xf32>
    %c6_386 = arith.constant 6 : index
    %c1408_387 = arith.constant 1408 : index
    %539 = vector.load %arg20[%c6_386, %c1408_387] : memref<8x2560xf32, #tpu.memory_space<vmem>>, vector<1x128xf32>
    tpu.vector_store %arg20[%c6_386, %c1408_387], %538 {strides = array<i32>} : memref<8x2560xf32, #tpu.memory_space<vmem>>, vector<1x128xf32>,
    %c132 = arith.constant 132 : index
    %540 = memref.load %arg1[%c132] : memref<160xi32, #tpu.memory_space<smem>>
    %541 = arith.index_cast %540 : i32 to index
    %c0_388 = arith.constant 0 : index
    %542 = vector.load %arg19[%541, %c0_388] : memref<512x128xf32, #tpu.memory_space<vmem>>, vector<1x128xf32>
    %c6_389 = arith.constant 6 : index
    %c1536_390 = arith.constant 1536 : index
    %543 = vector.load %arg20[%c6_389, %c1536_390] : memref<8x2560xf32, #tpu.memory_space<vmem>>, vector<1x128xf32>
    tpu.vector_store %arg20[%c6_389, %c1536_390], %542 {strides = array<i32>} : memref<8x2560xf32, #tpu.memory_space<vmem>>, vector<1x128xf32>,
    %c133 = arith.constant 133 : index
    %544 = memref.load %arg1[%c133] : memref<160xi32, #tpu.memory_space<smem>>
    %545 = arith.index_cast %544 : i32 to index
    %c0_391 = arith.constant 0 : index
    %546 = vector.load %arg19[%545, %c0_391] : memref<512x128xf32, #tpu.memory_space<vmem>>, vector<1x128xf32>
    %c6_392 = arith.constant 6 : index
    %c1664_393 = arith.constant 1664 : index
    %547 = vector.load %arg20[%c6_392, %c1664_393] : memref<8x2560xf32, #tpu.memory_space<vmem>>, vector<1x128xf32>
    tpu.vector_store %arg20[%c6_392, %c1664_393], %546 {strides = array<i32>} : memref<8x2560xf32, #tpu.memory_space<vmem>>, vector<1x128xf32>,
    %c134 = arith.constant 134 : index
    %548 = memref.load %arg1[%c134] : memref<160xi32, #tpu.memory_space<smem>>
    %549 = arith.index_cast %548 : i32 to index
    %c0_394 = arith.constant 0 : index
    %550 = vector.load %arg19[%549, %c0_394] : memref<512x128xf32, #tpu.memory_space<vmem>>, vector<1x128xf32>
    %c6_395 = arith.constant 6 : index
    %c1792_396 = arith.constant 1792 : index
    %551 = vector.load %arg20[%c6_395, %c1792_396] : memref<8x2560xf32, #tpu.memory_space<vmem>>, vector<1x128xf32>
    tpu.vector_store %arg20[%c6_395, %c1792_396], %550 {strides = array<i32>} : memref<8x2560xf32, #tpu.memory_space<vmem>>, vector<1x128xf32>,
    %c135 = arith.constant 135 : index
    %552 = memref.load %arg1[%c135] : memref<160xi32, #tpu.memory_space<smem>>
    %553 = arith.index_cast %552 : i32 to index
    %c0_397 = arith.constant 0 : index
    %554 = vector.load %arg19[%553, %c0_397] : memref<512x128xf32, #tpu.memory_space<vmem>>, vector<1x128xf32>
    %c6_398 = arith.constant 6 : index
    %c1920_399 = arith.constant 1920 : index
    %555 = vector.load %arg20[%c6_398, %c1920_399] : memref<8x2560xf32, #tpu.memory_space<vmem>>, vector<1x128xf32>
    tpu.vector_store %arg20[%c6_398, %c1920_399], %554 {strides = array<i32>} : memref<8x2560xf32, #tpu.memory_space<vmem>>, vector<1x128xf32>,
    %c136 = arith.constant 136 : index
    %556 = memref.load %arg1[%c136] : memref<160xi32, #tpu.memory_space<smem>>
    %557 = arith.index_cast %556 : i32 to index
    %c0_400 = arith.constant 0 : index
    %558 = vector.load %arg19[%557, %c0_400] : memref<512x128xf32, #tpu.memory_space<vmem>>, vector<1x128xf32>
    %c6_401 = arith.constant 6 : index
    %c2048_402 = arith.constant 2048 : index
    %559 = vector.load %arg20[%c6_401, %c2048_402] : memref<8x2560xf32, #tpu.memory_space<vmem>>, vector<1x128xf32>
    tpu.vector_store %arg20[%c6_401, %c2048_402], %558 {strides = array<i32>} : memref<8x2560xf32, #tpu.memory_space<vmem>>, vector<1x128xf32>,
    %c137 = arith.constant 137 : index
    %560 = memref.load %arg1[%c137] : memref<160xi32, #tpu.memory_space<smem>>
    %561 = arith.index_cast %560 : i32 to index
    %c0_403 = arith.constant 0 : index
    %562 = vector.load %arg19[%561, %c0_403] : memref<512x128xf32, #tpu.memory_space<vmem>>, vector<1x128xf32>
    %c6_404 = arith.constant 6 : index
    %c2176_405 = arith.constant 2176 : index
    %563 = vector.load %arg20[%c6_404, %c2176_405] : memref<8x2560xf32, #tpu.memory_space<vmem>>, vector<1x128xf32>
    tpu.vector_store %arg20[%c6_404, %c2176_405], %562 {strides = array<i32>} : memref<8x2560xf32, #tpu.memory_space<vmem>>, vector<1x128xf32>,
    %c138 = arith.constant 138 : index
    %564 = memref.load %arg1[%c138] : memref<160xi32, #tpu.memory_space<smem>>
    %565 = arith.index_cast %564 : i32 to index
    %c0_406 = arith.constant 0 : index
    %566 = vector.load %arg19[%565, %c0_406] : memref<512x128xf32, #tpu.memory_space<vmem>>, vector<1x128xf32>
    %c6_407 = arith.constant 6 : index
    %c2304_408 = arith.constant 2304 : index
    %567 = vector.load %arg20[%c6_407, %c2304_408] : memref<8x2560xf32, #tpu.memory_space<vmem>>, vector<1x128xf32>
    tpu.vector_store %arg20[%c6_407, %c2304_408], %566 {strides = array<i32>} : memref<8x2560xf32, #tpu.memory_space<vmem>>, vector<1x128xf32>,
    %c139 = arith.constant 139 : index
    %568 = memref.load %arg1[%c139] : memref<160xi32, #tpu.memory_space<smem>>
    %569 = arith.index_cast %568 : i32 to index
    %c0_409 = arith.constant 0 : index
    %570 = vector.load %arg19[%569, %c0_409] : memref<512x128xf32, #tpu.memory_space<vmem>>, vector<1x128xf32>
    %c6_410 = arith.constant 6 : index
    %c2432_411 = arith.constant 2432 : index
    %571 = vector.load %arg20[%c6_410, %c2432_411] : memref<8x2560xf32, #tpu.memory_space<vmem>>, vector<1x128xf32>
    tpu.vector_store %arg20[%c6_410, %c2432_411], %570 {strides = array<i32>} : memref<8x2560xf32, #tpu.memory_space<vmem>>, vector<1x128xf32>,
    %c140 = arith.constant 140 : index
    %572 = memref.load %arg1[%c140] : memref<160xi32, #tpu.memory_space<smem>>
    %573 = arith.index_cast %572 : i32 to index
    %c0_412 = arith.constant 0 : index
    %574 = vector.load %arg19[%573, %c0_412] : memref<512x128xf32, #tpu.memory_space<vmem>>, vector<1x128xf32>
    %c7_413 = arith.constant 7 : index
    %c0_414 = arith.constant 0 : index
    %575 = vector.load %arg20[%c7_413, %c0_414] : memref<8x2560xf32, #tpu.memory_space<vmem>>, vector<1x128xf32>
    tpu.vector_store %arg20[%c7_413, %c0_414], %574 {strides = array<i32>} : memref<8x2560xf32, #tpu.memory_space<vmem>>, vector<1x128xf32>,
    %c141 = arith.constant 141 : index
    %576 = memref.load %arg1[%c141] : memref<160xi32, #tpu.memory_space<smem>>
    %577 = arith.index_cast %576 : i32 to index
    %c0_415 = arith.constant 0 : index
    %578 = vector.load %arg19[%577, %c0_415] : memref<512x128xf32, #tpu.memory_space<vmem>>, vector<1x128xf32>
    %c7_416 = arith.constant 7 : index
    %c128_417 = arith.constant 128 : index
    %579 = vector.load %arg20[%c7_416, %c128_417] : memref<8x2560xf32, #tpu.memory_space<vmem>>, vector<1x128xf32>
    tpu.vector_store %arg20[%c7_416, %c128_417], %578 {strides = array<i32>} : memref<8x2560xf32, #tpu.memory_space<vmem>>, vector<1x128xf32>,
    %c142 = arith.constant 142 : index
    %580 = memref.load %arg1[%c142] : memref<160xi32, #tpu.memory_space<smem>>
    %581 = arith.index_cast %580 : i32 to index
    %c0_418 = arith.constant 0 : index
    %582 = vector.load %arg19[%581, %c0_418] : memref<512x128xf32, #tpu.memory_space<vmem>>, vector<1x128xf32>
    %c7_419 = arith.constant 7 : index
    %c256_420 = arith.constant 256 : index
    %583 = vector.load %arg20[%c7_419, %c256_420] : memref<8x2560xf32, #tpu.memory_space<vmem>>, vector<1x128xf32>
    tpu.vector_store %arg20[%c7_419, %c256_420], %582 {strides = array<i32>} : memref<8x2560xf32, #tpu.memory_space<vmem>>, vector<1x128xf32>,
    %c143 = arith.constant 143 : index
    %584 = memref.load %arg1[%c143] : memref<160xi32, #tpu.memory_space<smem>>
    %585 = arith.index_cast %584 : i32 to index
    %c0_421 = arith.constant 0 : index
    %586 = vector.load %arg19[%585, %c0_421] : memref<512x128xf32, #tpu.memory_space<vmem>>, vector<1x128xf32>
    %c7_422 = arith.constant 7 : index
    %c384_423 = arith.constant 384 : index
    %587 = vector.load %arg20[%c7_422, %c384_423] : memref<8x2560xf32, #tpu.memory_space<vmem>>, vector<1x128xf32>
    tpu.vector_store %arg20[%c7_422, %c384_423], %586 {strides = array<i32>} : memref<8x2560xf32, #tpu.memory_space<vmem>>, vector<1x128xf32>,
    %c144 = arith.constant 144 : index
    %588 = memref.load %arg1[%c144] : memref<160xi32, #tpu.memory_space<smem>>
    %589 = arith.index_cast %588 : i32 to index
    %c0_424 = arith.constant 0 : index
    %590 = vector.load %arg19[%589, %c0_424] : memref<512x128xf32, #tpu.memory_space<vmem>>, vector<1x128xf32>
    %c7_425 = arith.constant 7 : index
    %c512_426 = arith.constant 512 : index
    %591 = vector.load %arg20[%c7_425, %c512_426] : memref<8x2560xf32, #tpu.memory_space<vmem>>, vector<1x128xf32>
    tpu.vector_store %arg20[%c7_425, %c512_426], %590 {strides = array<i32>} : memref<8x2560xf32, #tpu.memory_space<vmem>>, vector<1x128xf32>,
    %c145 = arith.constant 145 : index
    %592 = memref.load %arg1[%c145] : memref<160xi32, #tpu.memory_space<smem>>
    %593 = arith.index_cast %592 : i32 to index
    %c0_427 = arith.constant 0 : index
    %594 = vector.load %arg19[%593, %c0_427] : memref<512x128xf32, #tpu.memory_space<vmem>>, vector<1x128xf32>
    %c7_428 = arith.constant 7 : index
    %c640_429 = arith.constant 640 : index
    %595 = vector.load %arg20[%c7_428, %c640_429] : memref<8x2560xf32, #tpu.memory_space<vmem>>, vector<1x128xf32>
    tpu.vector_store %arg20[%c7_428, %c640_429], %594 {strides = array<i32>} : memref<8x2560xf32, #tpu.memory_space<vmem>>, vector<1x128xf32>,
    %c146 = arith.constant 146 : index
    %596 = memref.load %arg1[%c146] : memref<160xi32, #tpu.memory_space<smem>>
    %597 = arith.index_cast %596 : i32 to index
    %c0_430 = arith.constant 0 : index
    %598 = vector.load %arg19[%597, %c0_430] : memref<512x128xf32, #tpu.memory_space<vmem>>, vector<1x128xf32>
    %c7_431 = arith.constant 7 : index
    %c768_432 = arith.constant 768 : index
    %599 = vector.load %arg20[%c7_431, %c768_432] : memref<8x2560xf32, #tpu.memory_space<vmem>>, vector<1x128xf32>
    tpu.vector_store %arg20[%c7_431, %c768_432], %598 {strides = array<i32>} : memref<8x2560xf32, #tpu.memory_space<vmem>>, vector<1x128xf32>,
    %c147 = arith.constant 147 : index
    %600 = memref.load %arg1[%c147] : memref<160xi32, #tpu.memory_space<smem>>
    %601 = arith.index_cast %600 : i32 to index
    %c0_433 = arith.constant 0 : index
    %602 = vector.load %arg19[%601, %c0_433] : memref<512x128xf32, #tpu.memory_space<vmem>>, vector<1x128xf32>
    %c7_434 = arith.constant 7 : index
    %c896_435 = arith.constant 896 : index
    %603 = vector.load %arg20[%c7_434, %c896_435] : memref<8x2560xf32, #tpu.memory_space<vmem>>, vector<1x128xf32>
    tpu.vector_store %arg20[%c7_434, %c896_435], %602 {strides = array<i32>} : memref<8x2560xf32, #tpu.memory_space<vmem>>, vector<1x128xf32>,
    %c148 = arith.constant 148 : index
    %604 = memref.load %arg1[%c148] : memref<160xi32, #tpu.memory_space<smem>>
    %605 = arith.index_cast %604 : i32 to index
    %c0_436 = arith.constant 0 : index
    %606 = vector.load %arg19[%605, %c0_436] : memref<512x128xf32, #tpu.memory_space<vmem>>, vector<1x128xf32>
    %c7_437 = arith.constant 7 : index
    %c1024_438 = arith.constant 1024 : index
    %607 = vector.load %arg20[%c7_437, %c1024_438] : memref<8x2560xf32, #tpu.memory_space<vmem>>, vector<1x128xf32>
    tpu.vector_store %arg20[%c7_437, %c1024_438], %606 {strides = array<i32>} : memref<8x2560xf32, #tpu.memory_space<vmem>>, vector<1x128xf32>,
    %c149 = arith.constant 149 : index
    %608 = memref.load %arg1[%c149] : memref<160xi32, #tpu.memory_space<smem>>
    %609 = arith.index_cast %608 : i32 to index
    %c0_439 = arith.constant 0 : index
    %610 = vector.load %arg19[%609, %c0_439] : memref<512x128xf32, #tpu.memory_space<vmem>>, vector<1x128xf32>
    %c7_440 = arith.constant 7 : index
    %c1152_441 = arith.constant 1152 : index
    %611 = vector.load %arg20[%c7_440, %c1152_441] : memref<8x2560xf32, #tpu.memory_space<vmem>>, vector<1x128xf32>
    tpu.vector_store %arg20[%c7_440, %c1152_441], %610 {strides = array<i32>} : memref<8x2560xf32, #tpu.memory_space<vmem>>, vector<1x128xf32>,
    %c150 = arith.constant 150 : index
    %612 = memref.load %arg1[%c150] : memref<160xi32, #tpu.memory_space<smem>>
    %613 = arith.index_cast %612 : i32 to index
    %c0_442 = arith.constant 0 : index
    %614 = vector.load %arg19[%613, %c0_442] : memref<512x128xf32, #tpu.memory_space<vmem>>, vector<1x128xf32>
    %c7_443 = arith.constant 7 : index
    %c1280_444 = arith.constant 1280 : index
    %615 = vector.load %arg20[%c7_443, %c1280_444] : memref<8x2560xf32, #tpu.memory_space<vmem>>, vector<1x128xf32>
    tpu.vector_store %arg20[%c7_443, %c1280_444], %614 {strides = array<i32>} : memref<8x2560xf32, #tpu.memory_space<vmem>>, vector<1x128xf32>,
    %c151 = arith.constant 151 : index
    %616 = memref.load %arg1[%c151] : memref<160xi32, #tpu.memory_space<smem>>
    %617 = arith.index_cast %616 : i32 to index
    %c0_445 = arith.constant 0 : index
    %618 = vector.load %arg19[%617, %c0_445] : memref<512x128xf32, #tpu.memory_space<vmem>>, vector<1x128xf32>
    %c7_446 = arith.constant 7 : index
    %c1408_447 = arith.constant 1408 : index
    %619 = vector.load %arg20[%c7_446, %c1408_447] : memref<8x2560xf32, #tpu.memory_space<vmem>>, vector<1x128xf32>
    tpu.vector_store %arg20[%c7_446, %c1408_447], %618 {strides = array<i32>} : memref<8x2560xf32, #tpu.memory_space<vmem>>, vector<1x128xf32>,
    %c152 = arith.constant 152 : index
    %620 = memref.load %arg1[%c152] : memref<160xi32, #tpu.memory_space<smem>>
    %621 = arith.index_cast %620 : i32 to index
    %c0_448 = arith.constant 0 : index
    %622 = vector.load %arg19[%621, %c0_448] : memref<512x128xf32, #tpu.memory_space<vmem>>, vector<1x128xf32>
    %c7_449 = arith.constant 7 : index
    %c1536_450 = arith.constant 1536 : index
    %623 = vector.load %arg20[%c7_449, %c1536_450] : memref<8x2560xf32, #tpu.memory_space<vmem>>, vector<1x128xf32>
    tpu.vector_store %arg20[%c7_449, %c1536_450], %622 {strides = array<i32>} : memref<8x2560xf32, #tpu.memory_space<vmem>>, vector<1x128xf32>,
    %c153 = arith.constant 153 : index
    %624 = memref.load %arg1[%c153] : memref<160xi32, #tpu.memory_space<smem>>
    %625 = arith.index_cast %624 : i32 to index
    %c0_451 = arith.constant 0 : index
    %626 = vector.load %arg19[%625, %c0_451] : memref<512x128xf32, #tpu.memory_space<vmem>>, vector<1x128xf32>
    %c7_452 = arith.constant 7 : index
    %c1664_453 = arith.constant 1664 : index
    %627 = vector.load %arg20[%c7_452, %c1664_453] : memref<8x2560xf32, #tpu.memory_space<vmem>>, vector<1x128xf32>
    tpu.vector_store %arg20[%c7_452, %c1664_453], %626 {strides = array<i32>} : memref<8x2560xf32, #tpu.memory_space<vmem>>, vector<1x128xf32>,
    %c154 = arith.constant 154 : index
    %628 = memref.load %arg1[%c154] : memref<160xi32, #tpu.memory_space<smem>>
    %629 = arith.index_cast %628 : i32 to index
    %c0_454 = arith.constant 0 : index
    %630 = vector.load %arg19[%629, %c0_454] : memref<512x128xf32, #tpu.memory_space<vmem>>, vector<1x128xf32>
    %c7_455 = arith.constant 7 : index
    %c1792_456 = arith.constant 1792 : index
    %631 = vector.load %arg20[%c7_455, %c1792_456] : memref<8x2560xf32, #tpu.memory_space<vmem>>, vector<1x128xf32>
    tpu.vector_store %arg20[%c7_455, %c1792_456], %630 {strides = array<i32>} : memref<8x2560xf32, #tpu.memory_space<vmem>>, vector<1x128xf32>,
    %c155 = arith.constant 155 : index
    %632 = memref.load %arg1[%c155] : memref<160xi32, #tpu.memory_space<smem>>
    %633 = arith.index_cast %632 : i32 to index
    %c0_457 = arith.constant 0 : index
    %634 = vector.load %arg19[%633, %c0_457] : memref<512x128xf32, #tpu.memory_space<vmem>>, vector<1x128xf32>
    %c7_458 = arith.constant 7 : index
    %c1920_459 = arith.constant 1920 : index
    %635 = vector.load %arg20[%c7_458, %c1920_459] : memref<8x2560xf32, #tpu.memory_space<vmem>>, vector<1x128xf32>
    tpu.vector_store %arg20[%c7_458, %c1920_459], %634 {strides = array<i32>} : memref<8x2560xf32, #tpu.memory_space<vmem>>, vector<1x128xf32>,
    %c156 = arith.constant 156 : index
    %636 = memref.load %arg1[%c156] : memref<160xi32, #tpu.memory_space<smem>>
    %637 = arith.index_cast %636 : i32 to index
    %c0_460 = arith.constant 0 : index
    %638 = vector.load %arg19[%637, %c0_460] : memref<512x128xf32, #tpu.memory_space<vmem>>, vector<1x128xf32>
    %c7_461 = arith.constant 7 : index
    %c2048_462 = arith.constant 2048 : index
    %639 = vector.load %arg20[%c7_461, %c2048_462] : memref<8x2560xf32, #tpu.memory_space<vmem>>, vector<1x128xf32>
    tpu.vector_store %arg20[%c7_461, %c2048_462], %638 {strides = array<i32>} : memref<8x2560xf32, #tpu.memory_space<vmem>>, vector<1x128xf32>,
    %c157 = arith.constant 157 : index
    %640 = memref.load %arg1[%c157] : memref<160xi32, #tpu.memory_space<smem>>
    %641 = arith.index_cast %640 : i32 to index
    %c0_463 = arith.constant 0 : index
    %642 = vector.load %arg19[%641, %c0_463] : memref<512x128xf32, #tpu.memory_space<vmem>>, vector<1x128xf32>
    %c7_464 = arith.constant 7 : index
    %c2176_465 = arith.constant 2176 : index
    %643 = vector.load %arg20[%c7_464, %c2176_465] : memref<8x2560xf32, #tpu.memory_space<vmem>>, vector<1x128xf32>
    tpu.vector_store %arg20[%c7_464, %c2176_465], %642 {strides = array<i32>} : memref<8x2560xf32, #tpu.memory_space<vmem>>, vector<1x128xf32>,
    %c158 = arith.constant 158 : index
    %644 = memref.load %arg1[%c158] : memref<160xi32, #tpu.memory_space<smem>>
    %645 = arith.index_cast %644 : i32 to index
    %c0_466 = arith.constant 0 : index
    %646 = vector.load %arg19[%645, %c0_466] : memref<512x128xf32, #tpu.memory_space<vmem>>, vector<1x128xf32>
    %c7_467 = arith.constant 7 : index
    %c2304_468 = arith.constant 2304 : index
    %647 = vector.load %arg20[%c7_467, %c2304_468] : memref<8x2560xf32, #tpu.memory_space<vmem>>, vector<1x128xf32>
    tpu.vector_store %arg20[%c7_467, %c2304_468], %646 {strides = array<i32>} : memref<8x2560xf32, #tpu.memory_space<vmem>>, vector<1x128xf32>,
    %c159 = arith.constant 159 : index
    %648 = memref.load %arg1[%c159] : memref<160xi32, #tpu.memory_space<smem>>
    %649 = arith.index_cast %648 : i32 to index
    %c0_469 = arith.constant 0 : index
    %650 = vector.load %arg19[%649, %c0_469] : memref<512x128xf32, #tpu.memory_space<vmem>>, vector<1x128xf32>
    %c7_470 = arith.constant 7 : index
    %c2432_471 = arith.constant 2432 : index
    %651 = vector.load %arg20[%c7_470, %c2432_471] : memref<8x2560xf32, #tpu.memory_space<vmem>>, vector<1x128xf32>
    tpu.vector_store %arg20[%c7_470, %c2432_471], %650 {strides = array<i32>} : memref<8x2560xf32, #tpu.memory_space<vmem>>, vector<1x128xf32>,
    %c0_472 = arith.constant 0 : index
    %c0_473 = arith.constant 0 : index
    %652 = vector.load %arg20[%c0_472, %c0_473] : memref<8x2560xf32, #tpu.memory_space<vmem>>, vector<8x2560xf32>
    %c0_474 = arith.constant 0 : index
    %c0_475 = arith.constant 0 : index
    %653 = vector.load %arg5[%c0_474, %c0_475] : memref<2560x128xf32, #tpu.memory_space<vmem>>, vector<2560x128xf32>
    %cst_476 = arith.constant dense<0.000000e+00> : vector<8x128xf32>
    %654 = tpu.matmul %652, %653, %cst_476 {dimension_numbers = #tpu.dot_dimension_numbers<[1], [0], [0], [1], [0, 0, 1, 1], [], []>} : vector<8x2560xf32>, vector<2560x128xf32>, vector<8x128xf32> -> vector<8x128xf32>
    %c0_477 = arith.constant 0 : index
    %c0_478 = arith.constant 0 : index
    %655 = vector.load %arg6[%c0_477, %c0_478] : memref<1x128xf32, #tpu.memory_space<vmem>>, vector<1x128xf32>
    %656 = vector.broadcast %655 : vector<1x128xf32> to vector<8x128xf32>
    %657 = arith.addf %654, %656 : vector<8x128xf32>
    %c0_479 = arith.constant 0 : index
    %c0_480 = arith.constant 0 : index
    %658 = vector.load %arg7[%c0_479, %c0_480] : memref<128x384xf32, #tpu.memory_space<vmem>>, vector<128x384xf32>
    %cst_481 = arith.constant dense<0.000000e+00> : vector<8x384xf32>
    %659 = tpu.matmul %657, %658, %cst_481 {dimension_numbers = #tpu.dot_dimension_numbers<[1], [0], [0], [1], [0, 0, 1, 1], [], []>} : vector<8x128xf32>, vector<128x384xf32>, vector<8x384xf32> -> vector<8x384xf32>
    %c0_482 = arith.constant 0 : index
    %c0_483 = arith.constant 0 : index
    %660 = vector.load %arg9[%c0_482, %c0_483] : memref<1x384xf32, #tpu.memory_space<vmem>>, vector<1x384xf32>
    %661 = vector.broadcast %660 : vector<1x384xf32> to vector<8x384xf32>
    %662 = arith.addf %659, %661 : vector<8x384xf32>
    %cst_484 = arith.constant 0.000000e+00 : f32
    %663 = vector.broadcast %cst_484 : f32 to vector<4x128xf32>
    %cst_485 = arith.constant 0.000000e+00 : f32
    %664 = vector.broadcast %cst_485 : f32 to vector<4x128xf32>
    %c0_486 = arith.constant 0 : index
    %c0_487 = arith.constant 0 : index
    %665 = vector.load %arg8[%c0_486, %c0_487] : memref<128x384xf32, #tpu.memory_space<vmem>>, vector<128x384xf32>
    %cst_488 = arith.constant dense<0.000000e+00> : vector<4x384xf32>
    %666 = tpu.matmul %663, %665, %cst_488 {dimension_numbers = #tpu.dot_dimension_numbers<[1], [0], [0], [1], [0, 0, 1, 1], [], []>} : vector<4x128xf32>, vector<128x384xf32>, vector<4x384xf32> -> vector<4x384xf32>
    %c0_489 = arith.constant 0 : index
    %c0_490 = arith.constant 0 : index
    %667 = vector.load %arg10[%c0_489, %c0_490] : memref<1x384xf32, #tpu.memory_space<vmem>>, vector<1x384xf32>
    %668 = vector.broadcast %667 : vector<1x384xf32> to vector<4x384xf32>
    %669 = arith.addf %666, %668 : vector<4x384xf32>
    %670 = vector.extract_strided_slice %662 {offsets = [0, 0], sizes = [4, 384], strides = [1, 1]} : vector<8x384xf32> to vector<4x384xf32>
    %671 = vector.extract_strided_slice %670 {offsets = [0, 0], sizes = [4, 128], strides = [1, 1]} : vector<4x384xf32> to vector<4x128xf32>
    %672 = vector.extract_strided_slice %669 {offsets = [0, 0], sizes = [4, 128], strides = [1, 1]} : vector<4x384xf32> to vector<4x128xf32>
    %673 = arith.addf %671, %672 : vector<4x128xf32>
    %674 = arith.negf %673 : vector<4x128xf32>
    %675 = math.exp %674 : vector<4x128xf32>
    %cst_491 = arith.constant 1.000000e+00 : f32
    %676 = vector.broadcast %cst_491 : f32 to vector<4x128xf32>
    %677 = arith.addf %676, %675 : vector<4x128xf32>
    %678 = arith.divf %676, %677 : vector<4x128xf32>
    %679 = vector.extract_strided_slice %670 {offsets = [0, 128], sizes = [4, 128], strides = [1, 1]} : vector<4x384xf32> to vector<4x128xf32>
    %680 = vector.extract_strided_slice %669 {offsets = [0, 128], sizes = [4, 128], strides = [1, 1]} : vector<4x384xf32> to vector<4x128xf32>
    %681 = arith.addf %679, %680 : vector<4x128xf32>
    %682 = arith.negf %681 : vector<4x128xf32>
    %683 = math.exp %682 : vector<4x128xf32>
    %cst_492 = arith.constant 1.000000e+00 : f32
    %684 = vector.broadcast %cst_492 : f32 to vector<4x128xf32>
    %685 = arith.addf %684, %683 : vector<4x128xf32>
    %686 = arith.divf %684, %685 : vector<4x128xf32>
    %687 = vector.extract_strided_slice %670 {offsets = [0, 256], sizes = [4, 128], strides = [1, 1]} : vector<4x384xf32> to vector<4x128xf32>
    %688 = vector.extract_strided_slice %669 {offsets = [0, 256], sizes = [4, 128], strides = [1, 1]} : vector<4x384xf32> to vector<4x128xf32>
    %689 = arith.mulf %678, %688 : vector<4x128xf32>
    %690 = arith.addf %687, %689 : vector<4x128xf32>
    %691 = math.tanh %690 : vector<4x128xf32>
    %cst_493 = arith.constant 1.000000e+00 : f32
    %692 = vector.broadcast %cst_493 : f32 to vector<4x128xf32>
    %693 = arith.subf %692, %686 : vector<4x128xf32>
    %694 = arith.mulf %693, %691 : vector<4x128xf32>
    %695 = arith.mulf %686, %663 : vector<4x128xf32>
    %696 = arith.addf %694, %695 : vector<4x128xf32>
    %c0_494 = arith.constant 0 : index
    %c0_495 = arith.constant 0 : index
    %697 = vector.load %arg11[%c0_494, %c0_495] : memref<128x384xf32, #tpu.memory_space<vmem>>, vector<128x384xf32>
    %cst_496 = arith.constant dense<0.000000e+00> : vector<4x384xf32>
    %698 = tpu.matmul %696, %697, %cst_496 {dimension_numbers = #tpu.dot_dimension_numbers<[1], [0], [0], [1], [0, 0, 1, 1], [], []>} : vector<4x128xf32>, vector<128x384xf32>, vector<4x384xf32> -> vector<4x384xf32>
    %c0_497 = arith.constant 0 : index
    %c0_498 = arith.constant 0 : index
    %699 = vector.load %arg13[%c0_497, %c0_498] : memref<1x384xf32, #tpu.memory_space<vmem>>, vector<1x384xf32>
    %700 = vector.broadcast %699 : vector<1x384xf32> to vector<4x384xf32>
    %701 = arith.addf %698, %700 : vector<4x384xf32>
    %c0_499 = arith.constant 0 : index
    %c0_500 = arith.constant 0 : index
    %702 = vector.load %arg12[%c0_499, %c0_500] : memref<128x384xf32, #tpu.memory_space<vmem>>, vector<128x384xf32>
    %cst_501 = arith.constant dense<0.000000e+00> : vector<4x384xf32>
    %703 = tpu.matmul %664, %702, %cst_501 {dimension_numbers = #tpu.dot_dimension_numbers<[1], [0], [0], [1], [0, 0, 1, 1], [], []>} : vector<4x128xf32>, vector<128x384xf32>, vector<4x384xf32> -> vector<4x384xf32>
    %c0_502 = arith.constant 0 : index
    %c0_503 = arith.constant 0 : index
    %704 = vector.load %arg14[%c0_502, %c0_503] : memref<1x384xf32, #tpu.memory_space<vmem>>, vector<1x384xf32>
    %705 = vector.broadcast %704 : vector<1x384xf32> to vector<4x384xf32>
    %706 = arith.addf %703, %705 : vector<4x384xf32>
    %707 = vector.extract_strided_slice %701 {offsets = [0, 0], sizes = [4, 128], strides = [1, 1]} : vector<4x384xf32> to vector<4x128xf32>
    %708 = vector.extract_strided_slice %706 {offsets = [0, 0], sizes = [4, 128], strides = [1, 1]} : vector<4x384xf32> to vector<4x128xf32>
    %709 = arith.addf %707, %708 : vector<4x128xf32>
    %710 = arith.negf %709 : vector<4x128xf32>
    %711 = math.exp %710 : vector<4x128xf32>
    %cst_504 = arith.constant 1.000000e+00 : f32
    %712 = vector.broadcast %cst_504 : f32 to vector<4x128xf32>
    %713 = arith.addf %712, %711 : vector<4x128xf32>
    %714 = arith.divf %712, %713 : vector<4x128xf32>
    %715 = vector.extract_strided_slice %701 {offsets = [0, 128], sizes = [4, 128], strides = [1, 1]} : vector<4x384xf32> to vector<4x128xf32>
    %716 = vector.extract_strided_slice %706 {offsets = [0, 128], sizes = [4, 128], strides = [1, 1]} : vector<4x384xf32> to vector<4x128xf32>
    %717 = arith.addf %715, %716 : vector<4x128xf32>
    %718 = arith.negf %717 : vector<4x128xf32>
    %719 = math.exp %718 : vector<4x128xf32>
    %cst_505 = arith.constant 1.000000e+00 : f32
    %720 = vector.broadcast %cst_505 : f32 to vector<4x128xf32>
    %721 = arith.addf %720, %719 : vector<4x128xf32>
    %722 = arith.divf %720, %721 : vector<4x128xf32>
    %723 = vector.extract_strided_slice %701 {offsets = [0, 256], sizes = [4, 128], strides = [1, 1]} : vector<4x384xf32> to vector<4x128xf32>
    %724 = vector.extract_strided_slice %706 {offsets = [0, 256], sizes = [4, 128], strides = [1, 1]} : vector<4x384xf32> to vector<4x128xf32>
    %725 = arith.mulf %714, %724 : vector<4x128xf32>
    %726 = arith.addf %723, %725 : vector<4x128xf32>
    %727 = math.tanh %726 : vector<4x128xf32>
    %cst_506 = arith.constant 1.000000e+00 : f32
    %728 = vector.broadcast %cst_506 : f32 to vector<4x128xf32>
    %729 = arith.subf %728, %722 : vector<4x128xf32>
    %730 = arith.mulf %729, %727 : vector<4x128xf32>
    %731 = arith.mulf %722, %664 : vector<4x128xf32>
    %732 = arith.addf %730, %731 : vector<4x128xf32>
    %c0_507 = arith.constant 0 : index
    %c0_508 = arith.constant 0 : index
    %733 = vector.load %arg8[%c0_507, %c0_508] : memref<128x384xf32, #tpu.memory_space<vmem>>, vector<128x384xf32>
    %cst_509 = arith.constant dense<0.000000e+00> : vector<4x384xf32>
    %734 = tpu.matmul %696, %733, %cst_509 {dimension_numbers = #tpu.dot_dimension_numbers<[1], [0], [0], [1], [0, 0, 1, 1], [], []>} : vector<4x128xf32>, vector<128x384xf32>, vector<4x384xf32> -> vector<4x384xf32>
    %c0_510 = arith.constant 0 : index
    %c0_511 = arith.constant 0 : index
    %735 = vector.load %arg10[%c0_510, %c0_511] : memref<1x384xf32, #tpu.memory_space<vmem>>, vector<1x384xf32>
    %736 = vector.broadcast %735 : vector<1x384xf32> to vector<4x384xf32>
    %737 = arith.addf %734, %736 : vector<4x384xf32>
    %738 = vector.extract_strided_slice %662 {offsets = [4, 0], sizes = [4, 384], strides = [1, 1]} : vector<8x384xf32> to vector<4x384xf32>
    %739 = vector.extract_strided_slice %738 {offsets = [0, 0], sizes = [4, 128], strides = [1, 1]} : vector<4x384xf32> to vector<4x128xf32>
    %740 = vector.extract_strided_slice %737 {offsets = [0, 0], sizes = [4, 128], strides = [1, 1]} : vector<4x384xf32> to vector<4x128xf32>
    %741 = arith.addf %739, %740 : vector<4x128xf32>
    %742 = arith.negf %741 : vector<4x128xf32>
    %743 = math.exp %742 : vector<4x128xf32>
    %cst_512 = arith.constant 1.000000e+00 : f32
    %744 = vector.broadcast %cst_512 : f32 to vector<4x128xf32>
    %745 = arith.addf %744, %743 : vector<4x128xf32>
    %746 = arith.divf %744, %745 : vector<4x128xf32>
    %747 = vector.extract_strided_slice %738 {offsets = [0, 128], sizes = [4, 128], strides = [1, 1]} : vector<4x384xf32> to vector<4x128xf32>
    %748 = vector.extract_strided_slice %737 {offsets = [0, 128], sizes = [4, 128], strides = [1, 1]} : vector<4x384xf32> to vector<4x128xf32>
    %749 = arith.addf %747, %748 : vector<4x128xf32>
    %750 = arith.negf %749 : vector<4x128xf32>
    %751 = math.exp %750 : vector<4x128xf32>
    %cst_513 = arith.constant 1.000000e+00 : f32
    %752 = vector.broadcast %cst_513 : f32 to vector<4x128xf32>
    %753 = arith.addf %752, %751 : vector<4x128xf32>
    %754 = arith.divf %752, %753 : vector<4x128xf32>
    %755 = vector.extract_strided_slice %738 {offsets = [0, 256], sizes = [4, 128], strides = [1, 1]} : vector<4x384xf32> to vector<4x128xf32>
    %756 = vector.extract_strided_slice %737 {offsets = [0, 256], sizes = [4, 128], strides = [1, 1]} : vector<4x384xf32> to vector<4x128xf32>
    %757 = arith.mulf %746, %756 : vector<4x128xf32>
    %758 = arith.addf %755, %757 : vector<4x128xf32>
    %759 = math.tanh %758 : vector<4x128xf32>
    %cst_514 = arith.constant 1.000000e+00 : f32
    %760 = vector.broadcast %cst_514 : f32 to vector<4x128xf32>
    %761 = arith.subf %760, %754 : vector<4x128xf32>
    %762 = arith.mulf %761, %759 : vector<4x128xf32>
    %763 = arith.mulf %754, %696 : vector<4x128xf32>
    %764 = arith.addf %762, %763 : vector<4x128xf32>
    %c0_515 = arith.constant 0 : index
    %c0_516 = arith.constant 0 : index
    %765 = vector.load %arg11[%c0_515, %c0_516] : memref<128x384xf32, #tpu.memory_space<vmem>>, vector<128x384xf32>
    %cst_517 = arith.constant dense<0.000000e+00> : vector<4x384xf32>
    %766 = tpu.matmul %764, %765, %cst_517 {dimension_numbers = #tpu.dot_dimension_numbers<[1], [0], [0], [1], [0, 0, 1, 1], [], []>} : vector<4x128xf32>, vector<128x384xf32>, vector<4x384xf32> -> vector<4x384xf32>
    %c0_518 = arith.constant 0 : index
    %c0_519 = arith.constant 0 : index
    %767 = vector.load %arg13[%c0_518, %c0_519] : memref<1x384xf32, #tpu.memory_space<vmem>>, vector<1x384xf32>
    %768 = vector.broadcast %767 : vector<1x384xf32> to vector<4x384xf32>
    %769 = arith.addf %766, %768 : vector<4x384xf32>
    %c0_520 = arith.constant 0 : index
    %c0_521 = arith.constant 0 : index
    %770 = vector.load %arg12[%c0_520, %c0_521] : memref<128x384xf32, #tpu.memory_space<vmem>>, vector<128x384xf32>
    %cst_522 = arith.constant dense<0.000000e+00> : vector<4x384xf32>
    %771 = tpu.matmul %732, %770, %cst_522 {dimension_numbers = #tpu.dot_dimension_numbers<[1], [0], [0], [1], [0, 0, 1, 1], [], []>} : vector<4x128xf32>, vector<128x384xf32>, vector<4x384xf32> -> vector<4x384xf32>
    %c0_523 = arith.constant 0 : index
    %c0_524 = arith.constant 0 : index
    %772 = vector.load %arg14[%c0_523, %c0_524] : memref<1x384xf32, #tpu.memory_space<vmem>>, vector<1x384xf32>
    %773 = vector.broadcast %772 : vector<1x384xf32> to vector<4x384xf32>
    %774 = arith.addf %771, %773 : vector<4x384xf32>
    %775 = vector.extract_strided_slice %769 {offsets = [0, 0], sizes = [4, 128], strides = [1, 1]} : vector<4x384xf32> to vector<4x128xf32>
    %776 = vector.extract_strided_slice %774 {offsets = [0, 0], sizes = [4, 128], strides = [1, 1]} : vector<4x384xf32> to vector<4x128xf32>
    %777 = arith.addf %775, %776 : vector<4x128xf32>
    %778 = arith.negf %777 : vector<4x128xf32>
    %779 = math.exp %778 : vector<4x128xf32>
    %cst_525 = arith.constant 1.000000e+00 : f32
    %780 = vector.broadcast %cst_525 : f32 to vector<4x128xf32>
    %781 = arith.addf %780, %779 : vector<4x128xf32>
    %782 = arith.divf %780, %781 : vector<4x128xf32>
    %783 = vector.extract_strided_slice %769 {offsets = [0, 128], sizes = [4, 128], strides = [1, 1]} : vector<4x384xf32> to vector<4x128xf32>
    %784 = vector.extract_strided_slice %774 {offsets = [0, 128], sizes = [4, 128], strides = [1, 1]} : vector<4x384xf32> to vector<4x128xf32>
    %785 = arith.addf %783, %784 : vector<4x128xf32>
    %786 = arith.negf %785 : vector<4x128xf32>
    %787 = math.exp %786 : vector<4x128xf32>
    %cst_526 = arith.constant 1.000000e+00 : f32
    %788 = vector.broadcast %cst_526 : f32 to vector<4x128xf32>
    %789 = arith.addf %788, %787 : vector<4x128xf32>
    %790 = arith.divf %788, %789 : vector<4x128xf32>
    %791 = vector.extract_strided_slice %769 {offsets = [0, 256], sizes = [4, 128], strides = [1, 1]} : vector<4x384xf32> to vector<4x128xf32>
    %792 = vector.extract_strided_slice %774 {offsets = [0, 256], sizes = [4, 128], strides = [1, 1]} : vector<4x384xf32> to vector<4x128xf32>
    %793 = arith.mulf %782, %792 : vector<4x128xf32>
    %794 = arith.addf %791, %793 : vector<4x128xf32>
    %795 = math.tanh %794 : vector<4x128xf32>
    %cst_527 = arith.constant 1.000000e+00 : f32
    %796 = vector.broadcast %cst_527 : f32 to vector<4x128xf32>
    %797 = arith.subf %796, %790 : vector<4x128xf32>
    %798 = arith.mulf %797, %795 : vector<4x128xf32>
    %799 = arith.mulf %790, %732 : vector<4x128xf32>
    %800 = arith.addf %798, %799 : vector<4x128xf32>
    %801 = tpu.concatenate %732, %800 in 0 : vector<4x128xf32>, vector<4x128xf32> -> vector<8x128xf32>
    %c0_528 = arith.constant 0 : index
    %c0_529 = arith.constant 0 : index
    %802 = vector.load %arg15[%c0_528, %c0_529] : memref<128x5xf32, #tpu.memory_space<vmem>>, vector<128x5xf32>
    %cst_530 = arith.constant dense<0.000000e+00> : vector<8x5xf32>
    %803 = tpu.matmul %801, %802, %cst_530 {dimension_numbers = #tpu.dot_dimension_numbers<[1], [0], [0], [1], [0, 0, 1, 1], [], []>} : vector<8x128xf32>, vector<128x5xf32>, vector<8x5xf32> -> vector<8x5xf32>
    %c0_531 = arith.constant 0 : index
    %c0_532 = arith.constant 0 : index
    %804 = vector.load %arg16[%c0_531, %c0_532] : memref<1x5xf32, #tpu.memory_space<vmem>>, vector<1x5xf32>
    %805 = vector.broadcast %804 : vector<1x5xf32> to vector<8x5xf32>
    %806 = arith.addf %803, %805 : vector<8x5xf32>
    %807 = vector.extract_strided_slice %806 {offsets = [0, 0], sizes = [4, 5], strides = [1, 1]} : vector<8x5xf32> to vector<4x5xf32>
    %cst_533 = arith.constant dense<0.000000e+00> : vector<5xf32>
    %808 = vector.multi_reduction <add>, %807, %cst_533 [0] : vector<4x5xf32> to vector<5xf32>
    %809 = vector.shape_cast %808 : vector<5xf32> to vector<1x5xf32>
    %cst_534 = arith.constant 2.500000e-01 : f32
    %810 = vector.broadcast %cst_534 : f32 to vector<1x5xf32>
    %811 = arith.mulf %809, %810 : vector<1x5xf32>
    %812 = vector.extract_strided_slice %807 {offsets = [3, 0], sizes = [1, 5], strides = [1, 1]} : vector<4x5xf32> to vector<1x5xf32>
    %813 = vector.extract_strided_slice %806 {offsets = [4, 0], sizes = [4, 5], strides = [1, 1]} : vector<8x5xf32> to vector<4x5xf32>
    %cst_535 = arith.constant dense<0.000000e+00> : vector<5xf32>
    %814 = vector.multi_reduction <add>, %813, %cst_535 [0] : vector<4x5xf32> to vector<5xf32>
    %815 = vector.shape_cast %814 : vector<5xf32> to vector<1x5xf32>
    %cst_536 = arith.constant 2.500000e-01 : f32
    %816 = vector.broadcast %cst_536 : f32 to vector<1x5xf32>
    %817 = arith.mulf %815, %816 : vector<1x5xf32>
    %818 = vector.extract_strided_slice %813 {offsets = [3, 0], sizes = [1, 5], strides = [1, 1]} : vector<4x5xf32> to vector<1x5xf32>
    %819 = tpu.concatenate %811, %817 in 0 : vector<1x5xf32>, vector<1x5xf32> -> vector<2x5xf32>
    %c0_537 = arith.constant 0 : index
    %c0_538 = arith.constant 0 : index
    %820 = vector.load %arg17[%c0_537, %c0_538] : memref<2x5xf32, #tpu.memory_space<vmem>>, vector<2x5xf32>
    tpu.vector_store %arg17[%c0_537, %c0_538], %819 {strides = array<i32>} : memref<2x5xf32, #tpu.memory_space<vmem>>, vector<2x5xf32>,
    %821 = tpu.concatenate %812, %818 in 0 : vector<1x5xf32>, vector<1x5xf32> -> vector<2x5xf32>
    %c0_539 = arith.constant 0 : index
    %c0_540 = arith.constant 0 : index
    %822 = vector.load %arg18[%c0_539, %c0_540] : memref<2x5xf32, #tpu.memory_space<vmem>>, vector<2x5xf32>
    tpu.vector_store %arg18[%c0_539, %c0_540], %821 {strides = array<i32>} : memref<2x5xf32, #tpu.memory_space<vmem>>, vector<2x5xf32>,
    return
  }
  func.func @transform_0(%arg0: i32, %arg1: memref<160xi32, #tpu.memory_space<smem>>) -> (i32, i32) {
    %c0_i32 = arith.constant 0 : i32
    %c0_i32_0 = arith.constant 0 : i32
    %c0_i32_1 = arith.constant 0 : i32
    return %c0_i32, %c0_i32_0 : i32, i32
  }
  func.func @transform_1(%arg0: i32, %arg1: memref<160xi32, #tpu.memory_space<smem>>) -> (i32, i32) {
    %c0_i32 = arith.constant 0 : i32
    %c0_i32_0 = arith.constant 0 : i32
    %c0_i32_1 = arith.constant 0 : i32
    return %c0_i32, %c0_i32_0 : i32, i32
  }
  func.func @transform_2(%arg0: i32, %arg1: memref<160xi32, #tpu.memory_space<smem>>) -> (i32, i32) {
    %c0_i32 = arith.constant 0 : i32
    %c0_i32_0 = arith.constant 0 : i32
    %c0_i32_1 = arith.constant 0 : i32
    return %c0_i32, %c0_i32_0 : i32, i32
  }
  func.func @transform_3(%arg0: i32, %arg1: memref<160xi32, #tpu.memory_space<smem>>) -> (i32, i32) {
    %c0_i32 = arith.constant 0 : i32
    %c0_i32_0 = arith.constant 0 : i32
    %c0_i32_1 = arith.constant 0 : i32
    return %c0_i32, %c0_i32_0 : i32, i32
  }
  func.func @transform_4(%arg0: i32, %arg1: memref<160xi32, #tpu.memory_space<smem>>) -> (i32, i32) {
    %c0_i32 = arith.constant 0 : i32
    %c0_i32_0 = arith.constant 0 : i32
    %c0_i32_1 = arith.constant 0 : i32
    return %c0_i32, %c0_i32_0 : i32, i32
  }
  func.func @transform_5(%arg0: i32, %arg1: memref<160xi32, #tpu.memory_space<smem>>) -> (i32, i32) {
    %c0_i32 = arith.constant 0 : i32
    %c0_i32_0 = arith.constant 0 : i32
    %c0_i32_1 = arith.constant 0 : i32
    return %c0_i32, %c0_i32_0 : i32, i32
  }
  func.func @transform_6(%arg0: i32, %arg1: memref<160xi32, #tpu.memory_space<smem>>) -> (i32, i32) {
    %c0_i32 = arith.constant 0 : i32
    %c0_i32_0 = arith.constant 0 : i32
    %c0_i32_1 = arith.constant 0 : i32
    return %c0_i32, %c0_i32_0 : i32, i32
  }
  func.func @transform_7(%arg0: i32, %arg1: memref<160xi32, #tpu.memory_space<smem>>) -> (i32, i32) {
    %c0_i32 = arith.constant 0 : i32
    %c0_i32_0 = arith.constant 0 : i32
    %c0_i32_1 = arith.constant 0 : i32
    return %c0_i32, %c0_i32_0 : i32, i32
  }
  func.func @transform_8(%arg0: i32, %arg1: memref<160xi32, #tpu.memory_space<smem>>) -> (i32, i32) {
    %c0_i32 = arith.constant 0 : i32
    %c0_i32_0 = arith.constant 0 : i32
    %c0_i32_1 = arith.constant 0 : i32
    return %c0_i32, %c0_i32_0 : i32, i32
  }
  func.func @transform_9(%arg0: i32, %arg1: memref<160xi32, #tpu.memory_space<smem>>) -> (i32, i32) {
    %c0_i32 = arith.constant 0 : i32
    %c0_i32_0 = arith.constant 0 : i32
    %c0_i32_1 = arith.constant 0 : i32
    return %c0_i32, %c0_i32_0 : i32, i32
  }
  func.func @transform_10(%arg0: i32, %arg1: memref<160xi32, #tpu.memory_space<smem>>) -> (i32, i32) {
    %c0_i32 = arith.constant 0 : i32
    %c0_i32_0 = arith.constant 0 : i32
    %c0_i32_1 = arith.constant 0 : i32
    return %c0_i32, %c0_i32_0 : i32, i32
  }
  func.func @transform_11(%arg0: i32, %arg1: memref<160xi32, #tpu.memory_space<smem>>) -> (i32, i32) {
    %c0_i32 = arith.constant 0 : i32
    %c0_i32_0 = arith.constant 0 : i32
    %c0_i32_1 = arith.constant 0 : i32
    return %c0_i32, %c0_i32_0 : i32, i32
  }
  func.func @transform_12(%arg0: i32, %arg1: memref<160xi32, #tpu.memory_space<smem>>) -> (i32, i32) {
    %c0_i32 = arith.constant 0 : i32
    %c0_i32_0 = arith.constant 0 : i32
    %c0_i32_1 = arith.constant 0 : i32
    return %c0_i32, %c0_i32_0 : i32, i32
  }
  func.func @transform_13(%arg0: i32, %arg1: memref<160xi32, #tpu.memory_space<smem>>) -> (i32, i32) {
    %c0_i32 = arith.constant 0 : i32
    %c0_i32_0 = arith.constant 0 : i32
    %c0_i32_1 = arith.constant 0 : i32
    return %c0_i32, %c0_i32_0 : i32, i32
  }
  func.func @transform_14(%arg0: i32, %arg1: memref<160xi32, #tpu.memory_space<smem>>) -> (i32, i32) {
    %c0_i32 = arith.constant 0 : i32
    %c0_i32_0 = arith.constant 0 : i32
    %c0_i32_1 = arith.constant 0 : i32
    return %c0_i32, %c0_i32_0 : i32, i32
  }
  func.func @transform_15(%arg0: i32, %arg1: memref<160xi32, #tpu.memory_space<smem>>) -> (i32, i32) {
    %c0_i32 = arith.constant 0 : i32
    %c0_i32_0 = arith.constant 0 : i32
    %c0_i32_1 = arith.constant 0 : i32
    return %c0_i32, %c0_i32_0 : i32, i32
  }
  func.func @transform_16(%arg0: i32, %arg1: memref<160xi32, #tpu.memory_space<smem>>) -> (i32, i32) {
    %c0_i32 = arith.constant 0 : i32
    %c0_i32_0 = arith.constant 0 : i32
    %c0_i32_1 = arith.constant 0 : i32
    return %c0_i32, %c0_i32_0 : i32, i32
  }
}

</mosaic_0001>

<bundles_post_ra>
// kernel: lpn_forward.1
= control target key start
LH: loop header
LB: loop body
LE: loop exit
PB: predicated region body
PF: predicated region fallthrough
CT: control target
= control target key end

     0   :  { %s3932_s27 = smov [#allocation5]   ;;  %s7163_s0 = inlined_call_operand.vmem [shape: s32[160], index: 0, kind: input, shape index: {}]   ;;  %s7164_s1 = inlined_call_operand.vmem [shape: f32[512,147], index: 1, kind: input, shape index: {}]   ;;  %s7165_s2 = inlined_call_operand.vmem [shape: f32[147,128], index: 2, kind: input, shape index: {}]   ;;  %s7166_s3 = inlined_call_operand.vmem [shape: f32[1,128], index: 3, kind: input, shape index: {}]   ;;  %s7167_s4 = inlined_call_operand.vmem [shape: f32[2560,128], index: 4, kind: input, shape index: {}]   ;;  %s7168_s5 = inlined_call_operand.vmem [shape: f32[1,128], index: 5, kind: input, shape index: {}]   ;;  %s7169_s6 = inlined_call_operand.vmem [shape: f32[128,384], index: 6, kind: input, shape index: {}]   ;;  %s7170_s7 = inlined_call_operand.vmem [shape: f32[128,384], index: 7, kind: input, shape index: {}]   ;;  %s7171_s8 = inlined_call_operand.vmem [shape: f32[1,384], index: 8, kind: input, shape index: {}]   ;;  %s7172_s9 = inlined_call_operand.vmem [shape: f32[1,384], index: 9, kind: input, shape index: {}]   ;;  %s7173_s10 = inlined_call_operand.vmem [shape: f32[128,384], index: 10, kind: input, shape index: {}]   ;;  %s7174_s11 = inlined_call_operand.vmem [shape: f32[128,384], index: 11, kind: input, shape index: {}]   ;;  %s7175_s12 = inlined_call_operand.vmem [shape: f32[1,384], index: 12, kind: input, shape index: {}]   ;;  %s7176_s13 = inlined_call_operand.vmem [shape: f32[1,384], index: 13, kind: input, shape index: {}]   ;;  %s7177_s14 = inlined_call_operand.vmem [shape: f32[128,5], index: 14, kind: input, shape index: {}]   ;;  %s7178_s15 = inlined_call_operand.vmem [shape: f32[1,5], index: 15, kind: input, shape index: {}]   ;;  %s7179_s16 = inlined_call_operand.hbm [shape: f32[2,5], index: 16, kind: output, shape index: {0}]   ;;  %s7180_s17 = inlined_call_operand.hbm [shape: f32[2,5], index: 17, kind: output, shape index: {1}]  }
   0x1   :  { %7203 = sst [smem:[#allocation93_spill]] %s7163_s0 }
   0x2   :  { %7204 = sst [smem:[#allocation94_spill]] %s7164_s1 }
   0x3   :  { %7205 = sst [smem:[#allocation95_spill]] %s7168_s5 }
   0x4   :  { %7206 = sst [smem:[#allocation96_spill]] %s7169_s6 }
   0x5   :  { %7207 = sst [smem:[#allocation97_spill]] %s7170_s7 }
   0x6   :  { %7208 = sst [smem:[#allocation98_spill]] %s7171_s8 }
   0x7   :  { %7209 = sst [smem:[#allocation99_spill]] %s7172_s9 }
   0x8   :  { %7210 = sst [smem:[#allocation100_spill]] %s7173_s10 }
   0x9   :  { %7211 = sst [smem:[#allocation101_spill]] %s7174_s11 }
   0xa   :  { %7212 = sst [smem:[#allocation102_spill]] %s7175_s12 }
   0xb   :  { %7213 = sst [smem:[#allocation103_spill]] %s7176_s13 }
   0xc   :  { %7214 = sst [smem:[#allocation104_spill]] %s7177_s14 }
   0xd   :  { %7215 = sst [smem:[#allocation105_spill]] %s7178_s15 }
   0xe   :  { %7216 = sst [smem:[#allocation106_spill]] %s7179_s16 }
   0xf   :  { %7217 = sst [smem:[#allocation107_spill]] %s7180_s17 }
  0x10   :  { %s7218_s26 = sld [smem:[#allocation93_spill]] }
  0x16   :  { %s24_s11 = sshll.u32 %s7218_s26, 4  ;;  %s25_s11 = int_to_ptr.vmem [resolvable:$true] %s24_s11 }
  0x17   :  { %27 = dma.vmem_to_smem %s25_s11, 32, %s3932_s27, [#allocation4] }
  0x18   :  { %3926 = dma.done.wait [#allocation4], 32 }
  0x19   :  { %3927 = vsyncadd [#allocation4], 4294967264 }
  0x1a   :  { %30 = sfence }
  0x1b   :  { %31 = vsyncpa [#allocation7], 0  ;;  %v206_v0 = vld [vmem:[%s7165_s2 + $0x78] sm:$0xff]  ;;  %v205_v1 = vld [vmem:[%s7165_s2 + $0x70] sm:$0xff]  ;;  %vm407_vm0 = vcmask 1042432   ;;  %s7219_s18 = sld [smem:[#allocation94_spill]] }
  0x1c   :  { %411 = vmatpush.msra.mxu0 %v206_v0  ;;  %v204_v2 = vld [vmem:[%s7165_s2 + $0x68] sm:$0xff]  ;;  %v203_v3 = vld [vmem:[%s7165_s2 + $0x60] sm:$0xff]  ;;  %v209_v4 = vld [vmem:[%s7165_s2 + $0x90] sm:$0x7]  ;;  %vm214_vm1 = vcmask 154624  }
  0x1d   :  { %v208_v5 = vld [vmem:[%s7165_s2 + $0x88] sm:$0xff]  ;;  %v202_v6 = vld [vmem:[%s7165_s2 + $0x58] sm:$0xff]  ;;  %3583 = vmatpush.msk.msra.mxu1 %vm407_vm0, %v209_v4  ;;  %v207_v7 = vld [vmem:[%s7165_s2 + $0x80] sm:$0xff] }
  0x1e   :  { %412 = vmatpush.msra.mxu0 %v205_v1  ;;  %v201_v8 = vld [vmem:[%s7165_s2 + $0x50] sm:$0xff] }
  0x1f   :  { %634 = vmatpush.msra.mxu1 %v208_v5 }
  0x20   :  { %413 = vmatpush.msra.mxu0 %v204_v2 }
  0x21   :  { %v64_v9 = vld [vmem:[%s7219_s18 + $0x8] sm:$0xff] }
  0x22   :  { %414 = vmatpush.msra.mxu0 %v203_v3 }
  0x24   :  { %415 = vmatpush.msra.mxu0 %v202_v6 }
  0x25   :  { %32 = vsyncpa [#allocation9], 0  ;;  %v200_v10 = vld [vmem:[%s7165_s2 + $0x48] sm:$0xff]  ;;  %635 = vmatpush.msra.mxu1 %v207_v7  ;;  %v199_v11 = vld [vmem:[%s7165_s2 + $0x40] sm:$0xff]  ;;  %s4599_s23 = sld [smem:[#allocation5 + $0x14]] }
  0x26   :  { %416 = vmatpush.msra.mxu0 %v201_v8  ;;  %3584 = vmatmul.msk.f32.vlgmr.msra.gmra.mxu1 %vm214_vm1, %v64_v9  ;;  %v198_v12 = vld [vmem:[%s7165_s2 + $0x38] sm:$0xff]  ;;  %v197_v13 = vld [vmem:[%s7165_s2 + $0x30] sm:$0xff]  ;;  %v196_v15 = vld [vmem:[%s7165_s2 + $0x28] sm:$0xff]  ;;  %s4601_s24 = sld [smem:[#allocation5 + $0x28]] }
  0x27   :  { %v66_v14 = vld [vmem:[%s7219_s18 + $0x18] sm:$0xff]  ;;  %v195_v16 = vld [vmem:[%s7165_s2 + $0x20] sm:$0xff]  ;;  %v193_v18 = vld [vmem:[%s7165_s2 + $0x10] sm:$0xff]  ;;  %s4603_s25 = sld [smem:[#allocation5 + $0x3c]] }
  0x28   :  { %417 = vmatpush.msra.mxu0 %v200_v10  ;;  %v194_v17 = vld [vmem:[%s7165_s2 + $0x18] sm:$0xff]  ;;  %v68_v19 = vld [vmem:[%s7219_s18 + $0x28] sm:$0xff]  ;;  %v191_v21 = vld [vmem:[%s7165_s2] sm:$0xff]  ;;  %s4606_s26 = sld [smem:[#allocation5 + $0x50]] }
  0x29   :  { %v192_v20 = vld [vmem:[%s7165_s2 + $0x8] sm:$0xff]  ;;  %v63_v22 = vld [vmem:[%s7219_s18] sm:$0xff]  ;;  %v70_v23 = vld [vmem:[%s7219_s18 + $0x38] sm:$0xff]  ;;  %s4608_s27 = sld [smem:[#allocation5 + $0x64]] }
  0x2a   :  { %418 = vmatpush.msra.mxu0 %v199_v11  ;;  %v65_v24 = vld [vmem:[%s7219_s18 + $0x10] sm:$0xff]  ;;  %v72_v25 = vld [vmem:[%s7219_s18 + $0x48] sm:$0xff]  ;;  %v67_v26 = vld [vmem:[%s7219_s18 + $0x20] sm:$0xff]  ;;  %s4610_s28 = sld [smem:[#allocation5 + $0x78]] }
  0x2b   :  { %v74_v27 = vld [vmem:[%s7219_s18 + $0x58] sm:$0xff]  ;;  %v69_v28 = vld [vmem:[%s7219_s18 + $0x30] sm:$0xff]  ;;  %v76_v29 = vld [vmem:[%s7219_s18 + $0x68] sm:$0xff]  ;;  %s4612_s29 = sld [smem:[#allocation5 + $0x8c]] }
  0x2c   :  { %419 = vmatpush.msra.mxu0 %v198_v12  ;;  %v71_v30 = vld [vmem:[%s7219_s18 + $0x40] sm:$0xff]  ;;  %v78_v31 = vld [vmem:[%s7219_s18 + $0x78] sm:$0xff]  ;;  %v73_v32 = vld [vmem:[%s7219_s18 + $0x50] sm:$0xff]  ;;  %s4614_s0 = sld [smem:[#allocation5 + $0x1]] }
  0x2d   :  { %v80_v33 = vld [vmem:[%s7219_s18 + $0x88] sm:$0xff]  ;;  %v75_v34 = vld [vmem:[%s7219_s18 + $0x60] sm:$0xff]  ;;  %v82_v35 = vld [vmem:[%s7219_s18 + $0x98] sm:$0xff]  ;;  %s4616_s30 = sld [smem:[#allocation5 + $0x15]] }
  0x2e   :  { %420 = vmatpush.msra.mxu0 %v197_v13  ;;  %3585 = vmatmul.msk.f32.gmra.mxu1 %vm214_vm1, %v66_v14  ;;  %v77_v36 = vld [vmem:[%s7219_s18 + $0x70] sm:$0xff]  ;;  %v84_v37 = vld [vmem:[%s7219_s18 + $0xa8] sm:$0xff]  ;;  %v79_v38 = vld [vmem:[%s7219_s18 + $0x80] sm:$0xff]  ;;  %s4620_s19 = sld [smem:[#allocation5 + $0x3d]] }
  0x2f   :  { %v86_v39 = vld [vmem:[%s7219_s18 + $0xb8] sm:$0xff]  ;;  %v81_v40 = vld [vmem:[%s7219_s18 + $0x90] sm:$0xff]  ;;  %v88_v41 = vld [vmem:[%s7219_s18 + $0xc8] sm:$0xff]  ;;  %s4629_s21 = sld [smem:[#allocation5 + $0x51]] }
  0x30   :  { %421 = vmatpush.msra.mxu0 %v196_v15  ;;  %v83_v42 = vld [vmem:[%s7219_s18 + $0xa0] sm:$0xff]  ;;  %v90_v43 = vld [vmem:[%s7219_s18 + $0xd8] sm:$0xff]  ;;  %v85_v44 = vld [vmem:[%s7219_s18 + $0xb0] sm:$0xff]  ;;  %s4633_s22 = sld [smem:[#allocation5 + $0x65]] }
  0x31   :  { %v92_v45 = vld [vmem:[%s7219_s18 + $0xe8] sm:$0xff]  ;;  %v87_v46 = vld [vmem:[%s7219_s18 + $0xc0] sm:$0xff]  ;;  %v94_v47 = vld [vmem:[%s7219_s18 + $0xf8] sm:$0xff]  ;;  %s4641_s11 = sld [smem:[#allocation5 + $0x79]] }
  0x32   :  { %422 = vmatpush.msra.mxu0 %v195_v16  ;;  %v89_v48 = vld [vmem:[%s7219_s18 + $0xd0] sm:$0xff]  ;;  %v96_v50 = vld [vmem:[%s7219_s18 + $0x108] sm:$0xff]  ;;  %v91_v51 = vld [vmem:[%s7219_s18 + $0xe0] sm:$0xff]  ;;  %s4643_s1 = sld [smem:[#allocation5 + $0x8d]] }
  0x33   :  { %v98_v53 = vld [vmem:[%s7219_s18 + $0x118] sm:$0xff]  ;;  %v93_v54 = vld [vmem:[%s7219_s18 + $0xf0] sm:$0xff]  ;;  %v100_v56 = vld [vmem:[%s7219_s18 + $0x128] sm:$0xff]  ;;  %s4651_s15 = sld [smem:[#allocation5 + $0x2]] }
  0x34   :  { %423 = vmatpush.msra.mxu0 %v194_v17  ;;  %v4212_v57 = vld [vmem:[%s7166_s3] ss:$0 sm:$0xff]  ;;  %v102_v63 = vld [vmem:[%s7219_s18 + $0x138] sm:$0xff]  ;;  %v97_v3 = vld [vmem:[%s7219_s18 + $0x110] sm:$0xff]  ;;  %s4659_s8 = sld [smem:[#allocation5 + $0x16]] }
  0x35   :  { %v95_v59 = vld [vmem:[%s7219_s18 + $0x100] sm:$0xff]  ;;  %v104_v7 = vld [vmem:[%s7219_s18 + $0x148] sm:$0xff]  ;;  %v106_v15 = vld [vmem:[%s7219_s18 + $0x158] sm:$0xff]  ;;  %s4661_s12 = sld [smem:[#allocation5 + $0x2a]] }
  0x36   :  { %424 = vmatpush.msra.mxu0 %v193_v18  ;;  %3586 = vmatmul.msk.f32.gmra.mxu1 %vm214_vm1, %v68_v19  ;;  %v99_v11 = vld [vmem:[%s7219_s18 + $0x120] sm:$0xff]  ;;  %v101_v19 = vld [vmem:[%s7219_s18 + $0x130] sm:$0xff]  ;;  %s4670_s9 = sld [smem:[#allocation5 + $0x3e]] }
  0x37   :  { %s4672_s17 = sld [smem:[#allocation5 + $0x52]] }
  0x38   :  { %425 = vmatpush.msra.mxu0 %v192_v20  ;;  %s4680_s13 = sld [smem:[#allocation5 + $0x66]] }
  0x39   :  { %s4682_s14 = sld [smem:[#allocation5 + $0x7a]] }
  0x3a   :  { %426 = vmatpush.msra.mxu0 %v191_v21  ;;  %s4690_s5 = sld [smem:[#allocation5 + $0x8e]] }
  0x3b   :  { %427 = vmatmul.f32.vlgmr.msra.gmra.mxu0 %v63_v22  ;;  %s4700_s7 = sld [smem:[#allocation5 + $0x17]] }
  0x3c   :  { %s4720_s20 = sld [smem:[#allocation5 + $0x53]] }
  0x3d   :  { %7220 = sst [smem:[#allocation13_spill]] %s4672_s17 }
  0x3e   :  { %3587 = vmatmul.msk.f32.gmra.mxu1 %vm214_vm1, %v70_v23  ;;  %v108_v23 = vld [vmem:[%s7219_s18 + $0x168] sm:$0xff]  ;;  %7221 = sst [smem:[#allocation14_spill]] %s4680_s13 }
  0x3f   :  { %7222 = sst [smem:[#allocation15_spill]] %s4682_s14 }
  0x40   :  { %7223 = sst [smem:[#allocation16_spill]] %s4690_s5 }
  0x41   :  { %s4698_s17 = sld [smem:[#allocation5 + $0x3]] }
  0x42   :  { %7225 = sst [smem:[#allocation18_spill]] %s4700_s7 }
  0x43   :  { %430 = vmatmul.f32.gmra.mxu0 %v65_v24  ;;  %s4709_s13 = sld [smem:[#allocation5 + $0x2b]] }
  0x44   :  { %s4711_s14 = sld [smem:[#allocation5 + $0x3f]] }
  0x45   :  { %7228 = sst [smem:[#allocation21_spill]] %s4720_s20 }
  0x46   :  { %3588 = vmatmul.msk.f32.gmra.mxu1 %vm214_vm1, %v72_v25  ;;  %s4722_s16 = sld [smem:[#allocation5 + $0x67]] }
  0x47   :  { %7224 = sst [smem:[#allocation17_spill]] %s4698_s17 }
  0x48   :  { %s4730_s17 = sld [smem:[#allocation5 + $0x7b]] }
  0x49   :  { %7226 = sst [smem:[#allocation19_spill]] %s4709_s13 }
  0x4a   :  { %7227 = sst [smem:[#allocation20_spill]] %s4711_s14 }
  0x4b   :  { %433 = vmatmul.f32.gmra.mxu0 %v67_v26  ;;  %s4738_s10 = sld [smem:[#allocation5 + $0x8f]] }
  0x4c   :  { %7229 = sst [smem:[#allocation22_spill]] %s4722_s16 }
  0x4d   :  { %s4740_s13 = sld [smem:[#allocation5 + $0x4]] }
  0x4e   :  { %3589 = vmatmul.msk.f32.gmra.mxu1 %vm214_vm1, %v74_v27  ;;  %v103_v27 = vld [vmem:[%s7219_s18 + $0x140] sm:$0xff]  ;;  %7230 = sst [smem:[#allocation23_spill]] %s4730_s17 }
  0x4f   :  { %s4749_s16 = sld [smem:[#allocation5 + $0x18]] }
  0x50   :  { %s4751_s2 = sld [smem:[#allocation5 + $0x2c]] }
  0x51   :  { %7231 = sst [smem:[#allocation24_spill]] %s4738_s10 }
  0x52   :  { %s4759_s14 = sld [smem:[#allocation5 + $0x40]] }
  0x53   :  { %436 = vmatmul.f32.gmra.mxu0 %v69_v28  ;;  %7232 = sst [smem:[#allocation25_spill]] %s4740_s13 }
  0x54   :  { %s4761_s6 = sld [smem:[#allocation5 + $0x54]] }
  0x55   :  { %7233 = sst [smem:[#allocation26_spill]] %s4749_s16 }
  0x56   :  { %3590 = vmatmul.msk.f32.gmra.mxu1 %vm214_vm1, %v76_v29  ;;  %7234 = sst [smem:[#allocation27_spill]] %s4751_s2 }
  0x57   :  { %s4769_s20 = sld [smem:[#allocation5 + $0x68]] }
  0x58   :  { %7235 = sst [smem:[#allocation28_spill]] %s4759_s14 }
  0x59   :  { %s4777_s14 = sld [smem:[#allocation5 + $0x7c]] }
  0x5a   :  { %7236 = sst [smem:[#allocation29_spill]] %s4761_s6 }
  0x5b   :  { %439 = vmatmul.f32.gmra.mxu0 %v71_v30  ;;  %s4785_s17 = sld [smem:[#allocation5 + $0x90]] }
  0x5c   :  { %s4788_s6 = sld [smem:[#allocation5 + $0x5]] }
  0x5d   :  { %7237 = sst [smem:[#allocation30_spill]] %s4769_s20 }
  0x5e   :  { %3591 = vmatmul.msk.f32.gmra.mxu1 %vm214_vm1, %v78_v31  ;;  %v110_v31 = vld [vmem:[%s7219_s18 + $0x178] sm:$0xff]  ;;  %s4796_s16 = sld [smem:[#allocation5 + $0x19]] }
  0x5f   :  { %7238 = sst [smem:[#allocation31_spill]] %s4777_s14 }
  0x60   :  { %s4798_s2 = sld [smem:[#allocation5 + $0x2d]] }
  0x61   :  { %7239 = sst [smem:[#allocation32_spill]] %s4785_s17 }
  0x62   :  { %7240 = sst [smem:[#allocation33_spill]] %s4788_s6 }
  0x63   :  { %442 = vmatmul.f32.gmra.mxu0 %v73_v32  ;;  %s4806_s10 = sld [smem:[#allocation5 + $0x41]] }
  0x64   :  { %7241 = sst [smem:[#allocation34_spill]] %s4796_s16 }
  0x65   :  { %s4808_s14 = sld [smem:[#allocation5 + $0x55]] }
  0x66   :  { %3592 = vmatmul.msk.f32.gmra.mxu1 %vm214_vm1, %v80_v33  ;;  %7242 = sst [smem:[#allocation35_spill]] %s4798_s2 }
  0x67   :  { %s4816_s5 = sld [smem:[#allocation5 + $0x69]] }
  0x68   :  { %s4818_s17 = sld [smem:[#allocation5 + $0x7d]] }
  0x69   :  { %7243 = sst [smem:[#allocation36_spill]] %s4806_s10 }
  0x6a   :  { %s4826_s13 = sld [smem:[#allocation5 + $0x91]] }
  0x6b   :  { %445 = vmatmul.f32.gmra.mxu0 %v75_v34  ;;  %7244 = sst [smem:[#allocation37_spill]] %s4808_s14 }
  0x6c   :  { %s4829_s16 = sld [smem:[#allocation5 + $0x6]] }
  0x6d   :  { %7245 = sst [smem:[#allocation38_spill]] %s4816_s5 }
  0x6e   :  { %3593 = vmatmul.msk.f32.gmra.mxu1 %vm214_vm1, %v82_v35  ;;  %v105_v35 = vld [vmem:[%s7219_s18 + $0x150] sm:$0xff]  ;;  %7246 = sst [smem:[#allocation39_spill]] %s4818_s17 }
  0x6f   :  { %s4837_s7 = sld [smem:[#allocation5 + $0x1a]] }
  0x70   :  { %7247 = sst [smem:[#allocation40_spill]] %s4826_s13 }
  0x71   :  { %s4839_s14 = sld [smem:[#allocation5 + $0x2e]] }
  0x72   :  { %7248 = sst [smem:[#allocation41_spill]] %s4829_s16 }
  0x73   :  { %448 = vmatmul.f32.gmra.mxu0 %v77_v36  ;;  %s4847_s17 = sld [smem:[#allocation5 + $0x42]] }
  0x74   :  { %s4849_s5 = sld [smem:[#allocation5 + $0x56]] }
  0x75   :  { %7249 = sst [smem:[#allocation42_spill]] %s4837_s7 }
  0x76   :  { %3594 = vmatmul.msk.f32.gmra.mxu1 %vm214_vm1, %v84_v37  ;;  %s4857_s13 = sld [smem:[#allocation5 + $0x6a]] }
  0x77   :  { %7250 = sst [smem:[#allocation43_spill]] %s4839_s14 }
  0x78   :  { %s4859_s10 = sld [smem:[#allocation5 + $0x7e]] }
  0x79   :  { %7251 = sst [smem:[#allocation44_spill]] %s4847_s17 }
  0x7a   :  { %7252 = sst [smem:[#allocation45_spill]] %s4849_s5 }
  0x7b   :  { %451 = vmatmul.f32.gmra.mxu0 %v79_v38  ;;  %s4870_s14 = sld [smem:[#allocation5 + $0x92]] }
  0x7c   :  { %7253 = sst [smem:[#allocation46_spill]] %s4857_s13 }
  0x7d   :  { %s4876_s16 = sld [smem:[#allocation5 + $0x7]] }
  0x7e   :  { %3595 = vmatmul.msk.f32.gmra.mxu1 %vm214_vm1, %v86_v39  ;;  %v112_v39 = vld [vmem:[%s7219_s18 + $0x188] sm:$0xff]  ;;  %7254 = sst [smem:[#allocation47_spill]] %s4859_s10 }
  0x7f   :  { %s4884_s6 = sld [smem:[#allocation5 + $0x1b]] }
  0x80   :  { %s4886_s7 = sld [smem:[#allocation5 + $0x2f]] }
  0x81   :  { %7255 = sst [smem:[#allocation48_spill]] %s4870_s14 }
  0x82   :  { %s4894_s17 = sld [smem:[#allocation5 + $0x43]] }
  0x83   :  { %454 = vmatmul.f32.gmra.mxu0 %v81_v40  ;;  %7256 = sst [smem:[#allocation49_spill]] %s4876_s16 }
  0x84   :  { %s4896_s20 = sld [smem:[#allocation5 + $0x57]] }
  0x85   :  { %7257 = sst [smem:[#allocation50_spill]] %s4884_s6 }
  0x86   :  { %3596 = vmatmul.msk.f32.gmra.mxu1 %vm214_vm1, %v88_v41  ;;  %7258 = sst [smem:[#allocation51_spill]] %s4886_s7 }
  0x87   :  { %s4904_s13 = sld [smem:[#allocation5 + $0x6b]] }
  0x88   :  { %7259 = sst [smem:[#allocation52_spill]] %s4894_s17 }
  0x89   :  { %s4906_s14 = sld [smem:[#allocation5 + $0x7f]] }
  0x8a   :  { %7260 = sst [smem:[#allocation53_spill]] %s4896_s20 }
  0x8b   :  { %457 = vmatmul.f32.gmra.mxu0 %v83_v42  ;;  %s4914_s2 = sld [smem:[#allocation5 + $0x93]] }
  0x8c   :  { %s4917_s6 = sld [smem:[#allocation5 + $0x8]] }
  0x8d   :  { %7261 = sst [smem:[#allocation54_spill]] %s4904_s13 }
  0x8e   :  { %3597 = vmatmul.msk.f32.gmra.mxu1 %vm214_vm1, %v90_v43  ;;  %v107_v43 = vld [vmem:[%s7219_s18 + $0x160] sm:$0xff]  ;;  %s4925_s16 = sld [smem:[#allocation5 + $0x1c]] }
  0x8f   :  { %7262 = sst [smem:[#allocation55_spill]] %s4906_s14 }
  0x90   :  { %s4927_s20 = sld [smem:[#allocation5 + $0x30]] }
  0x91   :  { %7263 = sst [smem:[#allocation56_spill]] %s4914_s2 }
  0x92   :  { %7264 = sst [smem:[#allocation57_spill]] %s4917_s6 }
  0x93   :  { %460 = vmatmul.f32.gmra.mxu0 %v85_v44  ;;  %s4935_s14 = sld [smem:[#allocation5 + $0x44]] }
  0x94   :  { %s4937_s17 = sld [smem:[#allocation5 + $0x58]] }
  0x95   :  { %s4939_s13 = sld [smem:[#allocation5 + $0x6c]] }
  0x96   :  { %3598 = vmatmul.msk.f32.gmra.mxu1 %vm214_vm1, %v92_v45  ;;  %7265 = sst [smem:[#allocation58_spill]] %s4927_s20  ;;  %s1166_s20 = scalar_lea.vmem [#allocation2], %s4599_s23 }
  0x97   :  { %s4941_s7 = sld [smem:[#allocation5 + $0x80]] }
  0x98   :  { %s4943_s2 = sld [smem:[#allocation5 + $0x94]] }
  0x99   :  { %7266 = sst [smem:[#allocation59_spill]] %s4935_s14 }
  0x9a   :  { %7267 = sst [smem:[#allocation60_spill]] %s4937_s17 }
  0x9b   :  { %463 = vmatmul.f32.gmra.mxu0 %v87_v46  ;;  %7268 = sst [smem:[#allocation61_spill]] %s4939_s13 }
  0x9c   :  { %s4946_s6 = sld [smem:[#allocation5 + $0x9]] }
  0x9d   :  { %7269 = sst [smem:[#allocation62_spill]] %s4941_s7 }
  0x9e   :  { %3599 = vmatmul.msk.f32.gmra.mxu1 %vm214_vm1, %v94_v47  ;;  %v114_v47 = vld [vmem:[%s7219_s18 + $0x198] sm:$0xff]  ;;  %7270 = sst [smem:[#allocation63_spill]] %s4943_s2 }
  0x9f   :  { %s4948_s10 = sld [smem:[#allocation5 + $0x1d]] }
  0xa0   :  { %s4950_s5 = sld [smem:[#allocation5 + $0x31]] }
  0xa1   :  { %s4952_s17 = sld [smem:[#allocation5 + $0x45]] }
  0xa2   :  { %7271 = sst [smem:[#allocation64_spill]] %s4946_s6 }
  0xa3   :  { %466 = vmatmul.f32.gmra.mxu0 %v89_v48  ;;  %v637_v49 = vpop.f32.mrf.mxu1  ;;  %s4954_s13 = sld [smem:[#allocation5 + $0x59]] }
  0xa4   :  { %s4956_s7 = sld [smem:[#allocation5 + $0x6d]] }
  0xa5   :  { %7272 = sst [smem:[#allocation65_spill]] %s4948_s10 }
  0xa6   :  { %3600 = vmatmul.msk.f32.gmra.mxu1 %vm214_vm1, %v96_v50  ;;  %7273 = sst [smem:[#allocation66_spill]] %s4950_s5 }
  0xa7   :  { %7274 = sst [smem:[#allocation67_spill]] %s4952_s17 }
  0xa8   :  { %s4958_s14 = sld [smem:[#allocation5 + $0x81]] }
  0xa9   :  { %7275 = sst [smem:[#allocation68_spill]] %s4954_s13 }
  0xaa   :  { %7276 = sst [smem:[#allocation69_spill]] %s4956_s7 }
  0xab   :  { %469 = vmatmul.f32.gmra.mxu0 %v91_v51  ;;  %v640_v52 = vpop.f32.mrf.mxu1  ;;  %v109_v51 = vld [vmem:[%s7219_s18 + $0x170] sm:$0xff]  ;;  %s4960_s6 = sld [smem:[#allocation5 + $0x95]] }
  0xac   :  { %s4963_s10 = sld [smem:[#allocation5 + $0xa]] }
  0xad   :  { %s4965_s5 = sld [smem:[#allocation5 + $0x1e]] }
  0xae   :  { %3601 = vmatmul.msk.f32.gmra.mxu1 %vm214_vm1, %v98_v53  ;;  %7277 = sst [smem:[#allocation70_spill]] %s4958_s14 }
  0xaf   :  { %s4967_s17 = sld [smem:[#allocation5 + $0x32]] }
  0xb0   :  { %s4969_s13 = sld [smem:[#allocation5 + $0x46]] }
  0xb1   :  { %7278 = sst [smem:[#allocation71_spill]] %s4960_s6 }
  0xb2   :  { %7279 = sst [smem:[#allocation72_spill]] %s4963_s10 }
  0xb3   :  { %472 = vmatmul.f32.gmra.mxu0 %v93_v54  ;;  %v643_v55 = vpop.f32.mrf.mxu1  ;;  %7280 = sst [smem:[#allocation73_spill]] %s4965_s5 }
  0xb4   :  { %s4971_s14 = sld [smem:[#allocation5 + $0x5a]] }
  0xb5   :  { %7281 = sst [smem:[#allocation74_spill]] %s4967_s17 }
  0xb6   :  { %3602 = vmatmul.msk.f32.gmra.mxu1 %vm214_vm1, %v100_v56  ;;  %7282 = sst [smem:[#allocation75_spill]] %s4969_s13 }
  0xb7   :  { %s4973_s7 = sld [smem:[#allocation5 + $0x6e]] }
  0xb8   :  { %v428_v58 = vpop.f32.mrf.mxu0  ;;  %s4975_s6 = sld [smem:[#allocation5 + $0x82]] }
  0xb9   :  { %v429_v60 = vadd.f32 %v4212_v57, %v428_v58  ;;  %s4977_s5 = sld [smem:[#allocation5 + $0x96]] }
  0xba   :  { %7283 = sst [smem:[#allocation76_spill]] %s4971_s14 }
  0xbb   :  { %v638_v61 = vadd.f32 %v637_v49, %v429_v60  ;;  %475 = vmatmul.f32.gmra.mxu0 %v95_v59  ;;  %v646_v62 = vpop.f32.mrf.mxu1  ;;  %v111_v60 = vld [vmem:[%s7219_s18 + $0x180] sm:$0xff]  ;;  %s4979_s10 = sld [smem:[#allocation5 + $0xb]] }
  0xbc   :  { %s4981_s17 = sld [smem:[#allocation5 + $0x1f]] }
  0xbd   :  { %vm829_vm2 = vcmp.ge.f32.partialorder %v638_v61, 0.0  ;;  %v893_v0 = vmul.f32 0.01, %v638_v61  ;;  %7284 = sst [smem:[#allocation77_spill]] %s4973_s7 }
  0xbe   :  { %3603 = vmatmul.msk.f32.gmra.mxu1 %vm214_vm1, %v102_v63  ;;  %7285 = sst [smem:[#allocation78_spill]] %s4975_s6  ;;  %s1246_s6 = scalar_lea.vmem [#allocation2], %s4601_s24 }
  0xbf   :  { %v957_v1 = vsel %vm829_vm2, %v638_v61, %v893_v0  ;;  %v118_v0 = vld [vmem:[%s7219_s18 + $0x1b8] sm:$0xff]  ;;  %7286 = sst [smem:[#allocation79_spill]] %s4977_s5  ;;  %s1326_s5 = scalar_lea.vmem [#allocation2], %s4603_s25 }
  0xc0   :  { %1021 = vst [vmem:[#allocation2] sm:$0xff] %v957_v1  ;;  %v431_v2 = vpop.f32.mrf.mxu0  ;;  %s4983_s13 = sld [smem:[#allocation5 + $0x33]]  ;;  %s1646_s24 = scalar_lea.vmem [#allocation2], %s4612_s29 }
  0xc1   :  { %v432_v4 = vadd.f32 %v4212_v57, %v431_v2  ;;  %s4985_s2 = sld [smem:[#allocation5 + $0x47]]  ;;  %s1090_s25 = scalar_lea.vmem [#allocation2], %s4614_s0 }
  0xc2   :  { %7287 = sst [smem:[#allocation80_spill]] %s4981_s17  ;;  %s1406_s17 = scalar_lea.vmem [#allocation2], %s4606_s26 }
  0xc3   :  { %v641_v5 = vadd.f32 %v640_v52, %v432_v4  ;;  %478 = vmatmul.f32.gmra.mxu0 %v97_v3  ;;  %v649_v6 = vpop.f32.mrf.mxu1  ;;  %v113_v4 = vld [vmem:[%s7219_s18 + $0x190] sm:$0xff]  ;;  %s4987_s14 = sld [smem:[#allocation5 + $0x5b]]  ;;  %s1410_s0 = scalar_lea.vmem [#allocation2], %s4629_s21 }
  0xc4   :  { %s4998_s23 = sld [smem:[#allocation5 + $0x83]] }
  0xc5   :  { %vm830_vm3 = vcmp.ge.f32.partialorder %v641_v5, 0.0  ;;  %v894_v8 = vmul.f32 0.01, %v641_v5  ;;  %s5002_s26 = sld [smem:[#allocation5 + $0x97]] }
  0xc6   :  { %3604 = vmatmul.msk.f32.gmra.mxu1 %vm214_vm1, %v104_v7  ;;  %s5009_s29 = sld [smem:[#allocation5 + $0x20]] }
  0xc7   :  { %v958_v9 = vsel %vm830_vm3, %v641_v5, %v894_v8  ;;  %v120_v8 = vld [vmem:[%s7219_s18 + $0x1c8] sm:$0xff]  ;;  %7288 = sst [smem:[#allocation81_spill]] %s4985_s2  ;;  %s1486_s2 = scalar_lea.vmem [#allocation2], %s4608_s27 }
  0xc8   :  { %1022 = vst [vmem:[#allocation2 + $0x8] sm:$0xff] %v958_v9  ;;  %v434_v10 = vpop.f32.mrf.mxu0  ;;  %s1170_s27 = scalar_lea.vmem [#allocation2], %s4616_s30  ;;  %s1490_s30 = scalar_lea.vmem [#allocation2], %s4633_s22 }
  0xc9   :  { %v435_v12 = vadd.f32 %v4212_v57, %v434_v10  ;;  %7289 = sst [smem:[#allocation82_spill]] %s4987_s14  ;;  %s1094_s22 = scalar_lea.vmem [#allocation2], %s4651_s15 }
  0xca   :  { %s4995_s14 = sld [smem:[#allocation5 + $0x6f]] }
  0xcb   :  { %v644_v13 = vadd.f32 %v643_v55, %v435_v12  ;;  %481 = vmatmul.f32.gmra.mxu0 %v99_v11  ;;  %v652_v14 = vpop.f32.mrf.mxu1  ;;  %v116_v55 = vld [vmem:[%s7219_s18 + $0x1a8] sm:$0xff]  ;;  %v115_v12 = vld [vmem:[%s7219_s18 + $0x1a0] sm:$0xff]  ;;  %s5021_s21 = sld [smem:[#allocation5 + $0x70]] }
  0xcc   :  { %s5033_s15 = sld [smem:[#allocation5 + $0x84]] }
  0xcd   :  { %vm831_vm4 = vcmp.ge.f32.partialorder %v644_v13, 0.0  ;;  %v895_v16 = vmul.f32 0.01, %v644_v13 }
  0xce   :  { %3605 = vmatmul.msk.f32.gmra.mxu1 %vm214_vm1, %v106_v15 }
  0xcf   :  { %v959_v17 = vsel %vm831_vm4, %v644_v13, %v895_v16  ;;  %v122_v16 = vld [vmem:[%s7219_s18 + $0x1d8] sm:$0xff] }
  0xd0   :  { %1023 = vst [vmem:[#allocation2 + $0x10] sm:$0xff] %v959_v17  ;;  %v437_v18 = vpop.f32.mrf.mxu0 }
  0xd1   :  { %v438_v20 = vadd.f32 %v4212_v57, %v437_v18 }
  0xd3   :  { %v647_v21 = vadd.f32 %v646_v62, %v438_v20  ;;  %484 = vmatmul.f32.gmra.mxu0 %v101_v19  ;;  %v655_v22 = vpop.f32.mrf.mxu1  ;;  %v117_v20 = vld [vmem:[%s7219_s18 + $0x1b0] sm:$0xff] }
  0xd5   :  { %vm832_vm5 = vcmp.ge.f32.partialorder %v647_v21, 0.0  ;;  %v896_v24 = vmul.f32 0.01, %v647_v21 }
  0xd6   :  { %3606 = vmatmul.msk.f32.gmra.mxu1 %vm214_vm1, %v108_v23 }
  0xd7   :  { %v960_v25 = vsel %vm832_vm5, %v647_v21, %v896_v24  ;;  %v124_v24 = vld [vmem:[%s7219_s18 + $0x1e8] sm:$0xff] }
  0xd8   :  { %1024 = vst [vmem:[#allocation2 + $0x18] sm:$0xff] %v960_v25  ;;  %v440_v26 = vpop.f32.mrf.mxu0 }
  0xd9   :  { %v441_v28 = vadd.f32 %v4212_v57, %v440_v26 }
  0xdb   :  { %v650_v29 = vadd.f32 %v649_v6, %v441_v28  ;;  %487 = vmatmul.f32.gmra.mxu0 %v103_v27  ;;  %v658_v30 = vpop.f32.mrf.mxu1  ;;  %v119_v28 = vld [vmem:[%s7219_s18 + $0x1c0] sm:$0xff] }
  0xdd   :  { %vm833_vm6 = vcmp.ge.f32.partialorder %v650_v29, 0.0  ;;  %v897_v32 = vmul.f32 0.01, %v650_v29 }
  0xde   :  { %3607 = vmatmul.msk.f32.gmra.mxu1 %vm214_vm1, %v110_v31 }
  0xdf   :  { %v961_v33 = vsel %vm833_vm6, %v650_v29, %v897_v32  ;;  %v126_v32 = vld [vmem:[%s7219_s18 + $0x1f8] sm:$0xff] }
  0xe0   :  { %1025 = vst [vmem:[#allocation2 + $0x20] sm:$0xff] %v961_v33  ;;  %v443_v34 = vpop.f32.mrf.mxu0 }
  0xe1   :  { %v444_v36 = vadd.f32 %v4212_v57, %v443_v34 }
  0xe3   :  { %v653_v37 = vadd.f32 %v652_v14, %v444_v36  ;;  %490 = vmatmul.f32.gmra.mxu0 %v105_v35  ;;  %v661_v38 = vpop.f32.mrf.mxu1  ;;  %v121_v36 = vld [vmem:[%s7219_s18 + $0x1d0] sm:$0xff] }
  0xe5   :  { %vm834_vm7 = vcmp.ge.f32.partialorder %v653_v37, 0.0  ;;  %v898_v40 = vmul.f32 0.01, %v653_v37 }
  0xe6   :  { %3608 = vmatmul.msk.f32.gmra.mxu1 %vm214_vm1, %v112_v39 }
  0xe7   :  { %v962_v41 = vsel %vm834_vm7, %v653_v37, %v898_v40  ;;  %v128_v40 = vld [vmem:[%s7219_s18 + $0x208] sm:$0xff] }
  0xe8   :  { %1026 = vst [vmem:[#allocation2 + $0x28] sm:$0xff] %v962_v41  ;;  %v446_v42 = vpop.f32.mrf.mxu0 }
  0xe9   :  { %v447_v44 = vadd.f32 %v4212_v57, %v446_v42 }
  0xeb   :  { %v656_v45 = vadd.f32 %v655_v22, %v447_v44  ;;  %493 = vmatmul.f32.gmra.mxu0 %v107_v43  ;;  %v664_v46 = vpop.f32.mrf.mxu1  ;;  %v123_v44 = vld [vmem:[%s7219_s18 + $0x1e0] sm:$0xff] }
  0xed   :  { %vm835_vm8 = vcmp.ge.f32.partialorder %v656_v45, 0.0  ;;  %v899_v48 = vmul.f32 0.01, %v656_v45 }
  0xee   :  { %3609 = vmatmul.msk.f32.gmra.mxu1 %vm214_vm1, %v114_v47 }
  0xef   :  { %v963_v49 = vsel %vm835_vm8, %v656_v45, %v899_v48  ;;  %v130_v48 = vld [vmem:[%s7219_s18 + $0x218] sm:$0xff] }
  0xf0   :  { %1027 = vst [vmem:[#allocation2 + $0x30] sm:$0xff] %v963_v49  ;;  %v449_v50 = vpop.f32.mrf.mxu0 }
  0xf1   :  { %v450_v52 = vadd.f32 %v4212_v57, %v449_v50 }
  0xf3   :  { %v659_v53 = vadd.f32 %v658_v30, %v450_v52  ;;  %496 = vmatmul.f32.gmra.mxu0 %v109_v51  ;;  %v667_v54 = vpop.f32.mrf.mxu1  ;;  %v125_v52 = vld [vmem:[%s7219_s18 + $0x1f0] sm:$0xff] }
  0xf5   :  { %vm836_vm9 = vcmp.ge.f32.partialorder %v659_v53, 0.0  ;;  %v900_v56 = vmul.f32 0.01, %v659_v53 }
  0xf6   :  { %3610 = vmatmul.msk.f32.gmra.mxu1 %vm214_vm1, %v116_v55 }
  0xf7   :  { %v964_v58 = vsel %vm836_vm9, %v659_v53, %v900_v56  ;;  %v132_v56 = vld [vmem:[%s7219_s18 + $0x228] sm:$0xff] }
  0xf8   :  { %1028 = vst [vmem:[#allocation2 + $0x38] sm:$0xff] %v964_v58  ;;  %v452_v59 = vpop.f32.mrf.mxu0 }
  0xf9   :  { %v453_v61 = vadd.f32 %v4212_v57, %v452_v59 }
  0xfb   :  { %v662_v62 = vadd.f32 %v661_v38, %v453_v61  ;;  %499 = vmatmul.f32.gmra.mxu0 %v111_v60  ;;  %v670_v63 = vpop.f32.mrf.mxu1  ;;  %v127_v61 = vld [vmem:[%s7219_s18 + $0x200] sm:$0xff] }
  0xfd   :  { %vm837_vm10 = vcmp.ge.f32.partialorder %v662_v62, 0.0  ;;  %v901_v1 = vmul.f32 0.01, %v662_v62 }
  0xfe   :  { %3611 = vmatmul.msk.f32.gmra.mxu1 %vm214_vm1, %v118_v0 }
  0xff   :  { %v965_v2 = vsel %vm837_vm10, %v662_v62, %v901_v1  ;;  %v134_v1 = vld [vmem:[%s7219_s18 + $0x238] sm:$0xff] }
 0x100   :  { %1029 = vst [vmem:[#allocation2 + $0x40] sm:$0xff] %v965_v2  ;;  %v455_v3 = vpop.f32.mrf.mxu0 }
 0x101   :  { %v456_v5 = vadd.f32 %v4212_v57, %v455_v3 }
 0x103   :  { %v665_v6 = vadd.f32 %v664_v46, %v456_v5  ;;  %502 = vmatmul.f32.gmra.mxu0 %v113_v4  ;;  %v673_v7 = vpop.f32.mrf.mxu1  ;;  %v129_v5 = vld [vmem:[%s7219_s18 + $0x210] sm:$0xff] }
 0x105   :  { %vm838_vm11 = vcmp.ge.f32.partialorder %v665_v6, 0.0  ;;  %v902_v9 = vmul.f32 0.01, %v665_v6 }
 0x106   :  { %3612 = vmatmul.msk.f32.gmra.mxu1 %vm214_vm1, %v120_v8 }
 0x107   :  { %v966_v10 = vsel %vm838_vm11, %v665_v6, %v902_v9  ;;  %v136_v9 = vld [vmem:[%s7219_s18 + $0x248] sm:$0xff] }
 0x108   :  { %1030 = vst [vmem:[#allocation2 + $0x48] sm:$0xff] %v966_v10  ;;  %v458_v11 = vpop.f32.mrf.mxu0 }
 0x109   :  { %v459_v13 = vadd.f32 %v4212_v57, %v458_v11 }
 0x10b   :  { %v668_v14 = vadd.f32 %v667_v54, %v459_v13  ;;  %505 = vmatmul.f32.gmra.mxu0 %v115_v12  ;;  %v676_v15 = vpop.f32.mrf.mxu1  ;;  %v131_v13 = vld [vmem:[%s7219_s18 + $0x220] sm:$0xff] }
 0x10d   :  { %vm839_vm12 = vcmp.ge.f32.partialorder %v668_v14, 0.0  ;;  %v903_v17 = vmul.f32 0.01, %v668_v14 }
 0x10e   :  { %3613 = vmatmul.msk.f32.gmra.mxu1 %vm214_vm1, %v122_v16 }
 0x10f   :  { %v967_v18 = vsel %vm839_vm12, %v668_v14, %v903_v17  ;;  %v138_v17 = vld [vmem:[%s7219_s18 + $0x258] sm:$0xff] }
 0x110   :  { %1031 = vst [vmem:[#allocation2 + $0x50] sm:$0xff] %v967_v18  ;;  %v461_v19 = vpop.f32.mrf.mxu0 }
 0x111   :  { %v462_v21 = vadd.f32 %v4212_v57, %v461_v19 }
 0x113   :  { %v671_v22 = vadd.f32 %v670_v63, %v462_v21  ;;  %508 = vmatmul.f32.gmra.mxu0 %v117_v20  ;;  %v679_v23 = vpop.f32.mrf.mxu1  ;;  %v133_v21 = vld [vmem:[%s7219_s18 + $0x230] sm:$0xff] }
 0x115   :  { %vm840_vm13 = vcmp.ge.f32.partialorder %v671_v22, 0.0  ;;  %v904_v25 = vmul.f32 0.01, %v671_v22 }
 0x116   :  { %3614 = vmatmul.msk.f32.gmra.mxu1 %vm214_vm1, %v124_v24 }
 0x117   :  { %v968_v26 = vsel %vm840_vm13, %v671_v22, %v904_v25  ;;  %v140_v25 = vld [vmem:[%s7219_s18 + $0x268] sm:$0xff] }
 0x118   :  { %1032 = vst [vmem:[#allocation2 + $0x58] sm:$0xff] %v968_v26  ;;  %v464_v27 = vpop.f32.mrf.mxu0 }
 0x119   :  { %v465_v29 = vadd.f32 %v4212_v57, %v464_v27 }
 0x11b   :  { %v674_v30 = vadd.f32 %v673_v7, %v465_v29  ;;  %511 = vmatmul.f32.gmra.mxu0 %v119_v28  ;;  %v682_v31 = vpop.f32.mrf.mxu1  ;;  %v135_v29 = vld [vmem:[%s7219_s18 + $0x240] sm:$0xff] }
 0x11d   :  { %vm841_vm14 = vcmp.ge.f32.partialorder %v674_v30, 0.0  ;;  %v905_v33 = vmul.f32 0.01, %v674_v30 }
 0x11e   :  { %3615 = vmatmul.msk.f32.gmra.mxu1 %vm214_vm1, %v126_v32 }
 0x11f   :  { %v969_v34 = vsel %vm841_vm14, %v674_v30, %v905_v33  ;;  %v142_v33 = vld [vmem:[%s7219_s18 + $0x278] sm:$0xff] }
 0x120   :  { %1033 = vst [vmem:[#allocation2 + $0x60] sm:$0xff] %v969_v34  ;;  %v467_v35 = vpop.f32.mrf.mxu0 }
 0x121   :  { %v468_v37 = vadd.f32 %v4212_v57, %v467_v35 }
 0x123   :  { %v677_v38 = vadd.f32 %v676_v15, %v468_v37  ;;  %514 = vmatmul.f32.gmra.mxu0 %v121_v36  ;;  %v685_v39 = vpop.f32.mrf.mxu1  ;;  %v137_v37 = vld [vmem:[%s7219_s18 + $0x250] sm:$0xff] }
 0x125   :  { %vm842_vm15 = vcmp.ge.f32.partialorder %v677_v38, 0.0  ;;  %v906_v41 = vmul.f32 0.01, %v677_v38 }
 0x126   :  { %3616 = vmatmul.msk.f32.gmra.mxu1 %vm214_vm1, %v128_v40 }
 0x127   :  { %v970_v42 = vsel %vm842_vm15, %v677_v38, %v906_v41  ;;  %v144_v41 = vld [vmem:[%s7219_s18 + $0x288] sm:$0xff] }
 0x128   :  { %1034 = vst [vmem:[#allocation2 + $0x68] sm:$0xff] %v970_v42  ;;  %v470_v43 = vpop.f32.mrf.mxu0 }
 0x129   :  { %v471_v45 = vadd.f32 %v4212_v57, %v470_v43 }
 0x12b   :  { %v680_v46 = vadd.f32 %v679_v23, %v471_v45  ;;  %517 = vmatmul.f32.gmra.mxu0 %v123_v44  ;;  %v688_v47 = vpop.f32.mrf.mxu1  ;;  %v139_v45 = vld [vmem:[%s7219_s18 + $0x260] sm:$0xff] }
 0x12d   :  { %vm843_vm0 = vcmp.ge.f32.partialorder %v680_v46, 0.0  ;;  %v907_v49 = vmul.f32 0.01, %v680_v46 }
 0x12e   :  { %3617 = vmatmul.msk.f32.gmra.mxu1 %vm214_vm1, %v130_v48 }
 0x12f   :  { %v971_v50 = vsel %vm843_vm0, %v680_v46, %v907_v49  ;;  %v146_v49 = vld [vmem:[%s7219_s18 + $0x298] sm:$0xff] }
 0x130   :  { %1035 = vst [vmem:[#allocation2 + $0x70] sm:$0xff] %v971_v50  ;;  %v473_v51 = vpop.f32.mrf.mxu0 }
 0x131   :  { %v474_v53 = vadd.f32 %v4212_v57, %v473_v51 }
 0x133   :  { %v683_v54 = vadd.f32 %v682_v31, %v474_v53  ;;  %520 = vmatmul.f32.gmra.mxu0 %v125_v52  ;;  %v691_v55 = vpop.f32.mrf.mxu1  ;;  %v141_v53 = vld [vmem:[%s7219_s18 + $0x270] sm:$0xff] }
 0x135   :  { %vm844_vm2 = vcmp.ge.f32.partialorder %v683_v54, 0.0  ;;  %v908_v58 = vmul.f32 0.01, %v683_v54 }
 0x136   :  { %3618 = vmatmul.msk.f32.gmra.mxu1 %vm214_vm1, %v132_v56 }
 0x137   :  { %v972_v59 = vsel %vm844_vm2, %v683_v54, %v908_v58  ;;  %v148_v58 = vld [vmem:[%s7219_s18 + $0x2a8] sm:$0xff] }
 0x138   :  { %1036 = vst [vmem:[#allocation2 + $0x78] sm:$0xff] %v972_v59  ;;  %v476_v60 = vpop.f32.mrf.mxu0 }
 0x139   :  { %v477_v62 = vadd.f32 %v4212_v57, %v476_v60 }
 0x13b   :  { %v686_v63 = vadd.f32 %v685_v39, %v477_v62  ;;  %523 = vmatmul.f32.gmra.mxu0 %v127_v61  ;;  %v694_v0 = vpop.f32.mrf.mxu1  ;;  %v143_v62 = vld [vmem:[%s7219_s18 + $0x280] sm:$0xff] }
 0x13d   :  { %vm845_vm3 = vcmp.ge.f32.partialorder %v686_v63, 0.0  ;;  %v909_v2 = vmul.f32 0.01, %v686_v63 }
 0x13e   :  { %3619 = vmatmul.msk.f32.gmra.mxu1 %vm214_vm1, %v134_v1 }
 0x13f   :  { %v973_v3 = vsel %vm845_vm3, %v686_v63, %v909_v2  ;;  %v150_v2 = vld [vmem:[%s7219_s18 + $0x2b8] sm:$0xff] }
 0x140   :  { %1037 = vst [vmem:[#allocation2 + $0x80] sm:$0xff] %v973_v3  ;;  %v479_v4 = vpop.f32.mrf.mxu0 }
 0x141   :  { %v480_v6 = vadd.f32 %v4212_v57, %v479_v4 }
 0x143   :  { %v689_v7 = vadd.f32 %v688_v47, %v480_v6  ;;  %526 = vmatmul.f32.gmra.mxu0 %v129_v5  ;;  %v697_v8 = vpop.f32.mrf.mxu1  ;;  %v145_v6 = vld [vmem:[%s7219_s18 + $0x290] sm:$0xff] }
 0x145   :  { %vm846_vm4 = vcmp.ge.f32.partialorder %v689_v7, 0.0  ;;  %v910_v10 = vmul.f32 0.01, %v689_v7 }
 0x146   :  { %3620 = vmatmul.msk.f32.gmra.mxu1 %vm214_vm1, %v136_v9 }
 0x147   :  { %v974_v11 = vsel %vm846_vm4, %v689_v7, %v910_v10  ;;  %v152_v10 = vld [vmem:[%s7219_s18 + $0x2c8] sm:$0xff] }
 0x148   :  { %1038 = vst [vmem:[#allocation2 + $0x88] sm:$0xff] %v974_v11  ;;  %v482_v12 = vpop.f32.mrf.mxu0 }
 0x149   :  { %v483_v14 = vadd.f32 %v4212_v57, %v482_v12 }
 0x14b   :  { %v692_v15 = vadd.f32 %v691_v55, %v483_v14  ;;  %529 = vmatmul.f32.gmra.mxu0 %v131_v13  ;;  %v700_v16 = vpop.f32.mrf.mxu1  ;;  %v147_v14 = vld [vmem:[%s7219_s18 + $0x2a0] sm:$0xff] }
 0x14d   :  { %vm847_vm5 = vcmp.ge.f32.partialorder %v692_v15, 0.0  ;;  %v911_v18 = vmul.f32 0.01, %v692_v15 }
 0x14e   :  { %3621 = vmatmul.msk.f32.gmra.mxu1 %vm214_vm1, %v138_v17 }
 0x14f   :  { %v975_v19 = vsel %vm847_vm5, %v692_v15, %v911_v18  ;;  %v154_v18 = vld [vmem:[%s7219_s18 + $0x2d8] sm:$0xff] }
 0x150   :  { %1039 = vst [vmem:[#allocation2 + $0x90] sm:$0xff] %v975_v19  ;;  %v485_v20 = vpop.f32.mrf.mxu0 }
 0x151   :  { %v486_v22 = vadd.f32 %v4212_v57, %v485_v20 }
 0x153   :  { %v695_v23 = vadd.f32 %v694_v0, %v486_v22  ;;  %532 = vmatmul.f32.gmra.mxu0 %v133_v21  ;;  %v703_v24 = vpop.f32.mrf.mxu1  ;;  %v149_v22 = vld [vmem:[%s7219_s18 + $0x2b0] sm:$0xff] }
 0x155   :  { %vm848_vm6 = vcmp.ge.f32.partialorder %v695_v23, 0.0  ;;  %v912_v26 = vmul.f32 0.01, %v695_v23 }
 0x156   :  { %3622 = vmatmul.msk.f32.gmra.mxu1 %vm214_vm1, %v140_v25 }
 0x157   :  { %v976_v27 = vsel %vm848_vm6, %v695_v23, %v912_v26  ;;  %v156_v26 = vld [vmem:[%s7219_s18 + $0x2e8] sm:$0xff] }
 0x158   :  { %1040 = vst [vmem:[#allocation2 + $0x98] sm:$0xff] %v976_v27  ;;  %v488_v28 = vpop.f32.mrf.mxu0 }
 0x159   :  { %v489_v30 = vadd.f32 %v4212_v57, %v488_v28 }
 0x15b   :  { %v698_v31 = vadd.f32 %v697_v8, %v489_v30  ;;  %535 = vmatmul.f32.gmra.mxu0 %v135_v29  ;;  %v706_v32 = vpop.f32.mrf.mxu1  ;;  %v151_v30 = vld [vmem:[%s7219_s18 + $0x2c0] sm:$0xff] }
 0x15d   :  { %vm849_vm7 = vcmp.ge.f32.partialorder %v698_v31, 0.0  ;;  %v913_v34 = vmul.f32 0.01, %v698_v31 }
 0x15e   :  { %3623 = vmatmul.msk.f32.gmra.mxu1 %vm214_vm1, %v142_v33 }
 0x15f   :  { %v977_v35 = vsel %vm849_vm7, %v698_v31, %v913_v34  ;;  %v158_v34 = vld [vmem:[%s7219_s18 + $0x2f8] sm:$0xff] }
 0x160   :  { %1041 = vst [vmem:[#allocation2 + $0xa0] sm:$0xff] %v977_v35  ;;  %v491_v36 = vpop.f32.mrf.mxu0 }
 0x161   :  { %v492_v38 = vadd.f32 %v4212_v57, %v491_v36 }
 0x163   :  { %v701_v39 = vadd.f32 %v700_v16, %v492_v38  ;;  %538 = vmatmul.f32.gmra.mxu0 %v137_v37  ;;  %v709_v40 = vpop.f32.mrf.mxu1  ;;  %v153_v38 = vld [vmem:[%s7219_s18 + $0x2d0] sm:$0xff] }
 0x165   :  { %vm850_vm8 = vcmp.ge.f32.partialorder %v701_v39, 0.0  ;;  %v914_v42 = vmul.f32 0.01, %v701_v39 }
 0x166   :  { %3624 = vmatmul.msk.f32.gmra.mxu1 %vm214_vm1, %v144_v41 }
 0x167   :  { %v978_v43 = vsel %vm850_vm8, %v701_v39, %v914_v42  ;;  %v160_v42 = vld [vmem:[%s7219_s18 + $0x308] sm:$0xff] }
 0x168   :  { %1042 = vst [vmem:[#allocation2 + $0xa8] sm:$0xff] %v978_v43  ;;  %v494_v44 = vpop.f32.mrf.mxu0 }
 0x169   :  { %v495_v46 = vadd.f32 %v4212_v57, %v494_v44 }
 0x16b   :  { %v704_v47 = vadd.f32 %v703_v24, %v495_v46  ;;  %541 = vmatmul.f32.gmra.mxu0 %v139_v45  ;;  %v712_v48 = vpop.f32.mrf.mxu1  ;;  %v155_v46 = vld [vmem:[%s7219_s18 + $0x2e0] sm:$0xff] }
 0x16d   :  { %vm851_vm9 = vcmp.ge.f32.partialorder %v704_v47, 0.0  ;;  %v915_v50 = vmul.f32 0.01, %v704_v47 }
 0x16e   :  { %3625 = vmatmul.msk.f32.gmra.mxu1 %vm214_vm1, %v146_v49 }
 0x16f   :  { %v979_v51 = vsel %vm851_vm9, %v704_v47, %v915_v50  ;;  %v162_v50 = vld [vmem:[%s7219_s18 + $0x318] sm:$0xff] }
 0x170   :  { %1043 = vst [vmem:[#allocation2 + $0xb0] sm:$0xff] %v979_v51  ;;  %v497_v52 = vpop.f32.mrf.mxu0 }
 0x171   :  { %v498_v54 = vadd.f32 %v4212_v57, %v497_v52 }
 0x173   :  { %v707_v55 = vadd.f32 %v706_v32, %v498_v54  ;;  %544 = vmatmul.f32.gmra.mxu0 %v141_v53  ;;  %v715_v56 = vpop.f32.mrf.mxu1  ;;  %v157_v54 = vld [vmem:[%s7219_s18 + $0x2f0] sm:$0xff] }
 0x175   :  { %vm852_vm10 = vcmp.ge.f32.partialorder %v707_v55, 0.0  ;;  %v916_v59 = vmul.f32 0.01, %v707_v55 }
 0x176   :  { %3626 = vmatmul.msk.f32.gmra.mxu1 %vm214_vm1, %v148_v58 }
 0x177   :  { %v980_v60 = vsel %vm852_vm10, %v707_v55, %v916_v59  ;;  %v164_v59 = vld [vmem:[%s7219_s18 + $0x328] sm:$0xff] }
 0x178   :  { %1044 = vst [vmem:[#allocation2 + $0xb8] sm:$0xff] %v980_v60  ;;  %v500_v61 = vpop.f32.mrf.mxu0 }
 0x179   :  { %v501_v63 = vadd.f32 %v4212_v57, %v500_v61 }
 0x17b   :  { %v710_v0 = vadd.f32 %v709_v40, %v501_v63  ;;  %547 = vmatmul.f32.gmra.mxu0 %v143_v62  ;;  %v718_v1 = vpop.f32.mrf.mxu1  ;;  %v159_v63 = vld [vmem:[%s7219_s18 + $0x300] sm:$0xff] }
 0x17d   :  { %vm853_vm11 = vcmp.ge.f32.partialorder %v710_v0, 0.0  ;;  %v917_v3 = vmul.f32 0.01, %v710_v0 }
 0x17e   :  { %3627 = vmatmul.msk.f32.gmra.mxu1 %vm214_vm1, %v150_v2 }
 0x17f   :  { %v981_v4 = vsel %vm853_vm11, %v710_v0, %v917_v3  ;;  %v166_v3 = vld [vmem:[%s7219_s18 + $0x338] sm:$0xff] }
 0x180   :  { %1045 = vst [vmem:[#allocation2 + $0xc0] sm:$0xff] %v981_v4  ;;  %v503_v5 = vpop.f32.mrf.mxu0 }
 0x181   :  { %v504_v7 = vadd.f32 %v4212_v57, %v503_v5 }
 0x183   :  { %v713_v8 = vadd.f32 %v712_v48, %v504_v7  ;;  %550 = vmatmul.f32.gmra.mxu0 %v145_v6  ;;  %v721_v9 = vpop.f32.mrf.mxu1  ;;  %v161_v7 = vld [vmem:[%s7219_s18 + $0x310] sm:$0xff] }
 0x185   :  { %vm854_vm12 = vcmp.ge.f32.partialorder %v713_v8, 0.0  ;;  %v918_v11 = vmul.f32 0.01, %v713_v8 }
 0x186   :  { %3628 = vmatmul.msk.f32.gmra.mxu1 %vm214_vm1, %v152_v10 }
 0x187   :  { %v982_v12 = vsel %vm854_vm12, %v713_v8, %v918_v11  ;;  %v168_v11 = vld [vmem:[%s7219_s18 + $0x348] sm:$0xff] }
 0x188   :  { %1046 = vst [vmem:[#allocation2 + $0xc8] sm:$0xff] %v982_v12  ;;  %v506_v13 = vpop.f32.mrf.mxu0 }
 0x189   :  { %v507_v15 = vadd.f32 %v4212_v57, %v506_v13 }
 0x18b   :  { %v716_v16 = vadd.f32 %v715_v56, %v507_v15  ;;  %553 = vmatmul.f32.gmra.mxu0 %v147_v14  ;;  %v724_v17 = vpop.f32.mrf.mxu1  ;;  %v163_v15 = vld [vmem:[%s7219_s18 + $0x320] sm:$0xff] }
 0x18d   :  { %vm855_vm13 = vcmp.ge.f32.partialorder %v716_v16, 0.0  ;;  %v919_v19 = vmul.f32 0.01, %v716_v16 }
 0x18e   :  { %3629 = vmatmul.msk.f32.gmra.mxu1 %vm214_vm1, %v154_v18 }
 0x18f   :  { %v983_v20 = vsel %vm855_vm13, %v716_v16, %v919_v19  ;;  %v170_v19 = vld [vmem:[%s7219_s18 + $0x358] sm:$0xff] }
 0x190   :  { %1047 = vst [vmem:[#allocation2 + $0xd0] sm:$0xff] %v983_v20  ;;  %v509_v21 = vpop.f32.mrf.mxu0 }
 0x191   :  { %v510_v23 = vadd.f32 %v4212_v57, %v509_v21 }
 0x193   :  { %v719_v24 = vadd.f32 %v718_v1, %v510_v23  ;;  %556 = vmatmul.f32.gmra.mxu0 %v149_v22  ;;  %v727_v25 = vpop.f32.mrf.mxu1  ;;  %v165_v23 = vld [vmem:[%s7219_s18 + $0x330] sm:$0xff] }
 0x195   :  { %vm856_vm14 = vcmp.ge.f32.partialorder %v719_v24, 0.0  ;;  %v920_v27 = vmul.f32 0.01, %v719_v24 }
 0x196   :  { %3630 = vmatmul.msk.f32.gmra.mxu1 %vm214_vm1, %v156_v26 }
 0x197   :  { %v984_v28 = vsel %vm856_vm14, %v719_v24, %v920_v27  ;;  %v172_v27 = vld [vmem:[%s7219_s18 + $0x368] sm:$0xff] }
 0x198   :  { %1048 = vst [vmem:[#allocation2 + $0xd8] sm:$0xff] %v984_v28  ;;  %v512_v29 = vpop.f32.mrf.mxu0 }
 0x199   :  { %v513_v31 = vadd.f32 %v4212_v57, %v512_v29 }
 0x19b   :  { %v722_v32 = vadd.f32 %v721_v9, %v513_v31  ;;  %559 = vmatmul.f32.gmra.mxu0 %v151_v30  ;;  %v730_v33 = vpop.f32.mrf.mxu1  ;;  %v167_v31 = vld [vmem:[%s7219_s18 + $0x340] sm:$0xff] }
 0x19d   :  { %vm857_vm15 = vcmp.ge.f32.partialorder %v722_v32, 0.0  ;;  %v921_v35 = vmul.f32 0.01, %v722_v32 }
 0x19e   :  { %3631 = vmatmul.msk.f32.gmra.mxu1 %vm214_vm1, %v158_v34 }
 0x19f   :  { %v985_v36 = vsel %vm857_vm15, %v722_v32, %v921_v35  ;;  %v174_v35 = vld [vmem:[%s7219_s18 + $0x378] sm:$0xff] }
 0x1a0   :  { %1049 = vst [vmem:[#allocation2 + $0xe0] sm:$0xff] %v985_v36  ;;  %v515_v37 = vpop.f32.mrf.mxu0 }
 0x1a1   :  { %v516_v39 = vadd.f32 %v4212_v57, %v515_v37 }
 0x1a3   :  { %v725_v40 = vadd.f32 %v724_v17, %v516_v39  ;;  %562 = vmatmul.f32.gmra.mxu0 %v153_v38  ;;  %v733_v41 = vpop.f32.mrf.mxu1  ;;  %v169_v39 = vld [vmem:[%s7219_s18 + $0x350] sm:$0xff] }
 0x1a5   :  { %vm858_vm0 = vcmp.ge.f32.partialorder %v725_v40, 0.0  ;;  %v922_v43 = vmul.f32 0.01, %v725_v40 }
 0x1a6   :  { %3632 = vmatmul.msk.f32.gmra.mxu1 %vm214_vm1, %v160_v42 }
 0x1a7   :  { %v986_v44 = vsel %vm858_vm0, %v725_v40, %v922_v43  ;;  %v176_v43 = vld [vmem:[%s7219_s18 + $0x388] sm:$0xff] }
 0x1a8   :  { %1050 = vst [vmem:[#allocation2 + $0xe8] sm:$0xff] %v986_v44  ;;  %v518_v45 = vpop.f32.mrf.mxu0 }
 0x1a9   :  { %v519_v47 = vadd.f32 %v4212_v57, %v518_v45 }
 0x1ab   :  { %v728_v48 = vadd.f32 %v727_v25, %v519_v47  ;;  %565 = vmatmul.f32.gmra.mxu0 %v155_v46  ;;  %v736_v49 = vpop.f32.mrf.mxu1  ;;  %v171_v47 = vld [vmem:[%s7219_s18 + $0x360] sm:$0xff] }
 0x1ad   :  { %vm859_vm2 = vcmp.ge.f32.partialorder %v728_v48, 0.0  ;;  %v923_v51 = vmul.f32 0.01, %v728_v48 }
 0x1ae   :  { %3633 = vmatmul.msk.f32.gmra.mxu1 %vm214_vm1, %v162_v50 }
 0x1af   :  { %v987_v52 = vsel %vm859_vm2, %v728_v48, %v923_v51  ;;  %v178_v51 = vld [vmem:[%s7219_s18 + $0x398] sm:$0xff] }
 0x1b0   :  { %1051 = vst [vmem:[#allocation2 + $0xf0] sm:$0xff] %v987_v52  ;;  %v521_v53 = vpop.f32.mrf.mxu0 }
 0x1b1   :  { %v522_v55 = vadd.f32 %v4212_v57, %v521_v53 }
 0x1b3   :  { %v731_v56 = vadd.f32 %v730_v33, %v522_v55  ;;  %568 = vmatmul.f32.gmra.mxu0 %v157_v54  ;;  %v739_v58 = vpop.f32.mrf.mxu1  ;;  %v173_v55 = vld [vmem:[%s7219_s18 + $0x370] sm:$0xff] }
 0x1b5   :  { %vm860_vm3 = vcmp.ge.f32.partialorder %v731_v56, 0.0  ;;  %v924_v60 = vmul.f32 0.01, %v731_v56 }
 0x1b6   :  { %3634 = vmatmul.msk.f32.gmra.mxu1 %vm214_vm1, %v164_v59 }
 0x1b7   :  { %v988_v61 = vsel %vm860_vm3, %v731_v56, %v924_v60  ;;  %v180_v60 = vld [vmem:[%s7219_s18 + $0x3a8] sm:$0xff] }
 0x1b8   :  { %1052 = vst [vmem:[#allocation2 + $0xf8] sm:$0xff] %v988_v61  ;;  %v524_v62 = vpop.f32.mrf.mxu0 }
 0x1b9   :  { %v525_v0 = vadd.f32 %v4212_v57, %v524_v62 }
 0x1bb   :  { %v734_v1 = vadd.f32 %v733_v41, %v525_v0  ;;  %571 = vmatmul.f32.gmra.mxu0 %v159_v63  ;;  %v742_v2 = vpop.f32.mrf.mxu1  ;;  %v175_v0 = vld [vmem:[%s7219_s18 + $0x380] sm:$0xff] }
 0x1bd   :  { %vm861_vm4 = vcmp.ge.f32.partialorder %v734_v1, 0.0  ;;  %v925_v4 = vmul.f32 0.01, %v734_v1 }
 0x1be   :  { %3635 = vmatmul.msk.f32.gmra.mxu1 %vm214_vm1, %v166_v3 }
 0x1bf   :  { %v989_v5 = vsel %vm861_vm4, %v734_v1, %v925_v4  ;;  %v182_v4 = vld [vmem:[%s7219_s18 + $0x3b8] sm:$0xff] }
 0x1c0   :  { %1053 = vst [vmem:[#allocation2 + $0x100] sm:$0xff] %v989_v5  ;;  %v527_v6 = vpop.f32.mrf.mxu0 }
 0x1c1   :  { %v528_v8 = vadd.f32 %v4212_v57, %v527_v6 }
 0x1c3   :  { %v737_v9 = vadd.f32 %v736_v49, %v528_v8  ;;  %574 = vmatmul.f32.gmra.mxu0 %v161_v7  ;;  %v745_v10 = vpop.f32.mrf.mxu1  ;;  %v177_v8 = vld [vmem:[%s7219_s18 + $0x390] sm:$0xff] }
 0x1c5   :  { %vm862_vm5 = vcmp.ge.f32.partialorder %v737_v9, 0.0  ;;  %v926_v12 = vmul.f32 0.01, %v737_v9 }
 0x1c6   :  { %3636 = vmatmul.msk.f32.gmra.mxu1 %vm214_vm1, %v168_v11 }
 0x1c7   :  { %v990_v13 = vsel %vm862_vm5, %v737_v9, %v926_v12  ;;  %v184_v12 = vld [vmem:[%s7219_s18 + $0x3c8] sm:$0xff] }
 0x1c8   :  { %1054 = vst [vmem:[#allocation2 + $0x108] sm:$0xff] %v990_v13  ;;  %v530_v14 = vpop.f32.mrf.mxu0 }
 0x1c9   :  { %v531_v16 = vadd.f32 %v4212_v57, %v530_v14 }
 0x1cb   :  { %v740_v17 = vadd.f32 %v739_v58, %v531_v16  ;;  %577 = vmatmul.f32.gmra.mxu0 %v163_v15  ;;  %v748_v18 = vpop.f32.mrf.mxu1  ;;  %v179_v16 = vld [vmem:[%s7219_s18 + $0x3a0] sm:$0xff] }
 0x1cd   :  { %vm863_vm6 = vcmp.ge.f32.partialorder %v740_v17, 0.0  ;;  %v927_v20 = vmul.f32 0.01, %v740_v17 }
 0x1ce   :  { %3637 = vmatmul.msk.f32.gmra.mxu1 %vm214_vm1, %v170_v19 }
 0x1cf   :  { %v991_v21 = vsel %vm863_vm6, %v740_v17, %v927_v20  ;;  %v186_v20 = vld [vmem:[%s7219_s18 + $0x3d8] sm:$0xff] }
 0x1d0   :  { %1055 = vst [vmem:[#allocation2 + $0x110] sm:$0xff] %v991_v21  ;;  %v533_v22 = vpop.f32.mrf.mxu0 }
 0x1d1   :  { %v534_v24 = vadd.f32 %v4212_v57, %v533_v22 }
 0x1d3   :  { %v743_v25 = vadd.f32 %v742_v2, %v534_v24  ;;  %580 = vmatmul.f32.gmra.mxu0 %v165_v23  ;;  %v751_v26 = vpop.f32.mrf.mxu1  ;;  %v181_v24 = vld [vmem:[%s7219_s18 + $0x3b0] sm:$0xff] }
 0x1d5   :  { %vm864_vm7 = vcmp.ge.f32.partialorder %v743_v25, 0.0  ;;  %v928_v28 = vmul.f32 0.01, %v743_v25 }
 0x1d6   :  { %3638 = vmatmul.msk.f32.gmra.mxu1 %vm214_vm1, %v172_v27 }
 0x1d7   :  { %v992_v29 = vsel %vm864_vm7, %v743_v25, %v928_v28  ;;  %v188_v28 = vld [vmem:[%s7219_s18 + $0x3e8] sm:$0xff] }
 0x1d8   :  { %1056 = vst [vmem:[#allocation2 + $0x118] sm:$0xff] %v992_v29  ;;  %v536_v30 = vpop.f32.mrf.mxu0 }
 0x1d9   :  { %v537_v32 = vadd.f32 %v4212_v57, %v536_v30 }
 0x1db   :  { %v746_v33 = vadd.f32 %v745_v10, %v537_v32  ;;  %583 = vmatmul.f32.gmra.mxu0 %v167_v31  ;;  %v754_v34 = vpop.f32.mrf.mxu1  ;;  %v183_v32 = vld [vmem:[%s7219_s18 + $0x3c0] sm:$0xff] }
 0x1dd   :  { %vm865_vm8 = vcmp.ge.f32.partialorder %v746_v33, 0.0  ;;  %v929_v36 = vmul.f32 0.01, %v746_v33 }
 0x1de   :  { %3639 = vmatmul.msk.f32.gmra.mxu1 %vm214_vm1, %v174_v35 }
 0x1df   :  { %v993_v37 = vsel %vm865_vm8, %v746_v33, %v929_v36  ;;  %v190_v36 = vld [vmem:[%s7219_s18 + $0x3f8] sm:$0xff] }
 0x1e0   :  { %1057 = vst [vmem:[#allocation2 + $0x120] sm:$0xff] %v993_v37  ;;  %v539_v38 = vpop.f32.mrf.mxu0 }
 0x1e1   :  { %v540_v40 = vadd.f32 %v4212_v57, %v539_v38 }
 0x1e3   :  { %v749_v41 = vadd.f32 %v748_v18, %v540_v40  ;;  %586 = vmatmul.f32.gmra.mxu0 %v169_v39  ;;  %v757_v42 = vpop.f32.mrf.mxu1  ;;  %v185_v40 = vld [vmem:[%s7219_s18 + $0x3d0] sm:$0xff] }
 0x1e5   :  { %vm866_vm9 = vcmp.ge.f32.partialorder %v749_v41, 0.0  ;;  %v930_v44 = vmul.f32 0.01, %v749_v41 }
 0x1e6   :  { %3640 = vmatmul.msk.f32.gmra.mxu1 %vm214_vm1, %v176_v43 }
 0x1e7   :  { %v994_v45 = vsel %vm866_vm9, %v749_v41, %v930_v44 }
 0x1e8   :  { %1058 = vst [vmem:[#allocation2 + $0x128] sm:$0xff] %v994_v45  ;;  %v542_v46 = vpop.f32.mrf.mxu0 }
 0x1e9   :  { %v543_v48 = vadd.f32 %v4212_v57, %v542_v46 }
 0x1eb   :  { %v752_v49 = vadd.f32 %v751_v26, %v543_v48  ;;  %589 = vmatmul.f32.gmra.mxu0 %v171_v47  ;;  %v760_v50 = vpop.f32.mrf.mxu1  ;;  %v187_v47 = vld [vmem:[%s7219_s18 + $0x3e0] sm:$0xff] }
 0x1ed   :  { %vm867_vm10 = vcmp.ge.f32.partialorder %v752_v49, 0.0  ;;  %v931_v52 = vmul.f32 0.01, %v752_v49 }
 0x1ee   :  { %3641 = vmatmul.msk.f32.gmra.mxu1 %vm214_vm1, %v178_v51 }
 0x1ef   :  { %v995_v53 = vsel %vm867_vm10, %v752_v49, %v931_v52 }
 0x1f0   :  { %1059 = vst [vmem:[#allocation2 + $0x130] sm:$0xff] %v995_v53  ;;  %v545_v54 = vpop.f32.mrf.mxu0 }
 0x1f1   :  { %v546_v56 = vadd.f32 %v4212_v57, %v545_v54  ;;  %v189_v54 = vld [vmem:[%s7219_s18 + $0x3f0] sm:$0xff]  ;;  %s4597_s18 = sld [smem:[#allocation5]] }
 0x1f3   :  { %v755_v58 = vadd.f32 %v754_v34, %v546_v56  ;;  %592 = vmatmul.f32.gmra.mxu0 %v173_v55  ;;  %v763_v59 = vpop.f32.mrf.mxu1 }
 0x1f5   :  { %vm868_vm11 = vcmp.ge.f32.partialorder %v755_v58, 0.0  ;;  %v932_v61 = vmul.f32 0.01, %v755_v58 }
 0x1f6   :  { %3642 = vmatmul.msk.f32.gmra.mxu1 %vm214_vm1, %v180_v60 }
 0x1f7   :  { %v996_v62 = vsel %vm868_vm11, %v755_v58, %v932_v61  ;;  %s1086_s7 = scalar_lea.vmem [#allocation2], %s4597_s18  ;;  %s1566_s18 = scalar_lea.vmem [#allocation2], %s4610_s28 }
 0x1f8   :  { %1060 = vst [vmem:[#allocation2 + $0x138] sm:$0xff] %v996_v62  ;;  %v548_v63 = vpop.f32.mrf.mxu0 }
 0x1f9   :  { %v549_v1 = vadd.f32 %v4212_v57, %v548_v63 }
 0x1fb   :  { %v758_v2 = vadd.f32 %v757_v42, %v549_v1  ;;  %595 = vmatmul.f32.gmra.mxu0 %v175_v0  ;;  %v766_v3 = vpop.f32.mrf.mxu1 }
 0x1fd   :  { %vm869_vm12 = vcmp.ge.f32.partialorder %v758_v2, 0.0  ;;  %v933_v5 = vmul.f32 0.01, %v758_v2 }
 0x1fe   :  { %3643 = vmatmul.msk.f32.gmra.mxu1 %vm214_vm1, %v182_v4 }
 0x1ff   :  { %v997_v6 = vsel %vm869_vm12, %v758_v2, %v933_v5 }
 0x200   :  { %1061 = vst [vmem:[#allocation2 + $0x140] sm:$0xff] %v997_v6  ;;  %v551_v7 = vpop.f32.mrf.mxu0 }
 0x201   :  { %v552_v9 = vadd.f32 %v4212_v57, %v551_v7 }
 0x203   :  { %v761_v10 = vadd.f32 %v760_v50, %v552_v9  ;;  %598 = vmatmul.f32.gmra.mxu0 %v177_v8  ;;  %v769_v11 = vpop.f32.mrf.mxu1 }
 0x205   :  { %vm870_vm13 = vcmp.ge.f32.partialorder %v761_v10, 0.0  ;;  %v934_v13 = vmul.f32 0.01, %v761_v10 }
 0x206   :  { %3644 = vmatmul.msk.f32.gmra.mxu1 %vm214_vm1, %v184_v12 }
 0x207   :  { %v998_v14 = vsel %vm870_vm13, %v761_v10, %v934_v13 }
 0x208   :  { %1062 = vst [vmem:[#allocation2 + $0x148] sm:$0xff] %v998_v14  ;;  %v554_v15 = vpop.f32.mrf.mxu0 }
 0x209   :  { %v555_v17 = vadd.f32 %v4212_v57, %v554_v15  ;;  %v4565_v57 = vld [vmem:[%s7166_s3] ss:$0 sm:$0xff]  ;;  %s4618_s3 = sld [smem:[#allocation5 + $0x29]] }
 0x20b   :  { %v764_v18 = vadd.f32 %v763_v59, %v555_v17  ;;  %601 = vmatmul.f32.gmra.mxu0 %v179_v16  ;;  %v772_v19 = vpop.f32.mrf.mxu1 }
 0x20d   :  { %vm871_vm14 = vcmp.ge.f32.partialorder %v764_v18, 0.0  ;;  %v935_v21 = vmul.f32 0.01, %v764_v18 }
 0x20e   :  { %3645 = vmatmul.msk.f32.gmra.mxu1 %vm214_vm1, %v186_v20 }
 0x20f   :  { %v999_v22 = vsel %vm871_vm14, %v764_v18, %v935_v21  ;;  %s1250_s28 = scalar_lea.vmem [#allocation2], %s4618_s3  ;;  %s1570_s3 = scalar_lea.vmem [#allocation2], %s4641_s11 }
 0x210   :  { %1063 = vst [vmem:[#allocation2 + $0x150] sm:$0xff] %v999_v22  ;;  %v557_v23 = vpop.f32.mrf.mxu0  ;;  %s1174_s11 = scalar_lea.vmem [#allocation2], %s4659_s8  ;;  %s7293_s8 = sld [smem:[#allocation16_spill]] }
 0x211   :  { %v558_v25 = vadd.f32 %v4565_v57, %v557_v23 }
 0x213   :  { %v767_v26 = vadd.f32 %v766_v3, %v558_v25  ;;  %604 = vmatmul.f32.gmra.mxu0 %v181_v24  ;;  %v775_v27 = vpop.f32.mrf.mxu1 }
 0x215   :  { %vm872_vm15 = vcmp.ge.f32.partialorder %v767_v26, 0.0  ;;  %v936_v29 = vmul.f32 0.01, %v767_v26 }
 0x216   :  { %3646 = vmatmul.msk.f32.gmra.mxu1 %vm214_vm1, %v188_v28 }
 0x217   :  { %v1000_v30 = vsel %vm872_vm15, %v767_v26, %v936_v29 }
 0x218   :  { %1064 = vst [vmem:[#allocation2 + $0x158] sm:$0xff] %v1000_v30  ;;  %v560_v31 = vpop.f32.mrf.mxu0 }
 0x219   :  { %v561_v33 = vadd.f32 %v4565_v57, %v560_v31 }
 0x21b   :  { %v770_v34 = vadd.f32 %v769_v11, %v561_v33  ;;  %607 = vmatmul.f32.gmra.mxu0 %v183_v32  ;;  %v778_v35 = vpop.f32.mrf.mxu1 }
 0x21d   :  { %vm873_vm0 = vcmp.ge.f32.partialorder %v770_v34, 0.0  ;;  %v937_v37 = vmul.f32 0.01, %v770_v34 }
 0x21e   :  { %3647 = vmatmul.msk.f32.gmra.mxu1 %vm214_vm1, %v190_v36 }
 0x21f   :  { %v1001_v38 = vsel %vm873_vm0, %v770_v34, %v937_v37  ;;  %v1760_v34 = vld [vmem:[%s7167_s4 + $0x78] sm:$0xff] }
 0x220   :  { %1065 = vst [vmem:[#allocation2 + $0x160] sm:$0xff] %v1001_v38  ;;  %v563_v39 = vpop.f32.mrf.mxu0  ;;  %2069 = vmatpush.msra.mxu2 %v1760_v34  ;;  %v1759_v38 = vld [vmem:[%s7167_s4 + $0x70] sm:$0xff] }
 0x221   :  { %v564_v41 = vadd.f32 %v4565_v57, %v563_v39  ;;  %v1775_v39 = vld [vmem:[%s7167_s4 + $0xf0] sm:$0xff] }
 0x222   :  { %2070 = vmatpush.msra.mxu2 %v1759_v38 }
 0x223   :  { %v773_v42 = vadd.f32 %v772_v19, %v564_v41  ;;  %610 = vmatmul.f32.gmra.mxu0 %v185_v40  ;;  %v781_v43 = vpop.f32.mrf.mxu1  ;;  %v1758_v41 = vld [vmem:[%s7167_s4 + $0x68] sm:$0xff] }
 0x224   :  { %2071 = vmatpush.msra.mxu2 %v1758_v41 }
 0x225   :  { %vm874_vm2 = vcmp.ge.f32.partialorder %v773_v42, 0.0  ;;  %v938_v44 = vmul.f32 0.01, %v773_v42 }
 0x227   :  { %v1002_v45 = vsel %vm874_vm2, %v773_v42, %v938_v44  ;;  %v1774_v42 = vld [vmem:[%s7167_s4 + $0xe8] sm:$0xff]  ;;  %v1757_v44 = vld [vmem:[%s7167_s4 + $0x60] sm:$0xff] }
 0x228   :  { %1066 = vst [vmem:[#allocation2 + $0x168] sm:$0xff] %v1002_v45  ;;  %v566_v46 = vpop.f32.mrf.mxu0  ;;  %v1773_v45 = vld [vmem:[%s7167_s4 + $0xe0] sm:$0xff]  ;;  %2072 = vmatpush.msra.mxu2 %v1757_v44  ;;  %v1803_v44 = vld [vmem:[%s7167_s4 + $0x1d0] sm:$0xff] }
 0x229   :  { %v567_v48 = vadd.f32 %v4565_v57, %v566_v46 }
 0x22b   :  { %v776_v49 = vadd.f32 %v775_v27, %v567_v48  ;;  %613 = vmatmul.f32.gmra.mxu0 %v187_v47  ;;  %v784_v50 = vpop.f32.mrf.mxu1  ;;  %v1756_v48 = vld [vmem:[%s7167_s4 + $0x58] sm:$0xff] }
 0x22c   :  { %2073 = vmatpush.msra.mxu2 %v1756_v48 }
 0x22d   :  { %vm875_vm1 = vcmp.ge.f32.partialorder %v776_v49, 0.0  ;;  %v939_v51 = vmul.f32 0.01, %v776_v49 }
 0x22f   :  { %v1003_v52 = vsel %vm875_vm1, %v776_v49, %v939_v51  ;;  %v1772_v49 = vld [vmem:[%s7167_s4 + $0xd8] sm:$0xff]  ;;  %v1755_v51 = vld [vmem:[%s7167_s4 + $0x50] sm:$0xff] }
 0x230   :  { %1067 = vst [vmem:[#allocation2 + $0x170] sm:$0xff] %v1003_v52  ;;  %v569_v53 = vpop.f32.mrf.mxu0  ;;  %v1771_v52 = vld [vmem:[%s7167_s4 + $0xd0] sm:$0xff]  ;;  %2074 = vmatpush.msra.mxu2 %v1755_v51 }
 0x231   :  { %v570_v55 = vadd.f32 %v4565_v57, %v569_v53 }
 0x233   :  { %v779_v56 = vadd.f32 %v778_v35, %v570_v55  ;;  %616 = vmatmul.f32.gmra.mxu0 %v189_v54  ;;  %v787_v58 = vpop.f32.mrf.mxu1  ;;  %v1776_v35 = vld [vmem:[%s7167_s4 + $0xf8] sm:$0xff]  ;;  %v1754_v55 = vld [vmem:[%s7167_s4 + $0x48] sm:$0xff] }
 0x234   :  { %2089 = vmatpush.msra.mxu3 %v1776_v35  ;;  %2075 = vmatpush.msra.mxu2 %v1754_v55  ;;  %v1789_v35 = vld [vmem:[%s7167_s4 + $0x160] sm:$0xff]  ;;  %v1783_v55 = vld [vmem:[%s7167_s4 + $0x130] sm:$0xff] }
 0x235   :  { %vm876_vm3 = vcmp.ge.f32.partialorder %v779_v56, 0.0  ;;  %v940_v59 = vmul.f32 0.01, %v779_v56 }
 0x236   :  { %2090 = vmatpush.msra.mxu3 %v1775_v39  ;;  %v1788_v39 = vld [vmem:[%s7167_s4 + $0x158] sm:$0xff] }
 0x237   :  { %v1004_v60 = vsel %vm876_vm3, %v779_v56, %v940_v59  ;;  %v1770_v56 = vld [vmem:[%s7167_s4 + $0xc8] sm:$0xff]  ;;  %v1753_v59 = vld [vmem:[%s7167_s4 + $0x40] sm:$0xff] }
 0x238   :  { %1068 = vst [vmem:[#allocation2 + $0x178] sm:$0xff] %v1004_v60  ;;  %v572_v61 = vpop.f32.mrf.mxu0  ;;  %2091 = vmatpush.msra.mxu3 %v1774_v42  ;;  %v1769_v60 = vld [vmem:[%s7167_s4 + $0xc0] sm:$0xff]  ;;  %2076 = vmatpush.msra.mxu2 %v1753_v59  ;;  %v1782_v59 = vld [vmem:[%s7167_s4 + $0x128] sm:$0xff] }
 0x239   :  { %v573_v62 = vadd.f32 %v4565_v57, %v572_v61 }
 0x23a   :  { %2092 = vmatpush.msra.mxu3 %v1773_v45 }
 0x23b   :  { %v782_v63 = vadd.f32 %v781_v43, %v573_v62  ;;  %v790_v0 = vpop.f32.mrf.mxu1 }
 0x23c   :  { %2093 = vmatpush.msra.mxu3 %v1772_v49  ;;  %v1785_v49 = vld [vmem:[%s7167_s4 + $0x140] sm:$0xff] }
 0x23d   :  { %vm877_vm4 = vcmp.ge.f32.partialorder %v782_v63, 0.0  ;;  %v941_v1 = vmul.f32 0.01, %v782_v63 }
 0x23e   :  { %2094 = vmatpush.msra.mxu3 %v1771_v52 }
 0x23f   :  { %v1005_v2 = vsel %vm877_vm4, %v782_v63, %v941_v1  ;;  %v1752_v63 = vld [vmem:[%s7167_s4 + $0x38] sm:$0xff] }
 0x240   :  { %1069 = vst [vmem:[#allocation2 + $0x180] sm:$0xff] %v1005_v2  ;;  %v575_v3 = vpop.f32.mrf.mxu0  ;;  %2095 = vmatpush.msra.mxu3 %v1770_v56  ;;  %2077 = vmatpush.msra.mxu2 %v1752_v63  ;;  %v1751_v2 = vld [vmem:[%s7167_s4 + $0x30] sm:$0xff]  ;;  %v1781_v63 = vld [vmem:[%s7167_s4 + $0x120] sm:$0xff] }
 0x241   :  { %v576_v4 = vadd.f32 %v4565_v57, %v575_v3  ;;  %v1767_v3 = vld [vmem:[%s7167_s4 + $0xb0] sm:$0xff] }
 0x242   :  { %2096 = vmatpush.msra.mxu3 %v1769_v60  ;;  %2078 = vmatpush.msra.mxu2 %v1751_v2  ;;  %v1798_v60 = vld [vmem:[%s7167_s4 + $0x1a8] sm:$0xff]  ;;  %v1780_v2 = vld [vmem:[%s7167_s4 + $0x118] sm:$0xff] }
 0x243   :  { %v785_v5 = vadd.f32 %v784_v50, %v576_v4  ;;  %v793_v6 = vpop.f32.mrf.mxu1 }
 0x245   :  { %vm878_vm5 = vcmp.ge.f32.partialorder %v785_v5, 0.0  ;;  %v942_v7 = vmul.f32 0.01, %v785_v5 }
 0x247   :  { %v1006_v8 = vsel %vm878_vm5, %v785_v5, %v942_v7  ;;  %v1750_v5 = vld [vmem:[%s7167_s4 + $0x28] sm:$0xff] }
 0x248   :  { %1070 = vst [vmem:[#allocation2 + $0x188] sm:$0xff] %v1006_v8  ;;  %v578_v9 = vpop.f32.mrf.mxu0  ;;  %2079 = vmatpush.msra.mxu2 %v1750_v5 }
 0x249   :  { %v579_v10 = vadd.f32 %v4565_v57, %v578_v9  ;;  %v1749_v9 = vld [vmem:[%s7167_s4 + $0x20] sm:$0xff] }
 0x24a   :  { %2080 = vmatpush.msra.mxu2 %v1749_v9  ;;  %v1778_v9 = vld [vmem:[%s7167_s4 + $0x108] sm:$0xff] }
 0x24b   :  { %v788_v11 = vadd.f32 %v787_v58, %v579_v10  ;;  %v796_v12 = vpop.f32.mrf.mxu1  ;;  %v1765_v10 = vld [vmem:[%s7167_s4 + $0xa0] sm:$0xff] }
 0x24d   :  { %vm879_vm6 = vcmp.ge.f32.partialorder %v788_v11, 0.0  ;;  %v943_v13 = vmul.f32 0.01, %v788_v11 }
 0x24f   :  { %v1007_v14 = vsel %vm879_vm6, %v788_v11, %v943_v13  ;;  %v1748_v13 = vld [vmem:[%s7167_s4 + $0x18] sm:$0xff] }
 0x250   :  { %1071 = vst [vmem:[#allocation2 + $0x190] sm:$0xff] %v1007_v14  ;;  %v581_v15 = vpop.f32.mrf.mxu0  ;;  %v1764_v14 = vld [vmem:[%s7167_s4 + $0x98] sm:$0xff]  ;;  %2081 = vmatpush.msra.mxu2 %v1748_v13  ;;  %v1793_v13 = vld [vmem:[%s7167_s4 + $0x180] sm:$0xff] }
 0x251   :  { %v582_v16 = vadd.f32 %v4565_v57, %v581_v15 }
 0x253   :  { %v791_v17 = vadd.f32 %v790_v0, %v582_v16  ;;  %v799_v19 = vpop.f32.mrf.mxu1  ;;  %v1768_v0 = vld [vmem:[%s7167_s4 + $0xb8] sm:$0xff]  ;;  %v1747_v16 = vld [vmem:[%s7167_s4 + $0x10] sm:$0xff] }
 0x254   :  { %2097 = vmatpush.msra.mxu3 %v1768_v0  ;;  %2082 = vmatpush.msra.mxu2 %v1747_v16  ;;  %v1797_v0 = vld [vmem:[%s7167_s4 + $0x1a0] sm:$0xff] }
 0x255   :  { %vm880_vm7 = vcmp.ge.f32.partialorder %v791_v17, 0.0  ;;  %v944_v18 = vmul.f32 0.01, %v791_v17 }
 0x256   :  { %2098 = vmatpush.msra.mxu3 %v1767_v3  ;;  %v1796_v3 = vld [vmem:[%s7167_s4 + $0x198] sm:$0xff] }
 0x257   :  { %v1008_v20 = vsel %vm880_vm7, %v791_v17, %v944_v18  ;;  %v1763_v17 = vld [vmem:[%s7167_s4 + $0x90] sm:$0xff] }
 0x258   :  { %1072 = vst [vmem:[#allocation2 + $0x198] sm:$0xff] %v1008_v20  ;;  %v584_v21 = vpop.f32.mrf.mxu0  ;;  %v1762_v20 = vld [vmem:[%s7167_s4 + $0x88] sm:$0xff] }
 0x259   :  { %v585_v22 = vadd.f32 %v4565_v57, %v584_v21 }
 0x25b   :  { %v794_v23 = vadd.f32 %v793_v6, %v585_v22  ;;  %v802_v27 = vpop.f32.mrf.mxu1  ;;  %v1766_v6 = vld [vmem:[%s7167_s4 + $0xa8] sm:$0xff]  ;;  %v1745_v22 = vld [vmem:[%s7167_s4] sm:$0xff] }
 0x25c   :  { %2099 = vmatpush.msra.mxu3 %v1766_v6  ;;  %v1779_v6 = vld [vmem:[%s7167_s4 + $0x110] sm:$0xff] }
 0x25d   :  { %vm881_vm8 = vcmp.ge.f32.partialorder %v794_v23, 0.0  ;;  %v945_v24 = vmul.f32 0.01, %v794_v23 }
 0x25e   :  { %2100 = vmatpush.msra.mxu3 %v1765_v10  ;;  %v1794_v10 = vld [vmem:[%s7167_s4 + $0x188] sm:$0xff] }
 0x25f   :  { %v1009_v25 = vsel %vm881_vm8, %v794_v23, %v945_v24  ;;  %v1761_v23 = vld [vmem:[%s7167_s4 + $0x80] sm:$0xff] }
 0x260   :  { %1073 = vst [vmem:[#allocation2 + $0x1a0] sm:$0xff] %v1009_v25  ;;  %v587_v26 = vpop.f32.mrf.mxu0  ;;  %2101 = vmatpush.msra.mxu3 %v1764_v14 }
 0x261   :  { %v588_v28 = vadd.f32 %v4565_v57, %v587_v26  ;;  %v1792_v26 = vld [vmem:[%s7167_s4 + $0x178] sm:$0xff] }
 0x262   :  { %2102 = vmatpush.msra.mxu3 %v1763_v17 }
 0x263   :  { %v797_v29 = vadd.f32 %v796_v12, %v588_v28  ;;  %v4631_v36 = vpop.f32.mrf.mxu1 }
 0x264   :  { %2103 = vmatpush.msra.mxu3 %v1762_v20 }
 0x265   :  { %vm882_vm9 = vcmp.ge.f32.partialorder %v797_v29, 0.0  ;;  %v946_v30 = vmul.f32 0.01, %v797_v29 }
 0x266   :  { %2104 = vmatpush.msra.mxu3 %v1761_v23 }
 0x267   :  { %v1010_v31 = vsel %vm882_vm9, %v797_v29, %v946_v30  ;;  %v1791_v29 = vld [vmem:[%s7167_s4 + $0x170] sm:$0xff] }
 0x268   :  { %1074 = vst [vmem:[#allocation2 + $0x1a8] sm:$0xff] %v1010_v31  ;;  %v590_v32 = vpop.f32.mrf.mxu0  ;;  %v1807_v30 = vld [vmem:[%s7167_s4 + $0x1f0] sm:$0xff] }
 0x269   :  { %v591_v33 = vadd.f32 %v4565_v57, %v590_v32  ;;  %v1790_v32 = vld [vmem:[%s7167_s4 + $0x168] sm:$0xff] }
 0x26b   :  { %v800_v37 = vadd.f32 %v799_v19, %v591_v33  ;;  %v808_v53 = vpop.f32.mrf.mxu1  ;;  %v1746_v19 = vld [vmem:[%s7167_s4 + $0x8] sm:$0xff] }
 0x26c   :  { %2083 = vmatpush.msra.mxu2 %v1746_v19  ;;  %v1806_v33 = vld [vmem:[%s7167_s4 + $0x1e8] sm:$0xff] }
 0x26d   :  { %vm883_vm10 = vcmp.ge.f32.partialorder %v800_v37, 0.0  ;;  %v947_v40 = vmul.f32 0.01, %v800_v37 }
 0x26e   :  { %2084 = vmatpush.msra.mxu2 %v1745_v22 }
 0x26f   :  { %v1011_v43 = vsel %vm883_vm10, %v800_v37, %v947_v40  ;;  %v1804_v40 = vld [vmem:[%s7167_s4 + $0x1d8] sm:$0xff] }
 0x270   :  { %1075 = vst [vmem:[#allocation2 + $0x1b0] sm:$0xff] %v1011_v43  ;;  %v593_v46 = vpop.f32.mrf.mxu0  ;;  %2109 = vmatpush.msrb.mxu2 %v1792_v26  ;;  %v1787_v43 = vld [vmem:[%s7167_s4 + $0x150] sm:$0xff] }
 0x271   :  { %v594_v47 = vadd.f32 %v4565_v57, %v593_v46  ;;  %v1786_v46 = vld [vmem:[%s7167_s4 + $0x148] sm:$0xff] }
 0x272   :  { %2110 = vmatpush.msrb.mxu2 %v1791_v29 }
 0x273   :  { %v803_v50 = vadd.f32 %v802_v27, %v594_v47  ;;  %v811_v7 = vpop.f32.mrf.mxu1  ;;  %v1808_v27 = vld [vmem:[%s7167_s4 + $0x1f8] sm:$0xff]  ;;  %v1802_v47 = vld [vmem:[%s7167_s4 + $0x1c8] sm:$0xff] }
 0x274   :  { %2129 = vmatpush.msrb.mxu3 %v1808_v27  ;;  %2111 = vmatpush.msrb.mxu2 %v1790_v32 }
 0x275   :  { %vm884_vm11 = vcmp.ge.f32.partialorder %v803_v50, 0.0  ;;  %v948_v54 = vmul.f32 0.01, %v803_v50 }
 0x276   :  { %2130 = vmatpush.msrb.mxu3 %v1807_v30  ;;  %2112 = vmatpush.msrb.mxu2 %v1789_v35 }
 0x277   :  { %v1012_v58 = vsel %vm884_vm11, %v803_v50, %v948_v54  ;;  %v1801_v50 = vld [vmem:[%s7167_s4 + $0x1c0] sm:$0xff]  ;;  %v1800_v54 = vld [vmem:[%s7167_s4 + $0x1b8] sm:$0xff] }
 0x278   :  { %1076 = vst [vmem:[#allocation2 + $0x1b8] sm:$0xff] %v1012_v58  ;;  %v596_v61 = vpop.f32.mrf.mxu0  ;;  %2131 = vmatpush.msrb.mxu3 %v1806_v33  ;;  %2113 = vmatpush.msrb.mxu2 %v1788_v39  ;;  %v1799_v58 = vld [vmem:[%s7167_s4 + $0x1b0] sm:$0xff] }
 0x279   :  { %v597_v62 = vadd.f32 %v4565_v57, %v596_v61 }
 0x27a   :  { %2114 = vmatpush.msrb.mxu2 %v1787_v43  ;;  %v1824_v43 = vld [vmem:[%s7167_s4 + $0x278] sm:$0xff] }
 0x27b   :  { %v806_v1 = vadd.f32 %v4631_v36, %v597_v62  ;;  %v814_v25 = vpop.f32.mrf.mxu1  ;;  %v1805_v36 = vld [vmem:[%s7167_s4 + $0x1e0] sm:$0xff] }
 0x27c   :  { %2132 = vmatpush.msrb.mxu3 %v1805_v36  ;;  %2115 = vmatpush.msrb.mxu2 %v1786_v46 }
 0x27d   :  { %vm885_vm12 = vcmp.ge.f32.partialorder %v806_v1, 0.0  ;;  %v949_v4 = vmul.f32 0.01, %v806_v1 }
 0x27e   :  { %2133 = vmatpush.msrb.mxu3 %v1804_v40  ;;  %2116 = vmatpush.msrb.mxu2 %v1785_v49 }
 0x27f   :  { %v1013_v8 = vsel %vm885_vm12, %v806_v1, %v949_v4 }
 0x280   :  { %1077 = vst [vmem:[#allocation2 + $0x1c0] sm:$0xff] %v1013_v8  ;;  %v599_v11 = vpop.f32.mrf.mxu0  ;;  %2134 = vmatpush.msrb.mxu3 %v1803_v44 }
 0x281   :  { %v600_v12 = vadd.f32 %v4565_v57, %v599_v11 }
 0x282   :  { %2135 = vmatpush.msrb.mxu3 %v1802_v47  ;;  %v1823_v47 = vld [vmem:[%s7167_s4 + $0x270] sm:$0xff] }
 0x283   :  { %v809_v15 = vadd.f32 %v808_v53, %v600_v12  ;;  %v817_v42 = vpop.f32.mrf.mxu1  ;;  %v1784_v53 = vld [vmem:[%s7167_s4 + $0x138] sm:$0xff]  ;;  %v1777_v12 = vld [vmem:[%s7167_s4 + $0x100] sm:$0xff] }
 0x284   :  { %2136 = vmatpush.msrb.mxu3 %v1801_v50  ;;  %2117 = vmatpush.msrb.mxu2 %v1784_v53  ;;  %v1822_v50 = vld [vmem:[%s7167_s4 + $0x268] sm:$0xff]  ;;  %v1821_v53 = vld [vmem:[%s7167_s4 + $0x260] sm:$0xff] }
 0x285   :  { %vm886_vm13 = vcmp.ge.f32.partialorder %v809_v15, 0.0  ;;  %v950_v18 = vmul.f32 0.01, %v809_v15 }
 0x286   :  { %2137 = vmatpush.msrb.mxu3 %v1800_v54  ;;  %2118 = vmatpush.msrb.mxu2 %v1783_v55 }
 0x287   :  { %v1014_v21 = vsel %vm886_vm13, %v809_v15, %v950_v18 }
 0x288   :  { %1078 = vst [vmem:[#allocation2 + $0x1c8] sm:$0xff] %v1014_v21  ;;  %v602_v24 = vpop.f32.mrf.mxu0  ;;  %2138 = vmatpush.msrb.mxu3 %v1799_v58  ;;  %2119 = vmatpush.msrb.mxu2 %v1782_v59  ;;  %v1820_v59 = vld [vmem:[%s7167_s4 + $0x258] sm:$0xff] }
 0x289   :  { %v603_v28 = vadd.f32 %v4565_v57, %v602_v24 }
 0x28a   :  { %2139 = vmatpush.msrb.mxu3 %v1798_v60  ;;  %2120 = vmatpush.msrb.mxu2 %v1781_v63 }
 0x28b   :  { %v812_v31 = vadd.f32 %v811_v7, %v603_v28  ;;  %v820_v62 = vpop.f32.mrf.mxu1  ;;  %v1795_v7 = vld [vmem:[%s7167_s4 + $0x190] sm:$0xff] }
 0x28c   :  { %2140 = vmatpush.msrb.mxu3 %v1797_v0  ;;  %2121 = vmatpush.msrb.mxu2 %v1780_v2  ;;  %v1819_v0 = vld [vmem:[%s7167_s4 + $0x250] sm:$0xff]  ;;  %v1838_v2 = vld [vmem:[%s7167_s4 + $0x2e8] sm:$0xff] }
 0x28d   :  { %vm887_vm14 = vcmp.ge.f32.partialorder %v812_v31, 0.0  ;;  %v951_v34 = vmul.f32 0.01, %v812_v31 }
 0x28e   :  { %2141 = vmatpush.msrb.mxu3 %v1796_v3  ;;  %2122 = vmatpush.msrb.mxu2 %v1779_v6  ;;  %v1837_v6 = vld [vmem:[%s7167_s4 + $0x2e0] sm:$0xff] }
 0x28f   :  { %v1015_v37 = vsel %vm887_vm14, %v812_v31, %v951_v34 }
 0x290   :  { %1079 = vst [vmem:[#allocation2 + $0x1d0] sm:$0xff] %v1015_v37  ;;  %v605_v38 = vpop.f32.mrf.mxu0  ;;  %2142 = vmatpush.msrb.mxu3 %v1795_v7  ;;  %2123 = vmatpush.msrb.mxu2 %v1778_v9 }
 0x291   :  { %v606_v41 = vadd.f32 %v4565_v57, %v605_v38 }
 0x292   :  { %2143 = vmatpush.msrb.mxu3 %v1794_v10  ;;  %2124 = vmatpush.msrb.mxu2 %v1777_v12  ;;  %v1836_v10 = vld [vmem:[%s7167_s4 + $0x2d8] sm:$0xff] }
 0x293   :  { %v815_v45 = vadd.f32 %v814_v25, %v606_v41  ;;  %v823_v15 = vpop.f32.mrf.mxu1 }
 0x294   :  { %2144 = vmatpush.msrb.mxu3 %v1793_v13 }
 0x295   :  { %vm888_vm15 = vcmp.ge.f32.partialorder %v815_v45, 0.0  ;;  %v952_v48 = vmul.f32 0.01, %v815_v45 }
 0x297   :  { %v1016_v51 = vsel %vm888_vm15, %v815_v45, %v952_v48 }
 0x298   :  { %1080 = vst [vmem:[#allocation2 + $0x1d8] sm:$0xff] %v1016_v51  ;;  %v608_v52 = vpop.f32.mrf.mxu0 }
 0x299   :  { %v609_v56 = vadd.f32 %v4565_v57, %v608_v52 }
 0x29b   :  { %v818_v61 = vadd.f32 %v817_v42, %v609_v56  ;;  %v826_v23 = vpop.f32.mrf.mxu1  ;;  %v1840_v56 = vld [vmem:[%s7167_s4 + $0x2f8] sm:$0xff] }
 0x29d   :  { %vm889_vm0 = vcmp.ge.f32.partialorder %v818_v61, 0.0  ;;  %v953_v1 = vmul.f32 0.01, %v818_v61 }
 0x29f   :  { %v1017_v4 = vsel %vm889_vm0, %v818_v61, %v953_v1 }
 0x2a0   :  { %1081 = vst [vmem:[#allocation2 + $0x1e0] sm:$0xff] %v1017_v4  ;;  %v611_v5 = vpop.f32.mrf.mxu0  ;;  %v1818_v4 = vld [vmem:[%s7167_s4 + $0x248] sm:$0xff] }
 0x2a1   :  { %v612_v8 = vadd.f32 %v4565_v57, %v611_v5 }
 0x2a3   :  { %v821_v11 = vadd.f32 %v820_v62, %v612_v8  ;;  %v1839_v62 = vld [vmem:[%s7167_s4 + $0x2f0] sm:$0xff]  ;;  %v1817_v8 = vld [vmem:[%s7167_s4 + $0x240] sm:$0xff] }
 0x2a5   :  { %vm890_vm2 = vcmp.ge.f32.partialorder %v821_v11, 0.0  ;;  %v954_v14 = vmul.f32 0.01, %v821_v11 }
 0x2a7   :  { %v1018_v16 = vsel %vm890_vm2, %v821_v11, %v954_v14  ;;  %v1816_v11 = vld [vmem:[%s7167_s4 + $0x238] sm:$0xff] }
 0x2a8   :  { %1082 = vst [vmem:[#allocation2 + $0x1e8] sm:$0xff] %v1018_v16  ;;  %v614_v17 = vpop.f32.mrf.mxu0  ;;  %v1815_v16 = vld [vmem:[%s7167_s4 + $0x230] sm:$0xff] }
 0x2a9   :  { %v615_v18 = vadd.f32 %v4565_v57, %v614_v17 }
 0x2ab   :  { %v824_v19 = vadd.f32 %v823_v15, %v615_v18  ;;  %v1835_v15 = vld [vmem:[%s7167_s4 + $0x2d0] sm:$0xff] }
 0x2ad   :  { %vm891_vm1 = vcmp.ge.f32.partialorder %v824_v19, 0.0  ;;  %v955_v20 = vmul.f32 0.01, %v824_v19 }
 0x2af   :  { %v1019_v21 = vsel %vm891_vm1, %v824_v19, %v955_v20  ;;  %v1834_v19 = vld [vmem:[%s7167_s4 + $0x2c8] sm:$0xff] }
 0x2b0   :  { %1083 = vst [vmem:[#allocation2 + $0x1f0] sm:$0xff] %v1019_v21  ;;  %v617_v22 = vpop.f32.mrf.mxu0  ;;  %v1814_v20 = vld [vmem:[%s7167_s4 + $0x228] sm:$0xff] }
 0x2b1   :  { %v618_v24 = vadd.f32 %v4565_v57, %v617_v22 }
 0x2b3   :  { %v827_v25 = vadd.f32 %v826_v23, %v618_v24  ;;  %v1833_v23 = vld [vmem:[%s7167_s4 + $0x2c0] sm:$0xff] }
 0x2b4   :  { %v1813_v24 = vld [vmem:[%s7167_s4 + $0x220] sm:$0xff] }
 0x2b5   :  { %vm892_vm3 = vcmp.ge.f32.partialorder %v827_v25, 0.0  ;;  %v956_v26 = vmul.f32 0.01, %v827_v25 }
 0x2b7   :  { %v1020_v27 = vsel %vm892_vm3, %v827_v25, %v956_v26 }
 0x2b8   :  { %1084 = vst [vmem:[#allocation2 + $0x1f8] sm:$0xff] %v1020_v27  ;;  %v1832_v27 = vld [vmem:[%s7167_s4 + $0x2b8] sm:$0xff] }
 0x2bf   :  { %v1087_v57 = vld [vmem:[%s1086_s7] sm:$0x1]  ;;  %s5012_s7 = sld [smem:[#allocation5 + $0x34]] }
 0x2c0   :  { %v1167_v28 = vld [vmem:[%s1166_s20] sm:$0x1]  ;;  %1088 = vst [vmem:[#allocation3] sm:$0x1] %v1087_v57  ;;  %s5005_s20 = sld [smem:[#allocation5 + $0xc]]  ;;  %v1812_v57 = vld [vmem:[%s7167_s4 + $0x218] sm:$0xff] }
 0x2c1   :  { %v1247_v29 = vld [vmem:[%s1246_s6] sm:$0x1]  ;;  %1168 = vst [vmem:[#allocation3 + $0x1] sm:$0x1] %v1167_v28  ;;  %s1650_s6 = scalar_lea.vmem [#allocation2], %s4643_s1 }
 0x2c2   :  { %v1327_v30 = vld [vmem:[%s1326_s5] sm:$0x1]  ;;  %1248 = vst [vmem:[#allocation3 + $0x2] sm:$0x1] %v1247_v29  ;;  %s7294_s5 = sld [smem:[#allocation17_spill]] }
 0x2c3   :  { %v1407_v31 = vld [vmem:[%s1406_s17] sm:$0x1]  ;;  %1328 = vst [vmem:[#allocation3 + $0x3] sm:$0x1] %v1327_v30  ;;  %s1330_s17 = scalar_lea.vmem [#allocation2], %s4620_s19  ;;  %s5018_s19 = sld [smem:[#allocation5 + $0x5c]] }
 0x2c4   :  { %v1487_v32 = vld [vmem:[%s1486_s2] sm:$0x1]  ;;  %1408 = vst [vmem:[#allocation3 + $0x4] sm:$0x1] %v1407_v31  ;;  %s5015_s2 = sld [smem:[#allocation5 + $0x48]]  ;;  %v1831_v31 = vld [vmem:[%s7167_s4 + $0x2b0] sm:$0xff] }
 0x2c5   :  { %v1567_v33 = vld [vmem:[%s1566_s18] sm:$0x1]  ;;  %1488 = vst [vmem:[#allocation3 + $0x5] sm:$0x1] %v1487_v32  ;;  %s5040_s18 = sld [smem:[#allocation5 + $0x98]]  ;;  %v1811_v32 = vld [vmem:[%s7167_s4 + $0x210] sm:$0xff] }
 0x2c6   :  { %v1647_v34 = vld [vmem:[%s1646_s24] sm:$0x1]  ;;  %1568 = vst [vmem:[#allocation3 + $0x6] sm:$0x1] %v1567_v33  ;;  %s7290_s24 = sld [smem:[#allocation13_spill]] }
 0x2c7   :  { %v1091_v35 = vld [vmem:[%s1090_s25] sm:$0x1]  ;;  %1648 = vst [vmem:[#allocation3 + $0x7] sm:$0x1] %v1647_v34  ;;  %s7291_s25 = sld [smem:[#allocation14_spill]] }
 0x2c8   :  { %v1171_v36 = vld [vmem:[%s1170_s27] sm:$0x1]  ;;  %1092 = vst [vmem:[#allocation3 + $0x8] sm:$0x1] %v1091_v35  ;;  %s1654_s27 = scalar_lea.vmem [#allocation2], %s7293_s8  ;;  %s7298_s8 = sld [smem:[#allocation21_spill]] }
 0x2c9   :  { %v1251_v37 = vld [vmem:[%s1250_s28] sm:$0x1]  ;;  %1172 = vst [vmem:[#allocation3 + $0x9] sm:$0x1] %v1171_v36  ;;  %s1254_s28 = scalar_lea.vmem [#allocation2], %s4661_s12  ;;  %v1830_v35 = vld [vmem:[%s7167_s4 + $0x2a8] sm:$0xff] }
 0x2ca   :  { %v1331_v38 = vld [vmem:[%s1330_s17] sm:$0x1]  ;;  %1252 = vst [vmem:[#allocation3 + $0xa] sm:$0x1] %v1251_v37  ;;  %s7292_s17 = sld [smem:[#allocation15_spill]]  ;;  %v1810_v36 = vld [vmem:[%s7167_s4 + $0x208] sm:$0xff] }
 0x2cb   :  { %v1411_v39 = vld [vmem:[%s1410_s0] sm:$0x1]  ;;  %1332 = vst [vmem:[#allocation3 + $0xb] sm:$0x1] %v1331_v38  ;;  %s1334_s0 = scalar_lea.vmem [#allocation2], %s4670_s9  ;;  %s7311_s9 = sld [smem:[#allocation32_spill]] }
 0x2cc   :  { %v1491_v40 = vld [vmem:[%s1490_s30] sm:$0x1]  ;;  %1412 = vst [vmem:[#allocation3 + $0xc] sm:$0x1] %v1411_v39  ;;  %s1098_s30 = scalar_lea.vmem [#allocation2], %s7294_s5  ;;  %s7299_s5 = sld [smem:[#allocation22_spill]] }
 0x2cd   :  { %v1571_v41 = vld [vmem:[%s1570_s3] sm:$0x1]  ;;  %1492 = vst [vmem:[#allocation3 + $0xd] sm:$0x1] %v1491_v40  ;;  %s1494_s12 = scalar_lea.vmem [#allocation2], %s7291_s25  ;;  %s7297_s3 = sld [smem:[#allocation20_spill]] }
 0x2ce   :  { %v1651_v42 = vld [vmem:[%s1650_s6] sm:$0x1]  ;;  %1572 = vst [vmem:[#allocation3 + $0xe] sm:$0x1] %v1571_v41  ;;  %s1414_s6 = scalar_lea.vmem [#allocation2], %s7290_s24  ;;  %s7296_s24 = sld [smem:[#allocation19_spill]] }
 0x2cf   :  { %v1095_v44 = vld [vmem:[%s1094_s22] sm:$0x1]  ;;  %1652 = vst [vmem:[#allocation3 + $0xf] sm:$0x1] %v1651_v42  ;;  %s7305_s22 = sld [smem:[#allocation27_spill]] }
 0x2d0   :  { %v1725_v45 = vld [vmem:[#allocation3] sm:$0xff]  ;;  %1096 = vst [vmem:[#allocation3 + $0x10] sm:$0x1] %v1095_v44  ;;  %s1574_s1 = scalar_lea.vmem [#allocation2], %s7292_s17  ;;  %v1856_v44 = vld [vmem:[%s7167_s4 + $0x378] sm:$0xff] }
 0x2d1   :  { %v1175_v46 = vld [vmem:[%s1174_s11] sm:$0x1]  ;;  %2085 = vmatmul.f32.vlgmr.msra.gmra.mxu2 %v1725_v45  ;;  %s7295_s11 = sld [smem:[#allocation18_spill]] }
 0x2d2   :  { %v1255_v48 = vld [vmem:[%s1254_s28] sm:$0x1]  ;;  %2149 = vmatpush.msra.mxu2 %v1824_v43  ;;  %1176 = vst [vmem:[#allocation3 + $0x11] sm:$0x1] %v1175_v46  ;;  %s5047_s28 = sld [smem:[#allocation5 + $0xd]]  ;;  %v1828_v43 = vld [vmem:[%s7167_s4 + $0x298] sm:$0xff] }
 0x2d3   :  { %v1335_v49 = vld [vmem:[%s1334_s0] sm:$0x1]  ;;  %1256 = vst [vmem:[#allocation3 + $0x12] sm:$0x1] %v1255_v48  ;;  %s1338_s25 = scalar_lea.vmem [#allocation2], %s7297_s3  ;;  %s1498_s3 = scalar_lea.vmem [#allocation2], %s7299_s5 }
 0x2d4   :  { %v1415_v51 = vld [vmem:[%s1414_s6] sm:$0x1]  ;;  %2150 = vmatpush.msra.mxu2 %v1823_v47  ;;  %1336 = vst [vmem:[#allocation3 + $0x13] sm:$0x1] %v1335_v49  ;;  %s5083_s5 = sld [smem:[#allocation5 + $0x35]]  ;;  %v1827_v48 = vld [vmem:[%s7167_s4 + $0x290] sm:$0xff] }
 0x2d5   :  { %v1495_v52 = vld [vmem:[%s1494_s12] sm:$0x1]  ;;  %1416 = vst [vmem:[#allocation3 + $0x14] sm:$0x1] %v1415_v51  ;;  %s7303_s12 = sld [smem:[#allocation26_spill]]  ;;  %v1855_v49 = vld [vmem:[%s7167_s4 + $0x370] sm:$0xff] }
 0x2d6   :  { %v1575_v54 = vld [vmem:[%s1574_s1] sm:$0x1]  ;;  %2151 = vmatpush.msra.mxu2 %v1822_v50  ;;  %1496 = vst [vmem:[#allocation3 + $0x15] sm:$0x1] %v1495_v52  ;;  %v1726_v60 = vld [vmem:[#allocation3 + $0x8] sm:$0xff]  ;;  %s1258_s1 = scalar_lea.vmem [#allocation2], %s7296_s24 }
 0x2d7   :  { %v1655_v55 = vld [vmem:[%s1654_s27] sm:$0x1]  ;;  %1576 = vst [vmem:[#allocation3 + $0x16] sm:$0x1] %v1575_v54  ;;  %s1178_s17 = scalar_lea.vmem [#allocation2], %s7295_s11  ;;  %2105 = vmatmul.f32.vlgmr.msra.gmra.mxu3 %v1726_v60  ;;  %s5065_s11 = sld [smem:[#allocation5 + $0x21]] }
 0x2d8   :  { %v1099_v58 = vld [vmem:[%s1098_s30] sm:$0x1]  ;;  %2152 = vmatpush.msra.mxu2 %v1821_v53  ;;  %1656 = vst [vmem:[#allocation3 + $0x17] sm:$0x1] %v1655_v55  ;;  %2169 = vmatpush.msra.mxu3 %v1840_v56  ;;  %s7300_s30 = sld [smem:[#allocation23_spill]]  ;;  %v1826_v52 = vld [vmem:[%s7167_s4 + $0x288] sm:$0xff] }
 0x2d9   :  { %v1179_v61 = vld [vmem:[%s1178_s17] sm:$0x1]  ;;  %1100 = vst [vmem:[#allocation3 + $0x18] sm:$0x1] %v1099_v58  ;;  %s7301_s24 = sld [smem:[#allocation24_spill]]  ;;  %s1418_s17 = scalar_lea.vmem [#allocation2], %s7298_s8 }
 0x2da   :  { %v1259_v63 = vld [vmem:[%s1258_s1] sm:$0x1]  ;;  %2153 = vmatpush.msra.mxu2 %v1820_v59  ;;  %1180 = vst [vmem:[#allocation3 + $0x19] sm:$0x1] %v1179_v61  ;;  %2170 = vmatpush.msra.mxu3 %v1839_v62  ;;  %s7302_s1 = sld [smem:[#allocation25_spill]]  ;;  %v1854_v53 = vld [vmem:[%s7167_s4 + $0x368] sm:$0xff] }
 0x2db   :  { %v1339_v1 = vld [vmem:[%s1338_s25] sm:$0x1]  ;;  %1260 = vst [vmem:[#allocation3 + $0x1a] sm:$0x1] %v1259_v63  ;;  %7304 = sst [smem:[#allocation13_spill]] %s5083_s5  ;;  %v1872_v61 = vld [vmem:[%s7167_s4 + $0x3f8] sm:$0xff] }
 0x2dc   :  { %v1419_v3 = vld [vmem:[%s1418_s17] sm:$0x1]  ;;  %2154 = vmatpush.msra.mxu2 %v1819_v0  ;;  %1340 = vst [vmem:[#allocation3 + $0x1b] sm:$0x1] %v1339_v1  ;;  %2171 = vmatpush.msra.mxu3 %v1838_v2  ;;  %s7307_s6 = sld [smem:[#allocation29_spill]]  ;;  %v1852_v62 = vld [vmem:[%s7167_s4 + $0x358] sm:$0xff] }
 0x2dd   :  { %v1499_v5 = vld [vmem:[%s1498_s3] sm:$0x1]  ;;  %1420 = vst [vmem:[#allocation3 + $0x1c] sm:$0x1] %v1419_v3  ;;  %s7312_s3 = sld [smem:[#allocation33_spill]]  ;;  %v1871_v2 = vld [vmem:[%s7167_s4 + $0x3f0] sm:$0xff] }
 0x2de   :  { %s1578_s25 = scalar_lea.vmem [#allocation2], %s7300_s30  ;;  %2155 = vmatpush.msra.mxu2 %v1818_v4  ;;  %1500 = vst [vmem:[#allocation3 + $0x1d] sm:$0x1] %v1499_v5  ;;  %2172 = vmatpush.msra.mxu3 %v1837_v6  ;;  %s7308_s30 = sld [smem:[#allocation30_spill]]  ;;  %v1829_v39 = vld [vmem:[%s7167_s4 + $0x2a0] sm:$0xff]  ;;  %v1851_v3 = vld [vmem:[%s7167_s4 + $0x350] sm:$0xff] }
 0x2df   :  { %v1579_v7 = vld [vmem:[%s1578_s25] sm:$0x1]  ;;  %s1658_s17 = scalar_lea.vmem [#allocation2], %s7301_s24  ;;  %s7306_s25 = sld [smem:[#allocation28_spill]]  ;;  %v1727_v13 = vld [vmem:[#allocation3 + $0x10] sm:$0xff]  ;;  %v1870_v6 = vld [vmem:[%s7167_s4 + $0x3e8] sm:$0xff] }
 0x2e0   :  { %v1659_v9 = vld [vmem:[%s1658_s17] sm:$0x1]  ;;  %s1102_s0 = scalar_lea.vmem [#allocation2], %s7302_s1  ;;  %1580 = vst [vmem:[#allocation3 + $0x1e] sm:$0x1] %v1579_v7  ;;  %2156 = vmatpush.msra.mxu2 %v1817_v8  ;;  %s1182_s24 = scalar_lea.vmem [#allocation2], %s7303_s12  ;;  %2173 = vmatpush.msra.mxu3 %v1836_v10 }
 0x2e1   :  { %v1103_v12 = vld [vmem:[%s1102_s0] sm:$0x1]  ;;  %2125 = vmatmul.f32.vlgmr.msrb.gmra.mxu2 %v1727_v13  ;;  %1660 = vst [vmem:[#allocation3 + $0x1f] sm:$0x1] %v1659_v9  ;;  %s1262_s1 = scalar_lea.vmem [#allocation2], %s7305_s22  ;;  %s7309_s12 = sld [smem:[#allocation31_spill]] }
 0x2e2   :  { %v1183_v14 = vld [vmem:[%s1182_s24] sm:$0x1]  ;;  %2157 = vmatpush.msra.mxu2 %v1816_v11  ;;  %1104 = vst [vmem:[#allocation3 + $0x20] sm:$0x1] %v1103_v12  ;;  %s5101_s0 = sld [smem:[#allocation5 + $0x49]]  ;;  %s1422_s22 = scalar_lea.vmem [#allocation2], %s7307_s6  ;;  %2174 = vmatpush.msra.mxu3 %v1835_v15 }
 0x2e3   :  { %v1263_v17 = vld [vmem:[%s1262_s1] sm:$0x1]  ;;  %1184 = vst [vmem:[#allocation3 + $0x21] sm:$0x1] %v1183_v14  ;;  %s5111_s1 = sld [smem:[#allocation5 + $0x5d]]  ;;  %v1850_v7 = vld [vmem:[%s7167_s4 + $0x348] sm:$0xff] }
 0x2e4   :  { %v1423_v21 = vld [vmem:[%s1422_s22] sm:$0x1]  ;;  %2158 = vmatpush.msra.mxu2 %v1815_v16  ;;  %1264 = vst [vmem:[#allocation3 + $0x22] sm:$0x1] %v1263_v17  ;;  %s7314_s8 = sld [smem:[#allocation34_spill]]  ;;  %2175 = vmatpush.msra.mxu3 %v1834_v19  ;;  %v1868_v14 = vld [vmem:[%s7167_s4 + $0x3d8] sm:$0xff] }
 0x2e5   :  { %s1342_s27 = scalar_lea.vmem [#allocation2], %s7306_s25  ;;  %s1502_s25 = scalar_lea.vmem [#allocation2], %s7308_s30  ;;  %1424 = vst [vmem:[#allocation3 + $0x24] sm:$0x1] %v1423_v21  ;;  %v1809_v40 = vld [vmem:[%s7167_s4 + $0x200] sm:$0xff]  ;;  %v1848_v15 = vld [vmem:[%s7167_s4 + $0x338] sm:$0xff] }
 0x2e6   :  { %v1343_v18 = vld [vmem:[%s1342_s27] sm:$0x1]  ;;  %2159 = vmatpush.msra.mxu2 %v1814_v20  ;;  %s1662_s30 = scalar_lea.vmem [#allocation2], %s7311_s9  ;;  %s5121_s17 = sld [smem:[#allocation5 + $0x71]]  ;;  %2176 = vmatpush.msra.mxu3 %v1833_v23  ;;  %v1847_v19 = vld [vmem:[%s7167_s4 + $0x330] sm:$0xff]  ;;  %v1846_v23 = vld [vmem:[%s7167_s4 + $0x328] sm:$0xff] }
 0x2e7   :  { %v1503_v22 = vld [vmem:[%s1502_s25] sm:$0x1]  ;;  %1344 = vst [vmem:[#allocation3 + $0x23] sm:$0x1] %v1343_v18  ;;  %s1582_s6 = scalar_lea.vmem [#allocation2], %s7309_s12  ;;  %s1106_s12 = scalar_lea.vmem [#allocation2], %s7312_s3 }
 0x2e8   :  { %7310 = sst [smem:[#allocation14_spill]] %s5101_s0  ;;  %v1583_v25 = vld [vmem:[%s1582_s6] sm:$0x1]  ;;  %1504 = vst [vmem:[#allocation3 + $0x25] sm:$0x1] %v1503_v22  ;;  %v1728_v29 = vld [vmem:[#allocation3 + $0x18] sm:$0xff]  ;;  %2160 = vmatpush.msra.mxu2 %v1813_v24  ;;  %2177 = vmatpush.msra.mxu3 %v1832_v27 }
 0x2e9   :  { %7313 = sst [smem:[#allocation15_spill]] %s5111_s1  ;;  %v1663_v26 = vld [vmem:[%s1662_s30] sm:$0x1]  ;;  %1584 = vst [vmem:[#allocation3 + $0x26] sm:$0x1] %v1583_v25  ;;  %2145 = vmatmul.f32.vlgmr.msrb.gmra.mxu3 %v1728_v29  ;;  %v1867_v18 = vld [vmem:[%s7167_s4 + $0x3d0] sm:$0xff] }
 0x2ea   :  { %s7316_s0 = sld [smem:[#allocation35_spill]]  ;;  %v1107_v28 = vld [vmem:[%s1106_s12] sm:$0x1]  ;;  %s1186_s9 = scalar_lea.vmem [#allocation2], %s7314_s8  ;;  %1664 = vst [vmem:[#allocation3 + $0x27] sm:$0x1] %v1663_v26  ;;  %2161 = vmatpush.msra.mxu2 %v1812_v57  ;;  %2178 = vmatpush.msra.mxu3 %v1831_v31 }
 0x2eb   :  { %s7317_s5 = sld [smem:[#allocation36_spill]]  ;;  %v1187_v30 = vld [vmem:[%s1186_s9] sm:$0x1]  ;;  %1108 = vst [vmem:[#allocation3 + $0x28] sm:$0x1] %v1107_v28  ;;  %v1866_v22 = vld [vmem:[%s7167_s4 + $0x3c8] sm:$0xff] }
 0x2ec   :  { %7315 = sst [smem:[#allocation16_spill]] %s5121_s17  ;;  %1188 = vst [vmem:[#allocation3 + $0x29] sm:$0x1] %v1187_v30  ;;  %2162 = vmatpush.msra.mxu2 %v1811_v32  ;;  %2179 = vmatpush.msra.mxu3 %v1830_v35  ;;  %v1825_v56 = vld [vmem:[%s7167_s4 + $0x280] sm:$0xff]  ;;  %v1864_v29 = vld [vmem:[%s7167_s4 + $0x3b8] sm:$0xff] }
 0x2ed   :  { %s7318_s24 = sld [smem:[#allocation37_spill]]  ;;  %v1853_v58 = vld [vmem:[%s7167_s4 + $0x360] sm:$0xff]  ;;  %v1844_v30 = vld [vmem:[%s7167_s4 + $0x318] sm:$0xff] }
 0x2ee   :  { %s7319_s3 = sld [smem:[#allocation38_spill]]  ;;  %2163 = vmatpush.msra.mxu2 %v1810_v36  ;;  %2180 = vmatpush.msra.mxu3 %v1829_v39  ;;  %v1869_v10 = vld [vmem:[%s7167_s4 + $0x3e0] sm:$0xff] }
 0x2ef   :  { %s7320_s8 = sld [smem:[#allocation39_spill]]  ;;  %v1849_v11 = vld [vmem:[%s7167_s4 + $0x340] sm:$0xff] }
 0x2f0   :  { %s1266_s1 = scalar_lea.vmem [#allocation2], %s7316_s0  ;;  %s7321_s25 = sld [smem:[#allocation40_spill]]  ;;  %2164 = vmatpush.msra.mxu2 %v1809_v40  ;;  %2181 = vmatpush.msra.mxu3 %v1828_v43  ;;  %v1865_v26 = vld [vmem:[%s7167_s4 + $0x3c0] sm:$0xff] }
 0x2f1   :  { %v1267_v33 = vld [vmem:[%s1266_s1] sm:$0x1]  ;;  %s1346_s27 = scalar_lea.vmem [#allocation2], %s7317_s5  ;;  %s7322_s5 = sld [smem:[#allocation41_spill]] }
 0x2f2   :  { %v1347_v34 = vld [vmem:[%s1346_s27] sm:$0x1]  ;;  %1268 = vst [vmem:[#allocation3 + $0x2a] sm:$0x1] %v1267_v33  ;;  %s5147_s1 = sld [smem:[#allocation5 + $0x85]]  ;;  %2189 = vmatpush.msrb.mxu2 %v1856_v44  ;;  %2182 = vmatpush.msra.mxu3 %v1827_v48  ;;  %v1863_v33 = vld [vmem:[%s7167_s4 + $0x3b0] sm:$0xff] }
 0x2f3   :  { %s1426_s22 = scalar_lea.vmem [#allocation2], %s7318_s24  ;;  %1348 = vst [vmem:[#allocation3 + $0x2b] sm:$0x1] %v1347_v34  ;;  %s7324_s6 = sld [smem:[#allocation42_spill]]  ;;  %v1729_v46 = vld [vmem:[#allocation3 + $0x20] sm:$0xff]  ;;  %v1843_v34 = vld [vmem:[%s7167_s4 + $0x310] sm:$0xff] }
 0x2f4   :  { %v1427_v37 = vld [vmem:[%s1426_s22] sm:$0x1]  ;;  %s1506_s0 = scalar_lea.vmem [#allocation2], %s7319_s3  ;;  %s5157_s30 = sld [smem:[#allocation5 + $0x99]]  ;;  %2165 = vmatmul.f32.vlgmr.msra.gmra.mxu2 %v1729_v46  ;;  %2183 = vmatpush.msra.mxu3 %v1826_v52  ;;  %v1888_v46 = vld [vmem:[%s7167_s4 + $0x478] sm:$0xff] }
 0x2f5   :  { %v1507_v38 = vld [vmem:[%s1506_s0] sm:$0x1]  ;;  %s1586_s24 = scalar_lea.vmem [#allocation2], %s7320_s8  ;;  %1428 = vst [vmem:[#allocation3 + $0x2c] sm:$0x1] %v1427_v37  ;;  %s7326_s17 = sld [smem:[#allocation43_spill]]  ;;  %2190 = vmatpush.msrb.mxu2 %v1855_v49 }
 0x2f6   :  { %v1587_v41 = vld [vmem:[%s1586_s24] sm:$0x1]  ;;  %s1666_s3 = scalar_lea.vmem [#allocation2], %s7321_s25  ;;  %1508 = vst [vmem:[#allocation3 + $0x2d] sm:$0x1] %v1507_v38  ;;  %s7327_s9 = sld [smem:[#allocation44_spill]]  ;;  %2184 = vmatpush.msra.mxu3 %v1825_v56 }
 0x2f7   :  { %v1667_v42 = vld [vmem:[%s1666_s3] sm:$0x1]  ;;  %s1110_s8 = scalar_lea.vmem [#allocation2], %s7322_s5  ;;  %1588 = vst [vmem:[#allocation3 + $0x2e] sm:$0x1] %v1587_v41  ;;  %s7328_s22 = sld [smem:[#allocation45_spill]]  ;;  %2191 = vmatpush.msrb.mxu2 %v1854_v53 }
 0x2f8   :  { %7323 = sst [smem:[#allocation17_spill]] %s5147_s1  ;;  %v1111_v45 = vld [vmem:[%s1110_s8] sm:$0x1]  ;;  %1668 = vst [vmem:[#allocation3 + $0x2f] sm:$0x1] %v1667_v42  ;;  %2209 = vmatpush.msrb.mxu3 %v1872_v61  ;;  %v1862_v37 = vld [vmem:[%s7167_s4 + $0x3a8] sm:$0xff] }
 0x2f9   :  { %s1190_s25 = scalar_lea.vmem [#allocation2], %s7324_s6  ;;  %s7329_s27 = sld [smem:[#allocation46_spill]]  ;;  %1112 = vst [vmem:[#allocation3 + $0x30] sm:$0x1] %v1111_v45  ;;  %2192 = vmatpush.msrb.mxu2 %v1853_v58  ;;  %v1845_v27 = vld [vmem:[%s7167_s4 + $0x320] sm:$0xff]  ;;  %v1842_v38 = vld [vmem:[%s7167_s4 + $0x308] sm:$0xff] }
 0x2fa   :  { %7325 = sst [smem:[#allocation18_spill]] %s5157_s30  ;;  %v1191_v47 = vld [vmem:[%s1190_s25] sm:$0x1]  ;;  %2210 = vmatpush.msrb.mxu3 %v1871_v2  ;;  %v1860_v45 = vld [vmem:[%s7167_s4 + $0x398] sm:$0xff] }
 0x2fb   :  { %s1270_s5 = scalar_lea.vmem [#allocation2], %s7326_s17  ;;  %s7330_s6 = sld [smem:[#allocation47_spill]]  ;;  %1192 = vst [vmem:[#allocation3 + $0x31] sm:$0x1] %v1191_v47  ;;  %2193 = vmatpush.msrb.mxu2 %v1852_v62  ;;  %v1861_v41 = vld [vmem:[%s7167_s4 + $0x3a0] sm:$0xff] }
 0x2fc   :  { %v1271_v50 = vld [vmem:[%s1270_s5] sm:$0x1]  ;;  %s1350_s12 = scalar_lea.vmem [#allocation2], %s7327_s9  ;;  %s5175_s8 = sld [smem:[#allocation5 + $0xe]]  ;;  %2211 = vmatpush.msrb.mxu3 %v1870_v6 }
 0x2fd   :  { %v1351_v51 = vld [vmem:[%s1350_s12] sm:$0x1]  ;;  %s7332_s30 = sld [smem:[#allocation48_spill]]  ;;  %s1430_s17 = scalar_lea.vmem [#allocation2], %s7328_s22  ;;  %1272 = vst [vmem:[#allocation3 + $0x32] sm:$0x1] %v1271_v50  ;;  %2194 = vmatpush.msrb.mxu2 %v1851_v3 }
 0x2fe   :  { %v1431_v54 = vld [vmem:[%s1430_s17] sm:$0x1]  ;;  %s7333_s0 = sld [smem:[#allocation49_spill]]  ;;  %1352 = vst [vmem:[#allocation3 + $0x33] sm:$0x1] %v1351_v51  ;;  %2212 = vmatpush.msrb.mxu3 %v1869_v10  ;;  %v1859_v50 = vld [vmem:[%s7167_s4 + $0x390] sm:$0xff] }
 0x2ff   :  { %s1510_s9 = scalar_lea.vmem [#allocation2], %s7329_s27  ;;  %s7334_s3 = sld [smem:[#allocation50_spill]]  ;;  %1432 = vst [vmem:[#allocation3 + $0x34] sm:$0x1] %v1431_v54  ;;  %v1730_v0 = vld [vmem:[#allocation3 + $0x28] sm:$0xff]  ;;  %2195 = vmatpush.msrb.mxu2 %v1850_v7  ;;  %v1841_v42 = vld [vmem:[%s7167_s4 + $0x300] sm:$0xff] }
 0x300   :  { %v1511_v55 = vld [vmem:[%s1510_s9] sm:$0x1]  ;;  %s5193_s27 = sld [smem:[#allocation5 + $0x22]]  ;;  %2185 = vmatmul.f32.vlgmr.msra.gmra.mxu3 %v1730_v0  ;;  %v1887_v51 = vld [vmem:[%s7167_s4 + $0x470] sm:$0xff]  ;;  %v1858_v54 = vld [vmem:[%s7167_s4 + $0x388] sm:$0xff] }
 0x301   :  { %s1590_s1 = scalar_lea.vmem [#allocation2], %s7330_s6  ;;  %s7336_s5 = sld [smem:[#allocation51_spill]]  ;;  %1512 = vst [vmem:[#allocation3 + $0x35] sm:$0x1] %v1511_v55  ;;  %2196 = vmatpush.msrb.mxu2 %v1849_v11  ;;  %2213 = vmatpush.msrb.mxu3 %v1868_v14  ;;  %v1886_v55 = vld [vmem:[%s7167_s4 + $0x468] sm:$0xff]  ;;  %v1884_v0 = vld [vmem:[%s7167_s4 + $0x458] sm:$0xff] }
 0x302   :  { %7331 = sst [smem:[#allocation19_spill]] %s5175_s8  ;;  %v1591_v59 = vld [vmem:[%s1590_s1] sm:$0x1] }
 0x303   :  { %s1670_s22 = scalar_lea.vmem [#allocation2], %s7332_s30  ;;  %s7337_s25 = sld [smem:[#allocation52_spill]]  ;;  %1592 = vst [vmem:[#allocation3 + $0x36] sm:$0x1] %v1591_v59  ;;  %2197 = vmatpush.msrb.mxu2 %v1848_v15  ;;  %2214 = vmatpush.msrb.mxu3 %v1867_v18  ;;  %v1857_v59 = vld [vmem:[%s7167_s4 + $0x380] sm:$0xff] }
 0x304   :  { %v1671_v60 = vld [vmem:[%s1670_s22] sm:$0x1]  ;;  %s1114_s6 = scalar_lea.vmem [#allocation2], %s7333_s0  ;;  %s7338_s24 = sld [smem:[#allocation53_spill]] }
 0x305   :  { %v1115_v63 = vld [vmem:[%s1114_s6] sm:$0x1]  ;;  %s1194_s30 = scalar_lea.vmem [#allocation2], %s7334_s3  ;;  %1672 = vst [vmem:[#allocation3 + $0x37] sm:$0x1] %v1671_v60  ;;  %s7339_s0 = sld [smem:[#allocation54_spill]]  ;;  %2198 = vmatpush.msrb.mxu2 %v1847_v19  ;;  %2215 = vmatpush.msrb.mxu3 %v1866_v22 }
 0x306   :  { %7335 = sst [smem:[#allocation20_spill]] %s5193_s27  ;;  %v1195_v1 = vld [vmem:[%s1194_s30] sm:$0x1]  ;;  %1116 = vst [vmem:[#allocation3 + $0x38] sm:$0x1] %v1115_v63  ;;  %v1904_v63 = vld [vmem:[%s7167_s4 + $0x4f8] sm:$0xff] }
 0x307   :  { %s1274_s8 = scalar_lea.vmem [#allocation2], %s7336_s5  ;;  %s7340_s3 = sld [smem:[#allocation55_spill]]  ;;  %1196 = vst [vmem:[#allocation3 + $0x39] sm:$0x1] %v1195_v1  ;;  %2199 = vmatpush.msrb.mxu2 %v1846_v23  ;;  %2216 = vmatpush.msrb.mxu3 %v1865_v26  ;;  %v1885_v60 = vld [vmem:[%s7167_s4 + $0x460] sm:$0xff] }
 0x308   :  { %v1275_v4 = vld [vmem:[%s1274_s8] sm:$0x1]  ;;  %s5211_s6 = sld [smem:[#allocation5 + $0x36]] }
 0x309   :  { %s1354_s12 = scalar_lea.vmem [#allocation2], %s7337_s25  ;;  %s7342_s17 = sld [smem:[#allocation56_spill]]  ;;  %1276 = vst [vmem:[#allocation3 + $0x3a] sm:$0x1] %v1275_v4  ;;  %2200 = vmatpush.msrb.mxu2 %v1845_v27  ;;  %2217 = vmatpush.msrb.mxu3 %v1864_v29  ;;  %v1903_v4 = vld [vmem:[%s7167_s4 + $0x4f0] sm:$0xff] }
 0x30a   :  { %v1355_v5 = vld [vmem:[%s1354_s12] sm:$0x1]  ;;  %s1434_s5 = scalar_lea.vmem [#allocation2], %s7338_s24  ;;  %s7343_s9 = sld [smem:[#allocation57_spill]] }
 0x30b   :  { %v1435_v8 = vld [vmem:[%s1434_s5] sm:$0x1]  ;;  %s1514_s25 = scalar_lea.vmem [#allocation2], %s7339_s0  ;;  %s5221_s8 = sld [smem:[#allocation5 + $0x4a]]  ;;  %1356 = vst [vmem:[#allocation3 + $0x3b] sm:$0x1] %v1355_v5  ;;  %2201 = vmatpush.msrb.mxu2 %v1844_v30  ;;  %2218 = vmatpush.msrb.mxu3 %v1863_v33 }
 0x30c   :  { %v1515_v9 = vld [vmem:[%s1514_s25] sm:$0x1]  ;;  %1436 = vst [vmem:[#allocation3 + $0x3c] sm:$0x1] %v1435_v8  ;;  %s7344_s1 = sld [smem:[#allocation58_spill]]  ;;  %v1731_v48 = vld [vmem:[#allocation3 + $0x30] sm:$0xff] }
 0x30d   :  { %s1594_s24 = scalar_lea.vmem [#allocation2], %s7340_s3  ;;  %1516 = vst [vmem:[#allocation3 + $0x3d] sm:$0x1] %v1515_v9  ;;  %s7345_s27 = sld [smem:[#allocation59_spill]]  ;;  %2202 = vmatpush.msrb.mxu2 %v1843_v34  ;;  %2219 = vmatpush.msrb.mxu3 %v1862_v37  ;;  %v1883_v5 = vld [vmem:[%s7167_s4 + $0x450] sm:$0xff]  ;;  %v1902_v8 = vld [vmem:[%s7167_s4 + $0x4e8] sm:$0xff] }
 0x30e   :  { %7341 = sst [smem:[#allocation21_spill]] %s5211_s6  ;;  %v1595_v12 = vld [vmem:[%s1594_s24] sm:$0x1]  ;;  %s1198_s3 = scalar_lea.vmem [#allocation2], %s4925_s16  ;;  %v1882_v9 = vld [vmem:[%s7167_s4 + $0x448] sm:$0xff] }
 0x30f   :  { %s1674_s0 = scalar_lea.vmem [#allocation2], %s7342_s17  ;;  %1596 = vst [vmem:[#allocation3 + $0x3e] sm:$0x1] %v1595_v12  ;;  %v1199_v17 = vld [vmem:[%s1198_s3] sm:$0x1]  ;;  %s7346_s17 = sld [smem:[#allocation60_spill]]  ;;  %2203 = vmatpush.msrb.mxu2 %v1842_v38  ;;  %2220 = vmatpush.msrb.mxu3 %v1861_v41 }
 0x310   :  { %v1675_v13 = vld [vmem:[%s1674_s0] sm:$0x1]  ;;  %s1118_s12 = scalar_lea.vmem [#allocation2], %s7343_s9  ;;  %s5239_s30 = sld [smem:[#allocation5 + $0x5e]]  ;;  %1200 = vst [vmem:[#allocation3 + $0x41] sm:$0x1] %v1199_v17 }
 0x311   :  { %v1119_v16 = vld [vmem:[%s1118_s12] sm:$0x1]  ;;  %1676 = vst [vmem:[#allocation3 + $0x3f] sm:$0x1] %v1675_v13  ;;  %s7348_s6 = sld [smem:[#allocation61_spill]]  ;;  %2204 = vmatpush.msrb.mxu2 %v1841_v42  ;;  %2221 = vmatpush.msrb.mxu3 %v1860_v45  ;;  %v1880_v17 = vld [vmem:[%s7167_s4 + $0x438] sm:$0xff] }
 0x312   :  { %s1278_s9 = scalar_lea.vmem [#allocation2], %s7344_s1  ;;  %1120 = vst [vmem:[#allocation3 + $0x40] sm:$0x1] %v1119_v16  ;;  %s7349_s25 = sld [smem:[#allocation62_spill]]  ;;  %2205 = vmatmul.f32.vlgmr.msrb.gmra.mxu2 %v1731_v48  ;;  %v1901_v12 = vld [vmem:[%s7167_s4 + $0x4e0] sm:$0xff]  ;;  %v1900_v16 = vld [vmem:[%s7167_s4 + $0x4d8] sm:$0xff] }
 0x313   :  { %v1279_v20 = vld [vmem:[%s1278_s9] sm:$0x1]  ;;  %s1358_s16 = scalar_lea.vmem [#allocation2], %s7345_s27  ;;  %s5249_s12 = sld [smem:[#allocation5 + $0x72]]  ;;  %2229 = vmatpush.msra.mxu2 %v1888_v46  ;;  %2222 = vmatpush.msrb.mxu3 %v1859_v50  ;;  %v1920_v50 = vld [vmem:[%s7167_s4 + $0x578] sm:$0xff] }
 0x314   :  { %v1359_v21 = vld [vmem:[%s1358_s16] sm:$0x1]  ;;  %s7351_s1 = sld [smem:[#allocation63_spill]]  ;;  %1280 = vst [vmem:[#allocation3 + $0x42] sm:$0x1] %v1279_v20  ;;  %v1899_v20 = vld [vmem:[%s7167_s4 + $0x4d0] sm:$0xff] }
 0x315   :  { %s1438_s22 = scalar_lea.vmem [#allocation2], %s7346_s17  ;;  %s7352_s5 = sld [smem:[#allocation64_spill]]  ;;  %1360 = vst [vmem:[#allocation3 + $0x43] sm:$0x1] %v1359_v21  ;;  %2230 = vmatpush.msra.mxu2 %v1887_v51  ;;  %2223 = vmatpush.msrb.mxu3 %v1858_v54  ;;  %v1881_v13 = vld [vmem:[%s7167_s4 + $0x440] sm:$0xff]  ;;  %v1879_v21 = vld [vmem:[%s7167_s4 + $0x430] sm:$0xff] }
 0x316   :  { %7347 = sst [smem:[#allocation22_spill]] %s5239_s30  ;;  %v1439_v24 = vld [vmem:[%s1438_s22] sm:$0x1]  ;;  %v1891_v54 = vld [vmem:[%s7167_s4 + $0x490] sm:$0xff] }
 0x317   :  { %s1518_s27 = scalar_lea.vmem [#allocation2], %s7348_s6  ;;  %s7353_s0 = sld [smem:[#allocation65_spill]]  ;;  %1440 = vst [vmem:[#allocation3 + $0x44] sm:$0x1] %v1439_v24  ;;  %2231 = vmatpush.msra.mxu2 %v1886_v55  ;;  %2224 = vmatpush.msrb.mxu3 %v1857_v59  ;;  %v1898_v24 = vld [vmem:[%s7167_s4 + $0x4c8] sm:$0xff]  ;;  %v1873_v45 = vld [vmem:[%s7167_s4 + $0x400] sm:$0xff] }
 0x318   :  { %v1519_v25 = vld [vmem:[%s1518_s27] sm:$0x1]  ;;  %s1598_s24 = scalar_lea.vmem [#allocation2], %s7349_s25  ;;  %s7354_s6 = sld [smem:[#allocation66_spill]]  ;;  %v1732_v2 = vld [vmem:[#allocation3 + $0x38] sm:$0xff]  ;;  %v1919_v55 = vld [vmem:[%s7167_s4 + $0x570] sm:$0xff] }
 0x319   :  { %7350 = sst [smem:[#allocation23_spill]] %s5249_s12  ;;  %v1599_v57 = vld [vmem:[%s1598_s24] sm:$0x1]  ;;  %1520 = vst [vmem:[#allocation3 + $0x45] sm:$0x1] %v1519_v25  ;;  %2232 = vmatpush.msra.mxu2 %v1885_v60  ;;  %2225 = vmatmul.f32.vlgmr.msrb.gmra.mxu3 %v1732_v2  ;;  %v1878_v25 = vld [vmem:[%s7167_s4 + $0x428] sm:$0xff] }
 0x31a   :  { %s1678_s17 = scalar_lea.vmem [#allocation2], %s7351_s1  ;;  %s5267_s22 = sld [smem:[#allocation5 + $0x86]]  ;;  %1600 = vst [vmem:[#allocation3 + $0x46] sm:$0x1] %v1599_v57  ;;  %2249 = vmatpush.msra.mxu3 %v1904_v63  ;;  %v1897_v57 = vld [vmem:[%s7167_s4 + $0x4c0] sm:$0xff]  ;;  %v1890_v60 = vld [vmem:[%s7167_s4 + $0x488] sm:$0xff] }
 0x31b   :  { %v1679_v28 = vld [vmem:[%s1678_s17] sm:$0x1]  ;;  %s1122_s25 = scalar_lea.vmem [#allocation2], %s7352_s5  ;;  %s7356_s30 = sld [smem:[#allocation67_spill]]  ;;  %2233 = vmatpush.msra.mxu2 %v1884_v0  ;;  %v1936_v2 = vld [vmem:[%s7167_s4 + $0x5f8] sm:$0xff] }
 0x31c   :  { %v1123_v31 = vld [vmem:[%s1122_s25] sm:$0x1]  ;;  %s7357_s3 = sld [smem:[#allocation68_spill]]  ;;  %1680 = vst [vmem:[#allocation3 + $0x47] sm:$0x1] %v1679_v28  ;;  %2250 = vmatpush.msra.mxu3 %v1903_v4 }
 0x31d   :  { %s1202_s1 = scalar_lea.vmem [#allocation2], %s7353_s0  ;;  %s5277_s24 = sld [smem:[#allocation5 + $0x9a]]  ;;  %1124 = vst [vmem:[#allocation3 + $0x48] sm:$0x1] %v1123_v31  ;;  %2234 = vmatpush.msra.mxu2 %v1883_v5  ;;  %v1877_v28 = vld [vmem:[%s7167_s4 + $0x420] sm:$0xff]  ;;  %v1896_v31 = vld [vmem:[%s7167_s4 + $0x4b8] sm:$0xff] }
 0x31e   :  { %v1203_v32 = vld [vmem:[%s1202_s1] sm:$0x1]  ;;  %s7359_s5 = sld [smem:[#allocation69_spill]]  ;;  %s1282_s9 = scalar_lea.vmem [#allocation2], %s7354_s6  ;;  %2251 = vmatpush.msra.mxu3 %v1902_v8  ;;  %v1916_v8 = vld [vmem:[%s7167_s4 + $0x558] sm:$0xff] }
 0x31f   :  { %v1283_v35 = vld [vmem:[%s1282_s9] sm:$0x1]  ;;  %s7360_s16 = sld [smem:[#allocation70_spill]]  ;;  %1204 = vst [vmem:[#allocation3 + $0x49] sm:$0x1] %v1203_v32  ;;  %2235 = vmatpush.msra.mxu2 %v1882_v9  ;;  %v1876_v32 = vld [vmem:[%s7167_s4 + $0x418] sm:$0xff] }
 0x320   :  { %7355 = sst [smem:[#allocation24_spill]] %s5267_s22  ;;  %1284 = vst [vmem:[#allocation3 + $0x4a] sm:$0x1] %v1283_v35  ;;  %2252 = vmatpush.msra.mxu3 %v1901_v12  ;;  %v1895_v35 = vld [vmem:[%s7167_s4 + $0x4b0] sm:$0xff]  ;;  %v1889_v63 = vld [vmem:[%s7167_s4 + $0x480] sm:$0xff] }
 0x321   :  { %s1362_s0 = scalar_lea.vmem [#allocation2], %s7356_s30  ;;  %s7361_s27 = sld [smem:[#allocation71_spill]]  ;;  %2236 = vmatpush.msra.mxu2 %v1881_v13  ;;  %v1915_v12 = vld [vmem:[%s7167_s4 + $0x550] sm:$0xff] }
 0x322   :  { %v1363_v36 = vld [vmem:[%s1362_s0] sm:$0x1]  ;;  %s1442_s12 = scalar_lea.vmem [#allocation2], %s7357_s3  ;;  %s7362_s30 = sld [smem:[#allocation72_spill]]  ;;  %2253 = vmatpush.msra.mxu3 %v1900_v16 }
 0x323   :  { %7358 = sst [smem:[#allocation25_spill]] %s5277_s24  ;;  %v1443_v39 = vld [vmem:[%s1442_s12] sm:$0x1]  ;;  %1364 = vst [vmem:[#allocation3 + $0x4b] sm:$0x1] %v1363_v36  ;;  %2237 = vmatpush.msra.mxu2 %v1880_v17  ;;  %v1875_v36 = vld [vmem:[%s7167_s4 + $0x410] sm:$0xff] }
 0x324   :  { %s1522_s6 = scalar_lea.vmem [#allocation2], %s7359_s5  ;;  %s5295_s9 = sld [smem:[#allocation5 + $0xf]]  ;;  %1444 = vst [vmem:[#allocation3 + $0x4c] sm:$0x1] %v1443_v39  ;;  %2254 = vmatpush.msra.mxu3 %v1899_v20  ;;  %v1894_v39 = vld [vmem:[%s7167_s4 + $0x4a8] sm:$0xff]  ;;  %v1933_v17 = vld [vmem:[%s7167_s4 + $0x5e0] sm:$0xff] }
 0x325   :  { %v1523_v40 = vld [vmem:[%s1522_s6] sm:$0x1]  ;;  %s1602_s3 = scalar_lea.vmem [#allocation2], %s7360_s16  ;;  %s7364_s22 = sld [smem:[#allocation73_spill]]  ;;  %2238 = vmatpush.msra.mxu2 %v1879_v21  ;;  %v1932_v21 = vld [vmem:[%s7167_s4 + $0x5d8] sm:$0xff] }
 0x326   :  { %v1603_v43 = vld [vmem:[%s1602_s3] sm:$0x1]  ;;  %s5305_s17 = sld [smem:[#allocation5 + $0x23]]  ;;  %1524 = vst [vmem:[#allocation3 + $0x4d] sm:$0x1] %v1523_v40  ;;  %2255 = vmatpush.msra.mxu3 %v1898_v24  ;;  %v1874_v40 = vld [vmem:[%s7167_s4 + $0x408] sm:$0xff] }
 0x327   :  { %s1682_s5 = scalar_lea.vmem [#allocation2], %s7361_s27  ;;  %s7366_s24 = sld [smem:[#allocation74_spill]]  ;;  %1604 = vst [vmem:[#allocation3 + $0x4e] sm:$0x1] %v1603_v43  ;;  %2239 = vmatpush.msra.mxu2 %v1878_v25  ;;  %v1931_v25 = vld [vmem:[%s7167_s4 + $0x5d0] sm:$0xff] }
 0x328   :  { %v1683_v44 = vld [vmem:[%s1682_s5] sm:$0x1]  ;;  %s1126_s16 = scalar_lea.vmem [#allocation2], %s7362_s30  ;;  %s7367_s25 = sld [smem:[#allocation75_spill]]  ;;  %2256 = vmatpush.msra.mxu3 %v1897_v57 }
 0x329   :  { %v1127_v47 = vld [vmem:[%s1126_s16] sm:$0x1]  ;;  %s7368_s5 = sld [smem:[#allocation76_spill]]  ;;  %1684 = vst [vmem:[#allocation3 + $0x4f] sm:$0x1] %v1683_v44  ;;  %2240 = vmatpush.msra.mxu2 %v1877_v28  ;;  %v1930_v28 = vld [vmem:[%s7167_s4 + $0x5c8] sm:$0xff] }
 0x32a   :  { %7363 = sst [smem:[#allocation26_spill]] %s5295_s9  ;;  %1128 = vst [vmem:[#allocation3 + $0x50] sm:$0x1] %v1127_v47  ;;  %2257 = vmatpush.msra.mxu3 %v1896_v31  ;;  %v1893_v44 = vld [vmem:[%s7167_s4 + $0x4a0] sm:$0xff]  ;;  %v1892_v47 = vld [vmem:[%s7167_s4 + $0x498] sm:$0xff] }
 0x32b   :  { %s1206_s27 = scalar_lea.vmem [#allocation2], %s7364_s22  ;;  %s7369_s9 = sld [smem:[#allocation77_spill]]  ;;  %2241 = vmatpush.msra.mxu2 %v1876_v32  ;;  %v1929_v32 = vld [vmem:[%s7167_s4 + $0x5c0] sm:$0xff] }
 0x32c   :  { %7365 = sst [smem:[#allocation27_spill]] %s5305_s17  ;;  %v1207_v49 = vld [vmem:[%s1206_s27] sm:$0x1]  ;;  %2258 = vmatpush.msra.mxu3 %v1895_v35 }
 0x32d   :  { %s1286_s30 = scalar_lea.vmem [#allocation2], %s7366_s24  ;;  %s7370_s22 = sld [smem:[#allocation78_spill]]  ;;  %1208 = vst [vmem:[#allocation3 + $0x51] sm:$0x1] %v1207_v49  ;;  %2242 = vmatpush.msra.mxu2 %v1875_v36  ;;  %v1733_v49 = vld [vmem:[#allocation3 + $0x40] sm:$0xff] }
 0x32e   :  { %v1287_v52 = vld [vmem:[%s1286_s30] sm:$0x1]  ;;  %s1366_s0 = scalar_lea.vmem [#allocation2], %s7367_s25  ;;  %s5323_s16 = sld [smem:[#allocation5 + $0x37]]  ;;  %2259 = vmatpush.msra.mxu3 %v1894_v39  ;;  %v1927_v39 = vld [vmem:[%s7167_s4 + $0x5b0] sm:$0xff] }
 0x32f   :  { %v1367_v53 = vld [vmem:[%s1366_s0] sm:$0x1]  ;;  %s7371_s24 = sld [smem:[#allocation79_spill]]  ;;  %s1446_s12 = scalar_lea.vmem [#allocation2], %s7368_s5  ;;  %1288 = vst [vmem:[#allocation3 + $0x52] sm:$0x1] %v1287_v52  ;;  %2243 = vmatpush.msra.mxu2 %v1874_v40 }
 0x330   :  { %v1447_v56 = vld [vmem:[%s1446_s12] sm:$0x1]  ;;  %1368 = vst [vmem:[#allocation3 + $0x53] sm:$0x1] %v1367_v53  ;;  %s7372_s1 = sld [smem:[#allocation80_spill]]  ;;  %2260 = vmatpush.msra.mxu3 %v1893_v44  ;;  %v1734_v5 = vld [vmem:[#allocation3 + $0x48] sm:$0xff] }
 0x331   :  { %s1526_s25 = scalar_lea.vmem [#allocation2], %s7369_s9  ;;  %1448 = vst [vmem:[#allocation3 + $0x54] sm:$0x1] %v1447_v56  ;;  %s5341_s9 = sld [smem:[#allocation5 + $0x4b]]  ;;  %2244 = vmatpush.msra.mxu2 %v1873_v45  ;;  %v1909_v35 = vld [vmem:[%s7167_s4 + $0x520] sm:$0xff]  ;;  %v1907_v40 = vld [vmem:[%s7167_s4 + $0x510] sm:$0xff] }
 0x332   :  { %v1527_v58 = vld [vmem:[%s1526_s25] sm:$0x1]  ;;  %s7373_s30 = sld [smem:[#allocation81_spill]]  ;;  %2245 = vmatmul.f32.vlgmr.msra.gmra.mxu2 %v1733_v49  ;;  %2261 = vmatpush.msra.mxu3 %v1892_v47  ;;  %v1926_v44 = vld [vmem:[%s7167_s4 + $0x5a8] sm:$0xff] }
 0x333   :  { %s1606_s17 = scalar_lea.vmem [#allocation2], %s7370_s22  ;;  %1528 = vst [vmem:[#allocation3 + $0x55] sm:$0x1] %v1527_v58  ;;  %s1130_s22 = scalar_lea.vmem [#allocation2], %s4979_s10  ;;  %2269 = vmatpush.msrb.mxu2 %v1920_v50  ;;  %v1925_v47 = vld [vmem:[%s7167_s4 + $0x5a0] sm:$0xff] }
 0x334   :  { %v1607_v61 = vld [vmem:[%s1606_s17] sm:$0x1]  ;;  %s7374_s0 = sld [smem:[#allocation82_spill]]  ;;  %s1290_s10 = scalar_lea.vmem [#allocation2], %s4983_s13  ;;  %2262 = vmatpush.msra.mxu3 %v1891_v54  ;;  %v1952_v54 = vld [vmem:[%s7167_s4 + $0x678] sm:$0xff] }
 0x335   :  { %s1686_s5 = scalar_lea.vmem [#allocation2], %s7371_s24  ;;  %v1131_v1 = vld [vmem:[%s1130_s22] sm:$0x1]  ;;  %1608 = vst [vmem:[#allocation3 + $0x56] sm:$0x1] %v1607_v61  ;;  %s5369_s27 = sld [smem:[#allocation5 + $0x73]]  ;;  %2270 = vmatpush.msrb.mxu2 %v1919_v55 }
 0x336   :  { %v1687_v62 = vld [vmem:[%s1686_s5] sm:$0x1]  ;;  %s1210_s24 = scalar_lea.vmem [#allocation2], %s7372_s1  ;;  %1132 = vst [vmem:[#allocation3 + $0x58] sm:$0x1] %v1131_v1  ;;  %s5359_s1 = sld [smem:[#allocation5 + $0x5f]]  ;;  %2263 = vmatpush.msra.mxu3 %v1890_v60 }
 0x337   :  { %v1211_v3 = vld [vmem:[%s1210_s24] sm:$0x1]  ;;  %1688 = vst [vmem:[#allocation3 + $0x57] sm:$0x1] %v1687_v62  ;;  %s1134_s24 = scalar_lea.vmem [#allocation2], %s5005_s20  ;;  %s1294_s20 = scalar_lea.vmem [#allocation2], %s5012_s7 }
 0x338   :  { %v1291_v6 = vld [vmem:[%s1290_s10] sm:$0x1]  ;;  %s1370_s12 = scalar_lea.vmem [#allocation2], %s7373_s30  ;;  %1212 = vst [vmem:[#allocation3 + $0x59] sm:$0x1] %v1211_v3  ;;  %s1530_s30 = scalar_lea.vmem [#allocation2], %s4995_s14  ;;  %2264 = vmatpush.msra.mxu3 %v1889_v63 }
 0x339   :  { %v1371_v7 = vld [vmem:[%s1370_s12] sm:$0x1]  ;;  %1292 = vst [vmem:[#allocation3 + $0x5a] sm:$0x1] %v1291_v6  ;;  %s1690_s14 = scalar_lea.vmem [#allocation2], %s5002_s26  ;;  %s5387_s26 = sld [smem:[#allocation5 + $0x87]]  ;;  %2265 = vmatmul.f32.vlgmr.msra.gmra.mxu3 %v1734_v5 }
 0x33a   :  { %s1450_s13 = scalar_lea.vmem [#allocation2], %s7374_s0  ;;  %v1531_v11 = vld [vmem:[%s1530_s30] sm:$0x1]  ;;  %1372 = vst [vmem:[#allocation3 + $0x5b] sm:$0x1] %v1371_v7  ;;  %s1610_s0 = scalar_lea.vmem [#allocation2], %s4998_s23  ;;  %2289 = vmatpush.msrb.mxu3 %v1936_v2 }
 0x33b   :  { %v1451_v10 = vld [vmem:[%s1450_s13] sm:$0x1]  ;;  %1532 = vst [vmem:[#allocation3 + $0x5d] sm:$0x1] %v1531_v11  ;;  %s1214_s23 = scalar_lea.vmem [#allocation2], %s5009_s29  ;;  %s1374_s29 = scalar_lea.vmem [#allocation2], %s5015_s2 }
 0x33c   :  { %v1611_v14 = vld [vmem:[%s1610_s0] sm:$0x1]  ;;  %1452 = vst [vmem:[#allocation3 + $0x5c] sm:$0x1] %v1451_v10  ;;  %s5397_s3 = sld [smem:[#allocation5 + $0x9b]]  ;;  %s1454_s7 = scalar_lea.vmem [#allocation2], %s5018_s19 }
 0x33d   :  { %v1691_v15 = vld [vmem:[%s1690_s14] sm:$0x1]  ;;  %1612 = vst [vmem:[#allocation3 + $0x5e] sm:$0x1] %v1611_v14  ;;  %s1534_s2 = scalar_lea.vmem [#allocation2], %s5021_s21  ;;  %s1694_s19 = scalar_lea.vmem [#allocation2], %s5040_s18 }
 0x33e   :  { %v1135_v18 = vld [vmem:[%s1134_s24] sm:$0x1]  ;;  %1692 = vst [vmem:[#allocation3 + $0x5f] sm:$0x1] %v1691_v15  ;;  %s7375_s13 = sld [smem:[#allocation13_spill]]  ;;  %s1218_s10 = scalar_lea.vmem [#allocation2], %s5065_s11 }
 0x33f   :  { %v1215_v19 = vld [vmem:[%s1214_s23] sm:$0x1]  ;;  %1136 = vst [vmem:[#allocation3 + $0x60] sm:$0x1] %v1135_v18  ;;  %s1614_s23 = scalar_lea.vmem [#allocation2], %s5033_s15  ;;  %s5415_s21 = sld [smem:[#allocation5 + $0x10]] }
 0x340   :  { %v1295_v22 = vld [vmem:[%s1294_s20] sm:$0x1]  ;;  %1216 = vst [vmem:[#allocation3 + $0x61] sm:$0x1] %v1215_v19  ;;  %s7376_s15 = sld [smem:[#allocation14_spill]]  ;;  %v1918_v61 = vld [vmem:[%s7167_s4 + $0x568] sm:$0xff] }
 0x341   :  { %v1375_v23 = vld [vmem:[%s1374_s29] sm:$0x1]  ;;  %1296 = vst [vmem:[#allocation3 + $0x62] sm:$0x1] %v1295_v22  ;;  %s1138_s29 = scalar_lea.vmem [#allocation2], %s5047_s28  ;;  %s7377_s18 = sld [smem:[#allocation15_spill]]  ;;  %2271 = vmatpush.msrb.mxu2 %v1918_v61 }
 0x342   :  { %v1455_v26 = vld [vmem:[%s1454_s7] sm:$0x1]  ;;  %1376 = vst [vmem:[#allocation3 + $0x63] sm:$0x1] %v1375_v23  ;;  %s7378_s25 = sld [smem:[#allocation16_spill]]  ;;  %v1935_v7 = vld [vmem:[%s7167_s4 + $0x5f0] sm:$0xff] }
 0x343   :  { %v1535_v27 = vld [vmem:[%s1534_s2] sm:$0x1]  ;;  %1456 = vst [vmem:[#allocation3 + $0x64] sm:$0x1] %v1455_v26  ;;  %s7379_s22 = sld [smem:[#allocation17_spill]]  ;;  %s1386_s11 = scalar_lea.vmem [#allocation2], %s5341_s9  ;;  %2290 = vmatpush.msrb.mxu3 %v1935_v7 }
 0x344   :  { %v1615_v29 = vld [vmem:[%s1614_s23] sm:$0x1]  ;;  %1536 = vst [vmem:[#allocation3 + $0x65] sm:$0x1] %v1535_v27  ;;  %s1298_s2 = scalar_lea.vmem [#allocation2], %s7375_s13  ;;  %s7380_s13 = sld [smem:[#allocation18_spill]] }
 0x345   :  { %v1695_v30 = vld [vmem:[%s1694_s19] sm:$0x1]  ;;  %1616 = vst [vmem:[#allocation3 + $0x66] sm:$0x1] %v1615_v29  ;;  %s7381_s5 = sld [smem:[#allocation97_spill]]  ;;  %v1934_v11 = vld [vmem:[%s7167_s4 + $0x5e8] sm:$0xff] }
 0x346   :  { %v1139_v33 = vld [vmem:[%s1138_s29] sm:$0x1]  ;;  %1696 = vst [vmem:[#allocation3 + $0x67] sm:$0x1] %v1695_v30  ;;  %s1378_s28 = scalar_lea.vmem [#allocation2], %s7376_s15  ;;  %s7383_s12 = sld [smem:[#allocation20_spill]]  ;;  %2291 = vmatpush.msrb.mxu3 %v1934_v11 }
 0x347   :  { %v1219_v34 = vld [vmem:[%s1218_s10] sm:$0x1]  ;;  %1140 = vst [vmem:[#allocation3 + $0x68] sm:$0x1] %v1139_v33  ;;  %s1458_s19 = scalar_lea.vmem [#allocation2], %s7377_s18  ;;  %s7382_s10 = sld [smem:[#allocation19_spill]] }
 0x348   :  { %v1299_v37 = vld [vmem:[%s1298_s2] sm:$0x1]  ;;  %1220 = vst [vmem:[#allocation3 + $0x69] sm:$0x1] %v1219_v34  ;;  %s1538_s20 = scalar_lea.vmem [#allocation2], %s7378_s25  ;;  %s7384_s25 = sld [smem:[#allocation21_spill]]  ;;  %2292 = vmatpush.msrb.mxu3 %v1933_v17 }
 0x349   :  { %v1379_v38 = vld [vmem:[%s1378_s28] sm:$0x1]  ;;  %1300 = vst [vmem:[#allocation3 + $0x6a] sm:$0x1] %v1299_v37  ;;  %s1618_s18 = scalar_lea.vmem [#allocation2], %s7379_s22  ;;  %s7385_s24 = sld [smem:[#allocation22_spill]] }
 0x34a   :  { %v1459_v41 = vld [vmem:[%s1458_s19] sm:$0x1]  ;;  %1380 = vst [vmem:[#allocation3 + $0x6b] sm:$0x1] %v1379_v38  ;;  %s1698_s28 = scalar_lea.vmem [#allocation2], %s7380_s13  ;;  %s7386_s23 = sld [smem:[#allocation23_spill]]  ;;  %2293 = vmatpush.msrb.mxu3 %v1932_v21 }
 0x34b   :  { %v2630_v42 = vld [vmem:[%s7381_s5 + $0x168] sm:$0xff]  ;;  %v1539_v43 = vld [vmem:[%s1538_s20] sm:$0x1]  ;;  %1460 = vst [vmem:[#allocation3 + $0x6c] sm:$0x1] %v1459_v41  ;;  %s7387_s20 = sld [smem:[#allocation24_spill]] }
 0x34c   :  { %3027 = vmatpush.msrb.mxu1 %v2630_v42  ;;  %v1619_v46 = vld [vmem:[%s1618_s18] sm:$0x1]  ;;  %1540 = vst [vmem:[#allocation3 + $0x6d] sm:$0x1] %v1539_v43  ;;  %s1222_s19 = scalar_lea.vmem [#allocation2], %s7383_s12  ;;  %s7388_s0 = sld [smem:[#allocation25_spill]]  ;;  %2294 = vmatpush.msrb.mxu3 %v1931_v25 }
 0x34d   :  { %v1699_v48 = vld [vmem:[%s1698_s28] sm:$0x1]  ;;  %s1142_s22 = scalar_lea.vmem [#allocation2], %s7382_s10  ;;  %1620 = vst [vmem:[#allocation3 + $0x6e] sm:$0x1] %v1619_v46  ;;  %s1382_s10 = scalar_lea.vmem [#allocation2], %s5221_s8 }
 0x34e   :  { %v1143_v51 = vld [vmem:[%s1142_s22] sm:$0x1]  ;;  %s1302_s30 = scalar_lea.vmem [#allocation2], %s7384_s25  ;;  %1700 = vst [vmem:[#allocation3 + $0x6f] sm:$0x1] %v1699_v48  ;;  %s7389_s28 = sld [smem:[#allocation26_spill]]  ;;  %2295 = vmatpush.msrb.mxu3 %v1930_v28 }
 0x34f   :  { %v1223_v52 = vld [vmem:[%s1222_s19] sm:$0x1]  ;;  %1144 = vst [vmem:[#allocation3 + $0x70] sm:$0x1] %v1143_v51  ;;  %s1462_s14 = scalar_lea.vmem [#allocation2], %s7385_s24  ;;  %s5477_s6 = sld [smem:[#allocation5 + $0x24]] }
 0x350   :  { %v1303_v53 = vld [vmem:[%s1302_s30] sm:$0x1]  ;;  %s1542_s18 = scalar_lea.vmem [#allocation2], %s7386_s23  ;;  %1224 = vst [vmem:[#allocation3 + $0x71] sm:$0x1] %v1223_v52  ;;  %v2631_v0 = vld [vmem:[%s7381_s5 + $0x170] sm:$0xff]  ;;  %2296 = vmatpush.msrb.mxu3 %v1929_v32 }
 0x351   :  { %v1383_v56 = vld [vmem:[%s1382_s10] sm:$0x1]  ;;  %s1622_s8 = scalar_lea.vmem [#allocation2], %s7387_s20  ;;  %s7390_s19 = sld [smem:[#allocation27_spill]]  ;;  %1304 = vst [vmem:[#allocation3 + $0x72] sm:$0x1] %v1303_v53  ;;  %3047 = vmatpush.msrb.mxu0 %v2631_v0 }
 0x352   :  { %v1463_v58 = vld [vmem:[%s1462_s14] sm:$0x1]  ;;  %s1702_s30 = scalar_lea.vmem [#allocation2], %s7388_s0  ;;  %s5486_s13 = sld [smem:[#allocation5 + $0x38]]  ;;  %1384 = vst [vmem:[#allocation3 + $0x73] sm:$0x1] %v1383_v56 }
 0x353   :  { %v1543_v59 = vld [vmem:[%s1542_s18] sm:$0x1]  ;;  %s5495_s14 = sld [smem:[#allocation5 + $0x4c]]  ;;  %1464 = vst [vmem:[#allocation3 + $0x74] sm:$0x1] %v1463_v58  ;;  %s1546_s9 = scalar_lea.vmem [#allocation2], %s5369_s27 }
 0x354   :  { %v1623_v62 = vld [vmem:[%s1622_s8] sm:$0x1]  ;;  %s1146_s10 = scalar_lea.vmem [#allocation2], %s7389_s28  ;;  %s5498_s18 = sld [smem:[#allocation5 + $0x60]]  ;;  %1544 = vst [vmem:[#allocation3 + $0x75] sm:$0x1] %v1543_v59 }
 0x355   :  { %v1703_v1 = vld [vmem:[%s1702_s30] sm:$0x1]  ;;  %s1306_s28 = scalar_lea.vmem [#allocation2], %s5323_s16  ;;  %s5507_s8 = sld [smem:[#allocation5 + $0x74]]  ;;  %1624 = vst [vmem:[#allocation3 + $0x76] sm:$0x1] %v1623_v62 }
 0x356   :  { %v1917_v3 = vld [vmem:[%s7167_s4 + $0x560] sm:$0xff]  ;;  %s5510_s22 = sld [smem:[#allocation5 + $0x88]]  ;;  %1704 = vst [vmem:[#allocation3 + $0x77] sm:$0x1] %v1703_v1  ;;  %s1466_s16 = scalar_lea.vmem [#allocation2], %s5359_s1  ;;  %v1914_v15 = vld [vmem:[%s7167_s4 + $0x548] sm:$0xff] }
 0x357   :  { %v1147_v4 = vld [vmem:[%s1146_s10] sm:$0x1]  ;;  %s1226_s0 = scalar_lea.vmem [#allocation2], %s7390_s19  ;;  %2272 = vmatpush.msrb.mxu2 %v1917_v3  ;;  %s5519_s17 = sld [smem:[#allocation5 + $0x9c]]  ;;  %v1912_v23 = vld [vmem:[%s7167_s4 + $0x538] sm:$0xff]  ;;  %v1911_v27 = vld [vmem:[%s7167_s4 + $0x530] sm:$0xff] }
 0x358   :  { %v1227_v6 = vld [vmem:[%s1226_s0] sm:$0x1]  ;;  %1148 = vst [vmem:[#allocation3 + $0x78] sm:$0x1] %v1147_v4  ;;  %s5522_s20 = sld [smem:[#allocation5 + $0x11]]  ;;  %s1626_s10 = scalar_lea.vmem [#allocation2], %s5387_s26 }
 0x359   :  { %v1307_v9 = vld [vmem:[%s1306_s28] sm:$0x1]  ;;  %2273 = vmatpush.msrb.mxu2 %v1916_v8  ;;  %1228 = vst [vmem:[#allocation3 + $0x79] sm:$0x1] %v1227_v6  ;;  %s5528_s1 = sld [smem:[#allocation5 + $0x25]]  ;;  %s1706_s27 = scalar_lea.vmem [#allocation2], %s5397_s3 }
 0x35a   :  { %v1387_v10 = vld [vmem:[%s1386_s11] sm:$0x1]  ;;  %1308 = vst [vmem:[#allocation3 + $0x7a] sm:$0x1] %v1307_v9  ;;  %s5534_s7 = sld [smem:[#allocation5 + $0x39]]  ;;  %s1150_s26 = scalar_lea.vmem [#allocation2], %s5415_s21 }
 0x35b   :  { %v1467_v13 = vld [vmem:[%s1466_s16] sm:$0x1]  ;;  %2274 = vmatpush.msrb.mxu2 %v1915_v12  ;;  %1388 = vst [vmem:[#allocation3 + $0x7b] sm:$0x1] %v1387_v10  ;;  %s5540_s28 = sld [smem:[#allocation5 + $0x4d]]  ;;  %s1230_s3 = scalar_lea.vmem [#allocation2], %s5477_s6 }
 0x35c   :  { %v1547_v14 = vld [vmem:[%s1546_s9] sm:$0x1]  ;;  %1468 = vst [vmem:[#allocation3 + $0x7c] sm:$0x1] %v1467_v13  ;;  %s5546_s23 = sld [smem:[#allocation5 + $0x61]]  ;;  %s1310_s21 = scalar_lea.vmem [#allocation2], %s5486_s13 }
 0x35d   :  { %v1627_v16 = vld [vmem:[%s1626_s10] sm:$0x1]  ;;  %2275 = vmatpush.msrb.mxu2 %v1914_v15  ;;  %1548 = vst [vmem:[#allocation3 + $0x7d] sm:$0x1] %v1547_v14  ;;  %s5552_s16 = sld [smem:[#allocation5 + $0x75]]  ;;  %s1390_s6 = scalar_lea.vmem [#allocation2], %s5495_s14 }
 0x35e   :  { %v1707_v18 = vld [vmem:[%s1706_s27] sm:$0x1]  ;;  %1628 = vst [vmem:[#allocation3 + $0x7e] sm:$0x1] %v1627_v16  ;;  %s1470_s13 = scalar_lea.vmem [#allocation2], %s5498_s18  ;;  %s1550_s27 = scalar_lea.vmem [#allocation2], %s5507_s8 }
 0x35f   :  { %v1913_v19 = vld [vmem:[%s7167_s4 + $0x540] sm:$0xff]  ;;  %1708 = vst [vmem:[#allocation3 + $0x7f] sm:$0x1] %v1707_v18  ;;  %s5566_s2 = sld [smem:[#allocation5 + $0x89]]  ;;  %v1910_v30 = vld [vmem:[%s7167_s4 + $0x528] sm:$0xff]  ;;  %s1630_s18 = scalar_lea.vmem [#allocation2], %s5510_s22 }
 0x360   :  { %v1151_v20 = vld [vmem:[%s1150_s26] sm:$0x1]  ;;  %2276 = vmatpush.msrb.mxu2 %v1913_v19  ;;  %s5572_s26 = sld [smem:[#allocation5 + $0x9d]]  ;;  %s1710_s8 = scalar_lea.vmem [#allocation2], %s5519_s17  ;;  %v1928_v34 = vld [vmem:[%s7167_s4 + $0x5b8] sm:$0xff]  ;;  %v1906_v46 = vld [vmem:[%s7167_s4 + $0x508] sm:$0xff] }
 0x361   :  { %v1231_v22 = vld [vmem:[%s1230_s3] sm:$0x1]  ;;  %1152 = vst [vmem:[#allocation3 + $0x80] sm:$0x1] %v1151_v20  ;;  %s5578_s3 = sld [smem:[#allocation5 + $0x12]]  ;;  %s1154_s9 = scalar_lea.vmem [#allocation2], %s5522_s20  ;;  %2297 = vmatpush.msrb.mxu3 %v1928_v34 }
 0x362   :  { %v1311_v24 = vld [vmem:[%s1310_s21] sm:$0x1]  ;;  %2277 = vmatpush.msrb.mxu2 %v1912_v23  ;;  %1232 = vst [vmem:[#allocation3 + $0x81] sm:$0x1] %v1231_v22  ;;  %s5587_s15 = sld [smem:[#allocation5 + $0x26]]  ;;  %v1908_v37 = vld [vmem:[%s7167_s4 + $0x518] sm:$0xff] }
 0x363   :  { %v1391_v26 = vld [vmem:[%s1390_s6] sm:$0x1]  ;;  %1312 = vst [vmem:[#allocation3 + $0x82] sm:$0x1] %v1311_v24  ;;  %s1234_s29 = scalar_lea.vmem [#allocation2], %s5528_s1  ;;  %s5593_s10 = sld [smem:[#allocation5 + $0x3a]]  ;;  %2298 = vmatpush.msrb.mxu3 %v1927_v39 }
 0x364   :  { %v1471_v57 = vld [vmem:[%s1470_s13] sm:$0x1]  ;;  %2278 = vmatpush.msrb.mxu2 %v1911_v27  ;;  %1392 = vst [vmem:[#allocation3 + $0x83] sm:$0x1] %v1391_v26  ;;  %s1314_s1 = scalar_lea.vmem [#allocation2], %s5534_s7  ;;  %s5604_s14 = sld [smem:[#allocation5 + $0x62]] }
 0x365   :  { %v1551_v29 = vld [vmem:[%s1550_s27] sm:$0x1]  ;;  %1472 = vst [vmem:[#allocation3 + $0x84] sm:$0x1] %v1471_v57  ;;  %s5601_s27 = sld [smem:[#allocation5 + $0x4e]]  ;;  %s1394_s25 = scalar_lea.vmem [#allocation2], %s5540_s28  ;;  %2299 = vmatpush.msrb.mxu3 %v1926_v44 }
 0x366   :  { %v1631_v31 = vld [vmem:[%s1630_s18] sm:$0x1]  ;;  %2279 = vmatpush.msrb.mxu2 %v1910_v30  ;;  %1552 = vst [vmem:[#allocation3 + $0x85] sm:$0x1] %v1551_v29  ;;  %s1474_s18 = scalar_lea.vmem [#allocation2], %s5546_s23  ;;  %s5612_s19 = sld [smem:[#allocation5 + $0x76]] }
 0x367   :  { %v1711_v33 = vld [vmem:[%s1710_s8] sm:$0x1]  ;;  %1632 = vst [vmem:[#allocation3 + $0x86] sm:$0x1] %v1631_v31  ;;  %s1554_s8 = scalar_lea.vmem [#allocation2], %s5552_s16  ;;  %s5617_s28 = sld [smem:[#allocation5 + $0x8a]]  ;;  %2300 = vmatpush.msrb.mxu3 %v1925_v47 }
 0x368   :  { %v1155_v36 = vld [vmem:[%s1154_s9] sm:$0x1]  ;;  %2280 = vmatpush.msrb.mxu2 %v1909_v35  ;;  %1712 = vst [vmem:[#allocation3 + $0x87] sm:$0x1] %v1711_v33  ;;  %s5622_s21 = sld [smem:[#allocation5 + $0x9e]]  ;;  %v1924_v48 = vld [vmem:[%s7167_s4 + $0x598] sm:$0xff] }
 0x369   :  { %v1235_v38 = vld [vmem:[%s1234_s29] sm:$0x1]  ;;  %1156 = vst [vmem:[#allocation3 + $0x88] sm:$0x1] %v1155_v36  ;;  %s1634_s29 = scalar_lea.vmem [#allocation2], %s5566_s2  ;;  %v1735_v51 = vld [vmem:[#allocation3 + $0x50] sm:$0xff]  ;;  %2301 = vmatpush.msrb.mxu3 %v1924_v48 }
 0x36a   :  { %v1315_v41 = vld [vmem:[%s1314_s1] sm:$0x1]  ;;  %2281 = vmatpush.msrb.mxu2 %v1908_v37  ;;  %1236 = vst [vmem:[#allocation3 + $0x89] sm:$0x1] %v1235_v38  ;;  %v5634_v52 = vld [vmem:[%s7381_s5 + $0x150] sm:$0xff]  ;;  %s1714_s20 = scalar_lea.vmem [#allocation2], %s5572_s26 }
 0x36b   :  { %v1395_v42 = vld [vmem:[%s1394_s25] sm:$0x1]  ;;  %1316 = vst [vmem:[#allocation3 + $0x8a] sm:$0x1] %v1315_v41  ;;  %3028 = vmatpush.msrb.mxu1 %v5634_v52  ;;  %s1158_s2 = scalar_lea.vmem [#allocation2], %s5578_s3  ;;  %v1923_v56 = vld [vmem:[%s7167_s4 + $0x590] sm:$0xff] }
 0x36c   :  { %v1475_v43 = vld [vmem:[%s1474_s18] sm:$0x1]  ;;  %2282 = vmatpush.msrb.mxu2 %v1907_v40  ;;  %1396 = vst [vmem:[#allocation3 + $0x8b] sm:$0x1] %v1395_v42  ;;  %s1238_s26 = scalar_lea.vmem [#allocation2], %s5587_s15  ;;  %v1922_v59 = vld [vmem:[%s7167_s4 + $0x588] sm:$0xff]  ;;  %2302 = vmatpush.msrb.mxu3 %v1923_v56 }
 0x36d   :  { %v1555_v45 = vld [vmem:[%s1554_s8] sm:$0x1]  ;;  %1476 = vst [vmem:[#allocation3 + $0x8c] sm:$0x1] %v1475_v43  ;;  %v1951_v60 = vld [vmem:[%s7167_s4 + $0x670] sm:$0xff]  ;;  %s1318_s3 = scalar_lea.vmem [#allocation2], %s5593_s10 }
 0x36e   :  { %v1905_v49 = vld [vmem:[%s7167_s4 + $0x500] sm:$0xff]  ;;  %2283 = vmatpush.msrb.mxu2 %v1906_v46  ;;  %1556 = vst [vmem:[#allocation3 + $0x8d] sm:$0x1] %v1555_v45  ;;  %v1950_v62 = vld [vmem:[%s7167_s4 + $0x668] sm:$0xff]  ;;  %s1398_s15 = scalar_lea.vmem [#allocation2], %s5601_s27  ;;  %s1478_s10 = scalar_lea.vmem [#allocation2], %s5604_s14  ;;  %2303 = vmatpush.msrb.mxu3 %v1922_v59 }
 0x36f   :  { %v1635_v50 = vld [vmem:[%s1634_s29] sm:$0x1]  ;;  %s1558_s6 = scalar_lea.vmem [#allocation2], %s5612_s19  ;;  %s5665_s29 = sld [smem:[#allocation5 + $0x13]]  ;;  %v2628_v5 = vld [vmem:[%s7381_s5 + $0x158] sm:$0xff]  ;;  %v1967_v10 = vld [vmem:[%s7167_s4 + $0x6f0] sm:$0xff] }
 0x370   :  { %v1715_v53 = vld [vmem:[%s1714_s20] sm:$0x1]  ;;  %2284 = vmatpush.msrb.mxu2 %v1905_v49  ;;  %1636 = vst [vmem:[#allocation3 + $0x8e] sm:$0x1] %v1635_v50  ;;  %s1638_s27 = scalar_lea.vmem [#allocation2], %s5617_s28  ;;  %s5668_s13 = sld [smem:[#allocation5 + $0x27]]  ;;  %3048 = vmatpush.msrb.mxu0 %v2628_v5 }
 0x371   :  { %v1159_v55 = vld [vmem:[%s1158_s2] sm:$0x1]  ;;  %2285 = vmatmul.f32.vlgmr.msrb.gmra.mxu2 %v1735_v51  ;;  %1716 = vst [vmem:[#allocation3 + $0x8f] sm:$0x1] %v1715_v53  ;;  %s1718_s14 = scalar_lea.vmem [#allocation2], %s5622_s21  ;;  %v1968_v7 = vld [vmem:[%s7167_s4 + $0x6f8] sm:$0xff] }
 0x372   :  { %v1239_v58 = vld [vmem:[%s1238_s26] sm:$0x1]  ;;  %2309 = vmatpush.msra.mxu2 %v1952_v54  ;;  %1160 = vst [vmem:[#allocation3 + $0x90] sm:$0x1] %v1159_v55  ;;  %v1948_v8 = vld [vmem:[%s7167_s4 + $0x658] sm:$0xff]  ;;  %s5680_s28 = sld [smem:[#allocation5 + $0x3b]] }
 0x373   :  { %v1319_v61 = vld [vmem:[%s1318_s3] sm:$0x1]  ;;  %1240 = vst [vmem:[#allocation3 + $0x91] sm:$0x1] %v1239_v58  ;;  %v1736_v9 = vld [vmem:[#allocation3 + $0x58] sm:$0xff]  ;;  %s5682_s25 = sld [smem:[#allocation5 + $0x4f]] }
 0x374   :  { %v1399_v63 = vld [vmem:[%s1398_s15] sm:$0x1]  ;;  %2310 = vmatpush.msra.mxu2 %v1951_v60  ;;  %1320 = vst [vmem:[#allocation3 + $0x92] sm:$0x1] %v1319_v61  ;;  %v1947_v11 = vld [vmem:[%s7167_s4 + $0x650] sm:$0xff]  ;;  %s5690_s24 = sld [smem:[#allocation5 + $0x63]] }
 0x375   :  { %v1921_v0 = vld [vmem:[%s7167_s4 + $0x580] sm:$0xff]  ;;  %1400 = vst [vmem:[#allocation3 + $0x93] sm:$0x1] %v1399_v63  ;;  %v1966_v12 = vld [vmem:[%s7167_s4 + $0x6e8] sm:$0xff]  ;;  %s5695_s3 = sld [smem:[#allocation5 + $0x77]]  ;;  %s1162_s15 = scalar_lea.vmem [#allocation2], %s5665_s29 }
 0x376   :  { %v1949_v1 = vld [vmem:[%s7167_s4 + $0x660] sm:$0xff]  ;;  %2311 = vmatpush.msra.mxu2 %v1950_v62  ;;  %2304 = vmatpush.msrb.mxu3 %v1921_v0  ;;  %v1946_v13 = vld [vmem:[%s7167_s4 + $0x648] sm:$0xff]  ;;  %s5701_s22 = sld [smem:[#allocation5 + $0x8b]]  ;;  %s1242_s17 = scalar_lea.vmem [#allocation2], %s5668_s13  ;;  %v1964_v18 = vld [vmem:[%s7167_s4 + $0x6d8] sm:$0xff] }
 0x377   :  { %v1479_v2 = vld [vmem:[%s1478_s10] sm:$0x1]  ;;  %2305 = vmatmul.f32.vlgmr.msrb.gmra.mxu3 %v1736_v9  ;;  %s5710_s29 = sld [smem:[#allocation5 + $0x9f]]  ;;  %v1944_v20 = vld [vmem:[%s7167_s4 + $0x638] sm:$0xff]  ;;  %v1963_v22 = vld [vmem:[%s7167_s4 + $0x6d0] sm:$0xff]  ;;  %s3934_s16 = smov [#allocation8]  }
 0x378   :  { %v1559_v3 = vld [vmem:[%s1558_s6] sm:$0x1]  ;;  %1480 = vst [vmem:[#allocation3 + $0x94] sm:$0x1] %v1479_v2  ;;  %2312 = vmatpush.msra.mxu2 %v1949_v1  ;;  %2329 = vmatpush.msra.mxu3 %v1968_v7  ;;  %s1322_s20 = scalar_lea.vmem [#allocation2], %s5680_s28  ;;  %v1943_v23 = vld [vmem:[%s7167_s4 + $0x630] sm:$0xff] }
 0x379   :  { %v1639_v4 = vld [vmem:[%s1638_s27] sm:$0x1]  ;;  %1560 = vst [vmem:[#allocation3 + $0x95] sm:$0x1] %v1559_v3  ;;  %s1402_s12 = scalar_lea.vmem [#allocation2], %s5682_s25  ;;  %v1962_v27 = vld [vmem:[%s7167_s4 + $0x6c8] sm:$0xff] }
 0x37a   :  { %v1719_v6 = vld [vmem:[%s1718_s14] sm:$0x1]  ;;  %1640 = vst [vmem:[#allocation3 + $0x96] sm:$0x1] %v1639_v4  ;;  %2313 = vmatpush.msra.mxu2 %v1948_v8  ;;  %2330 = vmatpush.msra.mxu3 %v1967_v10  ;;  %s1482_s28 = scalar_lea.vmem [#allocation2], %s5690_s24  ;;  %v1942_v57 = vld [vmem:[%s7167_s4 + $0x628] sm:$0xff] }
 0x37b   :  { %1720 = vst [vmem:[#allocation3 + $0x97] sm:$0x1] %v1719_v6  ;;  %v1163_v14 = vld [vmem:[%s1162_s15] sm:$0x1]  ;;  %s1562_s18 = scalar_lea.vmem [#allocation2], %s5695_s3  ;;  %v1960_v31 = vld [vmem:[%s7167_s4 + $0x6b8] sm:$0xff] }
 0x37c   :  { %v1965_v15 = vld [vmem:[%s7167_s4 + $0x6e0] sm:$0xff]  ;;  %2314 = vmatpush.msra.mxu2 %v1947_v11  ;;  %1164 = vst [vmem:[#allocation3 + $0x98] sm:$0x1] %v1163_v14  ;;  %2331 = vmatpush.msra.mxu3 %v1966_v12  ;;  %s1642_s25 = scalar_lea.vmem [#allocation2], %s5701_s22  ;;  %v1940_v32 = vld [vmem:[%s7167_s4 + $0x618] sm:$0xff]  ;;  %v1959_v33 = vld [vmem:[%s7167_s4 + $0x6b0] sm:$0xff] }
 0x37d   :  { %v1243_v16 = vld [vmem:[%s1242_s17] sm:$0x1]  ;;  %s1722_s24 = scalar_lea.vmem [#allocation2], %s5710_s29  ;;  %v1939_v34 = vld [vmem:[%s7167_s4 + $0x610] sm:$0xff]  ;;  %v1958_v35 = vld [vmem:[%s7167_s4 + $0x6a8] sm:$0xff]  ;;  %s7391_s6 = sld [smem:[#allocation96_spill]] }
 0x37e   :  { %v1945_v17 = vld [vmem:[%s7167_s4 + $0x640] sm:$0xff]  ;;  %1244 = vst [vmem:[#allocation3 + $0x99] sm:$0x1] %v1243_v16  ;;  %2315 = vmatpush.msra.mxu2 %v1946_v13  ;;  %2332 = vmatpush.msra.mxu3 %v1965_v15  ;;  %v1938_v36 = vld [vmem:[%s7167_s4 + $0x608] sm:$0xff]  ;;  %v5769_v39 = vld [vmem:[%s7381_s5 + $0x138] sm:$0xff]  ;;  %s7392_s29 = sld [smem:[#allocation95_spill]] }
 0x37f   :  { %v1323_v19 = vld [vmem:[%s1322_s20] sm:$0x1]  ;;  %v1956_v40 = vld [vmem:[%s7167_s4 + $0x698] sm:$0xff]  ;;  %3029 = vmatpush.msrb.mxu1 %v5769_v39  ;;  %v1955_v43 = vld [vmem:[%s7167_s4 + $0x690] sm:$0xff]  ;;  %s7393_s17 = sld [smem:[#allocation100_spill]]  ;;  %s3407_s9 = sshll.u32 %s3934_s16, 4  ;;  %s3408_s9 = int_to_ptr.vmem [resolvable:$true] %s3407_s9 }
 0x380   :  { %1324 = vst [vmem:[#allocation3 + $0x9a] sm:$0x1] %v1323_v19  ;;  %v1403_v21 = vld [vmem:[%s1402_s12] sm:$0x1]  ;;  %2316 = vmatpush.msra.mxu2 %v1945_v17  ;;  %2333 = vmatpush.msra.mxu3 %v1964_v18  ;;  %v1984_v41 = vld [vmem:[%s7167_s4 + $0x778] sm:$0xff]  ;;  %v1983_v44 = vld [vmem:[%s7167_s4 + $0x770] sm:$0xff] }
 0x381   :  { %1404 = vst [vmem:[#allocation3 + $0x9b] sm:$0x1] %v1403_v21  ;;  %v1483_v24 = vld [vmem:[%s1482_s28] sm:$0x1]  ;;  %v1954_v45 = vld [vmem:[%s7167_s4 + $0x688] sm:$0xff]  ;;  %v2000_v50 = vld [vmem:[%s7167_s4 + $0x7f8] sm:$0xff] }
 0x382   :  { %v1563_v25 = vld [vmem:[%s1562_s18] sm:$0x1]  ;;  %2317 = vmatpush.msra.mxu2 %v1944_v20  ;;  %1484 = vst [vmem:[#allocation3 + $0x9c] sm:$0x1] %v1483_v24  ;;  %2334 = vmatpush.msra.mxu3 %v1963_v22  ;;  %v1982_v46 = vld [vmem:[%s7167_s4 + $0x768] sm:$0xff]  ;;  %v1980_v51 = vld [vmem:[%s7167_s4 + $0x758] sm:$0xff] }
 0x383   :  { %v1643_v26 = vld [vmem:[%s1642_s25] sm:$0x1]  ;;  %1564 = vst [vmem:[#allocation3 + $0x9d] sm:$0x1] %v1563_v25  ;;  %v1738_v53 = vld [vmem:[#allocation3 + $0x68] sm:$0xff]  ;;  %v1999_v54 = vld [vmem:[%s7167_s4 + $0x7f0] sm:$0xff] }
 0x384   :  { %2318 = vmatpush.msra.mxu2 %v1943_v23  ;;  %1644 = vst [vmem:[#allocation3 + $0x9e] sm:$0x1] %v1643_v26  ;;  %v1723_v28 = vld [vmem:[%s1722_s24] sm:$0x1]  ;;  %2335 = vmatpush.msra.mxu3 %v1962_v27  ;;  %v1979_v55 = vld [vmem:[%s7167_s4 + $0x750] sm:$0xff]  ;;  %v1998_v56 = vld [vmem:[%s7167_s4 + $0x7e8] sm:$0xff] }
 0x385   :  { %v1961_v29 = vld [vmem:[%s7167_s4 + $0x6c0] sm:$0xff]  ;;  %1724 = vst [vmem:[#allocation3 + $0x9f] sm:$0x1] %v1723_v28  ;;  %v1978_v58 = vld [vmem:[%s7167_s4 + $0x748] sm:$0xff]  ;;  %v1996_v61 = vld [vmem:[%s7167_s4 + $0x7d8] sm:$0xff]  ;;  %s7394_s30 = sld [smem:[#allocation98_spill]] }
 0x386   :  { %v1941_v30 = vld [vmem:[%s7167_s4 + $0x620] sm:$0xff]  ;;  %2319 = vmatpush.msra.mxu2 %v1942_v57  ;;  %2336 = vmatpush.msra.mxu3 %v1961_v29  ;;  %v1976_v62 = vld [vmem:[%s7167_s4 + $0x738] sm:$0xff]  ;;  %v1995_v63 = vld [vmem:[%s7167_s4 + $0x7d0] sm:$0xff]  ;;  %s7395_s22 = sld [smem:[#allocation99_spill]]  ;;  %s3935_s27 = smov [#allocation6]  }
 0x387   :  { %v1957_v37 = vld [vmem:[%s7167_s4 + $0x6a0] sm:$0xff]  ;;  %v1975_v0 = vld [vmem:[%s7167_s4 + $0x730] sm:$0xff]  ;;  %v1994_v1 = vld [vmem:[%s7167_s4 + $0x7c8] sm:$0xff]  ;;  %s7399_s26 = sld [smem:[#allocation101_spill]]  ;;  %s3396_s0 = sshll.u32 %s3935_s27, 4  ;;  %s3397_s0 = int_to_ptr.vmem [resolvable:$true] %s3396_s0 }
 0x388   :  { %2320 = vmatpush.msra.mxu2 %v1941_v30  ;;  %2337 = vmatpush.msra.mxu3 %v1960_v31  ;;  %v1937_v38 = vld [vmem:[%s7167_s4 + $0x600] sm:$0xff]  ;;  %v1974_v2 = vld [vmem:[%s7167_s4 + $0x728] sm:$0xff]  ;;  %v1992_v5 = vld [vmem:[%s7167_s4 + $0x7b8] sm:$0xff]  ;;  %s7416_s11 = sld [smem:[#allocation102_spill]] }
 0x389   :  { %v1737_v42 = vld [vmem:[#allocation3 + $0x60] sm:$0xff]  ;;  %v1972_v6 = vld [vmem:[%s7167_s4 + $0x718] sm:$0xff]  ;;  %v1991_v7 = vld [vmem:[%s7167_s4 + $0x7b0] sm:$0xff]  ;;  %s7417_s24 = sld [smem:[#allocation103_spill]] }
 0x38a   :  { %2321 = vmatpush.msra.mxu2 %v1940_v32  ;;  %2338 = vmatpush.msra.mxu3 %v1959_v33  ;;  %v1953_v47 = vld [vmem:[%s7167_s4 + $0x680] sm:$0xff]  ;;  %v1971_v8 = vld [vmem:[%s7167_s4 + $0x710] sm:$0xff]  ;;  %v1990_v9 = vld [vmem:[%s7167_s4 + $0x7a8] sm:$0xff]  ;;  %s7425_s23 = sld [smem:[#allocation104_spill]] }
 0x38b   :  { %v1981_v48 = vld [vmem:[%s7167_s4 + $0x760] sm:$0xff]  ;;  %v1970_v10 = vld [vmem:[%s7167_s4 + $0x708] sm:$0xff]  ;;  %v1988_v14 = vld [vmem:[%s7167_s4 + $0x798] sm:$0xff]  ;;  %s7428_s14 = sld [smem:[#allocation106_spill]] }
 0x38c   :  { %2322 = vmatpush.msra.mxu2 %v1939_v34  ;;  %2339 = vmatpush.msra.mxu3 %v1958_v35  ;;  %v5799_v49 = vld [vmem:[%s7381_s5 + $0x140] sm:$0xff]  ;;  %v2016_v15 = vld [vmem:[%s7167_s4 + $0x878] sm:$0xff]  ;;  %v1739_v16 = vld [vmem:[#allocation3 + $0x70] sm:$0xff] }
 0x38d   :  { %3049 = vmatpush.msrb.mxu0 %v5799_v49  ;;  %v1997_v59 = vld [vmem:[%s7167_s4 + $0x7e0] sm:$0xff]  ;;  %v1987_v17 = vld [vmem:[%s7167_s4 + $0x790] sm:$0xff]  ;;  %v1986_v19 = vld [vmem:[%s7167_s4 + $0x788] sm:$0xff] }
 0x38e   :  { %2323 = vmatpush.msra.mxu2 %v1938_v36  ;;  %2340 = vmatpush.msra.mxu3 %v1957_v37  ;;  %v1977_v60 = vld [vmem:[%s7167_s4 + $0x740] sm:$0xff]  ;;  %v2015_v18 = vld [vmem:[%s7167_s4 + $0x870] sm:$0xff]  ;;  %v2014_v20 = vld [vmem:[%s7167_s4 + $0x868] sm:$0xff] }
 0x38f   :  { %v1993_v3 = vld [vmem:[%s7167_s4 + $0x7c0] sm:$0xff]  ;;  %v2032_v23 = vld [vmem:[%s7167_s4 + $0x8f8] sm:$0xff]  ;;  %v5913_v26 = vld [vmem:[%s7381_s5 + $0x128] sm:$0xff] }
 0x390   :  { %2324 = vmatpush.msra.mxu2 %v1937_v38  ;;  %2341 = vmatpush.msra.mxu3 %v1956_v40  ;;  %v1973_v4 = vld [vmem:[%s7167_s4 + $0x720] sm:$0xff]  ;;  %v2012_v24 = vld [vmem:[%s7167_s4 + $0x858] sm:$0xff]  ;;  %v2031_v27 = vld [vmem:[%s7167_s4 + $0x8f0] sm:$0xff] }
 0x391   :  { %2325 = vmatmul.f32.vlgmr.msra.gmra.mxu2 %v1737_v42  ;;  %v1989_v11 = vld [vmem:[%s7167_s4 + $0x7a0] sm:$0xff]  ;;  %v1740_v25 = vld [vmem:[#allocation3 + $0x78] sm:$0xff]  ;;  %v2011_v57 = vld [vmem:[%s7167_s4 + $0x850] sm:$0xff]  ;;  %3050 = vmatpush.msrb.mxu0 %v5913_v26  ;;  %s3398_s13 = sshll.u32 %s7428_s14, 4  ;;  %s3399_s13 = int_to_ptr.hbm [resolvable:$true] %s3398_s13 }
 0x392   :  { %2349 = vmatpush.msrb.mxu2 %v1984_v41  ;;  %2342 = vmatpush.msra.mxu3 %v1955_v43  ;;  %v1969_v12 = vld [vmem:[%s7167_s4 + $0x700] sm:$0xff]  ;;  %v2030_v28 = vld [vmem:[%s7167_s4 + $0x8e8] sm:$0xff]  ;;  %v2028_v32 = vld [vmem:[%s7167_s4 + $0x8d8] sm:$0xff] }
 0x393   :  { %v5877_v13 = vld [vmem:[%s7381_s5 + $0x120] sm:$0xff]  ;;  %v2010_v29 = vld [vmem:[%s7167_s4 + $0x848] sm:$0xff]  ;;  %v2008_v33 = vld [vmem:[%s7167_s4 + $0x838] sm:$0xff] }
 0x394   :  { %2350 = vmatpush.msrb.mxu2 %v1983_v44  ;;  %2343 = vmatpush.msra.mxu3 %v1954_v45  ;;  %v1985_v21 = vld [vmem:[%s7167_s4 + $0x780] sm:$0xff]  ;;  %v2027_v34 = vld [vmem:[%s7167_s4 + $0x8d0] sm:$0xff]  ;;  %v2026_v36 = vld [vmem:[%s7167_s4 + $0x8c8] sm:$0xff] }
 0x395   :  { %3030 = vmatpush.msrb.mxu1 %v5877_v13  ;;  %v2013_v22 = vld [vmem:[%s7167_s4 + $0x860] sm:$0xff]  ;;  %v2007_v35 = vld [vmem:[%s7167_s4 + $0x830] sm:$0xff]  ;;  %v2006_v37 = vld [vmem:[%s7167_s4 + $0x828] sm:$0xff] }
 0x396   :  { %2351 = vmatpush.msrb.mxu2 %v1982_v46  ;;  %2344 = vmatpush.msra.mxu3 %v1953_v47  ;;  %v2029_v30 = vld [vmem:[%s7167_s4 + $0x8e0] sm:$0xff]  ;;  %v2024_v41 = vld [vmem:[%s7167_s4 + $0x8b8] sm:$0xff]  ;;  %v2023_v43 = vld [vmem:[%s7167_s4 + $0x8b0] sm:$0xff] }
 0x397   :  { %2345 = vmatmul.f32.vlgmr.msra.gmra.mxu3 %v1738_v53  ;;  %v2009_v31 = vld [vmem:[%s7167_s4 + $0x840] sm:$0xff]  ;;  %v2004_v42 = vld [vmem:[%s7167_s4 + $0x818] sm:$0xff]  ;;  %v2003_v44 = vld [vmem:[%s7167_s4 + $0x810] sm:$0xff] }
 0x398   :  { %2352 = vmatpush.msrb.mxu2 %v1981_v48  ;;  %2369 = vmatpush.msrb.mxu3 %v2000_v50  ;;  %v2025_v38 = vld [vmem:[%s7167_s4 + $0x8c0] sm:$0xff]  ;;  %v2022_v45 = vld [vmem:[%s7167_s4 + $0x8a8] sm:$0xff]  ;;  %v2020_v50 = vld [vmem:[%s7167_s4 + $0x898] sm:$0xff] }
 0x399   :  { %v2005_v40 = vld [vmem:[%s7167_s4 + $0x820] sm:$0xff]  ;;  %v2002_v46 = vld [vmem:[%s7167_s4 + $0x808] sm:$0xff] }
 0x39a   :  { %2353 = vmatpush.msrb.mxu2 %v1980_v51  ;;  %2370 = vmatpush.msrb.mxu3 %v1999_v54  ;;  %v2021_v47 = vld [vmem:[%s7167_s4 + $0x8a0] sm:$0xff]  ;;  %v2048_v51 = vld [vmem:[%s7167_s4 + $0x978] sm:$0xff]  ;;  %v5991_v54 = vld [vmem:[%s7381_s5 + $0x108] sm:$0xff] }
 0x39b   :  { %v2001_v48 = vld [vmem:[%s7167_s4 + $0x800] sm:$0xff]  ;;  %3031 = vmatpush.msrb.mxu1 %v5991_v54 }
 0x39c   :  { %2354 = vmatpush.msrb.mxu2 %v1979_v55  ;;  %2371 = vmatpush.msrb.mxu3 %v1998_v56  ;;  %v1741_v53 = vld [vmem:[#allocation3 + $0x80] sm:$0xff]  ;;  %v2019_v55 = vld [vmem:[%s7167_s4 + $0x890] sm:$0xff] }
 0x39d   :  { %v2047_v56 = vld [vmem:[%s7167_s4 + $0x970] sm:$0xff] }
 0x39e   :  { %2355 = vmatpush.msrb.mxu2 %v1978_v58  ;;  %2372 = vmatpush.msrb.mxu3 %v1997_v59  ;;  %v2018_v58 = vld [vmem:[%s7167_s4 + $0x888] sm:$0xff] }
 0x39f   :  { %v2046_v59 = vld [vmem:[%s7167_s4 + $0x968] sm:$0xff] }
 0x3a0   :  { %2356 = vmatpush.msrb.mxu2 %v1977_v60  ;;  %2373 = vmatpush.msrb.mxu3 %v1996_v61  ;;  %v2017_v60 = vld [vmem:[%s7167_s4 + $0x880] sm:$0xff] }
 0x3a1   :  { %v2045_v61 = vld [vmem:[%s7167_s4 + $0x960] sm:$0xff] }
 0x3a2   :  { %2357 = vmatpush.msrb.mxu2 %v1976_v62  ;;  %2374 = vmatpush.msrb.mxu3 %v1995_v63  ;;  %v2064_v62 = vld [vmem:[%s7167_s4 + $0x9f8] sm:$0xff] }
 0x3a3   :  { %v2044_v63 = vld [vmem:[%s7167_s4 + $0x958] sm:$0xff] }
 0x3a4   :  { %2358 = vmatpush.msrb.mxu2 %v1975_v0  ;;  %2375 = vmatpush.msrb.mxu3 %v1994_v1  ;;  %v1742_v0 = vld [vmem:[#allocation3 + $0x88] sm:$0xff]  ;;  %v2063_v1 = vld [vmem:[%s7167_s4 + $0x9f0] sm:$0xff] }
 0x3a6   :  { %2359 = vmatpush.msrb.mxu2 %v1974_v2  ;;  %2376 = vmatpush.msrb.mxu3 %v1993_v3  ;;  %v2043_v2 = vld [vmem:[%s7167_s4 + $0x950] sm:$0xff] }
 0x3a7   :  { %v6027_v3 = vld [vmem:[%s7381_s5 + $0x110] sm:$0xff] }
 0x3a8   :  { %2360 = vmatpush.msrb.mxu2 %v1973_v4  ;;  %2377 = vmatpush.msrb.mxu3 %v1992_v5  ;;  %v2062_v4 = vld [vmem:[%s7167_s4 + $0x9e8] sm:$0xff] }
 0x3a9   :  { %v2042_v5 = vld [vmem:[%s7167_s4 + $0x948] sm:$0xff]  ;;  %3051 = vmatpush.msrb.mxu0 %v6027_v3 }
 0x3aa   :  { %2361 = vmatpush.msrb.mxu2 %v1972_v6  ;;  %2378 = vmatpush.msrb.mxu3 %v1991_v7  ;;  %v2061_v6 = vld [vmem:[%s7167_s4 + $0x9e0] sm:$0xff] }
 0x3ab   :  { %v2041_v7 = vld [vmem:[%s7167_s4 + $0x940] sm:$0xff] }
 0x3ac   :  { %2362 = vmatpush.msrb.mxu2 %v1971_v8  ;;  %2379 = vmatpush.msrb.mxu3 %v1990_v9  ;;  %v6045_v8 = vld [vmem:[%s7381_s5 + $0xf0] sm:$0xff]  ;;  %v6050_v9 = vld [vmem:[%s7381_s5 + $0xf8] sm:$0xff] }
 0x3ad   :  { %3032 = vmatpush.msrb.mxu1 %v6045_v8  ;;  %3052 = vmatpush.msrb.mxu0 %v6050_v9 }
 0x3ae   :  { %2363 = vmatpush.msrb.mxu2 %v1970_v10  ;;  %2380 = vmatpush.msrb.mxu3 %v1989_v11  ;;  %v2060_v10 = vld [vmem:[%s7167_s4 + $0x9d8] sm:$0xff] }
 0x3af   :  { %v2040_v11 = vld [vmem:[%s7167_s4 + $0x938] sm:$0xff] }
 0x3b0   :  { %2364 = vmatpush.msrb.mxu2 %v1969_v12  ;;  %2381 = vmatpush.msrb.mxu3 %v1988_v14  ;;  %v2059_v12 = vld [vmem:[%s7167_s4 + $0x9d0] sm:$0xff] }
 0x3b1   :  { %2365 = vmatmul.f32.vlgmr.msrb.gmra.mxu2 %v1739_v16  ;;  %v2039_v14 = vld [vmem:[%s7167_s4 + $0x930] sm:$0xff]  ;;  %v2038_v16 = vld [vmem:[%s7167_s4 + $0x928] sm:$0xff] }
 0x3b2   :  { %2389 = vmatpush.msra.mxu2 %v2016_v15  ;;  %2382 = vmatpush.msrb.mxu3 %v1987_v17  ;;  %v2058_v15 = vld [vmem:[%s7167_s4 + $0x9c8] sm:$0xff]  ;;  %v2057_v17 = vld [vmem:[%s7167_s4 + $0x9c0] sm:$0xff] }
 0x3b4   :  { %2390 = vmatpush.msra.mxu2 %v2015_v18  ;;  %2383 = vmatpush.msrb.mxu3 %v1986_v19  ;;  %v2037_v18 = vld [vmem:[%s7167_s4 + $0x920] sm:$0xff]  ;;  %v2056_v19 = vld [vmem:[%s7167_s4 + $0x9b8] sm:$0xff] }
 0x3b6   :  { %2391 = vmatpush.msra.mxu2 %v2014_v20  ;;  %2384 = vmatpush.msrb.mxu3 %v1985_v21  ;;  %v2036_v20 = vld [vmem:[%s7167_s4 + $0x918] sm:$0xff]  ;;  %v2055_v21 = vld [vmem:[%s7167_s4 + $0x9b0] sm:$0xff] }
 0x3b7   :  { %2385 = vmatmul.f32.vlgmr.msrb.gmra.mxu3 %v1740_v25  ;;  %v2053_v25 = vld [vmem:[%s7167_s4 + $0x9a0] sm:$0xff] }
 0x3b8   :  { %2392 = vmatpush.msra.mxu2 %v2013_v22  ;;  %2409 = vmatpush.msra.mxu3 %v2032_v23  ;;  %v2035_v22 = vld [vmem:[%s7167_s4 + $0x910] sm:$0xff]  ;;  %v2054_v23 = vld [vmem:[%s7167_s4 + $0x9a8] sm:$0xff] }
 0x3ba   :  { %2393 = vmatpush.msra.mxu2 %v2012_v24  ;;  %2410 = vmatpush.msra.mxu3 %v2031_v27  ;;  %v2034_v24 = vld [vmem:[%s7167_s4 + $0x908] sm:$0xff]  ;;  %v2033_v27 = vld [vmem:[%s7167_s4 + $0x900] sm:$0xff] }
 0x3bc   :  { %2394 = vmatpush.msra.mxu2 %v2011_v57  ;;  %2411 = vmatpush.msra.mxu3 %v2030_v28  ;;  %v2052_v57 = vld [vmem:[%s7167_s4 + $0x998] sm:$0xff]  ;;  %v1743_v28 = vld [vmem:[#allocation3 + $0x90] sm:$0xff] }
 0x3be   :  { %2395 = vmatpush.msra.mxu2 %v2010_v29  ;;  %2412 = vmatpush.msra.mxu3 %v2029_v30  ;;  %v2051_v29 = vld [vmem:[%s7167_s4 + $0x990] sm:$0xff]  ;;  %v2050_v30 = vld [vmem:[%s7167_s4 + $0x988] sm:$0xff] }
 0x3c0   :  { %2396 = vmatpush.msra.mxu2 %v2009_v31  ;;  %2413 = vmatpush.msra.mxu3 %v2028_v32  ;;  %v2049_v31 = vld [vmem:[%s7167_s4 + $0x980] sm:$0xff]  ;;  %v1744_v32 = vld [vmem:[#allocation3 + $0x98] sm:$0xff] }
 0x3c2   :  { %2397 = vmatpush.msra.mxu2 %v2008_v33  ;;  %2414 = vmatpush.msra.mxu3 %v2027_v34  ;;  %v6117_v33 = vld [vmem:[%s7381_s5 + $0xd8] sm:$0xff]  ;;  %v6122_v34 = vld [vmem:[%s7381_s5 + $0xe0] sm:$0xff] }
 0x3c3   :  { %3033 = vmatpush.msrb.mxu1 %v6117_v33  ;;  %3053 = vmatpush.msrb.mxu0 %v6122_v34 }
 0x3c4   :  { %2398 = vmatpush.msra.mxu2 %v2007_v35  ;;  %2415 = vmatpush.msra.mxu3 %v2026_v36  ;;  %v2514_v35 = vld [vmem:[%s7391_s6 + $0x168] sm:$0xff]  ;;  %v2511_v36 = vld [vmem:[%s7391_s6 + $0x150] sm:$0xff] }
 0x3c6   :  { %2399 = vmatpush.msra.mxu2 %v2006_v37  ;;  %2416 = vmatpush.msra.mxu3 %v2025_v38  ;;  %v2515_v37 = vld [vmem:[%s7391_s6 + $0x170] sm:$0xff]  ;;  %v2508_v38 = vld [vmem:[%s7391_s6 + $0x138] sm:$0xff] }
 0x3c8   :  { %2400 = vmatpush.msra.mxu2 %v2005_v40  ;;  %2417 = vmatpush.msra.mxu3 %v2024_v41  ;;  %v2512_v40 = vld [vmem:[%s7391_s6 + $0x158] sm:$0xff]  ;;  %v2509_v41 = vld [vmem:[%s7391_s6 + $0x140] sm:$0xff] }
 0x3ca   :  { %2401 = vmatpush.msra.mxu2 %v2004_v42  ;;  %2418 = vmatpush.msra.mxu3 %v2023_v43  ;;  %v6147_v42 = vld [vmem:[%s7381_s5 + $0xc0] sm:$0xff] }
 0x3cb   :  { %v2505_v43 = vld [vmem:[%s7391_s6 + $0x120] sm:$0xff]  ;;  %3034 = vmatpush.msrb.mxu1 %v6147_v42 }
 0x3cc   :  { %2402 = vmatpush.msra.mxu2 %v2003_v44  ;;  %2419 = vmatpush.msra.mxu3 %v2022_v45  ;;  %v2506_v44 = vld [vmem:[%s7391_s6 + $0x128] sm:$0xff] }
 0x3cd   :  { %v2502_v45 = vld [vmem:[%s7391_s6 + $0x108] sm:$0xff] }
 0x3ce   :  { %2403 = vmatpush.msra.mxu2 %v2002_v46  ;;  %2420 = vmatpush.msra.mxu3 %v2021_v47  ;;  %v2503_v46 = vld [vmem:[%s7391_s6 + $0x110] sm:$0xff]  ;;  %v6165_v47 = vld [vmem:[%s7381_s5 + $0xc8] sm:$0xff] }
 0x3cf   :  { %3054 = vmatpush.msrb.mxu0 %v6165_v47 }
 0x3d0   :  { %2404 = vmatpush.msra.mxu2 %v2001_v48  ;;  %2421 = vmatpush.msra.mxu3 %v2020_v50  ;;  %v2499_v48 = vld [vmem:[%s7391_s6 + $0xf0] sm:$0xff]  ;;  %v2500_v50 = vld [vmem:[%s7391_s6 + $0xf8] sm:$0xff] }
 0x3d1   :  { %2405 = vmatmul.f32.vlgmr.msra.gmra.mxu2 %v1741_v53  ;;  %v2497_v53 = vld [vmem:[%s7391_s6 + $0xe0] sm:$0xff] }
 0x3d2   :  { %2429 = vmatpush.msrb.mxu2 %v2048_v51  ;;  %2422 = vmatpush.msra.mxu3 %v2019_v55  ;;  %v2496_v51 = vld [vmem:[%s7391_s6 + $0xd8] sm:$0xff]  ;;  %v2493_v55 = vld [vmem:[%s7391_s6 + $0xc0] sm:$0xff] }
 0x3d4   :  { %2430 = vmatpush.msrb.mxu2 %v2047_v56  ;;  %2423 = vmatpush.msra.mxu3 %v2018_v58  ;;  %v2494_v56 = vld [vmem:[%s7391_s6 + $0xc8] sm:$0xff] }
 0x3d5   :  { %v2490_v58 = vld [vmem:[%s7391_s6 + $0xa8] sm:$0xff] }
 0x3d6   :  { %2431 = vmatpush.msrb.mxu2 %v2046_v59  ;;  %2424 = vmatpush.msra.mxu3 %v2017_v60  ;;  %v2086_v59 = vpop.f32.mrf.mxu2  ;;  %v2491_v60 = vld [vmem:[%s7391_s6 + $0xb0] sm:$0xff] }
 0x3d7   :  { %2425 = vmatmul.f32.vlgmr.msra.gmra.mxu3 %v1742_v0  ;;  %v2481_v0 = vld [vmem:[%s7391_s6 + $0x60] sm:$0xff] }
 0x3d8   :  { %2432 = vmatpush.msrb.mxu2 %v2045_v61  ;;  %2449 = vmatpush.msrb.mxu3 %v2064_v62  ;;  %v2487_v61 = vld [vmem:[%s7391_s6 + $0x90] sm:$0xff]  ;;  %v2488_v62 = vld [vmem:[%s7391_s6 + $0x98] sm:$0xff] }
 0x3da   :  { %2433 = vmatpush.msrb.mxu2 %v2044_v63  ;;  %2450 = vmatpush.msrb.mxu3 %v2063_v1  ;;  %v2484_v63 = vld [vmem:[%s7391_s6 + $0x78] sm:$0xff]  ;;  %v2106_v1 = vpop.f32.mrf.mxu3 }
 0x3dc   :  { %2434 = vmatpush.msrb.mxu2 %v2043_v2  ;;  %2451 = vmatpush.msrb.mxu3 %v2062_v4  ;;  %v2478_v2 = vld [vmem:[%s7391_s6 + $0x48] sm:$0xff] }
 0x3de   :  { %2435 = vmatpush.msrb.mxu2 %v2042_v5  ;;  %2452 = vmatpush.msrb.mxu3 %v2061_v6  ;;  %v2126_v4 = vpop.f32.mrf.mxu2  ;;  %v2475_v6 = vld [vmem:[%s7391_s6 + $0x30] sm:$0xff] }
 0x3e0   :  { %2436 = vmatpush.msrb.mxu2 %v2041_v7  ;;  %2453 = vmatpush.msrb.mxu3 %v2060_v10  ;;  %v2485_v7 = vld [vmem:[%s7391_s6 + $0x80] sm:$0xff]  ;;  %v2472_v10 = vld [vmem:[%s7391_s6 + $0x18] sm:$0xff] }
 0x3e2   :  { %2437 = vmatpush.msrb.mxu2 %v2040_v11  ;;  %2454 = vmatpush.msrb.mxu3 %v2059_v12  ;;  %v2146_v5 = vpop.f32.mrf.mxu3  ;;  %v2482_v12 = vld [vmem:[%s7391_s6 + $0x68] sm:$0xff] }
 0x3e4   :  { %2438 = vmatpush.msrb.mxu2 %v2039_v14  ;;  %2455 = vmatpush.msrb.mxu3 %v2058_v15  ;;  %v3820_v14 = vld [vmem:[%s7392_s29] ss:$0 sm:$0xff] }
 0x3e5   :  { %v2469_v15 = vld [vmem:[%s7391_s6] sm:$0xff] }
 0x3e6   :  { %2439 = vmatpush.msrb.mxu2 %v2038_v16  ;;  %2456 = vmatpush.msrb.mxu3 %v2057_v17  ;;  %v2166_v11 = vpop.f32.mrf.mxu2  ;;  %v2479_v16 = vld [vmem:[%s7391_s6 + $0x50] sm:$0xff]  ;;  %v2516_v17 = vld [vmem:[%s7391_s6 + $0x178] sm:$0xff] }
 0x3e8   :  { %2440 = vmatpush.msrb.mxu2 %v2037_v18  ;;  %2457 = vmatpush.msrb.mxu3 %v2056_v19  ;;  %v2476_v18 = vld [vmem:[%s7391_s6 + $0x38] sm:$0xff]  ;;  %v2513_v19 = vld [vmem:[%s7391_s6 + $0x160] sm:$0xff] }
 0x3ea   :  { %2441 = vmatpush.msrb.mxu2 %v2036_v20  ;;  %2458 = vmatpush.msrb.mxu3 %v2055_v21  ;;  %v2606_v20 = vld [vmem:[%s7381_s5 + $0xa8] sm:$0xff]  ;;  %v2087_v21 = vadd.f32 %v3820_v14, %v2086_v59  ;;  %v2597_v59 = vld [vmem:[%s7381_s5 + $0x60] sm:$0xff] }
 0x3eb   :  { %3035 = vmatpush.msrb.mxu1 %v2606_v20 }
 0x3ec   :  { %2442 = vmatpush.msrb.mxu2 %v2035_v22  ;;  %2459 = vmatpush.msrb.mxu3 %v2054_v23  ;;  %v2473_v22 = vld [vmem:[%s7391_s6 + $0x20] sm:$0xff]  ;;  %v2186_v23 = vpop.f32.mrf.mxu3 }
 0x3ee   :  { %2443 = vmatpush.msrb.mxu2 %v2034_v24  ;;  %2460 = vmatpush.msrb.mxu3 %v2053_v25  ;;  %v2510_v24 = vld [vmem:[%s7391_s6 + $0x148] sm:$0xff]  ;;  %v6249_v25 = vld [vmem:[%s7381_s5 + $0xb0] sm:$0xff] }
 0x3ef   :  { %3055 = vmatpush.msrb.mxu0 %v6249_v25 }
 0x3f0   :  { %2444 = vmatpush.msrb.mxu2 %v2033_v27  ;;  %2461 = vmatpush.msrb.mxu3 %v2052_v57  ;;  %v2470_v27 = vld [vmem:[%s7391_s6 + $0x8] sm:$0xff]  ;;  %v2603_v57 = vld [vmem:[%s7381_s5 + $0x90] sm:$0xff] }
 0x3f1   :  { %2445 = vmatmul.f32.vlgmr.msrb.gmra.mxu2 %v1743_v28  ;;  %v2206_v28 = vpop.f32.mrf.mxu2  ;;  %3036 = vmatpush.msrb.mxu1 %v2603_v57 }
 0x3f2   :  { %2462 = vmatpush.msrb.mxu3 %v2051_v29  ;;  %2525 = vmatpush.msra.mxu2 %v2514_v35  ;;  %v2507_v29 = vld [vmem:[%s7391_s6 + $0x130] sm:$0xff]  ;;  %v3863_v35 = vld [vmem:[%s7381_s5 + $0x168] sm:$0xff] }
 0x3f4   :  { %2463 = vmatpush.msrb.mxu3 %v2050_v30  ;;  %2526 = vmatpush.msra.mxu2 %v2511_v36  ;;  %v2107_v30 = vadd.f32 %v2106_v1, %v2087_v21  ;;  %v2501_v36 = vld [vmem:[%s7391_s6 + $0x100] sm:$0xff]  ;;  %v2588_v1 = vld [vmem:[%s7381_s5 + $0x18] sm:$0xff] }
 0x3f6   :  { %2464 = vmatpush.msrb.mxu3 %v2049_v31  ;;  %2527 = vmatpush.msra.mxu2 %v2508_v38  ;;  %v2504_v31 = vld [vmem:[%s7391_s6 + $0x118] sm:$0xff]  ;;  %v2498_v38 = vld [vmem:[%s7391_s6 + $0xe8] sm:$0xff] }
 0x3f7   :  { %2465 = vmatmul.f32.vlgmr.msrb.gmra.mxu3 %v1744_v32  ;;  %v2127_v32 = vadd.f32 %v2126_v4, %v2107_v30 }
 0x3f8   :  { %2545 = vmatpush.msra.mxu3 %v2515_v37  ;;  %2528 = vmatpush.msra.mxu2 %v2505_v43  ;;  %v2226_v37 = vpop.f32.mrf.mxu3  ;;  %v2495_v43 = vld [vmem:[%s7391_s6 + $0xd0] sm:$0xff] }
 0x3fa   :  { %2546 = vmatpush.msra.mxu3 %v2512_v40  ;;  %2529 = vmatpush.msra.mxu2 %v2502_v45  ;;  %v2147_v40 = vadd.f32 %v2146_v5, %v2127_v32  ;;  %v2585_v5 = vld [vmem:[%s7381_s5] sm:$0xff] }
 0x3fb   :  { %v6354_v32 = vld [vmem:[%s7381_s5 + $0x160] sm:$0xff] }
 0x3fc   :  { %2547 = vmatpush.msra.mxu3 %v2509_v41  ;;  %2530 = vmatpush.msra.mxu2 %v2499_v48  ;;  %v2246_v41 = vpop.f32.mrf.mxu2 }
 0x3fe   :  { %2548 = vmatpush.msra.mxu3 %v2506_v44  ;;  %2531 = vmatpush.msra.mxu2 %v2496_v51  ;;  %v2167_v44 = vadd.f32 %v2166_v11, %v2147_v40  ;;  %v6379_v40 = vld [vmem:[%s7381_s5 + $0x118] sm:$0xff] }
 0x400   :  { %2549 = vmatpush.msra.mxu3 %v2503_v46  ;;  %2532 = vmatpush.msra.mxu2 %v2493_v55  ;;  %v2187_v45 = vadd.f32 %v2186_v23, %v2167_v44  ;;  %v2266_v46 = vpop.f32.mrf.mxu3  ;;  %v6440_v44 = vld [vmem:[%s7381_s5 + $0x40] sm:$0xff] }
 0x402   :  { %2550 = vmatpush.msra.mxu3 %v2500_v50  ;;  %2533 = vmatpush.msra.mxu2 %v2490_v58  ;;  %v2207_v48 = vadd.f32 %v2206_v28, %v2187_v45  ;;  %v6461_v45 = vld [vmem:[%s7393_s17 + $0x168] sm:$0xff] }
 0x404   :  { %2551 = vmatpush.msra.mxu3 %v2497_v53  ;;  %2534 = vmatpush.msra.mxu2 %v2487_v61  ;;  %v2286_v50 = vpop.f32.mrf.mxu2  ;;  %v2227_v51 = vadd.f32 %v2226_v37, %v2207_v48  ;;  %v2471_v61 = vld [vmem:[%s7391_s6 + $0x10] sm:$0xff]  ;;  %v3865_v37 = vld [vmem:[%s7381_s5 + $0x158] sm:$0xff] }
 0x405   :  { %v6475_v48 = vld [vmem:[%s7393_s17 + $0x138] sm:$0xff] }
 0x406   :  { %2552 = vmatpush.msra.mxu3 %v2494_v56  ;;  %2535 = vmatpush.msra.mxu2 %v2484_v63  ;;  %v2247_v53 = vadd.f32 %v2246_v41, %v2227_v51  ;;  %v2600_v56 = vld [vmem:[%s7381_s5 + $0x78] sm:$0xff]  ;;  %v7190_v41 = vmov 0.0   ;;  %v2785_v51 = vld [vmem:[%s7393_s17 + $0x128] sm:$0xff] }
 0x407   :  { %3037 = vmatpush.msrb.mxu1 %v2600_v56 }
 0x408   :  { %2553 = vmatpush.msra.mxu3 %v2491_v60  ;;  %2536 = vmatpush.msra.mxu2 %v2481_v0  ;;  %v2306_v55 = vpop.f32.mrf.mxu3  ;;  %v2267_v60 = vadd.f32 %v2266_v46, %v2247_v53  ;;  %v2591_v0 = vld [vmem:[%s7381_s5 + $0x30] sm:$0xff]  ;;  %v6496_v53 = vld [vmem:[%s7393_s17 + $0x108] sm:$0xff] }
 0x409   :  { %3038 = vmatpush.msrb.mxu1 %v2597_v59  ;;  %v6466_v46 = vld [vmem:[%s7393_s17 + $0x150] sm:$0xff] }
 0x40a   :  { %2554 = vmatpush.msra.mxu3 %v2488_v62  ;;  %2537 = vmatpush.msra.mxu2 %v2478_v2  ;;  %v2594_v62 = vld [vmem:[%s7381_s5 + $0x48] sm:$0xff]  ;;  %v2287_v63 = vadd.f32 %v2286_v50, %v2267_v60  ;;  %v2791_v50 = vld [vmem:[%s7393_s17 + $0x158] sm:$0xff] }
 0x40b   :  { %3039 = vmatpush.msrb.mxu1 %v2594_v62  ;;  %v6526_v60 = vld [vmem:[%s7393_s17 + $0xd8] sm:$0xff] }
 0x40c   :  { %2538 = vmatpush.msra.mxu2 %v2475_v6  ;;  %2555 = vmatpush.msra.mxu3 %v2485_v7  ;;  %v2307_v4 = vadd.f32 %v2306_v55, %v2287_v63  ;;  %v2782_v55 = vld [vmem:[%s7393_s17 + $0x110] sm:$0xff] }
 0x40d   :  { %3040 = vmatpush.msrb.mxu1 %v2591_v0 }
 0x40e   :  { %2539 = vmatpush.msra.mxu2 %v2472_v10  ;;  %2556 = vmatpush.msra.mxu3 %v2482_v12 }
 0x40f   :  { %3041 = vmatpush.msrb.mxu1 %v2588_v1 }
 0x410   :  { %2540 = vmatpush.msra.mxu2 %v2469_v15  ;;  %2557 = vmatpush.msra.mxu3 %v2479_v16  ;;  %v2604_v15 = vld [vmem:[%s7381_s5 + $0x98] sm:$0xff] }
 0x411   :  { %3042 = vmatpush.msrb.mxu1 %v2585_v5  ;;  %3056 = vmatpush.msrb.mxu0 %v2604_v15 }
 0x412   :  { %2565 = vmatpush.msrb.mxu2 %v2516_v17  ;;  %2558 = vmatpush.msra.mxu3 %v2476_v18  ;;  %v2601_v17 = vld [vmem:[%s7381_s5 + $0x80] sm:$0xff] }
 0x413   :  { %3057 = vmatpush.msrb.mxu0 %v2601_v17 }
 0x414   :  { %2566 = vmatpush.msrb.mxu2 %v2513_v19  ;;  %2559 = vmatpush.msra.mxu3 %v2473_v22  ;;  %v2326_v58 = vpop.f32.mrf.mxu2  ;;  %v2595_v22 = vld [vmem:[%s7381_s5 + $0x50] sm:$0xff] }
 0x415   :  { %v2327_v7 = vadd.f32 %v2326_v58, %v2307_v4  ;;  %v6516_v58 = vld [vmem:[%s7394_s30] sm:$0x7]  ;;  %v6546_v4 = vld [vmem:[%s7393_s17 + $0xa8] sm:$0xff] }
 0x416   :  { %2567 = vmatpush.msrb.mxu2 %v2510_v24  ;;  %2560 = vmatpush.msra.mxu3 %v2470_v27  ;;  %v2592_v24 = vld [vmem:[%s7381_s5 + $0x38] sm:$0xff]  ;;  %v2519_v63 = vperm.slane %v6516_v58, 0 }
 0x418   :  { %2568 = vmatpush.msrb.mxu2 %v2507_v29  ;;  %2641 = vmatpush.msrb.mxu3 %v3863_v35  ;;  %v2586_v29 = vld [vmem:[%s7381_s5 + $0x8] sm:$0xff]  ;;  %v3864_v35 = vld [vmem:[%s7381_s5 + $0x170] sm:$0xff] }
 0x41a   :  { %2569 = vmatpush.msrb.mxu2 %v2504_v31  ;;  %2642 = vmatpush.msrb.mxu3 %v5634_v52  ;;  %v2492_v52 = vld [vmem:[%s7391_s6 + $0xb8] sm:$0xff]  ;;  %v2346_v2 = vpop.f32.mrf.mxu3 }
 0x41b   :  { %v2347_v10 = vadd.f32 %v2346_v2, %v2327_v7  ;;  %v6349_v31 = vld [vmem:[%s7381_s5 + $0x178] sm:$0xff] }
 0x41c   :  { %2570 = vmatpush.msrb.mxu2 %v2501_v36  ;;  %2643 = vmatpush.msrb.mxu3 %v5769_v39  ;;  %v2489_v39 = vld [vmem:[%s7391_s6 + $0xa0] sm:$0xff]  ;;  %v6363_v36 = vld [vmem:[%s7381_s5 + $0x148] sm:$0xff] }
 0x41e   :  { %2571 = vmatpush.msrb.mxu2 %v2498_v38  ;;  %2644 = vmatpush.msrb.mxu3 %v5877_v13  ;;  %v2486_v13 = vld [vmem:[%s7391_s6 + $0x88] sm:$0xff]  ;;  %v6372_v38 = vld [vmem:[%s7381_s5 + $0x130] sm:$0xff] }
 0x420   :  { %2572 = vmatpush.msrb.mxu2 %v2495_v43  ;;  %2645 = vmatpush.msrb.mxu3 %v5991_v54  ;;  %v2483_v54 = vld [vmem:[%s7391_s6 + $0x70] sm:$0xff]  ;;  %v6387_v43 = vld [vmem:[%s7381_s5 + $0x100] sm:$0xff] }
 0x422   :  { %2573 = vmatpush.msrb.mxu2 %v2492_v52  ;;  %2646 = vmatpush.msrb.mxu3 %v6045_v8  ;;  %v2480_v8 = vld [vmem:[%s7391_s6 + $0x58] sm:$0xff]  ;;  %v6446_v52 = vld [vmem:[%s7381_s5 + $0x28] sm:$0xff] }
 0x424   :  { %2574 = vmatpush.msrb.mxu2 %v2489_v39  ;;  %2647 = vmatpush.msrb.mxu3 %v6117_v33  ;;  %v2477_v33 = vld [vmem:[%s7391_s6 + $0x40] sm:$0xff]  ;;  %v6452_v39 = vld [vmem:[%s7381_s5 + $0x10] sm:$0xff] }
 0x426   :  { %2575 = vmatpush.msrb.mxu2 %v2486_v13  ;;  %2648 = vmatpush.msrb.mxu3 %v6147_v42  ;;  %v2474_v42 = vld [vmem:[%s7391_s6 + $0x28] sm:$0xff]  ;;  %v2794_v13 = vld [vmem:[%s7393_s17 + $0x170] sm:$0xff] }
 0x427   :  { %3169 = vmatpush.msra.mxu1 %v2794_v13 }
 0x428   :  { %2576 = vmatpush.msrb.mxu2 %v2483_v54  ;;  %2649 = vmatpush.msrb.mxu3 %v2606_v20  ;;  %v2598_v20 = vld [vmem:[%s7381_s5 + $0x68] sm:$0xff]  ;;  %v2788_v54 = vld [vmem:[%s7393_s17 + $0x140] sm:$0xff] }
 0x429   :  { %3058 = vmatpush.msrb.mxu0 %v2598_v20  ;;  %3170 = vmatpush.msra.mxu1 %v2791_v50 }
 0x42a   :  { %2577 = vmatpush.msrb.mxu2 %v2480_v8  ;;  %2650 = vmatpush.msrb.mxu3 %v2603_v57  ;;  %v2589_v57 = vld [vmem:[%s7381_s5 + $0x20] sm:$0xff] }
 0x42b   :  { %3059 = vmatpush.msrb.mxu0 %v2595_v22  ;;  %v6487_v8 = vld [vmem:[%s7393_s17 + $0x120] sm:$0xff]  ;;  %3171 = vmatpush.msra.mxu1 %v2788_v54 }
 0x42c   :  { %2578 = vmatpush.msrb.mxu2 %v2477_v33  ;;  %2651 = vmatpush.msrb.mxu3 %v2600_v56  ;;  %v6507_v56 = vld [vmem:[%s7393_s17 + $0xf0] sm:$0xff] }
 0x42d   :  { %3060 = vmatpush.msrb.mxu0 %v2592_v24  ;;  %3172 = vmatpush.msra.mxu1 %v2785_v51 }
 0x42e   :  { %2579 = vmatpush.msrb.mxu2 %v2474_v42  ;;  %2652 = vmatpush.msrb.mxu3 %v2597_v59  ;;  %v2779_v42 = vld [vmem:[%s7393_s17 + $0xf8] sm:$0xff]  ;;  %v6521_v59 = vld [vmem:[%s7395_s22] sm:$0x7]  ;;  %s7426_s22 = sld [smem:[#allocation105_spill]] }
 0x42f   :  { %3061 = vmatpush.msrb.mxu0 %v2589_v57  ;;  %7396 = vst [vmem:[#allocation83_spill] sm:$0xff] %v6521_v59  ;;  %3173 = vmatpush.msra.mxu1 %v2782_v55 }
 0x430   :  { %2580 = vmatpush.msrb.mxu2 %v2471_v61  ;;  %2653 = vmatpush.msrb.mxu3 %v2594_v62  ;;  %v2776_v61 = vld [vmem:[%s7393_s17 + $0xe0] sm:$0xff] }
 0x431   :  { %3062 = vmatpush.msrb.mxu0 %v2586_v29  ;;  %v6535_v62 = vld [vmem:[%s7393_s17 + $0xc0] sm:$0xff]  ;;  %3174 = vmatpush.msra.mxu1 %v2779_v42 }
 0x432   :  { %2654 = vmatpush.msrb.mxu3 %v2591_v0  ;;  %v7189_v0 = vperm.slane %v6521_v59, 0 }
 0x433   :  { %3175 = vmatpush.msra.mxu1 %v2776_v61 }
 0x434   :  { %v2366_v6 = vpop.f32.mrf.mxu2  ;;  %2655 = vmatpush.msrb.mxu3 %v2588_v1  ;;  %v2773_v1 = vld [vmem:[%s7393_s17 + $0xc8] sm:$0xff] }
 0x435   :  { %v2367_v12 = vadd.f32 %v2366_v6, %v2347_v10  ;;  %v6552_v6 = vld [vmem:[%s7393_s17 + $0x90] sm:$0xff]  ;;  %3176 = vmatpush.msra.mxu1 %v2773_v1 }
 0x436   :  { %2656 = vmatpush.msrb.mxu3 %v2585_v5 }
 0x43a   :  { %v2386_v11 = vpop.f32.mrf.mxu3 }
 0x43b   :  { %v2387_v16 = vadd.f32 %v2386_v11, %v2367_v12  ;;  %v6562_v11 = vld [vmem:[%s7393_s17 + $0x78] sm:$0xff] }
 0x454   :  { %v2406_v14 = vpop.f32.mrf.mxu2 }
 0x455   :  { %v2407_v18 = vadd.f32 %v2406_v14, %v2387_v16  ;;  %v6569_v14 = vld [vmem:[%s7393_s17 + $0x60] sm:$0xff] }
 0x45a   :  { %v2426_v19 = vpop.f32.mrf.mxu3 }
 0x45b   :  { %v2427_v23 = vadd.f32 %v2426_v19, %v2407_v18  ;;  %v2770_v19 = vld [vmem:[%s7393_s17 + $0xb0] sm:$0xff] }
 0x45c   :  { %3177 = vmatpush.msra.mxu1 %v2770_v19 }
 0x474   :  { %v2446_v21 = vpop.f32.mrf.mxu2 }
 0x475   :  { %v2447_v27 = vadd.f32 %v2446_v21, %v2427_v23  ;;  %v2767_v21 = vld [vmem:[%s7393_s17 + $0x98] sm:$0xff]  ;;  %v2520_v23 = vperm.slane %v6516_v58, 1 }
 0x476   :  { %3178 = vmatpush.msra.mxu1 %v2767_v21 }
 0x47a   :  { %v2466_v28 = vpop.f32.mrf.mxu3 }
 0x47b   :  { %v2467_v30 = vadd.f32 %v2466_v28, %v2447_v27  ;;  %v2764_v27 = vld [vmem:[%s7393_s17 + $0x80] sm:$0xff] }
 0x47c   :  { %3179 = vmatpush.msra.mxu1 %v2764_v27 }
 0x47d   :  { %2541 = vmatmul.f32.vlgmr.msra.gmra.mxu2 %v2467_v30  ;;  %2561 = vmatmul.f32.vlgmr.msra.gmra.mxu3 %v2467_v30 }
 0x47e   :  { %2661 = vmatpush.msra.mxu2 %v3864_v35  ;;  %2681 = vmatpush.msra.mxu3 %v6349_v31 }
 0x480   :  { %2662 = vmatpush.msra.mxu2 %v3865_v37  ;;  %2682 = vmatpush.msra.mxu3 %v6354_v32 }
 0x482   :  { %2663 = vmatpush.msra.mxu2 %v5799_v49  ;;  %2683 = vmatpush.msra.mxu3 %v6363_v36  ;;  %v6394_v49 = vld [vmem:[%s7381_s5 + $0xe8] sm:$0xff] }
 0x484   :  { %2664 = vmatpush.msra.mxu2 %v5913_v26  ;;  %2684 = vmatpush.msra.mxu3 %v6372_v38  ;;  %v6401_v26 = vld [vmem:[%s7381_s5 + $0xd0] sm:$0xff] }
 0x485   :  { %2581 = vmatmul.f32.vlgmr.msrb.gmra.mxu2 %v2467_v30  ;;  %2657 = vmatmul.f32.vlgmr.msrb.gmra.mxu3 %v7190_v41 }
 0x486   :  { %2665 = vmatpush.msra.mxu2 %v6027_v3  ;;  %2685 = vmatpush.msra.mxu3 %v6379_v40  ;;  %v6408_v3 = vld [vmem:[%s7381_s5 + $0xb8] sm:$0xff] }
 0x488   :  { %2666 = vmatpush.msra.mxu2 %v6050_v9  ;;  %2686 = vmatpush.msra.mxu3 %v6387_v43  ;;  %v6415_v9 = vld [vmem:[%s7381_s5 + $0xa0] sm:$0xff] }
 0x48a   :  { %2667 = vmatpush.msra.mxu2 %v6122_v34  ;;  %2687 = vmatpush.msra.mxu3 %v6394_v49  ;;  %v6422_v34 = vld [vmem:[%s7381_s5 + $0x88] sm:$0xff] }
 0x48c   :  { %2668 = vmatpush.msra.mxu2 %v6165_v47  ;;  %2688 = vmatpush.msra.mxu3 %v6401_v26  ;;  %v6428_v47 = vld [vmem:[%s7381_s5 + $0x70] sm:$0xff] }
 0x48e   :  { %2669 = vmatpush.msra.mxu2 %v6249_v25  ;;  %2689 = vmatpush.msra.mxu3 %v6408_v3  ;;  %v6434_v25 = vld [vmem:[%s7381_s5 + $0x58] sm:$0xff]  ;;  %s7427_s5 = sld [smem:[#allocation107_spill]] }
 0x490   :  { %2670 = vmatpush.msra.mxu2 %v2604_v15  ;;  %2690 = vmatpush.msra.mxu3 %v6415_v9 }
 0x492   :  { %2671 = vmatpush.msra.mxu2 %v2601_v17  ;;  %2691 = vmatpush.msra.mxu3 %v6422_v34 }
 0x494   :  { %2672 = vmatpush.msra.mxu2 %v2598_v20  ;;  %2692 = vmatpush.msra.mxu3 %v6428_v47  ;;  %v6584_v20 = vld [vmem:[%s7393_s17 + $0x48] sm:$0xff]  ;;  %s3409_s29 = sshll.u32 %s7427_s5, 4  ;;  %s3410_s29 = int_to_ptr.hbm [resolvable:$true] %s3409_s29 }
 0x496   :  { %2673 = vmatpush.msra.mxu2 %v2595_v22  ;;  %2693 = vmatpush.msra.mxu3 %v6434_v25  ;;  %v6593_v22 = vld [vmem:[%s7393_s17 + $0x30] sm:$0xff] }
 0x498   :  { %2674 = vmatpush.msra.mxu2 %v2592_v24  ;;  %2694 = vmatpush.msra.mxu3 %v6440_v44  ;;  %v7188_v24 = vperm.slane %v6521_v59, 1 }
 0x49a   :  { %2675 = vmatpush.msra.mxu2 %v2589_v57  ;;  %2695 = vmatpush.msra.mxu3 %v6446_v52  ;;  %v6603_v57 = vld [vmem:[%s7393_s17 + $0x18] sm:$0xff] }
 0x49c   :  { %2676 = vmatpush.msra.mxu2 %v2586_v29  ;;  %2696 = vmatpush.msra.mxu3 %v6452_v39  ;;  %v2761_v29 = vld [vmem:[%s7393_s17 + $0x68] sm:$0xff] }
 0x49d   :  { %2677 = vmatmul.f32.vlgmr.msra.gmra.mxu2 %v7190_v41  ;;  %2697 = vmatmul.f32.vlgmr.msra.gmra.mxu3 %v7190_v41 }
 0x49e   :  { %2804 = vmatpush.msrb.mxu2 %v6461_v45  ;;  %2824 = vmatpush.msrb.mxu3 %v2794_v13 }
 0x49f   :  { %3180 = vmatpush.msra.mxu1 %v2761_v29 }
 0x4a0   :  { %2805 = vmatpush.msrb.mxu2 %v6466_v46  ;;  %2825 = vmatpush.msrb.mxu3 %v2791_v50 }
 0x4a2   :  { %2806 = vmatpush.msrb.mxu2 %v6475_v48  ;;  %2826 = vmatpush.msrb.mxu3 %v2788_v54 }
 0x4a4   :  { %2807 = vmatpush.msrb.mxu2 %v6487_v8  ;;  %2827 = vmatpush.msrb.mxu3 %v2785_v51 }
 0x4a6   :  { %2808 = vmatpush.msrb.mxu2 %v6496_v53  ;;  %2828 = vmatpush.msrb.mxu3 %v2782_v55  ;;  %v6623_v55 = vld [vmem:[%s7393_s17] sm:$0xff] }
 0x4a8   :  { %2809 = vmatpush.msrb.mxu2 %v6507_v56  ;;  %2829 = vmatpush.msrb.mxu3 %v2779_v42  ;;  %v2795_v42 = vld [vmem:[%s7393_s17 + $0x178] sm:$0xff] }
 0x4a9   :  { %3189 = vmatpush.msra.mxu0 %v2795_v42 }
 0x4aa   :  { %2810 = vmatpush.msrb.mxu2 %v6526_v60  ;;  %2830 = vmatpush.msrb.mxu3 %v2776_v61 }
 0x4ac   :  { %2811 = vmatpush.msrb.mxu2 %v6535_v62  ;;  %2831 = vmatpush.msrb.mxu3 %v2773_v1  ;;  %v2792_v1 = vld [vmem:[%s7393_s17 + $0x160] sm:$0xff] }
 0x4ad   :  { %3190 = vmatpush.msra.mxu0 %v2792_v1 }
 0x4ae   :  { %2812 = vmatpush.msrb.mxu2 %v6546_v4  ;;  %2832 = vmatpush.msrb.mxu3 %v2770_v19 }
 0x4b0   :  { %2813 = vmatpush.msrb.mxu2 %v6552_v6  ;;  %2833 = vmatpush.msrb.mxu3 %v2767_v21  ;;  %v7187_v21 = vperm.slane %v6521_v59, 2  ;;  %v6912_v59 = vld [vmem:[%s7399_s26 + $0x68] sm:$0xff] }
 0x4b1   :  { %7406 = vst [vmem:[#allocation90_spill] sm:$0xff] %v6912_v59 }
 0x4b2   :  { %2814 = vmatpush.msrb.mxu2 %v6562_v11  ;;  %2834 = vmatpush.msrb.mxu3 %v2764_v27  ;;  %v2783_v27 = vld [vmem:[%s7393_s17 + $0x118] sm:$0xff] }
 0x4b4   :  { %2815 = vmatpush.msrb.mxu2 %v6569_v14  ;;  %2835 = vmatpush.msrb.mxu3 %v2761_v29  ;;  %v6668_v29 = vld [vmem:[%s7399_s26 + $0x150] sm:$0xff] }
 0x4b6   :  { %2816 = vmatpush.msrb.mxu2 %v6584_v20 }
 0x4b8   :  { %2817 = vmatpush.msrb.mxu2 %v6593_v22 }
 0x4ba   :  { %2818 = vmatpush.msrb.mxu2 %v6603_v57 }
 0x4bc   :  { %2819 = vmatpush.msrb.mxu2 %v6623_v55 }
 0x4be   :  { %2844 = vmatpush.msra.mxu2 %v2795_v42  ;;  %v2777_v42 = vld [vmem:[%s7393_s17 + $0xe8] sm:$0xff] }
 0x4c0   :  { %2845 = vmatpush.msra.mxu2 %v2792_v1  ;;  %v2521_v1 = vperm.slane %v6516_v58, 2  ;;  %v6719_v58 = vld [vmem:[%s7399_s26 + $0xf0] sm:$0xff] }
 0x500   :  { %v6502_v33 = vpop.f32.mrf.mxu3  ;;  %v2542_v2 = vpop.f32.mrf.mxu2 }
 0x501   :  { %v6554_v7 = vadd.f32 %v2542_v2, %v2519_v63  ;;  %v6615_v37 = vadd.f32 %v6502_v33, %v2520_v23  ;;  %v2758_v33 = vld [vmem:[%s7393_s17 + $0x50] sm:$0xff]  ;;  %v2755_v63 = vld [vmem:[%s7393_s17 + $0x38] sm:$0xff]  ;;  %v2752_v2 = vld [vmem:[%s7393_s17 + $0x20] sm:$0xff] }
 0x502   :  { %2836 = vmatpush.msrb.mxu3 %v2758_v33  ;;  %3181 = vmatpush.msra.mxu1 %v2758_v33 }
 0x503   :  { %7397 = vst [vmem:[#allocation84_spill] sm:$0xff] %v6554_v7 }
 0x504   :  { %7398 = vst [vmem:[#allocation85_spill] sm:$0xff] %v6615_v37  ;;  %2837 = vmatpush.msrb.mxu3 %v2755_v63  ;;  %3182 = vmatpush.msra.mxu1 %v2755_v63 }
 0x506   :  { %2838 = vmatpush.msrb.mxu3 %v2752_v2  ;;  %3183 = vmatpush.msra.mxu1 %v2752_v2  ;;  %v2774_v2 = vld [vmem:[%s7393_s17 + $0xd0] sm:$0xff] }
 0x508   :  { %v2658_v5 = vpop.f32.mrf.mxu3  ;;  %v6575_v18 = vpop.f32.mrf.mxu2 }
 0x509   :  { %v2659_v10 = vadd.f32 %v2658_v5, %v7189_v0  ;;  %v2789_v5 = vld [vmem:[%s7393_s17 + $0x148] sm:$0xff]  ;;  %v2902_v0 = vld [vmem:[%s7399_s26 + $0x130] sm:$0xff] }
 0x50a   :  { %2846 = vmatpush.msra.mxu2 %v2789_v5  ;;  %3191 = vmatpush.msra.mxu0 %v2789_v5  ;;  %v6710_v5 = vld [vmem:[%s7399_s26 + $0x108] sm:$0xff] }
 0x50b   :  { %v2701_v12 = vadd.f32 %v2659_v10, %v6554_v7  ;;  %v2749_v10 = vld [vmem:[%s7393_s17 + $0x8] sm:$0xff]  ;;  %v6903_v7 = vld [vmem:[%s7399_s26 + $0x80] sm:$0xff] }
 0x50c   :  { %2839 = vmatpush.msrb.mxu3 %v2749_v10  ;;  %3184 = vmatpush.msra.mxu1 %v2749_v10 }
 0x50d   :  { %v3807_v15 = vmul.f32 -1.442695, %v2701_v12 }
 0x50f   :  { %3822 = vpow2.f32 %v3807_v15  ;;  %v2786_v15 = vld [vmem:[%s7393_s17 + $0x130] sm:$0xff] }
 0x510   :  { %2847 = vmatpush.msra.mxu2 %v2786_v15  ;;  %3192 = vmatpush.msra.mxu0 %v2786_v15 }
 0x512   :  { %2848 = vmatpush.msra.mxu2 %v2783_v27  ;;  %3193 = vmatpush.msra.mxu0 %v2783_v27  ;;  %v6731_v27 = vld [vmem:[%s7399_s26 + $0xd8] sm:$0xff] }
 0x515   :  { %v3823_v16 = vpop.eup %3822 }
 0x516   :  { %v6573_v17 = vadd.f32 1.0, %v3823_v16  ;;  %v6656_v16 = vld [vmem:[%s7399_s26 + $0x168] sm:$0xff] }
 0x517   :  { %2920 = vmatpush.msra.mxu3 %v6656_v16 }
 0x518   :  { %3824 = vrcp.f32 %v6573_v17  ;;  %v2717_v19 = vand.u32 2147483648, %v6573_v17  ;;  %vm2711_vm5 = vweird.f32 %v6573_v17  ;;  %v2715_v23 = vand.u32 2147483647, %v6573_v17 }
 0x519   :  { %2921 = vmatpush.msra.mxu3 %v6668_v29 }
 0x51a   :  { %v2718_v33 = vor.u32 1.1754944e-38, %v2717_v19  ;;  %vm2716_vm7 = vcmp.eq.f32.partialorder %v2715_v23, 8.507059e+37  ;;  %v6723_v19 = vadd.f32 %v6575_v18, %v2521_v1  ;;  %v2768_v23 = vld [vmem:[%s7393_s17 + $0xa0] sm:$0xff]  ;;  %v2765_v18 = vld [vmem:[%s7393_s17 + $0x88] sm:$0xff]  ;;  %v2759_v1 = vld [vmem:[%s7393_s17 + $0x58] sm:$0xff] }
 0x51c   :  { %7402 = vst [vmem:[#allocation86_spill] sm:$0xff] %v6723_v19 }
 0x51e   :  { %v6605_v28 = vpop.eup %3824 }
 0x51f   :  { %v2707_v30 = vmul.f32 %v6605_v28, %v6573_v17  ;;  %vm2712_vm4 = vweird.f32 %v6605_v28 }
 0x520   :  { %v2678_v35 = vpop.f32.mrf.mxu2  ;;  %vm6672_vm6 = vmor %vm2711_vm5, %vm2712_vm4 }
 0x521   :  { %v2679_v13 = vadd.f32 %v2678_v35, %v7188_v24  ;;  %v2708_v50 = vsub.f32 1.0, %v2707_v30  ;;  %v2698_v35 = vpop.f32.mrf.mxu3  ;;  %v2905_v24 = vld [vmem:[%s7399_s26 + $0x148] sm:$0xff] }
 0x523   :  { %v2721_v54 = vadd.f32 %v2679_v13, %v6615_v37  ;;  %v2709_v61 = vmul.f32 %v6605_v28, %v2708_v50  ;;  %v6742_v13 = vld [vmem:[%s7399_s26 + $0xc0] sm:$0xff]  ;;  %v6894_v37 = vld [vmem:[%s7399_s26 + $0x98] sm:$0xff] }
 0x525   :  { %v3808_v51 = vmul.f32 -1.442695, %v2721_v54  ;;  %v2710_v12 = vadd.f32 %v6605_v28, %v2709_v61  ;;  %v2780_v54 = vld [vmem:[%s7393_s17 + $0x100] sm:$0xff] }
 0x526   :  { %v6700_v61 = vld [vmem:[%s7399_s26 + $0x120] sm:$0xff]  ;;  %2849 = vmatpush.msra.mxu2 %v2780_v54  ;;  %3194 = vmatpush.msra.mxu0 %v2780_v54 }
 0x527   :  { %3826 = vpow2.f32 %v3808_v51  ;;  %v2714_v50 = vsel %vm6672_vm6, %v6605_v28, %v2710_v12  ;;  %v6688_v51 = vld [vmem:[%s7399_s26 + $0x138] sm:$0xff]  ;;  %v2699_v28 = vadd.f32 %v2698_v35, %v7187_v21 }
 0x528   :  { %v2719_v63 = vsel %vm2716_vm7, %v2718_v33, %v2714_v50  ;;  %2922 = vmatpush.msra.mxu3 %v6688_v51  ;;  %2850 = vmatpush.msra.mxu2 %v2777_v42  ;;  %v2771_v12 = vld [vmem:[%s7393_s17 + $0xb8] sm:$0xff]  ;;  %v2762_v33 = vld [vmem:[%s7393_s17 + $0x70] sm:$0xff] }
 0x529   :  { %v2741_v10 = vmul.f32 %v2719_v63, %v2699_v28  ;;  %3195 = vmatpush.msra.mxu0 %v2777_v42  ;;  %v6752_v28 = vld [vmem:[%s7399_s26 + $0xa8] sm:$0xff]  ;;  %v6858_v21 = vld [vmem:[%s7399_s26 + $0xf8] sm:$0xff] }
 0x52a   :  { %2923 = vmatpush.msra.mxu3 %v6700_v61  ;;  %2851 = vmatpush.msra.mxu2 %v2774_v2 }
 0x52b   :  { %3196 = vmatpush.msra.mxu0 %v2774_v2  ;;  %v2742_v35 = vadd.f32 %v2741_v10, %v6723_v19  ;;  %v6762_v2 = vld [vmem:[%s7399_s26 + $0x90] sm:$0xff] }
 0x52c   :  { %2924 = vmatpush.msra.mxu3 %v6710_v5  ;;  %2852 = vmatpush.msra.mxu2 %v2771_v12  ;;  %v6885_v19 = vld [vmem:[%s7399_s26 + $0xb0] sm:$0xff] }
 0x52d   :  { %v3827_v30 = vpop.eup %3826  ;;  %3197 = vmatpush.msra.mxu0 %v2771_v12 }
 0x52e   :  { %v6677_v17 = vadd.f32 1.0, %v3827_v30  ;;  %2925 = vmatpush.msra.mxu3 %v6719_v58  ;;  %2853 = vmatpush.msra.mxu2 %v2768_v23 }
 0x52f   :  { %3198 = vmatpush.msra.mxu0 %v2768_v23  ;;  %v2756_v23 = vld [vmem:[%s7393_s17 + $0x40] sm:$0xff] }
 0x530   :  { %3828 = vrcp.f32 %v6677_v17  ;;  %2926 = vmatpush.msra.mxu3 %v6731_v27  ;;  %v2737_v54 = vand.u32 2147483648, %v6677_v17  ;;  %v2735_v63 = vand.u32 2147483647, %v6677_v17  ;;  %2854 = vmatpush.msra.mxu2 %v2765_v18  ;;  %vm2731_vm9 = vweird.f32 %v6677_v17 }
 0x531   :  { %3830 = vtanh.f32 %v2742_v35  ;;  %3199 = vmatpush.msra.mxu0 %v2765_v18  ;;  %v2753_v18 = vld [vmem:[%s7393_s17 + $0x28] sm:$0xff] }
 0x532   :  { %2927 = vmatpush.msra.mxu3 %v6742_v13  ;;  %2855 = vmatpush.msra.mxu2 %v2762_v33  ;;  %v2738_v12 = vor.u32 1.1754944e-38, %v2737_v54  ;;  %vm2736_vm11 = vcmp.eq.f32.partialorder %v2735_v63, 8.507059e+37 }
 0x533   :  { %3200 = vmatpush.msra.mxu0 %v2762_v33  ;;  %v2750_v33 = vld [vmem:[%s7393_s17 + $0x10] sm:$0xff] }
 0x534   :  { %2928 = vmatpush.msra.mxu3 %v6752_v28  ;;  %2856 = vmatpush.msra.mxu2 %v2759_v1 }
 0x535   :  { %3201 = vmatpush.msra.mxu0 %v2759_v1 }
 0x536   :  { %v3829_v15 = vpop.eup %3828  ;;  %2929 = vmatpush.msra.mxu3 %v6762_v2  ;;  %2857 = vmatpush.msra.mxu2 %v2756_v23 }
 0x537   :  { %v2727_v30 = vmul.f32 %v3829_v15, %v6677_v17  ;;  %vm2732_vm8 = vweird.f32 %v3829_v15  ;;  %3202 = vmatpush.msra.mxu0 %v2756_v23  ;;  %v6804_v23 = vld [vmem:[%s7399_s26 + $0x30] sm:$0xff] }
 0x538   :  { %vm2733_vm10 = vmor %vm2731_vm9, %vm2732_vm8  ;;  %2858 = vmatpush.msra.mxu2 %v2753_v18  ;;  %7403 = vst [vmem:[#allocation87_spill] sm:$0xff] %v6804_v23 }
 0x539   :  { %v2728_v50 = vsub.f32 1.0, %v2727_v30  ;;  %v6772_v30 = vld [vmem:[%s7399_s26 + $0x78] sm:$0xff]  ;;  %3203 = vmatpush.msra.mxu0 %v2753_v18  ;;  %v6825_v18 = vld [vmem:[%s7399_s26 + $0x140] sm:$0xff] }
 0x53a   :  { %2930 = vmatpush.msra.mxu3 %v6772_v30  ;;  %2859 = vmatpush.msra.mxu2 %v2750_v33 }
 0x53b   :  { %v2729_v42 = vmul.f32 %v3829_v15, %v2728_v50  ;;  %v6781_v50 = vld [vmem:[%s7399_s26 + $0x60] sm:$0xff]  ;;  %3204 = vmatpush.msra.mxu0 %v2750_v33  ;;  %v6840_v33 = vld [vmem:[%s7399_s26 + $0x128] sm:$0xff] }
 0x53c   :  { %2931 = vmatpush.msra.mxu3 %v6781_v50 }
 0x53d   :  { %v2730_v10 = vadd.f32 %v3829_v15, %v2729_v42  ;;  %v6790_v42 = vld [vmem:[%s7399_s26 + $0x48] sm:$0xff] }
 0x53e   :  { %2932 = vmatpush.msra.mxu3 %v6790_v42 }
 0x53f   :  { %v2734_v35 = vsel %vm2733_vm10, %v3829_v15, %v2730_v10  ;;  %v3831_v15 = vpop.eup %3830 }
 0x540   :  { %v2739_v17 = vsel %vm2736_vm11, %v2738_v12, %v2734_v35  ;;  %v6799_v12 = vld [vmem:[%s7399_s26 + $0x170] sm:$0xff]  ;;  %v6811_v35 = vld [vmem:[%s7399_s26 + $0x158] sm:$0xff]  ;;  %2933 = vmatpush.msra.mxu3 %v6804_v23  ;;  %v6939_v23 = vld [vmem:[%s7399_s26 + $0x20] sm:$0xff] }
 0x541   :  { %v2744_v54 = vsub.f32 1.0, %v2739_v17  ;;  %v2746_v10 = vmul.f32 0.0, %v2739_v17  ;;  %v6818_v17 = vld [vmem:[%s7399_s26 + $0x18] sm:$0xff] }
 0x542   :  { %7404 = vst [vmem:[#allocation88_spill] sm:$0xff] %v6818_v17  ;;  %2934 = vmatpush.msra.mxu3 %v6818_v17  ;;  %v6930_v17 = vld [vmem:[%s7399_s26 + $0x38] sm:$0xff] }
 0x543   :  { %v2745_v63 = vmul.f32 %v3831_v15, %v2744_v54  ;;  %v2911_v54 = vld [vmem:[%s7399_s26 + $0x178] sm:$0xff]  ;;  %v6834_v15 = vld [vmem:[%s7399_s26] sm:$0xff]  ;;  %7408 = vst [vmem:[#allocation92_spill] sm:$0xff] %v6930_v17 }
 0x544   :  { %7405 = vst [vmem:[#allocation89_spill] sm:$0xff] %v6834_v15  ;;  %2935 = vmatpush.msra.mxu3 %v6834_v15  ;;  %v6921_v15 = vld [vmem:[%s7399_s26 + $0x50] sm:$0xff] }
 0x545   :  { %v6793_v1 = vadd.f32 %v2746_v10, %v2745_v63  ;;  %v2908_v63 = vld [vmem:[%s7399_s26 + $0x160] sm:$0xff]  ;;  %v6850_v10 = vld [vmem:[%s7399_s26 + $0x110] sm:$0xff]  ;;  %7407 = vst [vmem:[#allocation91_spill] sm:$0xff] %v6921_v15 }
 0x547   :  { %2820 = vmatmul.f32.vlgmr.msrb.gmra.mxu2 %v6793_v1  ;;  %2840 = vmatmul.f32.vlgmr.msrb.gmra.mxu3 %v6793_v1 }
 0x548   :  { %2940 = vmatpush.msrb.mxu2 %v6799_v12  ;;  %3043 = vmatmul.f32.vlgmr.msrb.gmra.mxu1 %v6793_v1 }
 0x549   :  { %3063 = vmatmul.f32.vlgmr.msrb.gmra.mxu0 %v6793_v1  ;;  %3249 = vmatpush.msrb.mxu1 %v2911_v54 }
 0x54a   :  { %2941 = vmatpush.msrb.mxu2 %v6811_v35  ;;  %2960 = vmatpush.msrb.mxu3 %v2911_v54  ;;  %v6867_v54 = vld [vmem:[%s7399_s26 + $0xe0] sm:$0xff] }
 0x54b   :  { %3250 = vmatpush.msrb.mxu1 %v2908_v63 }
 0x54c   :  { %2942 = vmatpush.msrb.mxu2 %v6825_v18  ;;  %2961 = vmatpush.msrb.mxu3 %v2908_v63  ;;  %v2899_v63 = vld [vmem:[%s7399_s26 + $0x118] sm:$0xff] }
 0x54d   :  { %3251 = vmatpush.msrb.mxu1 %v2905_v24 }
 0x54e   :  { %2943 = vmatpush.msrb.mxu2 %v6840_v33  ;;  %2962 = vmatpush.msrb.mxu3 %v2905_v24  ;;  %v2896_v24 = vld [vmem:[%s7399_s26 + $0x100] sm:$0xff] }
 0x54f   :  { %2860 = vmatmul.f32.vlgmr.msra.gmra.mxu2 %v6793_v1  ;;  %2936 = vmatmul.f32.vlgmr.msra.gmra.mxu3 %v7190_v41  ;;  %v6876_v41 = vld [vmem:[%s7399_s26 + $0xc8] sm:$0xff] }
 0x550   :  { %2944 = vmatpush.msrb.mxu2 %v6850_v10  ;;  %3252 = vmatpush.msrb.mxu1 %v2902_v0 }
 0x551   :  { %2963 = vmatpush.msrb.mxu3 %v2902_v0  ;;  %v2893_v0 = vld [vmem:[%s7399_s26 + $0xe8] sm:$0xff] }
 0x552   :  { %2945 = vmatpush.msrb.mxu2 %v6858_v21  ;;  %3253 = vmatpush.msrb.mxu1 %v2899_v63 }
 0x553   :  { %2964 = vmatpush.msrb.mxu3 %v2899_v63  ;;  %v2890_v63 = vld [vmem:[%s7399_s26 + $0xd0] sm:$0xff] }
 0x554   :  { %2946 = vmatpush.msrb.mxu2 %v6867_v54  ;;  %3254 = vmatpush.msrb.mxu1 %v2896_v24 }
 0x555   :  { %2965 = vmatpush.msrb.mxu3 %v2896_v24  ;;  %v2887_v24 = vld [vmem:[%s7399_s26 + $0xb8] sm:$0xff] }
 0x556   :  { %2947 = vmatpush.msrb.mxu2 %v6876_v41  ;;  %3255 = vmatpush.msrb.mxu1 %v2893_v0 }
 0x557   :  { %2966 = vmatpush.msrb.mxu3 %v2893_v0  ;;  %v2884_v0 = vld [vmem:[%s7399_s26 + $0xa0] sm:$0xff] }
 0x558   :  { %2948 = vmatpush.msrb.mxu2 %v6885_v19  ;;  %3256 = vmatpush.msrb.mxu1 %v2890_v63 }
 0x559   :  { %2967 = vmatpush.msrb.mxu3 %v2890_v63  ;;  %v2881_v63 = vld [vmem:[%s7399_s26 + $0x88] sm:$0xff] }
 0x55a   :  { %2949 = vmatpush.msrb.mxu2 %v6894_v37  ;;  %3257 = vmatpush.msrb.mxu1 %v2887_v24 }
 0x55b   :  { %2968 = vmatpush.msrb.mxu3 %v2887_v24  ;;  %v2878_v24 = vld [vmem:[%s7399_s26 + $0x70] sm:$0xff] }
 0x55c   :  { %2950 = vmatpush.msrb.mxu2 %v6903_v7  ;;  %3258 = vmatpush.msrb.mxu1 %v2884_v0 }
 0x55d   :  { %2969 = vmatpush.msrb.mxu3 %v2884_v0  ;;  %v2875_v0 = vld [vmem:[%s7399_s26 + $0x58] sm:$0xff] }
 0x55e   :  { %2951 = vmatpush.msrb.mxu2 %v6912_v59  ;;  %3259 = vmatpush.msrb.mxu1 %v2881_v63  ;;  %v6948_v59 = vld [vmem:[%s7399_s26 + $0x8] sm:$0xff] }
 0x55f   :  { %2970 = vmatpush.msrb.mxu3 %v2881_v63  ;;  %v7409_v63 = vmov 0.0  }
 0x560   :  { %2952 = vmatpush.msrb.mxu2 %v6921_v15  ;;  %3260 = vmatpush.msrb.mxu1 %v2878_v24  ;;  %v2872_v15 = vld [vmem:[%s7399_s26 + $0x40] sm:$0xff] }
 0x561   :  { %2971 = vmatpush.msrb.mxu3 %v2878_v24  ;;  %v2866_v24 = vld [vmem:[%s7399_s26 + $0x10] sm:$0xff] }
 0x562   :  { %2953 = vmatpush.msrb.mxu2 %v6930_v17  ;;  %3261 = vmatpush.msrb.mxu1 %v2875_v0  ;;  %v2869_v17 = vld [vmem:[%s7399_s26 + $0x28] sm:$0xff] }
 0x563   :  { %2972 = vmatpush.msrb.mxu3 %v2875_v0 }
 0x564   :  { %2954 = vmatpush.msrb.mxu2 %v6939_v23  ;;  %3262 = vmatpush.msrb.mxu1 %v2872_v15 }
 0x565   :  { %2973 = vmatpush.msrb.mxu3 %v2872_v15 }
 0x566   :  { %2955 = vmatpush.msrb.mxu2 %v6948_v59  ;;  %3263 = vmatpush.msrb.mxu1 %v2869_v17 }
 0x567   :  { %2956 = vmatmul.f32.vlgmr.msrb.gmra.mxu2 %v7409_v63  ;;  %2974 = vmatpush.msrb.mxu3 %v2869_v17 }
 0x568   :  { %3067 = vmatpush.msra.mxu2 %v6349_v31  ;;  %3264 = vmatpush.msrb.mxu1 %v2866_v24  ;;  %v7410_v31 = vld [vmem:[#allocation87_spill] sm:$0xff] }
 0x569   :  { %2975 = vmatpush.msrb.mxu3 %v2866_v24 }
 0x56a   :  { %3068 = vmatpush.msra.mxu2 %v6354_v32  ;;  %2976 = vmatmul.f32.vlgmr.msrb.gmra.mxu3 %v7409_v63  ;;  %v7411_v32 = vld [vmem:[#allocation90_spill] sm:$0xff] }
 0x56b   :  { %3149 = vmatpush.msra.mxu3 %v6461_v45 }
 0x56c   :  { %3069 = vmatpush.msra.mxu2 %v6363_v36  ;;  %v7412_v36 = vld [vmem:[#allocation88_spill] sm:$0xff] }
 0x56d   :  { %3150 = vmatpush.msra.mxu3 %v6466_v46 }
 0x56e   :  { %3070 = vmatpush.msra.mxu2 %v6372_v38  ;;  %v7413_v38 = vld [vmem:[#allocation91_spill] sm:$0xff] }
 0x56f   :  { %3151 = vmatpush.msra.mxu3 %v6475_v48 }
 0x570   :  { %3071 = vmatpush.msra.mxu2 %v6379_v40  ;;  %v7414_v40 = vld [vmem:[#allocation89_spill] sm:$0xff] }
 0x571   :  { %3152 = vmatpush.msra.mxu3 %v6487_v8 }
 0x572   :  { %3072 = vmatpush.msra.mxu2 %v6387_v43 }
 0x573   :  { %3153 = vmatpush.msra.mxu3 %v6496_v53 }
 0x574   :  { %3073 = vmatpush.msra.mxu2 %v6394_v49  ;;  %v7034_v49 = vld [vmem:[%s7416_s11] sm:$0x7] }
 0x575   :  { %3154 = vmatpush.msra.mxu3 %v6507_v56 }
 0x576   :  { %3074 = vmatpush.msra.mxu2 %v6401_v26  ;;  %v7039_v26 = vld [vmem:[%s7417_s24] sm:$0x7] }
 0x577   :  { %3155 = vmatpush.msra.mxu3 %v6526_v60 }
 0x578   :  { %3075 = vmatpush.msra.mxu2 %v6408_v3  ;;  %v2798_v3 = vperm.slane %v7034_v49, 0 }
 0x579   :  { %3156 = vmatpush.msra.mxu3 %v6535_v62  ;;  %v7421_v62 = vld [vmem:[#allocation84_spill] sm:$0xff] }
 0x57a   :  { %3076 = vmatpush.msra.mxu2 %v6415_v9  ;;  %v2914_v9 = vperm.slane %v7039_v26, 0 }
 0x57b   :  { %3157 = vmatpush.msra.mxu3 %v6546_v4 }
 0x57c   :  { %3077 = vmatpush.msra.mxu2 %v6422_v34 }
 0x57d   :  { %3158 = vmatpush.msra.mxu3 %v6552_v6 }
 0x57e   :  { %3078 = vmatpush.msra.mxu2 %v6428_v47 }
 0x57f   :  { %3159 = vmatpush.msra.mxu3 %v6562_v11 }
 0x580   :  { %3079 = vmatpush.msra.mxu2 %v6434_v25 }
 0x581   :  { %3160 = vmatpush.msra.mxu3 %v6569_v14 }
 0x582   :  { %3080 = vmatpush.msra.mxu2 %v6440_v44 }
 0x583   :  { %3161 = vmatpush.msra.mxu3 %v6584_v20 }
 0x584   :  { %3081 = vmatpush.msra.mxu2 %v6446_v52 }
 0x585   :  { %3162 = vmatpush.msra.mxu3 %v6593_v22  ;;  %v7422_v22 = vld [vmem:[#allocation85_spill] sm:$0xff] }
 0x586   :  { %3082 = vmatpush.msra.mxu2 %v6452_v39  ;;  %v7418_v39 = vld [vmem:[#allocation83_spill] sm:$0xff] }
 0x587   :  { %3083 = vmatmul.f32.vlgmr.msra.gmra.mxu2 %v6793_v1  ;;  %3163 = vmatpush.msra.mxu3 %v6603_v57  ;;  %v7419_v45 = vperm.slane %v7418_v39, 0 }
 0x588   :  { %3209 = vmatpush.msrb.mxu2 %v6656_v16 }
 0x589   :  { %3164 = vmatpush.msra.mxu3 %v6623_v55  ;;  %v2915_v55 = vperm.slane %v7039_v26, 1 }
 0x58a   :  { %3210 = vmatpush.msrb.mxu2 %v6668_v29 }
 0x58b   :  { %3229 = vmatpush.msrb.mxu3 %v6799_v12 }
 0x58c   :  { %3211 = vmatpush.msrb.mxu2 %v6688_v51 }
 0x58d   :  { %3230 = vmatpush.msrb.mxu3 %v6811_v35 }
 0x58e   :  { %3212 = vmatpush.msrb.mxu2 %v6700_v61 }
 0x58f   :  { %3231 = vmatpush.msrb.mxu3 %v6825_v18 }
 0x590   :  { %3213 = vmatpush.msrb.mxu2 %v6710_v5 }
 0x591   :  { %3232 = vmatpush.msrb.mxu3 %v6840_v33 }
 0x592   :  { %3214 = vmatpush.msrb.mxu2 %v6719_v58 }
 0x593   :  { %3233 = vmatpush.msrb.mxu3 %v6850_v10 }
 0x594   :  { %3215 = vmatpush.msrb.mxu2 %v6731_v27 }
 0x595   :  { %3234 = vmatpush.msrb.mxu3 %v6858_v21 }
 0x596   :  { %3216 = vmatpush.msrb.mxu2 %v6742_v13 }
 0x597   :  { %3235 = vmatpush.msrb.mxu3 %v6867_v54 }
 0x598   :  { %3217 = vmatpush.msrb.mxu2 %v6752_v28 }
 0x599   :  { %3236 = vmatpush.msrb.mxu3 %v6876_v41  ;;  %v7415_v41 = vld [vmem:[#allocation92_spill] sm:$0xff] }
 0x59a   :  { %3218 = vmatpush.msrb.mxu2 %v6762_v2 }
 0x59b   :  { %3237 = vmatpush.msrb.mxu3 %v6885_v19 }
 0x59c   :  { %3219 = vmatpush.msrb.mxu2 %v6772_v30 }
 0x59d   :  { %3238 = vmatpush.msrb.mxu3 %v6894_v37  ;;  %v2799_v37 = vperm.slane %v7034_v49, 1 }
 0x59e   :  { %3220 = vmatpush.msrb.mxu2 %v6781_v50 }
 0x59f   :  { %3239 = vmatpush.msrb.mxu3 %v6903_v7 }
 0x5a0   :  { %3221 = vmatpush.msrb.mxu2 %v6790_v42 }
 0x5a1   :  { %3240 = vmatpush.msrb.mxu3 %v7411_v32 }
 0x5a2   :  { %3222 = vmatpush.msrb.mxu2 %v7410_v31  ;;  %v2800_v31 = vperm.slane %v7034_v49, 2 }
 0x5a3   :  { %3241 = vmatpush.msrb.mxu3 %v7413_v38 }
 0x5a4   :  { %3223 = vmatpush.msrb.mxu2 %v7412_v36 }
 0x5a5   :  { %3242 = vmatpush.msrb.mxu3 %v7415_v41 }
 0x5a6   :  { %3224 = vmatpush.msrb.mxu2 %v7414_v40 }
 0x5a7   :  { %3243 = vmatpush.msrb.mxu3 %v6939_v23  ;;  %v2916_v23 = vperm.slane %v7039_v26, 2 }
 0x5a9   :  { %3244 = vmatpush.msrb.mxu3 %v6948_v59  ;;  %v7420_v59 = vperm.slane %v7418_v39, 1 }
 0x5c5   :  { %v3044_v47 = vpop.f32.mrf.mxu1 }
 0x5c6   :  { %v3045_v46 = vadd.f32 %v3044_v47, %v7419_v45  ;;  %v3064_v56 = vpop.f32.mrf.mxu0 }
 0x5c7   :  { %v3065_v60 = vadd.f32 %v3064_v56, %v7420_v59 }
 0x5c8   :  { %v3088_v53 = vrot.slane %v3045_v46, 4 }
 0x5c9   :  { %v3111_v7 = vrot.slane %v3065_v60, 4 }
 0x5ca   :  { %v2841_v43 = vpop.f32.mrf.mxu3  ;;  %v2821_v34 = vpop.f32.mrf.mxu2  ;;  %v3090_v4 = vadd.f32 %v3088_v53, %v7421_v62 }
 0x5cb   :  { %v2822_v44 = vadd.f32 %v2821_v34, %v2798_v3  ;;  %v3113_v57 = vadd.f32 %v3111_v7, %v7422_v22  ;;  %v2842_v5 = vadd.f32 %v2841_v43, %v2799_v37 }
 0x5cc   :  { %v3811_v14 = vmul.f32 -1.442695, %v3090_v4 }
 0x5cd   :  { %v3812_v21 = vmul.f32 -1.442695, %v3113_v57 }
 0x5d2   :  { %v2937_v25 = vpop.f32.mrf.mxu3  ;;  %v2861_v20 = vpop.f32.mrf.mxu2 }
 0x5d3   :  { %v2938_v52 = vadd.f32 %v2937_v25, %v2914_v9  ;;  %v2862_v41 = vadd.f32 %v2861_v20, %v2800_v31 }
 0x5d5   :  { %v2980_v48 = vadd.f32 %v2938_v52, %v2822_v44 }
 0x5d7   :  { %v3809_v8 = vmul.f32 -1.442695, %v2980_v48 }
 0x5d9   :  { %3832 = vpow2.f32 %v3809_v8 }
 0x5df   :  { %v3833_v6 = vpop.eup %3832 }
 0x5e0   :  { %v2984_v11 = vadd.f32 1.0, %v3833_v6 }
 0x5e2   :  { %3834 = vrcp.f32 %v2984_v11  ;;  %v2996_v12 = vand.u32 2147483648, %v2984_v11  ;;  %vm2990_vm13 = vweird.f32 %v2984_v11  ;;  %v2994_v35 = vand.u32 2147483647, %v2984_v11 }
 0x5e3   :  { %3836 = vpow2.f32 %v3811_v14  ;;  %v7423_v14 = vperm.slane %v7418_v39, 2 }
 0x5e4   :  { %3838 = vpow2.f32 %v3812_v21  ;;  %v2997_v54 = vor.u32 1.1754944e-38, %v2996_v12  ;;  %vm2995_vm15 = vcmp.eq.f32.partialorder %v2994_v35, 8.507059e+37  ;;  %v3142_v35 = vrot.slane %v6793_v1, 4 }
 0x5e8   :  { %v3835_v16 = vpop.eup %3834 }
 0x5e9   :  { %v2986_v29 = vmul.f32 %v3835_v16, %v2984_v11  ;;  %v3837_v61 = vpop.eup %3836  ;;  %vm2991_vm12 = vweird.f32 %v3835_v16 }
 0x5ea   :  { %v2957_v51 = vpop.f32.mrf.mxu2  ;;  %v7059_v13 = vadd.f32 1.0, %v3837_v61  ;;  %v3839_v30 = vpop.eup %3838  ;;  %vm2992_vm14 = vmor %vm2990_vm13, %vm2991_vm12 }
 0x5eb   :  { %v2958_v58 = vadd.f32 %v2957_v51, %v2915_v55  ;;  %v2987_v19 = vsub.f32 1.0, %v2986_v29  ;;  %v7062_v42 = vadd.f32 1.0, %v3839_v30 }
 0x5ec   :  { %v3106_v59 = vand.u32 2147483648, %v7059_v13  ;;  %vm3100_vm5 = vweird.f32 %v7059_v13  ;;  %v3104_v62 = vand.u32 2147483647, %v7059_v13 }
 0x5ed   :  { %v3000_v27 = vadd.f32 %v2958_v58, %v2842_v5  ;;  %v2988_v2 = vmul.f32 %v3835_v16, %v2987_v19  ;;  %v2977_v18 = vpop.f32.mrf.mxu3  ;;  %vm3123_vm9 = vweird.f32 %v7062_v42  ;;  %v3127_v39 = vand.u32 2147483647, %v7062_v42 }
 0x5ee   :  { %v2978_v0 = vadd.f32 %v2977_v18, %v2916_v23  ;;  %vm3105_vm7 = vcmp.eq.f32.partialorder %v3104_v62, 8.507059e+37 }
 0x5ef   :  { %v3810_v28 = vmul.f32 -1.442695, %v3000_v27  ;;  %v2989_v50 = vadd.f32 %v3835_v16, %v2988_v2  ;;  %v3129_v27 = vand.u32 2147483648, %v7062_v42  ;;  %vm3128_vm11 = vcmp.eq.f32.partialorder %v3127_v39, 8.507059e+37 }
 0x5f1   :  { %3840 = vpow2.f32 %v3810_v28  ;;  %v2993_v10 = vsel %vm2992_vm14, %v3835_v16, %v2989_v50  ;;  %v3107_v16 = vor.u32 1.1754944e-38, %v3106_v59  ;;  %v3130_v30 = vor.u32 1.1754944e-38, %v3129_v27 }
 0x5f2   :  { %3842 = vrcp.f32 %v7059_v13  ;;  %v2998_v63 = vsel %vm2995_vm15, %v2997_v54, %v2993_v10 }
 0x5f3   :  { %3844 = vrcp.f32 %v7062_v42  ;;  %v3020_v32 = vmul.f32 %v2998_v63, %v2978_v0 }
 0x5f5   :  { %v3021_v47 = vadd.f32 %v3020_v32, %v2862_v41  ;;  %v3336_v32 = vld [vmem:[%s7425_s23 + $0x78] sm:$0xff] }
 0x5f6   :  { %3341 = vmatpush.msrb.mxu0 %v3336_v32 }
 0x5f7   :  { %v3841_v17 = vpop.eup %3840 }
 0x5f8   :  { %v3843_v15 = vpop.eup %3842  ;;  %v3004_v33 = vadd.f32 1.0, %v3841_v17 }
 0x5f9   :  { %v3096_v24 = vmul.f32 %v3843_v15, %v7059_v13  ;;  %v3845_v36 = vpop.eup %3844  ;;  %vm3101_vm1 = vweird.f32 %v3843_v15  ;;  %v7424_v13 = vld [vmem:[#allocation86_spill] sm:$0xff] }
 0x5fa   :  { %3846 = vrcp.f32 %v3004_v33  ;;  %v3119_v34 = vmul.f32 %v3845_v36, %v7062_v42  ;;  %v3016_v52 = vand.u32 2147483648, %v3004_v33  ;;  %v3014_v46 = vand.u32 2147483647, %v3004_v33  ;;  %vm3102_vm6 = vmor %vm3100_vm5, %vm3101_vm1 }
 0x5fb   :  { %v3097_v38 = vsub.f32 1.0, %v3096_v24  ;;  %3848 = vtanh.f32 %v3021_v47  ;;  %vm3010_vm2 = vweird.f32 %v3004_v33  ;;  %vm3124_vm8 = vweird.f32 %v3845_v36  ;;  %v3332_v47 = vld [vmem:[%s7425_s23 + $0x58] sm:$0xff] }
 0x5fc   :  { %v3120_v48 = vsub.f32 1.0, %v3119_v34  ;;  %v3017_v56 = vor.u32 1.1754944e-38, %v3016_v52  ;;  %vm3015_vm4 = vcmp.eq.f32.partialorder %v3014_v46, 8.507059e+37  ;;  %vm3125_vm10 = vmor %vm3123_vm9, %vm3124_vm8  ;;  %v3328_v46 = vld [vmem:[%s7425_s23 + $0x38] sm:$0xff]  ;;  %vm3361_vm5 = vcmask 35840  }
 0x5fd   :  { %v3098_v44 = vmul.f32 %v3843_v15, %v3097_v38 }
 0x5fe   :  { %v3121_v7 = vmul.f32 %v3845_v36, %v3120_v48 }
 0x5ff   :  { %v3099_v53 = vadd.f32 %v3843_v15, %v3098_v44 }
 0x600   :  { %v3847_v40 = vpop.eup %3846  ;;  %v3122_v5 = vadd.f32 %v3845_v36, %v3121_v7 }
 0x601   :  { %v3006_v43 = vmul.f32 %v3847_v40, %v3004_v33  ;;  %vm3011_vm0 = vweird.f32 %v3847_v40  ;;  %v3103_v22 = vsel %vm3102_vm6, %v3843_v15, %v3099_v53  ;;  %v3849_v57 = vpop.eup %3848  ;;  %vm3381_vm6 = vcmask 1040384  }
 0x602   :  { %vm3012_vm3 = vmor %vm3010_vm2, %vm3011_vm0  ;;  %v3108_v61 = vsel %vm3105_vm7, %v3107_v16, %v3103_v22  ;;  %v3126_v2 = vsel %vm3125_vm10, %v3845_v36, %v3122_v5  ;;  %v3335_v36 = vld [vmem:[%s7425_s23 + $0x70] sm:$0xff]  ;;  %vm3383_vm7 = vcmask 33792  }
 0x603   :  { %v3007_v25 = vsub.f32 1.0, %v3006_v43  ;;  %v3131_v50 = vsel %vm3128_vm11, %v3130_v30, %v3126_v2  ;;  %3342 = vmatpush.msrb.mxu0 %v3335_v36  ;;  %v3333_v43 = vld [vmem:[%s7425_s23 + $0x60] sm:$0xff] }
 0x604   :  { %v3139_v12 = vsub.f32 1.0, %v3131_v50  ;;  %v3144_v15 = vmul.f32 %v3142_v35, %v3131_v50  ;;  %v3321_v2 = vld [vmem:[%s7425_s23] sm:$0xff] }
 0x605   :  { %v3008_v45 = vmul.f32 %v3847_v40, %v3007_v25 }
 0x607   :  { %v3009_v8 = vadd.f32 %v3847_v40, %v3008_v45  ;;  %v3329_v45 = vld [vmem:[%s7425_s23 + $0x40] sm:$0xff] }
 0x609   :  { %v3013_v60 = vsel %vm3012_vm3, %v3847_v40, %v3009_v8  ;;  %v3327_v8 = vld [vmem:[%s7425_s23 + $0x30] sm:$0xff] }
 0x60a   :  { %v3018_v4 = vsel %vm3015_vm4, %v3017_v56, %v3013_v60  ;;  %v3084_v6 = vpop.f32.mrf.mxu2  ;;  %v3326_v60 = vld [vmem:[%s7425_s23 + $0x28] sm:$0xff]  ;;  %vm3319_vm4 = vcmask 1043456  }
 0x60b   :  { %v3023_v11 = vsub.f32 1.0, %v3018_v4  ;;  %v3085_v20 = vadd.f32 %v3084_v6, %v7423_v14  ;;  %v3025_v51 = vmul.f32 0.0, %v3018_v4  ;;  %v3325_v4 = vld [vmem:[%s7425_s23 + $0x20] sm:$0xff]  ;;  %v3324_v14 = vld [vmem:[%s7425_s23 + $0x18] sm:$0xff] }
 0x60d   :  { %v3024_v21 = vmul.f32 %v3849_v57, %v3023_v11  ;;  %v3134_v29 = vrot.slane %v3085_v20, 4  ;;  %v3323_v57 = vld [vmem:[%s7425_s23 + $0x10] sm:$0xff] }
 0x60f   :  { %v3136_v58 = vmul.f32 %v3134_v29, %v3108_v61  ;;  %v7078_v19 = vadd.f32 %v3025_v51, %v3024_v21 }
 0x611   :  { %v3137_v28 = vadd.f32 %v3136_v58, %v7424_v13  ;;  %3225 = vmatmul.f32.vlgmr.msrb.gmra.mxu2 %v7078_v19  ;;  %v3322_v58 = vld [vmem:[%s7425_s23 + $0x8] sm:$0xff] }
 0x613   :  { %3850 = vtanh.f32 %v3137_v28 }
 0x619   :  { %v3851_v17 = vpop.eup %3850 }
 0x61a   :  { %v3140_v18 = vmul.f32 %v3851_v17, %v3139_v12 }
 0x61c   :  { %v3145_v33 = vadd.f32 %v3144_v15, %v3140_v18 }
 0x61e   :  { %v3147_v10 = vrot.slane %v3145_v33, 4 }
 0x620   :  { %3165 = vmatmul.f32.vlgmr.msra.gmra.mxu3 %v3147_v10  ;;  %3185 = vmatmul.f32.vlgmr.msra.gmra.mxu1 %v3147_v10 }
 0x621   :  { %3205 = vmatmul.f32.vlgmr.msra.gmra.mxu0 %v3147_v10 }
 0x628   :  { %3245 = vmatmul.f32.vlgmr.msrb.gmra.mxu3 %v7078_v19  ;;  %3265 = vmatmul.f32.vlgmr.msrb.gmra.mxu1 %v7078_v19 }
 0x694   :  { %v3226_v42 = vpop.f32.mrf.mxu2 }
 0x695   :  { %v3227_v0 = vadd.f32 %v3226_v42, %v2914_v9  ;;  %v3334_v9 = vld [vmem:[%s7425_s23 + $0x68] sm:$0xff] }
 0x696   :  { %3343 = vmatpush.msrb.mxu0 %v3334_v9 }
 0x698   :  { %3344 = vmatpush.msrb.mxu0 %v3333_v43 }
 0x69a   :  { %3345 = vmatpush.msrb.mxu0 %v3332_v47 }
 0x69d   :  { %v3186_v38 = vpop.f32.mrf.mxu1 }
 0x69e   :  { %v3206_v21 = vpop.f32.mrf.mxu0 }
 0x69f   :  { %v3207_v39 = vadd.f32 %v3206_v21, %v2800_v31 }
 0x6a3   :  { %v3166_v54 = vpop.f32.mrf.mxu3 }
 0x6a4   :  { %v3167_v1 = vadd.f32 %v3166_v54, %v2798_v3  ;;  %v3187_v3 = vadd.f32 %v3186_v38, %v2799_v37  ;;  %v3331_v37 = vld [vmem:[%s7425_s23 + $0x50] sm:$0xff] }
 0x6a5   :  { %3346 = vmatpush.msrb.mxu0 %v3331_v37  ;;  %v3266_v20 = vpop.f32.mrf.mxu1 }
 0x6a6   :  { %v3269_v63 = vadd.f32 %v3227_v0, %v3167_v1  ;;  %v3267_v51 = vadd.f32 %v3266_v20, %v2916_v23  ;;  %v3821_v0 = vld [vmem:[%s7426_s22] ss:$0 sm:$0xff] }
 0x6a8   :  { %v3813_v24 = vmul.f32 -1.442695, %v3269_v63 }
 0x6aa   :  { %3852 = vpow2.f32 %v3813_v24 }
 0x6ab   :  { %v3246_v40 = vpop.f32.mrf.mxu3 }
 0x6ac   :  { %v3247_v41 = vadd.f32 %v3246_v40, %v2915_v55  ;;  %v3330_v55 = vld [vmem:[%s7425_s23 + $0x48] sm:$0xff] }
 0x6ad   :  { %3347 = vmatpush.msrb.mxu0 %v3330_v55 }
 0x6ae   :  { %v3289_v34 = vadd.f32 %v3247_v41, %v3187_v3 }
 0x6af   :  { %3348 = vmatpush.msrb.mxu0 %v3329_v45 }
 0x6b0   :  { %v3853_v25 = vpop.eup %3852  ;;  %v3814_v44 = vmul.f32 -1.442695, %v3289_v34 }
 0x6b1   :  { %v3273_v52 = vadd.f32 1.0, %v3853_v25  ;;  %3349 = vmatpush.msrb.mxu0 %v3328_v46 }
 0x6b2   :  { %3854 = vpow2.f32 %v3814_v44 }
 0x6b3   :  { %3856 = vrcp.f32 %v3273_v52  ;;  %3350 = vmatpush.msrb.mxu0 %v3327_v8  ;;  %v3285_v6 = vand.u32 2147483648, %v3273_v52  ;;  %v3283_v11 = vand.u32 2147483647, %v3273_v52  ;;  %vm3279_vm13 = vweird.f32 %v3273_v52 }
 0x6b5   :  { %3351 = vmatpush.msrb.mxu0 %v3326_v60  ;;  %v3286_v29 = vor.u32 1.1754944e-38, %v3285_v6  ;;  %vm3284_vm15 = vcmp.eq.f32.partialorder %v3283_v11, 8.507059e+37 }
 0x6b7   :  { %3352 = vmatpush.msrb.mxu0 %v3325_v4 }
 0x6b8   :  { %v3855_v48 = vpop.eup %3854 }
 0x6b9   :  { %v3857_v53 = vpop.eup %3856  ;;  %v3293_v56 = vadd.f32 1.0, %v3855_v48  ;;  %3353 = vmatpush.msrb.mxu0 %v3324_v14 }
 0x6ba   :  { %v3275_v59 = vmul.f32 %v3857_v53, %v3273_v52  ;;  %vm3280_vm12 = vweird.f32 %v3857_v53 }
 0x6bb   :  { %3858 = vrcp.f32 %v3293_v56  ;;  %vm3281_vm14 = vmor %vm3279_vm13, %vm3280_vm12  ;;  %3354 = vmatpush.msrb.mxu0 %v3323_v57  ;;  %v3305_v26 = vand.u32 2147483648, %v3293_v56  ;;  %v3303_v50 = vand.u32 2147483647, %v3293_v56  ;;  %vm3299_vm2 = vweird.f32 %v3293_v56 }
 0x6bc   :  { %v3276_v62 = vsub.f32 1.0, %v3275_v59 }
 0x6bd   :  { %3355 = vmatpush.msrb.mxu0 %v3322_v58  ;;  %v3306_v35 = vor.u32 1.1754944e-38, %v3305_v26  ;;  %vm3304_vm3 = vcmp.eq.f32.partialorder %v3303_v50, 8.507059e+37 }
 0x6be   :  { %v3277_v7 = vmul.f32 %v3857_v53, %v3276_v62 }
 0x6bf   :  { %3356 = vmatpush.msrb.mxu0 %v3321_v2 }
 0x6c0   :  { %v3278_v22 = vadd.f32 %v3857_v53, %v3277_v7 }
 0x6c1   :  { %v3859_v16 = vpop.eup %3858 }
 0x6c2   :  { %v3282_v61 = vsel %vm3281_vm14, %v3857_v53, %v3278_v22  ;;  %v3295_v5 = vmul.f32 %v3859_v16, %v3293_v56  ;;  %vm3300_vm0 = vweird.f32 %v3859_v16 }
 0x6c3   :  { %v3287_v27 = vsel %vm3284_vm15, %v3286_v29, %v3282_v61  ;;  %vm3301_vm1 = vmor %vm3299_vm2, %vm3300_vm0 }
 0x6c4   :  { %v3309_v13 = vmul.f32 %v3287_v27, %v3267_v51  ;;  %v3296_v28 = vsub.f32 1.0, %v3295_v5 }
 0x6c6   :  { %v3310_v23 = vadd.f32 %v3309_v13, %v3207_v39  ;;  %v3297_v30 = vmul.f32 %v3859_v16, %v3296_v28 }
 0x6c8   :  { %3860 = vtanh.f32 %v3310_v23  ;;  %v3298_v12 = vadd.f32 %v3859_v16, %v3297_v30 }
 0x6ca   :  { %v3302_v49 = vsel %vm3301_vm1, %v3859_v16, %v3298_v12 }
 0x6cb   :  { %v3307_v31 = vsel %vm3304_vm3, %v3306_v35, %v3302_v49 }
 0x6cc   :  { %v3312_v17 = vsub.f32 1.0, %v3307_v31  ;;  %v3314_v33 = vmul.f32 %v3307_v31, %v7078_v19 }
 0x6ce   :  { %v3861_v18 = vpop.eup %3860 }
 0x6cf   :  { %v3313_v15 = vmul.f32 %v3861_v18, %v3312_v17 }
 0x6d1   :  { %v3315_v10 = vadd.f32 %v3314_v33, %v3313_v15 }
 0x6d3   :  { %v3317_v42 = vrot.slane %v3315_v10, 4 }
 0x6d5   :  { %v3320_v54 = vsel %vm3319_vm4, %v7078_v19, %v3317_v42 }
 0x6d6   :  { %3357 = vmatmul.f32.vlgmr.msrb.gmra.mxu0 %v3320_v54 }
 0x753   :  { %v3358_v1 = vpop.f32.mrf.mxu0 }
 0x754   :  { %v3359_v63 = vadd.f32 %v3821_v0, %v3358_v1 }
 0x756   :  { %v3362_v24 = vsel %vm3361_vm5, %v3359_v63, 0.0  ;;  %v3371_v32 = vrot.slane %v3359_v63, 4  ;;  %v3385_v36 = vrot.slane %v3359_v63, 3  ;;  %v3387_v19 = vrot.slane %v3359_v63, 6 }
 0x757   :  { %v3363_v38 = vrot.slane %v3362_v24, 4 }
 0x758   :  { %v3373_v9 = vsel %vm3361_vm5, %v3371_v32, 0.0  ;;  %v3389_v40 = vsel %vm3381_vm6, %v3385_v36, %v3387_v19 }
 0x759   :  { %v3364_v3 = vadd.f32 %v3363_v38, %v3362_v24  ;;  %v3374_v41 = vrot.slane %v3373_v9, 4  ;;  %3390 = vst.msk [vmem:[#allocation8] sm:$0x3] %vm3383_vm7, %v3389_v40 }
 0x75a   :  { %3412 = dma.vmem_to_hbm [thread:$0]  %s3408_s9, 32, %s3410_s29, [#allocation9]  }
 0x75b   :  { %v3365_v43 = vrot.slane %v3364_v3, 2  ;;  %v3375_v34 = vadd.f32 %v3374_v41, %v3373_v9 }
 0x75d   :  { %v3366_v47 = vadd.f32 %v3365_v43, %v3364_v3  ;;  %v3376_v25 = vrot.slane %v3375_v34, 2 }
 0x75f   :  { %v3367_v44 = vrot.slane %v3366_v47, 1  ;;  %v3377_v37 = vadd.f32 %v3376_v25, %v3375_v34 }
 0x761   :  { %v3368_v52 = vadd.f32 %v3367_v44, %v3366_v47  ;;  %v3378_v55 = vrot.slane %v3377_v37, 1 }
 0x763   :  { %v3379_v45 = vadd.f32 %v3378_v55, %v3377_v37  ;;  %v3369_v46 = vmul.f32 0.25, %v3368_v52 }
 0x765   :  { %v3380_v48 = vmul.f32 0.25, %v3379_v45 }
 0x767   :  { %v3382_v8 = vsel %vm3381_vm6, %v3369_v46, %v3380_v48 }
 0x768   :  { %3384 = vst.msk [vmem:[#allocation6] sm:$0x3] %vm3383_vm7, %v3382_v8 }
 0x769   :  { %3401 = dma.vmem_to_hbm [thread:$0]  %s3397_s0, 32, %s3399_s13, [#allocation7]  }
 0x76a   :  { %3928 = dma.done.wait [#allocation7], 32  }
 0x76b   :  { %3929 = vsyncadd [#allocation7], 4294967264 }
 0x76c   :  { %3930 = dma.done.wait [#allocation9], 32  }
 0x76d   :  { %3931 = vsyncadd [#allocation9], 4294967264 }
 0x76e   :  { %3421 = vsyncpa [#allocation7], 1 }
 0x76f   :  { %3422 = vsyncpa [#allocation9], 1 }

</bundles_post_ra>
